<compile_context>
chip_gen: v7x
topology: tpu7x:2x2x1
jax: 0.10.0
libtpu: 0.0.40
codegen_flags: <defaults>
</compile_context>

<pallas_src>
import functools

import jax
import jax.numpy as jnp
import numpy as np
from jax.experimental import pallas as pl
from jax.experimental.pallas import tpu as pltpu

EPS = 1e-5          # nn.BatchNorm2d default eps
SLOPE = 0.01        # nn.LeakyReLU default negative_slope
LANE = 128          # TPU lane width (channel padding granularity)
STATS_TILE_M = 1024  # 1024-row tiles ~86% of HBM roofline for the reduction


def _round_up(x, m):
    return (x + m - 1) // m * m


def _leaky(y):
    return jnp.where(y >= 0, y, SLOPE * y)


def _row_col(r, wp):
    """Exact integer-valued (row, col) f32 vectors for flat indices 0..r-1.

    row = idx // wp, col = idx % wp, computed with float divide + floor so no
    vector integer division is needed (the +0.5 offset keeps the quotient well
    clear of integer boundaries for any realistic image size).
    """
    ri = jax.lax.broadcasted_iota(jnp.int32, (r, 1), 0).astype(jnp.float32)
    row = jnp.floor((ri + 0.5) / wp)
    col = ri - row * wp
    return row, col


# ---------------------------------------------------------------------------
# Kernel 1: per-channel batch statistics (sum, sum of squares).
# Tiled over M; the [2, C] output block is revisited on every grid step and
# used as an accumulator (grid axis marked "arbitrary", pl.when init).
# ---------------------------------------------------------------------------
def bn_stats_kernel(x_ref, o_ref):
    @pl.when(pl.program_id(0) == 0)
    def _init():
        o_ref[...] = jnp.zeros_like(o_ref)

    x = x_ref[...]
    s = jnp.sum(x, axis=0, keepdims=True)
    ss = jnp.sum(x * x, axis=0, keepdims=True)
    o_ref[...] = o_ref[...] + jnp.concatenate([s, ss], axis=0)


def _bn_batch_stats(x2d, n_valid):
    """x2d: [M, Cp] f32 (extra rows, if any, must be zero). Returns (mean, var)."""
    m, cp = x2d.shape
    tile = min(STATS_TILE_M, _round_up(m, 8))
    mp = _round_up(m, tile)
    if mp != m:
        x2d = jnp.pad(x2d, ((0, mp - m), (0, 0)))  # zero rows: no effect on sums
    stats = pl.pallas_call(
        bn_stats_kernel,
        out_shape=jax.ShapeDtypeStruct((2, cp), jnp.float32),
        grid=(mp // tile,),
        in_specs=[pl.BlockSpec((tile, cp), lambda i: (i, 0))],
        out_specs=pl.BlockSpec((2, cp), lambda i: (0, 0)),
        compiler_params=pltpu.CompilerParams(
            dimension_semantics=("arbitrary",),
            vmem_limit_bytes=32 << 20),
    )(x2d)
    mean = stats[0] / n_valid
    # TODO(synk): E[x^2]-E[x]^2 in f32 can cancel for badly-centred activations;
    # use a shifted/Welford accumulation if this ever feeds long training runs.
    var = stats[1] / n_valid - mean * mean   # biased variance (training-mode BN)
    return mean, var


# ---------------------------------------------------------------------------
# Kernel 2: fused  (BN affine + LeakyReLU)  ->  3x3 stride-1 conv as 9 shifted
# MXU dots  ->  (+ identity / projection residual)  [-> bn2 partial stats].
#
# Layouts (per image, spatial flattened so channels sit on the lane dim):
#   input  "extended padded flat":  [(H+6)*(W+2), Cin_p]  (zero margin so every
#            shifted slice is a static, contiguous, in-bounds row window)
#   output "standard padded flat":  [(H+2)*(W+2), Cout_p] (1-pixel zero halo),
#            or, when ext_out=True, the extended layout directly (rows shifted
#            by 2*(W+2)) so the next conv can consume it with no re-pad.
# ---------------------------------------------------------------------------
def _make_conv_kernel(hin, win, residual, emit_stats, stats_stride, ext_out):
    wp = win + 2
    r_ext = (hin + 6) * wp
    r_std = (hin + 2) * wp

    def kernel(*refs):
        it = iter(refs)
        xe_ref = next(it)
        w_ref = next(it)
        sc_ref = next(it)
        sh_ref = next(it)
        res_ref = rsc_ref = rsh_ref = ws_ref = None
        if residual == "identity":
            res_ref = next(it)
        elif residual == "project":
            res_ref = next(it)
            rsc_ref = next(it)
            rsh_ref = next(it)
            ws_ref = next(it)
        y_ref = next(it)
        st_ref = next(it) if emit_stats else None

        # Interior masks from in-kernel row/col indices (no mask DMA streams,
        # no lane-padded (r,1) mask buffers).  Cheap VPU work hidden under MXU.
        he, we = _row_col(r_ext, wp)
        in_mask = (he > 2.5) & (he < hin + 2.5) & (we > 0.5) & (we < win + 0.5)
        hp, wq = _row_col(r_std, wp)
        out_mask = (hp > 0.5) & (hp < hin + 0.5) & (wq > 0.5) & (wq < win + 0.5)

        # Fused BN affine + LeakyReLU on the conv input (f32 on the VPU); the
        # halo is re-zeroed (affine of 0 is not 0).  ONE bf16 down-cast -- the
        # 9 taps below slice the already-bf16 activation.
        a = xe_ref[0].astype(jnp.float32)
        a = jnp.where(in_mask, _leaky(a * sc_ref[...] + sh_ref[...]), 0.0)
        a = a.astype(jnp.bfloat16)

        cout_p = w_ref.shape[2]
        acc = jnp.zeros((r_std, cout_p), jnp.float32)
        base = 2 * wp
        for kh in range(3):
            for kw in range(3):
                off = base + (kh - 1) * wp + (kw - 1)
                # TODO(synk): the +-1 / +-wp shifted slices could use pltpu.roll
                # (XLU slot) with wp padded to a multiple of 8.
                acc = acc + jnp.dot(a[off:off + r_std, :], w_ref[kh * 3 + kw],
                                    preferred_element_type=jnp.float32)
        y = jnp.where(out_mask, acc, 0.0)   # kill output-halo wrap garbage

        if residual == "identity":
            y = y + res_ref[0].astype(jnp.float32)
        elif residual == "project":
            # 1x1 projection shortcut on lrelu(bn1(x)), fused into this pass.
            r = res_ref[0].astype(jnp.float32)
            r = jnp.where(out_mask, _leaky(r * rsc_ref[...] + rsh_ref[...]), 0.0)
            y = y + jnp.dot(r.astype(jnp.bfloat16), ws_ref[...],
                            preferred_element_type=jnp.float32)

        if emit_stats:
            ys = y
            if stats_stride > 1:
                # bn2 statistics on the *subsampled* positions only, fused here
                # so no separate stats pass / extra HBM read of y1 is needed.
                hs = hp - 1.0
                vs = wq - 1.0
                qh = jnp.floor((hs + 0.5) / stats_stride)
                qw = jnp.floor((vs + 0.5) / stats_stride)
                smask = (out_mask
                         & (jnp.abs(hs - qh * stats_stride) < 0.5)
                         & (jnp.abs(vs - qw * stats_stride) < 0.5))
                ys = jnp.where(smask, y, 0.0)
            st_ref[0] = jnp.concatenate(
                [jnp.sum(ys, axis=0, keepdims=True),
                 jnp.sum(ys * ys, axis=0, keepdims=True)], axis=0)

        yo = y.astype(y_ref.dtype)
        if ext_out:
            # Emit directly in the extended padded-flat layout consumed by the
            # next conv: zero 2*wp margin rows, conv result shifted by 2*wp.
            pad = 2 * wp
            zeros = jnp.zeros((pad, cout_p), y_ref.dtype)
            y_ref[0, :pad, :] = zeros
            y_ref[0, pad:pad + r_std, :] = yo
            y_ref[0, pad + r_std:, :] = zeros
        else:
            y_ref[0] = yo

    return kernel


def _conv3x3(xe, w9, scale, shift, hin, win, *, residual="none", res=None,
             res_scale=None, res_shift=None, wres=None, emit_stats=False,
             stats_stride=1, out_layout="std", out_dtype=jnp.float32):
    n, r_ext, cin_p = xe.shape
    wp = win + 2
    r_std = (hin + 2) * wp
    assert r_ext == (hin + 6) * wp
    cout_p = w9.shape[2]
    r_out = r_ext if out_layout == "ext" else r_std
    esz = lambda dt: jnp.dtype(dt).itemsize

    arrays = [xe, w9, scale, shift]
    in_specs = [
        pl.BlockSpec((1, r_ext, cin_p), lambda i: (i, 0, 0)),
        # TODO(synk): verify via pl.lower_as_mlir that this constant-index
        # weight block is single-buffered; budgeted at 2x below to be safe.
        pl.BlockSpec((9, cin_p, cout_p), lambda i: (0, 0, 0)),
        pl.BlockSpec((1, cin_p), lambda i: (0, 0)),
        pl.BlockSpec((1, cin_p), lambda i: (0, 0)),
    ]
    # Real per-step VMEM footprint: double-buffered streams + kernel temporaries.
    vmem = 2 * (r_ext * cin_p * esz(xe.dtype)
                + 9 * cin_p * cout_p * 2
                + 2 * cin_p * 4
                + r_out * cout_p * esz(out_dtype))
    vmem += r_ext * cin_p * 2 + r_std * cout_p * 4   # prepped bf16 act + f32 acc
    flops = 2 * n * 9 * r_std * cin_p * cout_p
    bytes_accessed = (xe.size * esz(xe.dtype) + w9.size * 2
                      + n * r_out * cout_p * esz(out_dtype))

    if residual == "identity":
        cres_p = res.shape[2]
        arrays += [res]
        in_specs += [pl.BlockSpec((1, r_std, cres_p), lambda i: (i, 0, 0))]
        vmem += 2 * r_std * cres_p * esz(res.dtype)
        bytes_accessed += res.size * esz(res.dtype)
    elif residual == "project":
        cres_p = res.shape[2]
        arrays += [res, res_scale, res_shift, wres]
        in_specs += [
            pl.BlockSpec((1, r_std, cres_p), lambda i: (i, 0, 0)),
            pl.BlockSpec((1, cres_p), lambda i: (0, 0)),
            pl.BlockSpec((1, cres_p), lambda i: (0, 0)),
            pl.BlockSpec((cres_p, cout_p), lambda i: (0, 0)),
        ]
        vmem += 2 * (r_std * cres_p * esz(res.dtype) + 2 * cres_p * 4
                     + cres_p * cout_p * 2)
        flops += 2 * n * r_std * cres_p * cout_p
        bytes_accessed += res.size * esz(res.dtype) + wres.size * 2

    out_shape = [jax.ShapeDtypeStruct((n, r_out, cout_p), out_dtype)]
    out_specs = [pl.BlockSpec((1, r_out, cout_p), lambda i: (i, 0, 0))]
    if emit_stats:
        out_shape.append(jax.ShapeDtypeStruct((n, 2, cout_p), jnp.float32))
        out_specs.append(pl.BlockSpec((1, 2, cout_p), lambda i: (i, 0, 0)))
        vmem += 2 * 2 * cout_p * 4
        bytes_accessed += n * 2 * cout_p * 4

    # Never below the 32 MiB v6e/v7x default scope (>= v5e's 16 MiB default),
    # capped at v7x's 64 MiB physical VMEM.
    # TODO(synk): for very wide layers that approach this cap, add an inner
    # Cout grid axis with the prepped activation held in a VMEM scratch.
    vmem_limit = min(64 << 20, max(32 << 20, int(vmem * 1.25) + (4 << 20)))

    outs = pl.pallas_call(
        _make_conv_kernel(hin, win, residual, emit_stats, stats_stride,
                          out_layout == "ext"),
        out_shape=tuple(out_shape),
        grid=(n,),
        in_specs=in_specs,
        out_specs=tuple(out_specs),
        compiler_params=pltpu.CompilerParams(
            dimension_semantics=("parallel",),     # megacore sharding over N
            vmem_limit_bytes=vmem_limit),
        cost_estimate=pl.CostEstimate(
            flops=flops, transcendentals=0, bytes_accessed=bytes_accessed),
    )(*arrays)
    if not isinstance(outs, (tuple, list)):
        outs = (outs,)
    return tuple(outs)


# ---------------------------------------------------------------------------
# JAX-side glue: channel padding, padded-flat layouts, weight prep.
# ---------------------------------------------------------------------------
def _pad_lanes(a, cp):
    c = a.shape[-1]
    if c == cp:
        return a
    pad = [(0, 0)] * (a.ndim - 1) + [(0, cp - c)]
    return jnp.pad(a, pad)


def _ext_flat(a_nhwc):
    """Zero-pad H by (3,3), W by (1,1) and flatten spatial -> [N, (H+6)(W+2), C]."""
    n, h, w, c = a_nhwc.shape
    ap = jnp.pad(a_nhwc, ((0, 0), (3, 3), (1, 1), (0, 0)))
    return ap.reshape(n, (h + 6) * (w + 2), c)


def _std_flat(a_nhwc):
    """Zero-pad H,W by (1,1) and flatten spatial -> [N, (H+2)(W+2), C]."""
    n, h, w, c = a_nhwc.shape
    ap = jnp.pad(a_nhwc, ((0, 0), (1, 1), (1, 1), (0, 0)))
    return ap.reshape(n, (h + 2) * (w + 2), c)


def _prep_w3x3(w_oihw, cin_p, cout_p):
    cout, cin = w_oihw.shape[0], w_oihw.shape[1]
    w = jnp.transpose(w_oihw, (2, 3, 1, 0)).reshape(9, cin, cout)
    w = jnp.pad(w, ((0, 0), (0, cin_p - cin), (0, cout_p - cout)))
    return w.astype(jnp.bfloat16)


# ---------------------------------------------------------------------------
# BasicBlock forward.
# ---------------------------------------------------------------------------
@functools.partial(jax.jit, static_argnames=("stride", "drop_rate"))
def basic_block_forward(x_nchw, params, stride, drop_rate=0.0):
    # TODO(synk): F.dropout (dropRate > 0, training mode) is not implemented;
    # the module default dropRate=0.0 makes it a no-op.
    n, cin, h, w = x_nchw.shape
    cout = params["conv1_w"].shape[0]
    equal = cin == cout
    assert stride == 1 or not equal, "identity residual requires stride == 1"

    cin_p = _round_up(cin, LANE)
    cout_p = _round_up(cout, LANE)

    # TODO(synk): the NCHW->NHWC transpose + lane pad + halo pad below are
    # separate XLA passes over x before conv1; they could be folded into a
    # dedicated layout kernel.
    x = jnp.transpose(x_nchw, (0, 2, 3, 1)).astype(jnp.float32)   # NHWC
    xp = _pad_lanes(x, cin_p)                                     # lane-dense

    g1 = _pad_lanes(params["bn1_gamma"], cin_p)
    b1 = _pad_lanes(params["bn1_beta"], cin_p)
    g2 = _pad_lanes(params["bn2_gamma"], cout_p)
    b2 = _pad_lanes(params["bn2_beta"], cout_p)

    # ---- bn1: global batch statistics (two-pass BN), tiled over M ----
    mean1, var1 = _bn_batch_stats(xp.reshape(n * h * w, cin_p), n * h * w)
    scale1 = (g1 * jax.lax.rsqrt(var1 + EPS))[None, :]
    shift1 = (b1 - mean1 * scale1[0])[None, :]

    # ---- conv1 (3x3): bn1 affine + LeakyReLU fused into the conv input ----
    # Output stored bf16 (conv2 casts to bf16 anyway; bn2 stats come from the
    # f32 accumulator inside this kernel).  For stride==1 the output is emitted
    # directly in the extended layout conv2 consumes (no JAX-side re-pad).
    w1 = _prep_w3x3(params["conv1_w"], cin_p, cout_p)
    y1_out, st1 = _conv3x3(
        _ext_flat(xp), w1, scale1, shift1, h, w,
        emit_stats=True, stats_stride=stride,
        out_layout=("ext" if stride == 1 else "std"),
        out_dtype=jnp.bfloat16)

    ho = -(-h // stride)
    wo = -(-w // stride)
    s = jnp.sum(st1, axis=0)                 # fused bn2 partial stats
    cnt = n * ho * wo
    mean2 = s[0] / cnt
    var2 = s[1] / cnt - mean2 * mean2
    scale2 = (g2 * jax.lax.rsqrt(var2 + EPS))[None, :]
    shift2 = (b2 - mean2 * scale2[0])[None, :]

    if stride == 1:
        xe2 = y1_out                          # already extended-flat, bf16
    else:
        # TODO(synk): stride>1 still computes the stride-1 conv and subsamples
        # here (stride^2 extra MXU work); bn2 stats are already taken on the
        # subsampled positions inside the kernel so no extra stats pass runs.
        y1_std = y1_out.reshape(n, h + 2, w + 2, cout_p)
        xe2 = _ext_flat(y1_std[:, 1:h + 1:stride, 1:w + 1:stride, :])

    # ---- conv2 (3x3, stride 1) + residual, single fused kernel ----
    w2 = _prep_w3x3(params["conv2_w"], cout_p, cout_p)
    if equal:
        # Identity residual: the ORIGINAL (pre-BN) x, as in the PyTorch branch.
        out2 = _conv3x3(xe2, w2, scale2, shift2, ho, wo,
                        residual="identity", res=_std_flat(xp))[0]
    else:
        # Projection shortcut: 1x1 stride-s conv on lrelu(bn1(x)); the affine,
        # LeakyReLU and the 1x1 matmul are all fused into the conv2 kernel.
        ws = jnp.transpose(params["convShortcut_w"].reshape(cout, cin), (1, 0))
        ws = jnp.pad(ws, ((0, cin_p - cin), (0, cout_p - cout)))
        ws = ws.astype(jnp.bfloat16)
        xs = _std_flat(xp[:, ::stride, ::stride, :])
        out2 = _conv3x3(xe2, w2, scale2, shift2, ho, wo,
                        residual="project", res=xs,
                        res_scale=scale1, res_shift=shift1, wres=ws)[0]

    out = out2.reshape(n, ho + 2, wo + 2, cout_p)
    out = out[:, 1:ho + 1, 1:wo + 1, :cout]
    return jnp.transpose(out, (0, 3, 1, 2))       # back to NCHW


# ---------------------------------------------------------------------------
# Deterministic parameter init + pure-JAX reference (correctness check).
# ---------------------------------------------------------------------------
def init_params(key, in_planes, out_planes):
    ks = jax.random.split(key, 7)
    p = {
        "bn1_gamma": jax.random.uniform(ks[0], (in_planes,), jnp.float32, 0.5, 1.5),
        "bn1_beta": 0.1 * jax.random.normal(ks[1], (in_planes,), jnp.float32),
        "conv1_w": 0.1 * jax.random.normal(ks[2], (out_planes, in_planes, 3, 3), jnp.float32),
        "bn2_gamma": jax.random.uniform(ks[3], (out_planes,), jnp.float32, 0.5, 1.5),
        "bn2_beta": 0.1 * jax.random.normal(ks[4], (out_planes,), jnp.float32),
        "conv2_w": 0.1 * jax.random.normal(ks[5], (out_planes, out_planes, 3, 3), jnp.float32),
    }
    if in_planes != out_planes:
        p["convShortcut_w"] = 0.1 * jax.random.normal(
            ks[6], (out_planes, in_planes, 1, 1), jnp.float32)
    return p


def ref_forward(x, params, stride):
    def bn(y, g, b):
        mean = y.mean(axis=(0, 2, 3), keepdims=True)
        var = jnp.square(y - mean).mean(axis=(0, 2, 3), keepdims=True)
        return (y - mean) * jax.lax.rsqrt(var + EPS) * g[None, :, None, None] \
            + b[None, :, None, None]

    lrelu = lambda y: jnp.where(y >= 0, y, SLOPE * y)
    conv = lambda y, w, s, p: jax.lax.conv_general_dilated(
        y, w, (s, s), [(p, p), (p, p)],
        dimension_numbers=("NCHW", "OIHW", "NCHW"),
        precision=jax.lax.Precision.HIGHEST,
    )

    cin = x.shape[1]
    cout = params["conv1_w"].shape[0]
    equal = cin == cout
    if not equal:
        x = lrelu(bn(x, params["bn1_gamma"], params["bn1_beta"]))
        out = x
    else:
        out = lrelu(bn(x, params["bn1_gamma"], params["bn1_beta"]))
    out = lrelu(bn(conv(out, params["conv1_w"], stride, 1),
                   params["bn2_gamma"], params["bn2_beta"]))
    out = conv(out, params["conv2_w"], 1, 1)
    short = x if equal else conv(x, params["convShortcut_w"], stride, 0)
    return short + out


if __name__ == "__main__":
    key = jax.random.PRNGKey(0)
    kx, kx2, kp1, kp2 = jax.random.split(key, 4)

    # Tolerances: bf16 MXU operands + bf16 inter-conv activation (f32
    # accumulation, f32 BN) vs. the HIGHEST-precision f32 reference.
    RTOL, ATOL = 5e-2, 5e-2

    # Case 1: in_planes != out_planes -> projection shortcut, stride 2.
    x = jax.random.normal(kx, (2, 4, 16, 16), jnp.float32)
    params = init_params(kp1, 4, 8)
    y = jax.block_until_ready(basic_block_forward(x, params, stride=2))
    y_ref = ref_forward(x, params, 2)
    assert y.shape == (2, 8, 8, 8)
    np.testing.assert_allclose(np.asarray(y), np.asarray(y_ref), rtol=RTOL, atol=ATOL)

    # Case 2: in_planes == out_planes -> identity shortcut, stride 1.
    x2 = jax.random.normal(kx2, (2, 8, 16, 16), jnp.float32)
    params2 = init_params(kp2, 8, 8)
    y2 = jax.block_until_ready(basic_block_forward(x2, params2, stride=1))
    y2_ref = ref_forward(x2, params2, 1)
    assert y2.shape == (2, 8, 16, 16)
    np.testing.assert_allclose(np.asarray(y2), np.asarray(y2_ref), rtol=RTOL, atol=ATOL)

    print("KERNEL_OK")
</pallas_src>

<mosaic_0001>
module attributes {stable_mosaic.version = 11 : i64} {
  func.func @bn_stats_kernel(%arg0: i32, %arg1: memref<512x128xf32, #tpu.memory_space<vmem>>, %arg2: memref<2x128xf32, #tpu.memory_space<vmem>>) attributes {dimension_semantics = [#tpu.dimension_semantics<arbitrary>], iteration_bounds = array<i64: 1>, scalar_prefetch = 0 : i64, scratch_operands = 0 : i64, tpu.core_type = #tpu.core_type<tc>, window_params = [{transform_indices = @transform_0, window_bounds = array<i64: 512, 128>}, {pipeline_mode = #tpu.pipeline_mode<synchronous>, transform_indices = @transform_1, window_bounds = array<i64: 2, 128>}]} {
    %c0_i32 = arith.constant 0 : i32
    %0 = arith.cmpi eq, %arg0, %c0_i32 : i32
    %1 = arith.extui %0 : i1 to i32
    %c0_i32_0 = arith.constant 0 : i32
    %2 = arith.cmpi ne, %1, %c0_i32_0 : i32
    scf.if %2 {
      %cst_7 = arith.constant 0.000000e+00 : f32
      %13 = vector.broadcast %cst_7 : f32 to vector<2x128xf32>
      %c0_8 = arith.constant 0 : index
      %c0_9 = arith.constant 0 : index
      %14 = vector.load %arg2[%c0_8, %c0_9] : memref<2x128xf32, #tpu.memory_space<vmem>>, vector<2x128xf32>
      tpu.vector_store %arg2[%c0_8, %c0_9], %13 {strides = array<i32>} : memref<2x128xf32, #tpu.memory_space<vmem>>, vector<2x128xf32>,
    } else {
    }
    %c0 = arith.constant 0 : index
    %c0_1 = arith.constant 0 : index
    %3 = vector.load %arg1[%c0, %c0_1] : memref<512x128xf32, #tpu.memory_space<vmem>>, vector<512x128xf32>
    %cst = arith.constant dense<0.000000e+00> : vector<128xf32>
    %4 = vector.multi_reduction <add>, %3, %cst [0] : vector<512x128xf32> to vector<128xf32>
    %5 = vector.shape_cast %4 : vector<128xf32> to vector<1x128xf32>
    %6 = arith.mulf %3, %3 : vector<512x128xf32>
    %cst_2 = arith.constant dense<0.000000e+00> : vector<128xf32>
    %7 = vector.multi_reduction <add>, %6, %cst_2 [0] : vector<512x128xf32> to vector<128xf32>
    %8 = vector.shape_cast %7 : vector<128xf32> to vector<1x128xf32>
    %c0_3 = arith.constant 0 : index
    %c0_4 = arith.constant 0 : index
    %9 = vector.load %arg2[%c0_3, %c0_4] : memref<2x128xf32, #tpu.memory_space<vmem>>, vector<2x128xf32>
    %10 = tpu.concatenate %5, %8 in 0 : vector<1x128xf32>, vector<1x128xf32> -> vector<2x128xf32>
    %11 = arith.addf %9, %10 : vector<2x128xf32>
    %c0_5 = arith.constant 0 : index
    %c0_6 = arith.constant 0 : index
    %12 = vector.load %arg2[%c0_5, %c0_6] : memref<2x128xf32, #tpu.memory_space<vmem>>, vector<2x128xf32>
    tpu.vector_store %arg2[%c0_5, %c0_6], %11 {strides = array<i32>} : memref<2x128xf32, #tpu.memory_space<vmem>>, vector<2x128xf32>,
    return
  }
  func.func @transform_0(%arg0: i32) -> (i32, i32) {
    %c0_i32 = arith.constant 0 : i32
    %c0_i32_0 = arith.constant 0 : i32
    return %arg0, %c0_i32 : i32, i32
  }
  func.func @transform_1(%arg0: i32) -> (i32, i32) {
    %c0_i32 = arith.constant 0 : i32
    %c0_i32_0 = arith.constant 0 : i32
    %c0_i32_1 = arith.constant 0 : i32
    return %c0_i32, %c0_i32_0 : i32, i32
  }
}

module attributes {stable_mosaic.version = 11 : i64} {
  func.func @kernel(%arg0: i32, %arg1: memref<1x396x128xf32, #tpu.memory_space<vmem>>, %arg2: memref<9x128x128xbf16, #tpu.memory_space<vmem>>, %arg3: memref<1x128xf32, #tpu.memory_space<vmem>>, %arg4: memref<1x128xf32, #tpu.memory_space<vmem>>, %arg5: memref<1x324x128xbf16, #tpu.memory_space<vmem>>, %arg6: memref<1x2x128xf32, #tpu.memory_space<vmem>>) attributes {dimension_semantics = [#tpu.dimension_semantics<parallel>], iteration_bounds = array<i64: 2>, scalar_prefetch = 0 : i64, scratch_operands = 0 : i64, tpu.core_type = #tpu.core_type<tc>, window_params = [{transform_indices = @transform_0, window_bounds = array<i64: 1, 396, 128>}, {pipeline_mode = #tpu.pipeline_mode<synchronous>, transform_indices = @transform_1, window_bounds = array<i64: 9, 128, 128>}, {pipeline_mode = #tpu.pipeline_mode<synchronous>, transform_indices = @transform_2, window_bounds = array<i64: 1, 128>}, {pipeline_mode = #tpu.pipeline_mode<synchronous>, transform_indices = @transform_3, window_bounds = array<i64: 1, 128>}, {transform_indices = @transform_4, window_bounds = array<i64: 1, 324, 128>}, {transform_indices = @transform_5, window_bounds = array<i64: 1, 2, 128>}]} {
    %0 = tpu.iota {dimensions = array<i32: 0>} : vector<396x1xi32>
    %1 = arith.sitofp %0 : vector<396x1xi32> to vector<396x1xf32>
    %cst = arith.constant 5.000000e-01 : f32
    %2 = vector.broadcast %cst : f32 to vector<396x1xf32>
    %3 = arith.addf %1, %2 : vector<396x1xf32>
    %cst_0 = arith.constant 1.800000e+01 : f32
    %4 = vector.broadcast %cst_0 : f32 to vector<396x1xf32>
    %5 = arith.divf %3, %4 : vector<396x1xf32>
    %6 = math.floor %5 : vector<396x1xf32>
    %cst_1 = arith.constant 1.800000e+01 : f32
    %7 = vector.broadcast %cst_1 : f32 to vector<396x1xf32>
    %8 = arith.mulf %6, %7 : vector<396x1xf32>
    %9 = arith.subf %1, %8 : vector<396x1xf32>
    %cst_2 = arith.constant 2.500000e+00 : f32
    %10 = vector.broadcast %cst_2 : f32 to vector<396x1xf32>
    %11 = arith.cmpf ogt, %6, %10 : vector<396x1xf32>
    %cst_3 = arith.constant 1.850000e+01 : f32
    %12 = vector.broadcast %cst_3 : f32 to vector<396x1xf32>
    %13 = arith.cmpf olt, %6, %12 : vector<396x1xf32>
    %14 = arith.andi %11, %13 : vector<396x1xi1>
    %cst_4 = arith.constant 5.000000e-01 : f32
    %15 = vector.broadcast %cst_4 : f32 to vector<396x1xf32>
    %16 = arith.cmpf ogt, %9, %15 : vector<396x1xf32>
    %17 = arith.andi %14, %16 : vector<396x1xi1>
    %cst_5 = arith.constant 1.650000e+01 : f32
    %18 = vector.broadcast %cst_5 : f32 to vector<396x1xf32>
    %19 = arith.cmpf olt, %9, %18 : vector<396x1xf32>
    %20 = arith.andi %17, %19 : vector<396x1xi1>
    %21 = tpu.iota {dimensions = array<i32: 0>} : vector<324x1xi32>
    %22 = arith.sitofp %21 : vector<324x1xi32> to vector<324x1xf32>
    %cst_6 = arith.constant 5.000000e-01 : f32
    %23 = vector.broadcast %cst_6 : f32 to vector<324x1xf32>
    %24 = arith.addf %22, %23 : vector<324x1xf32>
    %cst_7 = arith.constant 1.800000e+01 : f32
    %25 = vector.broadcast %cst_7 : f32 to vector<324x1xf32>
    %26 = arith.divf %24, %25 : vector<324x1xf32>
    %27 = math.floor %26 : vector<324x1xf32>
    %cst_8 = arith.constant 1.800000e+01 : f32
    %28 = vector.broadcast %cst_8 : f32 to vector<324x1xf32>
    %29 = arith.mulf %27, %28 : vector<324x1xf32>
    %30 = arith.subf %22, %29 : vector<324x1xf32>
    %cst_9 = arith.constant 5.000000e-01 : f32
    %31 = vector.broadcast %cst_9 : f32 to vector<324x1xf32>
    %32 = arith.cmpf ogt, %27, %31 : vector<324x1xf32>
    %cst_10 = arith.constant 1.650000e+01 : f32
    %33 = vector.broadcast %cst_10 : f32 to vector<324x1xf32>
    %34 = arith.cmpf olt, %27, %33 : vector<324x1xf32>
    %35 = arith.andi %32, %34 : vector<324x1xi1>
    %cst_11 = arith.constant 5.000000e-01 : f32
    %36 = vector.broadcast %cst_11 : f32 to vector<324x1xf32>
    %37 = arith.cmpf ogt, %30, %36 : vector<324x1xf32>
    %38 = arith.andi %35, %37 : vector<324x1xi1>
    %cst_12 = arith.constant 1.650000e+01 : f32
    %39 = vector.broadcast %cst_12 : f32 to vector<324x1xf32>
    %40 = arith.cmpf olt, %30, %39 : vector<324x1xf32>
    %41 = arith.andi %38, %40 : vector<324x1xi1>
    %c0 = arith.constant 0 : index
    %c0_13 = arith.constant 0 : index
    %c0_14 = arith.constant 0 : index
    %42 = vector.load %arg1[%c0, %c0_13, %c0_14] : memref<1x396x128xf32, #tpu.memory_space<vmem>>, vector<1x396x128xf32>
    %43 = vector.shape_cast %42 : vector<1x396x128xf32> to vector<396x128xf32>
    %c0_15 = arith.constant 0 : index
    %c0_16 = arith.constant 0 : index
    %44 = vector.load %arg3[%c0_15, %c0_16] : memref<1x128xf32, #tpu.memory_space<vmem>>, vector<1x128xf32>
    %45 = vector.broadcast %44 : vector<1x128xf32> to vector<396x128xf32>
    %46 = arith.mulf %43, %45 : vector<396x128xf32>
    %c0_17 = arith.constant 0 : index
    %c0_18 = arith.constant 0 : index
    %47 = vector.load %arg4[%c0_17, %c0_18] : memref<1x128xf32, #tpu.memory_space<vmem>>, vector<1x128xf32>
    %48 = vector.broadcast %47 : vector<1x128xf32> to vector<396x128xf32>
    %49 = arith.addf %46, %48 : vector<396x128xf32>
    %cst_19 = arith.constant 0.000000e+00 : f32
    %50 = vector.broadcast %cst_19 : f32 to vector<396x128xf32>
    %51 = arith.cmpf oge, %49, %50 : vector<396x128xf32>
    %cst_20 = arith.constant 0.00999999977 : f32
    %52 = vector.broadcast %cst_20 : f32 to vector<396x128xf32>
    %53 = arith.mulf %52, %49 : vector<396x128xf32>
    %54 = arith.select %51, %49, %53 : vector<396x128xi1>, vector<396x128xf32>
    %cst_21 = arith.constant 0.000000e+00 : f32
    %55 = vector.shape_cast %20 : vector<396x1xi1> to vector<396x1xi1>
    %56 = vector.broadcast %55 : vector<396x1xi1> to vector<396x128xi1>
    %57 = vector.broadcast %cst_21 : f32 to vector<396x128xf32>
    %58 = arith.select %56, %54, %57 : vector<396x128xi1>, vector<396x128xf32>
    %59 = arith.truncf %58 : vector<396x128xf32> to vector<396x128xbf16>
    %cst_22 = arith.constant 0.000000e+00 : f32
    %60 = vector.broadcast %cst_22 : f32 to vector<324x128xf32>
    %61 = vector.extract_strided_slice %59 {offsets = [17, 0], sizes = [324, 128], strides = [1, 1]} : vector<396x128xbf16> to vector<324x128xbf16>
    %c0_23 = arith.constant 0 : index
    %c0_24 = arith.constant 0 : index
    %c0_25 = arith.constant 0 : index
    %62 = vector.load %arg2[%c0_23, %c0_24, %c0_25] : memref<9x128x128xbf16, #tpu.memory_space<vmem>>, vector<1x128x128xbf16>
    %63 = vector.shape_cast %62 : vector<1x128x128xbf16> to vector<128x128xbf16>
    %cst_26 = arith.constant dense<0.000000e+00> : vector<324x128xf32>
    %64 = tpu.matmul %61, %63, %cst_26 {dimension_numbers = #tpu.dot_dimension_numbers<[1], [0], [0], [1], [0, 0, 1, 1], [], []>} : vector<324x128xbf16>, vector<128x128xbf16>, vector<324x128xf32> -> vector<324x128xf32>
    %65 = arith.addf %60, %64 : vector<324x128xf32>
    %66 = vector.extract_strided_slice %59 {offsets = [18, 0], sizes = [324, 128], strides = [1, 1]} : vector<396x128xbf16> to vector<324x128xbf16>
    %c1 = arith.constant 1 : index
    %c0_27 = arith.constant 0 : index
    %c0_28 = arith.constant 0 : index
    %67 = vector.load %arg2[%c1, %c0_27, %c0_28] : memref<9x128x128xbf16, #tpu.memory_space<vmem>>, vector<1x128x128xbf16>
    %68 = vector.shape_cast %67 : vector<1x128x128xbf16> to vector<128x128xbf16>
    %cst_29 = arith.constant dense<0.000000e+00> : vector<324x128xf32>
    %69 = tpu.matmul %66, %68, %cst_29 {dimension_numbers = #tpu.dot_dimension_numbers<[1], [0], [0], [1], [0, 0, 1, 1], [], []>} : vector<324x128xbf16>, vector<128x128xbf16>, vector<324x128xf32> -> vector<324x128xf32>
    %70 = arith.addf %65, %69 : vector<324x128xf32>
    %71 = vector.extract_strided_slice %59 {offsets = [19, 0], sizes = [324, 128], strides = [1, 1]} : vector<396x128xbf16> to vector<324x128xbf16>
    %c2 = arith.constant 2 : index
    %c0_30 = arith.constant 0 : index
    %c0_31 = arith.constant 0 : index
    %72 = vector.load %arg2[%c2, %c0_30, %c0_31] : memref<9x128x128xbf16, #tpu.memory_space<vmem>>, vector<1x128x128xbf16>
    %73 = vector.shape_cast %72 : vector<1x128x128xbf16> to vector<128x128xbf16>
    %cst_32 = arith.constant dense<0.000000e+00> : vector<324x128xf32>
    %74 = tpu.matmul %71, %73, %cst_32 {dimension_numbers = #tpu.dot_dimension_numbers<[1], [0], [0], [1], [0, 0, 1, 1], [], []>} : vector<324x128xbf16>, vector<128x128xbf16>, vector<324x128xf32> -> vector<324x128xf32>
    %75 = arith.addf %70, %74 : vector<324x128xf32>
    %76 = vector.extract_strided_slice %59 {offsets = [35, 0], sizes = [324, 128], strides = [1, 1]} : vector<396x128xbf16> to vector<324x128xbf16>
    %c3 = arith.constant 3 : index
    %c0_33 = arith.constant 0 : index
    %c0_34 = arith.constant 0 : index
    %77 = vector.load %arg2[%c3, %c0_33, %c0_34] : memref<9x128x128xbf16, #tpu.memory_space<vmem>>, vector<1x128x128xbf16>
    %78 = vector.shape_cast %77 : vector<1x128x128xbf16> to vector<128x128xbf16>
    %cst_35 = arith.constant dense<0.000000e+00> : vector<324x128xf32>
    %79 = tpu.matmul %76, %78, %cst_35 {dimension_numbers = #tpu.dot_dimension_numbers<[1], [0], [0], [1], [0, 0, 1, 1], [], []>} : vector<324x128xbf16>, vector<128x128xbf16>, vector<324x128xf32> -> vector<324x128xf32>
    %80 = arith.addf %75, %79 : vector<324x128xf32>
    %81 = vector.extract_strided_slice %59 {offsets = [36, 0], sizes = [324, 128], strides = [1, 1]} : vector<396x128xbf16> to vector<324x128xbf16>
    %c4 = arith.constant 4 : index
    %c0_36 = arith.constant 0 : index
    %c0_37 = arith.constant 0 : index
    %82 = vector.load %arg2[%c4, %c0_36, %c0_37] : memref<9x128x128xbf16, #tpu.memory_space<vmem>>, vector<1x128x128xbf16>
    %83 = vector.shape_cast %82 : vector<1x128x128xbf16> to vector<128x128xbf16>
    %cst_38 = arith.constant dense<0.000000e+00> : vector<324x128xf32>
    %84 = tpu.matmul %81, %83, %cst_38 {dimension_numbers = #tpu.dot_dimension_numbers<[1], [0], [0], [1], [0, 0, 1, 1], [], []>} : vector<324x128xbf16>, vector<128x128xbf16>, vector<324x128xf32> -> vector<324x128xf32>
    %85 = arith.addf %80, %84 : vector<324x128xf32>
    %86 = vector.extract_strided_slice %59 {offsets = [37, 0], sizes = [324, 128], strides = [1, 1]} : vector<396x128xbf16> to vector<324x128xbf16>
    %c5 = arith.constant 5 : index
    %c0_39 = arith.constant 0 : index
    %c0_40 = arith.constant 0 : index
    %87 = vector.load %arg2[%c5, %c0_39, %c0_40] : memref<9x128x128xbf16, #tpu.memory_space<vmem>>, vector<1x128x128xbf16>
    %88 = vector.shape_cast %87 : vector<1x128x128xbf16> to vector<128x128xbf16>
    %cst_41 = arith.constant dense<0.000000e+00> : vector<324x128xf32>
    %89 = tpu.matmul %86, %88, %cst_41 {dimension_numbers = #tpu.dot_dimension_numbers<[1], [0], [0], [1], [0, 0, 1, 1], [], []>} : vector<324x128xbf16>, vector<128x128xbf16>, vector<324x128xf32> -> vector<324x128xf32>
    %90 = arith.addf %85, %89 : vector<324x128xf32>
    %91 = vector.extract_strided_slice %59 {offsets = [53, 0], sizes = [324, 128], strides = [1, 1]} : vector<396x128xbf16> to vector<324x128xbf16>
    %c6 = arith.constant 6 : index
    %c0_42 = arith.constant 0 : index
    %c0_43 = arith.constant 0 : index
    %92 = vector.load %arg2[%c6, %c0_42, %c0_43] : memref<9x128x128xbf16, #tpu.memory_space<vmem>>, vector<1x128x128xbf16>
    %93 = vector.shape_cast %92 : vector<1x128x128xbf16> to vector<128x128xbf16>
    %cst_44 = arith.constant dense<0.000000e+00> : vector<324x128xf32>
    %94 = tpu.matmul %91, %93, %cst_44 {dimension_numbers = #tpu.dot_dimension_numbers<[1], [0], [0], [1], [0, 0, 1, 1], [], []>} : vector<324x128xbf16>, vector<128x128xbf16>, vector<324x128xf32> -> vector<324x128xf32>
    %95 = arith.addf %90, %94 : vector<324x128xf32>
    %96 = vector.extract_strided_slice %59 {offsets = [54, 0], sizes = [324, 128], strides = [1, 1]} : vector<396x128xbf16> to vector<324x128xbf16>
    %c7 = arith.constant 7 : index
    %c0_45 = arith.constant 0 : index
    %c0_46 = arith.constant 0 : index
    %97 = vector.load %arg2[%c7, %c0_45, %c0_46] : memref<9x128x128xbf16, #tpu.memory_space<vmem>>, vector<1x128x128xbf16>
    %98 = vector.shape_cast %97 : vector<1x128x128xbf16> to vector<128x128xbf16>
    %cst_47 = arith.constant dense<0.000000e+00> : vector<324x128xf32>
    %99 = tpu.matmul %96, %98, %cst_47 {dimension_numbers = #tpu.dot_dimension_numbers<[1], [0], [0], [1], [0, 0, 1, 1], [], []>} : vector<324x128xbf16>, vector<128x128xbf16>, vector<324x128xf32> -> vector<324x128xf32>
    %100 = arith.addf %95, %99 : vector<324x128xf32>
    %101 = vector.extract_strided_slice %59 {offsets = [55, 0], sizes = [324, 128], strides = [1, 1]} : vector<396x128xbf16> to vector<324x128xbf16>
    %c8 = arith.constant 8 : index
    %c0_48 = arith.constant 0 : index
    %c0_49 = arith.constant 0 : index
    %102 = vector.load %arg2[%c8, %c0_48, %c0_49] : memref<9x128x128xbf16, #tpu.memory_space<vmem>>, vector<1x128x128xbf16>
    %103 = vector.shape_cast %102 : vector<1x128x128xbf16> to vector<128x128xbf16>
    %cst_50 = arith.constant dense<0.000000e+00> : vector<324x128xf32>
    %104 = tpu.matmul %101, %103, %cst_50 {dimension_numbers = #tpu.dot_dimension_numbers<[1], [0], [0], [1], [0, 0, 1, 1], [], []>} : vector<324x128xbf16>, vector<128x128xbf16>, vector<324x128xf32> -> vector<324x128xf32>
    %105 = arith.addf %100, %104 : vector<324x128xf32>
    %cst_51 = arith.constant 0.000000e+00 : f32
    %106 = vector.shape_cast %41 : vector<324x1xi1> to vector<324x1xi1>
    %107 = vector.broadcast %106 : vector<324x1xi1> to vector<324x128xi1>
    %108 = vector.broadcast %cst_51 : f32 to vector<324x128xf32>
    %109 = arith.select %107, %105, %108 : vector<324x128xi1>, vector<324x128xf32>
    %cst_52 = arith.constant 1.000000e+00 : f32
    %110 = vector.broadcast %cst_52 : f32 to vector<324x1xf32>
    %111 = arith.subf %27, %110 : vector<324x1xf32>
    %cst_53 = arith.constant 1.000000e+00 : f32
    %112 = vector.broadcast %cst_53 : f32 to vector<324x1xf32>
    %113 = arith.subf %30, %112 : vector<324x1xf32>
    %cst_54 = arith.constant 5.000000e-01 : f32
    %114 = vector.broadcast %cst_54 : f32 to vector<324x1xf32>
    %115 = arith.addf %111, %114 : vector<324x1xf32>
    %cst_55 = arith.constant 2.000000e+00 : f32
    %116 = vector.broadcast %cst_55 : f32 to vector<324x1xf32>
    %117 = arith.divf %115, %116 : vector<324x1xf32>
    %118 = math.floor %117 : vector<324x1xf32>
    %cst_56 = arith.constant 5.000000e-01 : f32
    %119 = vector.broadcast %cst_56 : f32 to vector<324x1xf32>
    %120 = arith.addf %113, %119 : vector<324x1xf32>
    %cst_57 = arith.constant 2.000000e+00 : f32
    %121 = vector.broadcast %cst_57 : f32 to vector<324x1xf32>
    %122 = arith.divf %120, %121 : vector<324x1xf32>
    %123 = math.floor %122 : vector<324x1xf32>
    %cst_58 = arith.constant 2.000000e+00 : f32
    %124 = vector.broadcast %cst_58 : f32 to vector<324x1xf32>
    %125 = arith.mulf %118, %124 : vector<324x1xf32>
    %126 = arith.subf %111, %125 : vector<324x1xf32>
    %127 = math.absf %126 : vector<324x1xf32>
    %cst_59 = arith.constant 5.000000e-01 : f32
    %128 = vector.broadcast %cst_59 : f32 to vector<324x1xf32>
    %129 = arith.cmpf olt, %127, %128 : vector<324x1xf32>
    %130 = arith.andi %41, %129 : vector<324x1xi1>
    %cst_60 = arith.constant 2.000000e+00 : f32
    %131 = vector.broadcast %cst_60 : f32 to vector<324x1xf32>
    %132 = arith.mulf %123, %131 : vector<324x1xf32>
    %133 = arith.subf %113, %132 : vector<324x1xf32>
    %134 = math.absf %133 : vector<324x1xf32>
    %cst_61 = arith.constant 5.000000e-01 : f32
    %135 = vector.broadcast %cst_61 : f32 to vector<324x1xf32>
    %136 = arith.cmpf olt, %134, %135 : vector<324x1xf32>
    %137 = arith.andi %130, %136 : vector<324x1xi1>
    %cst_62 = arith.constant 0.000000e+00 : f32
    %138 = vector.shape_cast %137 : vector<324x1xi1> to vector<324x1xi1>
    %139 = vector.broadcast %138 : vector<324x1xi1> to vector<324x128xi1>
    %140 = vector.broadcast %cst_62 : f32 to vector<324x128xf32>
    %141 = arith.select %139, %109, %140 : vector<324x128xi1>, vector<324x128xf32>
    %cst_63 = arith.constant dense<0.000000e+00> : vector<128xf32>
    %142 = vector.multi_reduction <add>, %141, %cst_63 [0] : vector<324x128xf32> to vector<128xf32>
    %143 = vector.shape_cast %142 : vector<128xf32> to vector<1x128xf32>
    %144 = arith.mulf %141, %141 : vector<324x128xf32>
    %cst_64 = arith.constant dense<0.000000e+00> : vector<128xf32>
    %145 = vector.multi_reduction <add>, %144, %cst_64 [0] : vector<324x128xf32> to vector<128xf32>
    %146 = vector.shape_cast %145 : vector<128xf32> to vector<1x128xf32>
    %147 = tpu.concatenate %143, %146 in 0 : vector<1x128xf32>, vector<1x128xf32> -> vector<2x128xf32>
    %c0_65 = arith.constant 0 : index
    %c0_66 = arith.constant 0 : index
    %c0_67 = arith.constant 0 : index
    %148 = vector.load %arg6[%c0_65, %c0_66, %c0_67] : memref<1x2x128xf32, #tpu.memory_space<vmem>>, vector<1x2x128xf32>
    %149 = vector.shape_cast %148 : vector<1x2x128xf32> to vector<2x128xf32>
    %150 = vector.shape_cast %147 : vector<2x128xf32> to vector<1x2x128xf32>
    tpu.vector_store %arg6[%c0_65, %c0_66, %c0_67], %150 {strides = array<i32>} : memref<1x2x128xf32, #tpu.memory_space<vmem>>, vector<1x2x128xf32>,
    %151 = arith.truncf %109 : vector<324x128xf32> to vector<324x128xbf16>
    %c0_68 = arith.constant 0 : index
    %c0_69 = arith.constant 0 : index
    %c0_70 = arith.constant 0 : index
    %152 = vector.load %arg5[%c0_68, %c0_69, %c0_70] : memref<1x324x128xbf16, #tpu.memory_space<vmem>>, vector<1x324x128xbf16>
    %153 = vector.shape_cast %152 : vector<1x324x128xbf16> to vector<324x128xbf16>
    %154 = vector.shape_cast %151 : vector<324x128xbf16> to vector<1x324x128xbf16>
    tpu.vector_store %arg5[%c0_68, %c0_69, %c0_70], %154 {strides = array<i32>} : memref<1x324x128xbf16, #tpu.memory_space<vmem>>, vector<1x324x128xbf16>,
    return
  }
  func.func @transform_0(%arg0: i32) -> (i32, i32, i32) {
    %c0_i32 = arith.constant 0 : i32
    %c0_i32_0 = arith.constant 0 : i32
    %c0_i32_1 = arith.constant 0 : i32
    return %arg0, %c0_i32, %c0_i32_0 : i32, i32, i32
  }
  func.func @transform_1(%arg0: i32) -> (i32, i32, i32) {
    %c0_i32 = arith.constant 0 : i32
    %c0_i32_0 = arith.constant 0 : i32
    %c0_i32_1 = arith.constant 0 : i32
    %c0_i32_2 = arith.constant 0 : i32
    return %c0_i32, %c0_i32_0, %c0_i32_1 : i32, i32, i32
  }
  func.func @transform_2(%arg0: i32) -> (i32, i32) {
    %c0_i32 = arith.constant 0 : i32
    %c0_i32_0 = arith.constant 0 : i32
    %c0_i32_1 = arith.constant 0 : i32
    return %c0_i32, %c0_i32_0 : i32, i32
  }
  func.func @transform_3(%arg0: i32) -> (i32, i32) {
    %c0_i32 = arith.constant 0 : i32
    %c0_i32_0 = arith.constant 0 : i32
    %c0_i32_1 = arith.constant 0 : i32
    return %c0_i32, %c0_i32_0 : i32, i32
  }
  func.func @transform_4(%arg0: i32) -> (i32, i32, i32) {
    %c0_i32 = arith.constant 0 : i32
    %c0_i32_0 = arith.constant 0 : i32
    %c0_i32_1 = arith.constant 0 : i32
    return %arg0, %c0_i32, %c0_i32_0 : i32, i32, i32
  }
  func.func @transform_5(%arg0: i32) -> (i32, i32, i32) {
    %c0_i32 = arith.constant 0 : i32
    %c0_i32_0 = arith.constant 0 : i32
    %c0_i32_1 = arith.constant 0 : i32
    return %arg0, %c0_i32, %c0_i32_0 : i32, i32, i32
  }
}

module attributes {stable_mosaic.version = 11 : i64} {
  func.func @kernel(%arg0: i32, %arg1: memref<1x140x128xbf16, #tpu.memory_space<vmem>>, %arg2: memref<9x128x128xbf16, #tpu.memory_space<vmem>>, %arg3: memref<1x128xf32, #tpu.memory_space<vmem>>, %arg4: memref<1x128xf32, #tpu.memory_space<vmem>>, %arg5: memref<1x100x128xf32, #tpu.memory_space<vmem>>, %arg6: memref<1x128xf32, #tpu.memory_space<vmem>>, %arg7: memref<1x128xf32, #tpu.memory_space<vmem>>, %arg8: memref<128x128xbf16, #tpu.memory_space<vmem>>, %arg9: memref<1x100x128xf32, #tpu.memory_space<vmem>>) attributes {dimension_semantics = [#tpu.dimension_semantics<parallel>], iteration_bounds = array<i64: 2>, scalar_prefetch = 0 : i64, scratch_operands = 0 : i64, tpu.core_type = #tpu.core_type<tc>, window_params = [{transform_indices = @transform_0, window_bounds = array<i64: 1, 140, 128>}, {pipeline_mode = #tpu.pipeline_mode<synchronous>, transform_indices = @transform_1, window_bounds = array<i64: 9, 128, 128>}, {pipeline_mode = #tpu.pipeline_mode<synchronous>, transform_indices = @transform_2, window_bounds = array<i64: 1, 128>}, {pipeline_mode = #tpu.pipeline_mode<synchronous>, transform_indices = @transform_3, window_bounds = array<i64: 1, 128>}, {transform_indices = @transform_4, window_bounds = array<i64: 1, 100, 128>}, {pipeline_mode = #tpu.pipeline_mode<synchronous>, transform_indices = @transform_5, window_bounds = array<i64: 1, 128>}, {pipeline_mode = #tpu.pipeline_mode<synchronous>, transform_indices = @transform_6, window_bounds = array<i64: 1, 128>}, {pipeline_mode = #tpu.pipeline_mode<synchronous>, transform_indices = @transform_7, window_bounds = array<i64: 128, 128>}, {transform_indices = @transform_8, window_bounds = array<i64: 1, 100, 128>}]} {
    %0 = tpu.iota {dimensions = array<i32: 0>} : vector<140x1xi32>
    %1 = arith.sitofp %0 : vector<140x1xi32> to vector<140x1xf32>
    %cst = arith.constant 5.000000e-01 : f32
    %2 = vector.broadcast %cst : f32 to vector<140x1xf32>
    %3 = arith.addf %1, %2 : vector<140x1xf32>
    %cst_0 = arith.constant 1.000000e+01 : f32
    %4 = vector.broadcast %cst_0 : f32 to vector<140x1xf32>
    %5 = arith.divf %3, %4 : vector<140x1xf32>
    %6 = math.floor %5 : vector<140x1xf32>
    %cst_1 = arith.constant 1.000000e+01 : f32
    %7 = vector.broadcast %cst_1 : f32 to vector<140x1xf32>
    %8 = arith.mulf %6, %7 : vector<140x1xf32>
    %9 = arith.subf %1, %8 : vector<140x1xf32>
    %cst_2 = arith.constant 2.500000e+00 : f32
    %10 = vector.broadcast %cst_2 : f32 to vector<140x1xf32>
    %11 = arith.cmpf ogt, %6, %10 : vector<140x1xf32>
    %cst_3 = arith.constant 1.050000e+01 : f32
    %12 = vector.broadcast %cst_3 : f32 to vector<140x1xf32>
    %13 = arith.cmpf olt, %6, %12 : vector<140x1xf32>
    %14 = arith.andi %11, %13 : vector<140x1xi1>
    %cst_4 = arith.constant 5.000000e-01 : f32
    %15 = vector.broadcast %cst_4 : f32 to vector<140x1xf32>
    %16 = arith.cmpf ogt, %9, %15 : vector<140x1xf32>
    %17 = arith.andi %14, %16 : vector<140x1xi1>
    %cst_5 = arith.constant 8.500000e+00 : f32
    %18 = vector.broadcast %cst_5 : f32 to vector<140x1xf32>
    %19 = arith.cmpf olt, %9, %18 : vector<140x1xf32>
    %20 = arith.andi %17, %19 : vector<140x1xi1>
    %21 = tpu.iota {dimensions = array<i32: 0>} : vector<100x1xi32>
    %22 = arith.sitofp %21 : vector<100x1xi32> to vector<100x1xf32>
    %cst_6 = arith.constant 5.000000e-01 : f32
    %23 = vector.broadcast %cst_6 : f32 to vector<100x1xf32>
    %24 = arith.addf %22, %23 : vector<100x1xf32>
    %cst_7 = arith.constant 1.000000e+01 : f32
    %25 = vector.broadcast %cst_7 : f32 to vector<100x1xf32>
    %26 = arith.divf %24, %25 : vector<100x1xf32>
    %27 = math.floor %26 : vector<100x1xf32>
    %cst_8 = arith.constant 1.000000e+01 : f32
    %28 = vector.broadcast %cst_8 : f32 to vector<100x1xf32>
    %29 = arith.mulf %27, %28 : vector<100x1xf32>
    %30 = arith.subf %22, %29 : vector<100x1xf32>
    %cst_9 = arith.constant 5.000000e-01 : f32
    %31 = vector.broadcast %cst_9 : f32 to vector<100x1xf32>
    %32 = arith.cmpf ogt, %27, %31 : vector<100x1xf32>
    %cst_10 = arith.constant 8.500000e+00 : f32
    %33 = vector.broadcast %cst_10 : f32 to vector<100x1xf32>
    %34 = arith.cmpf olt, %27, %33 : vector<100x1xf32>
    %35 = arith.andi %32, %34 : vector<100x1xi1>
    %cst_11 = arith.constant 5.000000e-01 : f32
    %36 = vector.broadcast %cst_11 : f32 to vector<100x1xf32>
    %37 = arith.cmpf ogt, %30, %36 : vector<100x1xf32>
    %38 = arith.andi %35, %37 : vector<100x1xi1>
    %cst_12 = arith.constant 8.500000e+00 : f32
    %39 = vector.broadcast %cst_12 : f32 to vector<100x1xf32>
    %40 = arith.cmpf olt, %30, %39 : vector<100x1xf32>
    %41 = arith.andi %38, %40 : vector<100x1xi1>
    %c0 = arith.constant 0 : index
    %c0_13 = arith.constant 0 : index
    %c0_14 = arith.constant 0 : index
    %42 = vector.load %arg1[%c0, %c0_13, %c0_14] : memref<1x140x128xbf16, #tpu.memory_space<vmem>>, vector<1x140x128xbf16>
    %43 = vector.shape_cast %42 : vector<1x140x128xbf16> to vector<140x128xbf16>
    %44 = arith.extf %43 : vector<140x128xbf16> to vector<140x128xf32>
    %c0_15 = arith.constant 0 : index
    %c0_16 = arith.constant 0 : index
    %45 = vector.load %arg3[%c0_15, %c0_16] : memref<1x128xf32, #tpu.memory_space<vmem>>, vector<1x128xf32>
    %46 = vector.broadcast %45 : vector<1x128xf32> to vector<140x128xf32>
    %47 = arith.mulf %44, %46 : vector<140x128xf32>
    %c0_17 = arith.constant 0 : index
    %c0_18 = arith.constant 0 : index
    %48 = vector.load %arg4[%c0_17, %c0_18] : memref<1x128xf32, #tpu.memory_space<vmem>>, vector<1x128xf32>
    %49 = vector.broadcast %48 : vector<1x128xf32> to vector<140x128xf32>
    %50 = arith.addf %47, %49 : vector<140x128xf32>
    %cst_19 = arith.constant 0.000000e+00 : f32
    %51 = vector.broadcast %cst_19 : f32 to vector<140x128xf32>
    %52 = arith.cmpf oge, %50, %51 : vector<140x128xf32>
    %cst_20 = arith.constant 0.00999999977 : f32
    %53 = vector.broadcast %cst_20 : f32 to vector<140x128xf32>
    %54 = arith.mulf %53, %50 : vector<140x128xf32>
    %55 = arith.select %52, %50, %54 : vector<140x128xi1>, vector<140x128xf32>
    %cst_21 = arith.constant 0.000000e+00 : f32
    %56 = vector.shape_cast %20 : vector<140x1xi1> to vector<140x1xi1>
    %57 = vector.broadcast %56 : vector<140x1xi1> to vector<140x128xi1>
    %58 = vector.broadcast %cst_21 : f32 to vector<140x128xf32>
    %59 = arith.select %57, %55, %58 : vector<140x128xi1>, vector<140x128xf32>
    %60 = arith.truncf %59 : vector<140x128xf32> to vector<140x128xbf16>
    %cst_22 = arith.constant 0.000000e+00 : f32
    %61 = vector.broadcast %cst_22 : f32 to vector<100x128xf32>
    %62 = vector.extract_strided_slice %60 {offsets = [9, 0], sizes = [100, 128], strides = [1, 1]} : vector<140x128xbf16> to vector<100x128xbf16>
    %c0_23 = arith.constant 0 : index
    %c0_24 = arith.constant 0 : index
    %c0_25 = arith.constant 0 : index
    %63 = vector.load %arg2[%c0_23, %c0_24, %c0_25] : memref<9x128x128xbf16, #tpu.memory_space<vmem>>, vector<1x128x128xbf16>
    %64 = vector.shape_cast %63 : vector<1x128x128xbf16> to vector<128x128xbf16>
    %cst_26 = arith.constant dense<0.000000e+00> : vector<100x128xf32>
    %65 = tpu.matmul %62, %64, %cst_26 {dimension_numbers = #tpu.dot_dimension_numbers<[1], [0], [0], [1], [0, 0, 1, 1], [], []>} : vector<100x128xbf16>, vector<128x128xbf16>, vector<100x128xf32> -> vector<100x128xf32>
    %66 = arith.addf %61, %65 : vector<100x128xf32>
    %67 = vector.extract_strided_slice %60 {offsets = [10, 0], sizes = [100, 128], strides = [1, 1]} : vector<140x128xbf16> to vector<100x128xbf16>
    %c1 = arith.constant 1 : index
    %c0_27 = arith.constant 0 : index
    %c0_28 = arith.constant 0 : index
    %68 = vector.load %arg2[%c1, %c0_27, %c0_28] : memref<9x128x128xbf16, #tpu.memory_space<vmem>>, vector<1x128x128xbf16>
    %69 = vector.shape_cast %68 : vector<1x128x128xbf16> to vector<128x128xbf16>
    %cst_29 = arith.constant dense<0.000000e+00> : vector<100x128xf32>
    %70 = tpu.matmul %67, %69, %cst_29 {dimension_numbers = #tpu.dot_dimension_numbers<[1], [0], [0], [1], [0, 0, 1, 1], [], []>} : vector<100x128xbf16>, vector<128x128xbf16>, vector<100x128xf32> -> vector<100x128xf32>
    %71 = arith.addf %66, %70 : vector<100x128xf32>
    %72 = vector.extract_strided_slice %60 {offsets = [11, 0], sizes = [100, 128], strides = [1, 1]} : vector<140x128xbf16> to vector<100x128xbf16>
    %c2 = arith.constant 2 : index
    %c0_30 = arith.constant 0 : index
    %c0_31 = arith.constant 0 : index
    %73 = vector.load %arg2[%c2, %c0_30, %c0_31] : memref<9x128x128xbf16, #tpu.memory_space<vmem>>, vector<1x128x128xbf16>
    %74 = vector.shape_cast %73 : vector<1x128x128xbf16> to vector<128x128xbf16>
    %cst_32 = arith.constant dense<0.000000e+00> : vector<100x128xf32>
    %75 = tpu.matmul %72, %74, %cst_32 {dimension_numbers = #tpu.dot_dimension_numbers<[1], [0], [0], [1], [0, 0, 1, 1], [], []>} : vector<100x128xbf16>, vector<128x128xbf16>, vector<100x128xf32> -> vector<100x128xf32>
    %76 = arith.addf %71, %75 : vector<100x128xf32>
    %77 = vector.extract_strided_slice %60 {offsets = [19, 0], sizes = [100, 128], strides = [1, 1]} : vector<140x128xbf16> to vector<100x128xbf16>
    %c3 = arith.constant 3 : index
    %c0_33 = arith.constant 0 : index
    %c0_34 = arith.constant 0 : index
    %78 = vector.load %arg2[%c3, %c0_33, %c0_34] : memref<9x128x128xbf16, #tpu.memory_space<vmem>>, vector<1x128x128xbf16>
    %79 = vector.shape_cast %78 : vector<1x128x128xbf16> to vector<128x128xbf16>
    %cst_35 = arith.constant dense<0.000000e+00> : vector<100x128xf32>
    %80 = tpu.matmul %77, %79, %cst_35 {dimension_numbers = #tpu.dot_dimension_numbers<[1], [0], [0], [1], [0, 0, 1, 1], [], []>} : vector<100x128xbf16>, vector<128x128xbf16>, vector<100x128xf32> -> vector<100x128xf32>
    %81 = arith.addf %76, %80 : vector<100x128xf32>
    %82 = vector.extract_strided_slice %60 {offsets = [20, 0], sizes = [100, 128], strides = [1, 1]} : vector<140x128xbf16> to vector<100x128xbf16>
    %c4 = arith.constant 4 : index
    %c0_36 = arith.constant 0 : index
    %c0_37 = arith.constant 0 : index
    %83 = vector.load %arg2[%c4, %c0_36, %c0_37] : memref<9x128x128xbf16, #tpu.memory_space<vmem>>, vector<1x128x128xbf16>
    %84 = vector.shape_cast %83 : vector<1x128x128xbf16> to vector<128x128xbf16>
    %cst_38 = arith.constant dense<0.000000e+00> : vector<100x128xf32>
    %85 = tpu.matmul %82, %84, %cst_38 {dimension_numbers = #tpu.dot_dimension_numbers<[1], [0], [0], [1], [0, 0, 1, 1], [], []>} : vector<100x128xbf16>, vector<128x128xbf16>, vector<100x128xf32> -> vector<100x128xf32>
    %86 = arith.addf %81, %85 : vector<100x128xf32>
    %87 = vector.extract_strided_slice %60 {offsets = [21, 0], sizes = [100, 128], strides = [1, 1]} : vector<140x128xbf16> to vector<100x128xbf16>
    %c5 = arith.constant 5 : index
    %c0_39 = arith.constant 0 : index
    %c0_40 = arith.constant 0 : index
    %88 = vector.load %arg2[%c5, %c0_39, %c0_40] : memref<9x128x128xbf16, #tpu.memory_space<vmem>>, vector<1x128x128xbf16>
    %89 = vector.shape_cast %88 : vector<1x128x128xbf16> to vector<128x128xbf16>
    %cst_41 = arith.constant dense<0.000000e+00> : vector<100x128xf32>
    %90 = tpu.matmul %87, %89, %cst_41 {dimension_numbers = #tpu.dot_dimension_numbers<[1], [0], [0], [1], [0, 0, 1, 1], [], []>} : vector<100x128xbf16>, vector<128x128xbf16>, vector<100x128xf32> -> vector<100x128xf32>
    %91 = arith.addf %86, %90 : vector<100x128xf32>
    %92 = vector.extract_strided_slice %60 {offsets = [29, 0], sizes = [100, 128], strides = [1, 1]} : vector<140x128xbf16> to vector<100x128xbf16>
    %c6 = arith.constant 6 : index
    %c0_42 = arith.constant 0 : index
    %c0_43 = arith.constant 0 : index
    %93 = vector.load %arg2[%c6, %c0_42, %c0_43] : memref<9x128x128xbf16, #tpu.memory_space<vmem>>, vector<1x128x128xbf16>
    %94 = vector.shape_cast %93 : vector<1x128x128xbf16> to vector<128x128xbf16>
    %cst_44 = arith.constant dense<0.000000e+00> : vector<100x128xf32>
    %95 = tpu.matmul %92, %94, %cst_44 {dimension_numbers = #tpu.dot_dimension_numbers<[1], [0], [0], [1], [0, 0, 1, 1], [], []>} : vector<100x128xbf16>, vector<128x128xbf16>, vector<100x128xf32> -> vector<100x128xf32>
    %96 = arith.addf %91, %95 : vector<100x128xf32>
    %97 = vector.extract_strided_slice %60 {offsets = [30, 0], sizes = [100, 128], strides = [1, 1]} : vector<140x128xbf16> to vector<100x128xbf16>
    %c7 = arith.constant 7 : index
    %c0_45 = arith.constant 0 : index
    %c0_46 = arith.constant 0 : index
    %98 = vector.load %arg2[%c7, %c0_45, %c0_46] : memref<9x128x128xbf16, #tpu.memory_space<vmem>>, vector<1x128x128xbf16>
    %99 = vector.shape_cast %98 : vector<1x128x128xbf16> to vector<128x128xbf16>
    %cst_47 = arith.constant dense<0.000000e+00> : vector<100x128xf32>
    %100 = tpu.matmul %97, %99, %cst_47 {dimension_numbers = #tpu.dot_dimension_numbers<[1], [0], [0], [1], [0, 0, 1, 1], [], []>} : vector<100x128xbf16>, vector<128x128xbf16>, vector<100x128xf32> -> vector<100x128xf32>
    %101 = arith.addf %96, %100 : vector<100x128xf32>
    %102 = vector.extract_strided_slice %60 {offsets = [31, 0], sizes = [100, 128], strides = [1, 1]} : vector<140x128xbf16> to vector<100x128xbf16>
    %c8 = arith.constant 8 : index
    %c0_48 = arith.constant 0 : index
    %c0_49 = arith.constant 0 : index
    %103 = vector.load %arg2[%c8, %c0_48, %c0_49] : memref<9x128x128xbf16, #tpu.memory_space<vmem>>, vector<1x128x128xbf16>
    %104 = vector.shape_cast %103 : vector<1x128x128xbf16> to vector<128x128xbf16>
    %cst_50 = arith.constant dense<0.000000e+00> : vector<100x128xf32>
    %105 = tpu.matmul %102, %104, %cst_50 {dimension_numbers = #tpu.dot_dimension_numbers<[1], [0], [0], [1], [0, 0, 1, 1], [], []>} : vector<100x128xbf16>, vector<128x128xbf16>, vector<100x128xf32> -> vector<100x128xf32>
    %106 = arith.addf %101, %105 : vector<100x128xf32>
    %cst_51 = arith.constant 0.000000e+00 : f32
    %107 = vector.shape_cast %41 : vector<100x1xi1> to vector<100x1xi1>
    %108 = vector.broadcast %107 : vector<100x1xi1> to vector<100x128xi1>
    %109 = vector.broadcast %cst_51 : f32 to vector<100x128xf32>
    %110 = arith.select %108, %106, %109 : vector<100x128xi1>, vector<100x128xf32>
    %c0_52 = arith.constant 0 : index
    %c0_53 = arith.constant 0 : index
    %c0_54 = arith.constant 0 : index
    %111 = vector.load %arg5[%c0_52, %c0_53, %c0_54] : memref<1x100x128xf32, #tpu.memory_space<vmem>>, vector<1x100x128xf32>
    %112 = vector.shape_cast %111 : vector<1x100x128xf32> to vector<100x128xf32>
    %c0_55 = arith.constant 0 : index
    %c0_56 = arith.constant 0 : index
    %113 = vector.load %arg6[%c0_55, %c0_56] : memref<1x128xf32, #tpu.memory_space<vmem>>, vector<1x128xf32>
    %114 = vector.broadcast %113 : vector<1x128xf32> to vector<100x128xf32>
    %115 = arith.mulf %112, %114 : vector<100x128xf32>
    %c0_57 = arith.constant 0 : index
    %c0_58 = arith.constant 0 : index
    %116 = vector.load %arg7[%c0_57, %c0_58] : memref<1x128xf32, #tpu.memory_space<vmem>>, vector<1x128xf32>
    %117 = vector.broadcast %116 : vector<1x128xf32> to vector<100x128xf32>
    %118 = arith.addf %115, %117 : vector<100x128xf32>
    %cst_59 = arith.constant 0.000000e+00 : f32
    %119 = vector.broadcast %cst_59 : f32 to vector<100x128xf32>
    %120 = arith.cmpf oge, %118, %119 : vector<100x128xf32>
    %cst_60 = arith.constant 0.00999999977 : f32
    %121 = vector.broadcast %cst_60 : f32 to vector<100x128xf32>
    %122 = arith.mulf %121, %118 : vector<100x128xf32>
    %123 = arith.select %120, %118, %122 : vector<100x128xi1>, vector<100x128xf32>
    %cst_61 = arith.constant 0.000000e+00 : f32
    %124 = vector.shape_cast %41 : vector<100x1xi1> to vector<100x1xi1>
    %125 = vector.broadcast %124 : vector<100x1xi1> to vector<100x128xi1>
    %126 = vector.broadcast %cst_61 : f32 to vector<100x128xf32>
    %127 = arith.select %125, %123, %126 : vector<100x128xi1>, vector<100x128xf32>
    %128 = arith.truncf %127 : vector<100x128xf32> to vector<100x128xbf16>
    %c0_62 = arith.constant 0 : index
    %c0_63 = arith.constant 0 : index
    %129 = vector.load %arg8[%c0_62, %c0_63] : memref<128x128xbf16, #tpu.memory_space<vmem>>, vector<128x128xbf16>
    %cst_64 = arith.constant dense<0.000000e+00> : vector<100x128xf32>
    %130 = tpu.matmul %128, %129, %cst_64 {dimension_numbers = #tpu.dot_dimension_numbers<[1], [0], [0], [1], [0, 0, 1, 1], [], []>} : vector<100x128xbf16>, vector<128x128xbf16>, vector<100x128xf32> -> vector<100x128xf32>
    %131 = arith.addf %110, %130 : vector<100x128xf32>
    %c0_65 = arith.constant 0 : index
    %c0_66 = arith.constant 0 : index
    %c0_67 = arith.constant 0 : index
    %132 = vector.load %arg9[%c0_65, %c0_66, %c0_67] : memref<1x100x128xf32, #tpu.memory_space<vmem>>, vector<1x100x128xf32>
    %133 = vector.shape_cast %132 : vector<1x100x128xf32> to vector<100x128xf32>
    %134 = vector.shape_cast %131 : vector<100x128xf32> to vector<1x100x128xf32>
    tpu.vector_store %arg9[%c0_65, %c0_66, %c0_67], %134 {strides = array<i32>} : memref<1x100x128xf32, #tpu.memory_space<vmem>>, vector<1x100x128xf32>,
    return
  }
  func.func @transform_0(%arg0: i32) -> (i32, i32, i32) {
    %c0_i32 = arith.constant 0 : i32
    %c0_i32_0 = arith.constant 0 : i32
    %c0_i32_1 = arith.constant 0 : i32
    return %arg0, %c0_i32, %c0_i32_0 : i32, i32, i32
  }
  func.func @transform_1(%arg0: i32) -> (i32, i32, i32) {
    %c0_i32 = arith.constant 0 : i32
    %c0_i32_0 = arith.constant 0 : i32
    %c0_i32_1 = arith.constant 0 : i32
    %c0_i32_2 = arith.constant 0 : i32
    return %c0_i32, %c0_i32_0, %c0_i32_1 : i32, i32, i32
  }
  func.func @transform_2(%arg0: i32) -> (i32, i32) {
    %c0_i32 = arith.constant 0 : i32
    %c0_i32_0 = arith.constant 0 : i32
    %c0_i32_1 = arith.constant 0 : i32
    return %c0_i32, %c0_i32_0 : i32, i32
  }
  func.func @transform_3(%arg0: i32) -> (i32, i32) {
    %c0_i32 = arith.constant 0 : i32
    %c0_i32_0 = arith.constant 0 : i32
    %c0_i32_1 = arith.constant 0 : i32
    return %c0_i32, %c0_i32_0 : i32, i32
  }
  func.func @transform_4(%arg0: i32) -> (i32, i32, i32) {
    %c0_i32 = arith.constant 0 : i32
    %c0_i32_0 = arith.constant 0 : i32
    %c0_i32_1 = arith.constant 0 : i32
    return %arg0, %c0_i32, %c0_i32_0 : i32, i32, i32
  }
  func.func @transform_5(%arg0: i32) -> (i32, i32) {
    %c0_i32 = arith.constant 0 : i32
    %c0_i32_0 = arith.constant 0 : i32
    %c0_i32_1 = arith.constant 0 : i32
    return %c0_i32, %c0_i32_0 : i32, i32
  }
  func.func @transform_6(%arg0: i32) -> (i32, i32) {
    %c0_i32 = arith.constant 0 : i32
    %c0_i32_0 = arith.constant 0 : i32
    %c0_i32_1 = arith.constant 0 : i32
    return %c0_i32, %c0_i32_0 : i32, i32
  }
  func.func @transform_7(%arg0: i32) -> (i32, i32) {
    %c0_i32 = arith.constant 0 : i32
    %c0_i32_0 = arith.constant 0 : i32
    %c0_i32_1 = arith.constant 0 : i32
    return %c0_i32, %c0_i32_0 : i32, i32
  }
  func.func @transform_8(%arg0: i32) -> (i32, i32, i32) {
    %c0_i32 = arith.constant 0 : i32
    %c0_i32_0 = arith.constant 0 : i32
    %c0_i32_1 = arith.constant 0 : i32
    return %arg0, %c0_i32, %c0_i32_0 : i32, i32, i32
  }
}

</mosaic_0001>

<bundles_post_ra>
// kernel: basic_block_forward.3
= control target key start
LH: loop header
LB: loop body
LE: loop exit
PB: predicated region body
PF: predicated region fallthrough
CT: control target
= control target key end

     0   :  { %v289_v0 = vmov 0.0   ;;  %vm280_vm0 = vcmask 1040384   ;;  %s501_s0 = inlined_call_operand.vmem [shape: f32[512,128], index: 0, kind: input, shape index: {}]   ;;  %s502_s1 = inlined_call_operand.vmem [shape: f32[2,128], index: 1, kind: output, shape index: {}]  }
   0x1   :  { %12 = vst [vmem:[%s502_s1] sm:$0x3] %v289_v0  ;;  %v13_v1 = vld [vmem:[%s501_s0] sm:$0xff]  ;;  %v14_v2 = vld [vmem:[%s501_s0 + $0x8] sm:$0xff]  ;;  %v15_v3 = vld [vmem:[%s501_s0 + $0x10] sm:$0xff] }
   0x2   :  { %v16_v4 = vld [vmem:[%s501_s0 + $0x18] sm:$0xff]  ;;  %v77_v5 = vadd.f32 %v14_v2, %v13_v1  ;;  %v146_v6 = vmul.f32 %v13_v1, %v13_v1  ;;  %v147_v7 = vmul.f32 %v14_v2, %v14_v2  ;;  %v148_v8 = vmul.f32 %v15_v3, %v15_v3  ;;  %v17_v9 = vld [vmem:[%s501_s0 + $0x20] sm:$0xff]  ;;  %v18_v13 = vld [vmem:[%s501_s0 + $0x28] sm:$0xff] }
   0x3   :  { %v149_v11 = vmul.f32 %v16_v4, %v16_v4  ;;  %v150_v15 = vmul.f32 %v17_v9, %v17_v9  ;;  %v19_v17 = vld [vmem:[%s501_s0 + $0x30] sm:$0xff]  ;;  %v151_v19 = vmul.f32 %v18_v13, %v18_v13  ;;  %v20_v21 = vld [vmem:[%s501_s0 + $0x38] sm:$0xff]  ;;  %v21_v25 = vld [vmem:[%s501_s0 + $0x40] sm:$0xff] }
   0x4   :  { %v78_v10 = vadd.f32 %v77_v5, %v15_v3  ;;  %v210_v12 = vadd.f32 %v147_v7, %v146_v6  ;;  %v152_v23 = vmul.f32 %v19_v17, %v19_v17  ;;  %v153_v27 = vmul.f32 %v20_v21, %v20_v21  ;;  %v22_v29 = vld [vmem:[%s501_s0 + $0x48] sm:$0xff]  ;;  %v23_v33 = vld [vmem:[%s501_s0 + $0x50] sm:$0xff]  ;;  %v24_v37 = vld [vmem:[%s501_s0 + $0x58] sm:$0xff] }
   0x5   :  { %v154_v31 = vmul.f32 %v21_v25, %v21_v25  ;;  %v155_v35 = vmul.f32 %v22_v29, %v22_v29  ;;  %v156_v39 = vmul.f32 %v23_v33, %v23_v33  ;;  %v25_v41 = vld [vmem:[%s501_s0 + $0x60] sm:$0xff]  ;;  %v157_v43 = vmul.f32 %v24_v37, %v24_v37  ;;  %v26_v45 = vld [vmem:[%s501_s0 + $0x68] sm:$0xff]  ;;  %v27_v49 = vld [vmem:[%s501_s0 + $0x70] sm:$0xff] }
   0x6   :  { %v79_v14 = vadd.f32 %v78_v10, %v16_v4  ;;  %v211_v16 = vadd.f32 %v210_v12, %v148_v8  ;;  %v158_v47 = vmul.f32 %v25_v41, %v25_v41  ;;  %v159_v51 = vmul.f32 %v26_v45, %v26_v45  ;;  %v28_v53 = vld [vmem:[%s501_s0 + $0x78] sm:$0xff]  ;;  %v29_v57 = vld [vmem:[%s501_s0 + $0x80] sm:$0xff]  ;;  %v30_v61 = vld [vmem:[%s501_s0 + $0x88] sm:$0xff] }
   0x7   :  { %v160_v55 = vmul.f32 %v27_v49, %v27_v49  ;;  %v161_v59 = vmul.f32 %v28_v53, %v28_v53  ;;  %v162_v63 = vmul.f32 %v29_v57, %v29_v57  ;;  %v31_v1 = vld [vmem:[%s501_s0 + $0x90] sm:$0xff]  ;;  %v163_v3 = vmul.f32 %v30_v61, %v30_v61  ;;  %v32_v5 = vld [vmem:[%s501_s0 + $0x98] sm:$0xff] }
   0x8   :  { %v80_v18 = vadd.f32 %v79_v14, %v17_v9  ;;  %v212_v20 = vadd.f32 %v211_v16, %v149_v11  ;;  %v164_v7 = vmul.f32 %v31_v1, %v31_v1  ;;  %v33_v9 = vld [vmem:[%s501_s0 + $0xa0] sm:$0xff]  ;;  %v165_v11 = vmul.f32 %v32_v5, %v32_v5 }
   0xa   :  { %v81_v22 = vadd.f32 %v80_v18, %v18_v13  ;;  %v213_v24 = vadd.f32 %v212_v20, %v150_v15  ;;  %v34_v13 = vld [vmem:[%s501_s0 + $0xa8] sm:$0xff]  ;;  %v166_v15 = vmul.f32 %v33_v9, %v33_v9 }
   0xc   :  { %v82_v26 = vadd.f32 %v81_v22, %v19_v17  ;;  %v214_v28 = vadd.f32 %v213_v24, %v151_v19  ;;  %v35_v17 = vld [vmem:[%s501_s0 + $0xb0] sm:$0xff]  ;;  %v167_v19 = vmul.f32 %v34_v13, %v34_v13 }
   0xe   :  { %v83_v30 = vadd.f32 %v82_v26, %v20_v21  ;;  %v215_v32 = vadd.f32 %v214_v28, %v152_v23  ;;  %v36_v21 = vld [vmem:[%s501_s0 + $0xb8] sm:$0xff]  ;;  %v168_v23 = vmul.f32 %v35_v17, %v35_v17 }
  0x10   :  { %v84_v34 = vadd.f32 %v83_v30, %v21_v25  ;;  %v216_v36 = vadd.f32 %v215_v32, %v153_v27  ;;  %v37_v25 = vld [vmem:[%s501_s0 + $0xc0] sm:$0xff]  ;;  %v169_v27 = vmul.f32 %v36_v21, %v36_v21 }
  0x12   :  { %v85_v38 = vadd.f32 %v84_v34, %v22_v29  ;;  %v217_v40 = vadd.f32 %v216_v36, %v154_v31  ;;  %v38_v29 = vld [vmem:[%s501_s0 + $0xc8] sm:$0xff]  ;;  %v170_v31 = vmul.f32 %v37_v25, %v37_v25 }
  0x14   :  { %v86_v42 = vadd.f32 %v85_v38, %v23_v33  ;;  %v218_v44 = vadd.f32 %v217_v40, %v155_v35  ;;  %v39_v33 = vld [vmem:[%s501_s0 + $0xd0] sm:$0xff]  ;;  %v171_v35 = vmul.f32 %v38_v29, %v38_v29 }
  0x16   :  { %v87_v46 = vadd.f32 %v86_v42, %v24_v37  ;;  %v219_v48 = vadd.f32 %v218_v44, %v156_v39  ;;  %v40_v37 = vld [vmem:[%s501_s0 + $0xd8] sm:$0xff]  ;;  %v172_v39 = vmul.f32 %v39_v33, %v39_v33 }
  0x18   :  { %v88_v50 = vadd.f32 %v87_v46, %v25_v41  ;;  %v220_v52 = vadd.f32 %v219_v48, %v157_v43  ;;  %v41_v41 = vld [vmem:[%s501_s0 + $0xe0] sm:$0xff]  ;;  %v173_v43 = vmul.f32 %v40_v37, %v40_v37 }
  0x1a   :  { %v89_v54 = vadd.f32 %v88_v50, %v26_v45  ;;  %v221_v56 = vadd.f32 %v220_v52, %v158_v47  ;;  %v42_v45 = vld [vmem:[%s501_s0 + $0xe8] sm:$0xff]  ;;  %v174_v47 = vmul.f32 %v41_v41, %v41_v41 }
  0x1c   :  { %v90_v58 = vadd.f32 %v89_v54, %v27_v49  ;;  %v222_v60 = vadd.f32 %v221_v56, %v159_v51  ;;  %v43_v49 = vld [vmem:[%s501_s0 + $0xf0] sm:$0xff]  ;;  %v175_v51 = vmul.f32 %v42_v45, %v42_v45 }
  0x1e   :  { %v91_v62 = vadd.f32 %v90_v58, %v28_v53  ;;  %v223_v0 = vadd.f32 %v222_v60, %v160_v55  ;;  %v44_v53 = vld [vmem:[%s501_s0 + $0xf8] sm:$0xff]  ;;  %v176_v55 = vmul.f32 %v43_v49, %v43_v49 }
  0x20   :  { %v92_v2 = vadd.f32 %v91_v62, %v29_v57  ;;  %v224_v4 = vadd.f32 %v223_v0, %v161_v59  ;;  %v45_v57 = vld [vmem:[%s501_s0 + $0x100] sm:$0xff]  ;;  %v177_v59 = vmul.f32 %v44_v53, %v44_v53 }
  0x22   :  { %v93_v6 = vadd.f32 %v92_v2, %v30_v61  ;;  %v225_v8 = vadd.f32 %v224_v4, %v162_v63  ;;  %v46_v61 = vld [vmem:[%s501_s0 + $0x108] sm:$0xff]  ;;  %v178_v63 = vmul.f32 %v45_v57, %v45_v57 }
  0x24   :  { %v94_v10 = vadd.f32 %v93_v6, %v31_v1  ;;  %v226_v12 = vadd.f32 %v225_v8, %v163_v3  ;;  %v47_v1 = vld [vmem:[%s501_s0 + $0x110] sm:$0xff]  ;;  %v179_v3 = vmul.f32 %v46_v61, %v46_v61 }
  0x26   :  { %v95_v14 = vadd.f32 %v94_v10, %v32_v5  ;;  %v227_v16 = vadd.f32 %v226_v12, %v164_v7  ;;  %v48_v5 = vld [vmem:[%s501_s0 + $0x118] sm:$0xff]  ;;  %v180_v7 = vmul.f32 %v47_v1, %v47_v1 }
  0x28   :  { %v96_v18 = vadd.f32 %v95_v14, %v33_v9  ;;  %v228_v20 = vadd.f32 %v227_v16, %v165_v11  ;;  %v49_v9 = vld [vmem:[%s501_s0 + $0x120] sm:$0xff]  ;;  %v181_v11 = vmul.f32 %v48_v5, %v48_v5 }
  0x2a   :  { %v97_v22 = vadd.f32 %v96_v18, %v34_v13  ;;  %v229_v24 = vadd.f32 %v228_v20, %v166_v15  ;;  %v50_v13 = vld [vmem:[%s501_s0 + $0x128] sm:$0xff]  ;;  %v182_v15 = vmul.f32 %v49_v9, %v49_v9 }
  0x2c   :  { %v98_v26 = vadd.f32 %v97_v22, %v35_v17  ;;  %v230_v28 = vadd.f32 %v229_v24, %v167_v19  ;;  %v51_v17 = vld [vmem:[%s501_s0 + $0x130] sm:$0xff]  ;;  %v183_v19 = vmul.f32 %v50_v13, %v50_v13 }
  0x2e   :  { %v99_v30 = vadd.f32 %v98_v26, %v36_v21  ;;  %v231_v32 = vadd.f32 %v230_v28, %v168_v23  ;;  %v52_v21 = vld [vmem:[%s501_s0 + $0x138] sm:$0xff]  ;;  %v184_v23 = vmul.f32 %v51_v17, %v51_v17 }
  0x30   :  { %v100_v34 = vadd.f32 %v99_v30, %v37_v25  ;;  %v232_v36 = vadd.f32 %v231_v32, %v169_v27  ;;  %v53_v25 = vld [vmem:[%s501_s0 + $0x140] sm:$0xff]  ;;  %v185_v27 = vmul.f32 %v52_v21, %v52_v21 }
  0x32   :  { %v101_v38 = vadd.f32 %v100_v34, %v38_v29  ;;  %v233_v40 = vadd.f32 %v232_v36, %v170_v31  ;;  %v54_v29 = vld [vmem:[%s501_s0 + $0x148] sm:$0xff]  ;;  %v186_v31 = vmul.f32 %v53_v25, %v53_v25 }
  0x34   :  { %v102_v42 = vadd.f32 %v101_v38, %v39_v33  ;;  %v234_v44 = vadd.f32 %v233_v40, %v171_v35  ;;  %v55_v33 = vld [vmem:[%s501_s0 + $0x150] sm:$0xff]  ;;  %v187_v35 = vmul.f32 %v54_v29, %v54_v29 }
  0x36   :  { %v103_v46 = vadd.f32 %v102_v42, %v40_v37  ;;  %v235_v48 = vadd.f32 %v234_v44, %v172_v39  ;;  %v56_v37 = vld [vmem:[%s501_s0 + $0x158] sm:$0xff]  ;;  %v188_v39 = vmul.f32 %v55_v33, %v55_v33 }
  0x38   :  { %v104_v50 = vadd.f32 %v103_v46, %v41_v41  ;;  %v236_v52 = vadd.f32 %v235_v48, %v173_v43  ;;  %v57_v41 = vld [vmem:[%s501_s0 + $0x160] sm:$0xff]  ;;  %v189_v43 = vmul.f32 %v56_v37, %v56_v37 }
  0x3a   :  { %v105_v54 = vadd.f32 %v104_v50, %v42_v45  ;;  %v237_v56 = vadd.f32 %v236_v52, %v174_v47  ;;  %v58_v45 = vld [vmem:[%s501_s0 + $0x168] sm:$0xff]  ;;  %v190_v47 = vmul.f32 %v57_v41, %v57_v41 }
  0x3c   :  { %v106_v58 = vadd.f32 %v105_v54, %v43_v49  ;;  %v238_v60 = vadd.f32 %v237_v56, %v175_v51  ;;  %v59_v49 = vld [vmem:[%s501_s0 + $0x170] sm:$0xff]  ;;  %v191_v51 = vmul.f32 %v58_v45, %v58_v45 }
  0x3e   :  { %v107_v62 = vadd.f32 %v106_v58, %v44_v53  ;;  %v239_v0 = vadd.f32 %v238_v60, %v176_v55  ;;  %v60_v53 = vld [vmem:[%s501_s0 + $0x178] sm:$0xff]  ;;  %v192_v55 = vmul.f32 %v59_v49, %v59_v49 }
  0x40   :  { %v108_v2 = vadd.f32 %v107_v62, %v45_v57  ;;  %v240_v4 = vadd.f32 %v239_v0, %v177_v59  ;;  %v61_v57 = vld [vmem:[%s501_s0 + $0x180] sm:$0xff]  ;;  %v193_v59 = vmul.f32 %v60_v53, %v60_v53 }
  0x42   :  { %v109_v6 = vadd.f32 %v108_v2, %v46_v61  ;;  %v241_v8 = vadd.f32 %v240_v4, %v178_v63  ;;  %v62_v61 = vld [vmem:[%s501_s0 + $0x188] sm:$0xff]  ;;  %v194_v63 = vmul.f32 %v61_v57, %v61_v57 }
  0x44   :  { %v110_v10 = vadd.f32 %v109_v6, %v47_v1  ;;  %v242_v12 = vadd.f32 %v241_v8, %v179_v3  ;;  %v63_v1 = vld [vmem:[%s501_s0 + $0x190] sm:$0xff]  ;;  %v195_v3 = vmul.f32 %v62_v61, %v62_v61 }
  0x46   :  { %v111_v14 = vadd.f32 %v110_v10, %v48_v5  ;;  %v243_v16 = vadd.f32 %v242_v12, %v180_v7  ;;  %v64_v5 = vld [vmem:[%s501_s0 + $0x198] sm:$0xff]  ;;  %v196_v7 = vmul.f32 %v63_v1, %v63_v1 }
  0x48   :  { %v112_v18 = vadd.f32 %v111_v14, %v49_v9  ;;  %v244_v20 = vadd.f32 %v243_v16, %v181_v11  ;;  %v65_v9 = vld [vmem:[%s501_s0 + $0x1a0] sm:$0xff]  ;;  %v197_v11 = vmul.f32 %v64_v5, %v64_v5 }
  0x4a   :  { %v113_v22 = vadd.f32 %v112_v18, %v50_v13  ;;  %v245_v24 = vadd.f32 %v244_v20, %v182_v15  ;;  %v66_v13 = vld [vmem:[%s501_s0 + $0x1a8] sm:$0xff]  ;;  %v198_v15 = vmul.f32 %v65_v9, %v65_v9 }
  0x4c   :  { %v114_v26 = vadd.f32 %v113_v22, %v51_v17  ;;  %v246_v28 = vadd.f32 %v245_v24, %v183_v19  ;;  %v67_v17 = vld [vmem:[%s501_s0 + $0x1b0] sm:$0xff]  ;;  %v199_v19 = vmul.f32 %v66_v13, %v66_v13 }
  0x4e   :  { %v115_v30 = vadd.f32 %v114_v26, %v52_v21  ;;  %v247_v32 = vadd.f32 %v246_v28, %v184_v23  ;;  %v68_v21 = vld [vmem:[%s501_s0 + $0x1b8] sm:$0xff]  ;;  %v200_v23 = vmul.f32 %v67_v17, %v67_v17 }
  0x50   :  { %v116_v34 = vadd.f32 %v115_v30, %v53_v25  ;;  %v248_v36 = vadd.f32 %v247_v32, %v185_v27  ;;  %v69_v25 = vld [vmem:[%s501_s0 + $0x1c0] sm:$0xff]  ;;  %v201_v27 = vmul.f32 %v68_v21, %v68_v21 }
  0x52   :  { %v117_v38 = vadd.f32 %v116_v34, %v54_v29  ;;  %v249_v40 = vadd.f32 %v248_v36, %v186_v31  ;;  %v70_v29 = vld [vmem:[%s501_s0 + $0x1c8] sm:$0xff]  ;;  %v202_v31 = vmul.f32 %v69_v25, %v69_v25 }
  0x54   :  { %v118_v42 = vadd.f32 %v117_v38, %v55_v33  ;;  %v250_v44 = vadd.f32 %v249_v40, %v187_v35  ;;  %v71_v33 = vld [vmem:[%s501_s0 + $0x1d0] sm:$0xff]  ;;  %v203_v35 = vmul.f32 %v70_v29, %v70_v29 }
  0x56   :  { %v119_v46 = vadd.f32 %v118_v42, %v56_v37  ;;  %v251_v48 = vadd.f32 %v250_v44, %v188_v39  ;;  %v72_v37 = vld [vmem:[%s501_s0 + $0x1d8] sm:$0xff]  ;;  %v204_v39 = vmul.f32 %v71_v33, %v71_v33 }
  0x58   :  { %v120_v50 = vadd.f32 %v119_v46, %v57_v41  ;;  %v252_v52 = vadd.f32 %v251_v48, %v189_v43  ;;  %v73_v41 = vld [vmem:[%s501_s0 + $0x1e0] sm:$0xff]  ;;  %v205_v43 = vmul.f32 %v72_v37, %v72_v37 }
  0x5a   :  { %v121_v54 = vadd.f32 %v120_v50, %v58_v45  ;;  %v253_v56 = vadd.f32 %v252_v52, %v190_v47  ;;  %v74_v45 = vld [vmem:[%s501_s0 + $0x1e8] sm:$0xff]  ;;  %v206_v47 = vmul.f32 %v73_v41, %v73_v41 }
  0x5c   :  { %v122_v58 = vadd.f32 %v121_v54, %v59_v49  ;;  %v254_v60 = vadd.f32 %v253_v56, %v191_v51  ;;  %v75_v49 = vld [vmem:[%s501_s0 + $0x1f0] sm:$0xff]  ;;  %v207_v51 = vmul.f32 %v74_v45, %v74_v45 }
  0x5e   :  { %v123_v62 = vadd.f32 %v122_v58, %v60_v53  ;;  %v255_v0 = vadd.f32 %v254_v60, %v192_v55  ;;  %v76_v53 = vld [vmem:[%s501_s0 + $0x1f8] sm:$0xff]  ;;  %v208_v55 = vmul.f32 %v75_v49, %v75_v49 }
  0x5f   :  { %v209_v58 = vmul.f32 %v76_v53, %v76_v53 }
  0x60   :  { %v124_v2 = vadd.f32 %v123_v62, %v61_v57  ;;  %v256_v4 = vadd.f32 %v255_v0, %v193_v59 }
  0x62   :  { %v125_v6 = vadd.f32 %v124_v2, %v62_v61  ;;  %v257_v8 = vadd.f32 %v256_v4, %v194_v63 }
  0x64   :  { %v126_v10 = vadd.f32 %v125_v6, %v63_v1  ;;  %v258_v12 = vadd.f32 %v257_v8, %v195_v3 }
  0x66   :  { %v127_v14 = vadd.f32 %v126_v10, %v64_v5  ;;  %v259_v16 = vadd.f32 %v258_v12, %v196_v7 }
  0x68   :  { %v128_v18 = vadd.f32 %v127_v14, %v65_v9  ;;  %v260_v20 = vadd.f32 %v259_v16, %v197_v11  ;;  %v279_v11 = vld [vmem:[%s502_s1] sm:$0x3] }
  0x6a   :  { %v129_v22 = vadd.f32 %v128_v18, %v66_v13  ;;  %v261_v24 = vadd.f32 %v260_v20, %v198_v15 }
  0x6c   :  { %v130_v26 = vadd.f32 %v129_v22, %v67_v17  ;;  %v262_v28 = vadd.f32 %v261_v24, %v199_v19 }
  0x6e   :  { %v131_v30 = vadd.f32 %v130_v26, %v68_v21  ;;  %v263_v32 = vadd.f32 %v262_v28, %v200_v23 }
  0x70   :  { %v132_v34 = vadd.f32 %v131_v30, %v69_v25  ;;  %v264_v36 = vadd.f32 %v263_v32, %v201_v27 }
  0x72   :  { %v133_v38 = vadd.f32 %v132_v34, %v70_v29  ;;  %v265_v40 = vadd.f32 %v264_v36, %v202_v31 }
  0x74   :  { %v134_v42 = vadd.f32 %v133_v38, %v71_v33  ;;  %v266_v44 = vadd.f32 %v265_v40, %v203_v35 }
  0x76   :  { %v135_v46 = vadd.f32 %v134_v42, %v72_v37  ;;  %v267_v48 = vadd.f32 %v266_v44, %v204_v39 }
  0x78   :  { %v136_v50 = vadd.f32 %v135_v46, %v73_v41  ;;  %v268_v52 = vadd.f32 %v267_v48, %v205_v43 }
  0x7a   :  { %v137_v54 = vadd.f32 %v136_v50, %v74_v45  ;;  %v269_v56 = vadd.f32 %v268_v52, %v206_v47 }
  0x7c   :  { %v138_v57 = vadd.f32 %v137_v54, %v75_v49  ;;  %v270_v59 = vadd.f32 %v269_v56, %v207_v51 }
  0x7e   :  { %v139_v60 = vadd.f32 %v138_v57, %v76_v53  ;;  %v271_v61 = vadd.f32 %v270_v59, %v208_v55 }
  0x80   :  { %v140_v62 = vrot.slane %v139_v60, 4  ;;  %v272_v63 = vadd.f32 %v271_v61, %v209_v58 }
  0x82   :  { %v141_v0 = vadd.f32 %v140_v62, %v139_v60  ;;  %v273_v1 = vrot.slane %v272_v63, 4 }
  0x84   :  { %v142_v2 = vrot.slane %v141_v0, 2  ;;  %v274_v3 = vadd.f32 %v273_v1, %v272_v63 }
  0x86   :  { %v143_v4 = vadd.f32 %v142_v2, %v141_v0  ;;  %v275_v5 = vrot.slane %v274_v3, 2 }
  0x88   :  { %v144_v6 = vrot.slane %v143_v4, 1  ;;  %v276_v7 = vadd.f32 %v275_v5, %v274_v3 }
  0x8a   :  { %v145_v8 = vadd.f32 %v144_v6, %v143_v4  ;;  %v277_v9 = vrot.slane %v276_v7, 1 }
  0x8c   :  { %v278_v10 = vadd.f32 %v277_v9, %v276_v7 }
  0x8e   :  { %v281_v12 = vsel %vm280_vm0, %v145_v8, %v278_v10 }
  0x8f   :  { %v282_v13 = vadd.f32 %v281_v12, %v279_v11 }
  0x91   :  { %283 = vst [vmem:[%s502_s1] sm:$0x3] %v282_v13 }

// kernel: basic_block_forward.4
= control target key start
LH: loop header
LB: loop body
LE: loop exit
PB: predicated region body
PF: predicated region fallthrough
CT: control target
= control target key end

     0   :  { %s8823_s18 = smov 0   ;;  %s14198_s0 = inlined_call_operand.vmem [shape: f32[2,396,128], index: 0, kind: input, shape index: {}]   ;;  %s14199_s1 = inlined_call_operand.vmem [shape: bf16[9,128,128], index: 1, kind: input, shape index: {}]   ;;  %s14200_s2 = inlined_call_operand.vmem [shape: f32[1,128], index: 2, kind: input, shape index: {}]   ;;  %s14201_s3 = inlined_call_operand.vmem [shape: f32[1,128], index: 3, kind: input, shape index: {}]   ;;  %s14202_s4 = inlined_call_operand.vmem [shape: bf16[2,324,128], index: 4, kind: output, shape index: {0}]   ;;  %s14203_s5 = inlined_call_operand.vmem [shape: f32[2,2,128], index: 5, kind: output, shape index: {1}]  }
   0x1 LB: > { %s6382_s19 = sadd.s32 4294967295, %s8788_s18   ;;  %p6386_p0 = scmp.ge.s32.totalorder %s8788_s18, 1  ;;  %s8788_s18 = sphi %s8823_s18, %s16_s18  }
   0x2   : > { %p190_p1 = scmp.lt.s32.totalorder %s8788_s18, 3 }
   0x4   : > { %p191_p2 = pnand %p6386_p0, %p190_p1 }
   0x6   : > { %194 = sbr.rel (%p191_p2) target bundleno = 1126 (0x466), region = 36 }
   0xd   : > { %v8696_v0 = vld [vmem:[%s14199_s1 + $0x40] sm:$0xff]   ;;  %v237_v1 = vlaneseq  ;;  %v14230_v2 = vmov 0.0   ;;  %v8698_v4 = vld [vmem:[%s14199_s1 + $0x48] sm:$0xff]   ;;  %vm14205_vm0 = vmmov 0   ;;  %p222_p3 = scmp.lt.s32.totalorder %s6382_s19, 1  ;;  %v8700_v8 = vld [vmem:[%s14199_s1 + $0x50] sm:$0xff]  }
   0xe   : > { %7138 = vmatprep.subr.bf16.mxu1 %v14230_v2  ;;  %7538 = vmatprep.subr.bf16.mxu0 %v14230_v2  ;;  %v8697_v3 = vld [vmem:[%s14199_s1 + $0x100] sm:$0xff]   ;;  %v8699_v5 = vld [vmem:[%s14199_s1 + $0x108] sm:$0xff]   ;;  %v8701_v9 = vld [vmem:[%s14199_s1 + $0x110] sm:$0xff]  }
   0xf   : > { %7139 = vmatpush3.bf16.msra.mxu1 %v8696_v0  ;;  %7154 = vmatprep.mubr.msk.bf16.mxu1 %vm14205_vm0, %v14230_v2  ;;  %v8848_v6 = vshrl.u32 %v237_v1, 7  ;;  %s15613_s19 = smov (!%p222_p3, %s6382_s19), 1  ;;  %v8702_v15 = vld [vmem:[%s14199_s1 + $0x58] sm:$0xff]   ;;  %v8704_v23 = vld [vmem:[%s14199_s1 + $0x60] sm:$0xff]   ;;  %v8706_v34 = vld [vmem:[%s14199_s1 + $0x68] sm:$0xff]  }
  0x10   : > { %7539 = vmatpush3.bf16.msra.mxu0 %v8697_v3  ;;  %7140 = vmatprep.subr.bf16.mxu1 %v14230_v2  ;;  %s8683_s9 = smul.u32 400, %s15613_s19  ;;  %v8703_v17 = vld [vmem:[%s14199_s1 + $0x118] sm:$0xff]   ;;  %v8705_v24 = vld [vmem:[%s14199_s1 + $0x120] sm:$0xff]   ;;  %v8707_v40 = vld [vmem:[%s14199_s1 + $0x128] sm:$0xff]   ;;  %s6389_s25 = sshll.u32 %s15613_s19, 1 }
  0x11   : > { %14560 = vst [vmem:[#allocation2_spill] sm:$0xff] %v8848_v6  ;;  %7540 = vmatprep.subr.bf16.mxu0 %v14230_v2  ;;  %7554 = vmatprep.mubr.msk.bf16.mxu0 %vm14205_vm0, %v14230_v2  ;;  %v8854_v7 = vadd.s32 16, %v8848_v6  ;;  %v8866_v10 = vadd.s32 24, %v8848_v6  ;;  %v8871_v12 = vadd.s32 32, %v8848_v6  ;;  %v8874_v13 = vadd.s32 40, %v8848_v6  ;;  %v8708_v45 = vld [vmem:[%s14199_s1 + $0x70] sm:$0xff]   ;;  %s235_s28 = scalar_lea.vmem %s14203_s5, %s6389_s25 }
  0x12   : > { %s8894_s16 = scalar_lea.vmem %s14198_s0, %s8683_s9  ;;  %v8901_v25 = vadd.s32 48, %v8848_v6  ;;  %v8908_v33 = vadd.s32 56, %v8848_v6  ;;  %v8922_v38 = vld [vmem:[%s14200_s2] ss:$0 sm:$0xff]  ;;  %v8709_v49 = vld [vmem:[%s14199_s1 + $0x130] sm:$0xff]   ;;  %v8710_v62 = vld [vmem:[%s14199_s1 + $0x78] sm:$0xff]  }
  0x13   : > { %7141 = vmatpush3.bf16.msra.mxu1 %v8698_v4  ;;  %v285_v11 = vcvt.s32.f32 %v8854_v7  ;;  %v286_v14 = vcvt.s32.f32 %v8866_v10  ;;  %v287_v16 = vcvt.s32.f32 %v8871_v12  ;;  %v288_v18 = vcvt.s32.f32 %v8874_v13  ;;  %v1106_v30 = vld [vmem:[%s8894_s16 + $0x10] sm:$0xff]  ;;  %v1107_v31 = vld [vmem:[%s8894_s16 + $0x18] sm:$0xff]  ;;  %v1108_v32 = vld [vmem:[%s8894_s16 + $0x20] sm:$0xff]  ;;  %s8684_s21 = smul.u32 164, %s15613_s19 }
  0x14   : > { %7541 = vmatpush3.bf16.msra.mxu0 %v8699_v5  ;;  %7142 = vmatprep.subr.bf16.mxu1 %v14230_v2  ;;  %v289_v39 = vcvt.s32.f32 %v8901_v25  ;;  %v1159_v42 = vmul.f32 %v8922_v38, %v1106_v30  ;;  %v1160_v43 = vmul.f32 %v8922_v38, %v1107_v31  ;;  %v1161_v44 = vmul.f32 %v8922_v38, %v1108_v32  ;;  %v1109_v51 = vld [vmem:[%s8894_s16 + $0x28] sm:$0xff]  ;;  %v8953_v52 = vld [vmem:[%s14201_s3] ss:$0 sm:$0xff]  ;;  %v1110_v56 = vld [vmem:[%s8894_s16 + $0x30] sm:$0xff] }
  0x15   : > { %7542 = vmatprep.subr.bf16.mxu0 %v14230_v2  ;;  %v331_v19 = vadd.f32 0.5, %v285_v11  ;;  %v332_v20 = vadd.f32 0.5, %v286_v14  ;;  %v333_v21 = vadd.f32 0.5, %v287_v16  ;;  %v334_v22 = vadd.f32 0.5, %v288_v18  ;;  %v1111_v59 = vld [vmem:[%s8894_s16 + $0x38] sm:$0xff]  ;;  %v8716_v12 = vld [vmem:[%s14199_s1 + $0x8] sm:$0xff]   ;;  %s12821_s24 = scalar_lea.vmem %s14202_s4, %s8684_s21 }
  0x16   : > { %v1162_v0 = vmul.f32 %v8922_v38, %v1109_v51  ;;  %v1212_v1 = vadd.f32 %v8953_v52, %v1159_v42  ;;  %v1213_v3 = vadd.f32 %v8953_v52, %v1160_v43  ;;  %v1214_v4 = vadd.f32 %v8953_v52, %v1161_v44  ;;  %v8711_v5 = vld [vmem:[%s14199_s1 + $0x138] sm:$0xff]   ;;  %v1112_v51 = vld [vmem:[%s8894_s16 + $0x40] sm:$0xff] }
  0x17   : > { %7143 = vmatpush3.bf16.msra.mxu1 %v8700_v8  ;;  %v378_v26 = vmul.f32 0.055555556, %v331_v19  ;;  %v379_v27 = vmul.f32 0.055555556, %v332_v20  ;;  %v380_v28 = vmul.f32 0.055555556, %v333_v21  ;;  %v290_v8 = vcvt.s32.f32 %v8908_v33 }
  0x18   : > { %7543 = vmatpush3.bf16.msra.mxu0 %v8701_v9  ;;  %7144 = vmatprep.subr.bf16.mxu1 %v14230_v2  ;;  %v381_v29 = vmul.f32 0.055555556, %v334_v22  ;;  %v335_v9 = vadd.f32 0.5, %v289_v39  ;;  %v1163_v10 = vmul.f32 %v8922_v38, %v1110_v56  ;;  %v1215_v13 = vadd.f32 %v8953_v52, %v1162_v0  ;;  %v1113_v56 = vld [vmem:[%s8894_s16 + $0x48] sm:$0xff] }
  0x19   : > { %7544 = vmatprep.subr.bf16.mxu0 %v14230_v2  ;;  %v8913_v35 = vfloor.f32 %v378_v26  ;;  %v8915_v36 = vfloor.f32 %v379_v27  ;;  %v8917_v37 = vfloor.f32 %v380_v28  ;;  %v336_v21 = vadd.f32 0.5, %v290_v8 }
  0x1a   : > { %v8929_v41 = vfloor.f32 %v381_v29  ;;  %v1307_v20 = vmul.f32 0.01, %v1215_v13  ;;  %v382_v22 = vmul.f32 0.055555556, %v335_v9  ;;  %v9123_v63 = vadd.s32 64, %v8848_v6 }
  0x1b   : > { %7145 = vmatpush3.bf16.msra.mxu1 %v8702_v15  ;;  %14561 = vst [vmem:[#allocation3_spill] sm:$0xff] %v8913_v35  ;;  %14562 = vst [vmem:[#allocation4_spill] sm:$0xff] %v8915_v36  ;;  %v470_v46 = vmul.f32 18.0, %v8913_v35  ;;  %v471_v47 = vmul.f32 18.0, %v8915_v36  ;;  %v472_v48 = vmul.f32 18.0, %v8917_v37  ;;  %vm562_vm1 = vcmp.gt.f32.partialorder %v8913_v35, 2.5 }
  0x1c   : > { %7545 = vmatpush3.bf16.msra.mxu0 %v8703_v17  ;;  %7146 = vmatprep.subr.bf16.mxu1 %v14230_v2  ;;  %14563 = vst [vmem:[#allocation5_spill] sm:$0xff] %v8917_v37  ;;  %14564 = vst [vmem:[#allocation6_spill] sm:$0xff] %v8929_v41  ;;  %v473_v50 = vmul.f32 18.0, %v8929_v41  ;;  %vm563_vm2 = vcmp.gt.f32.partialorder %v8915_v36, 2.5  ;;  %vm564_vm3 = vcmp.gt.f32.partialorder %v8917_v37, 2.5  ;;  %vm565_vm4 = vcmp.gt.f32.partialorder %v8929_v41, 2.5 }
  0x1d   : > { %7546 = vmatprep.subr.bf16.mxu0 %v14230_v2  ;;  %v8955_v53 = vsub.f32 %v285_v11, %v470_v46  ;;  %v8957_v54 = vsub.f32 %v286_v14, %v471_v47  ;;  %v8959_v55 = vsub.f32 %v287_v16, %v472_v48  ;;  %vm608_vm5 = vcmp.lt.f32.partialorder %v8913_v35, 18.5 }
  0x1e   : > { %v8964_v57 = vsub.f32 %v288_v18, %v473_v50  ;;  %vm609_vm6 = vcmp.lt.f32.partialorder %v8915_v36, 18.5  ;;  %vm610_vm7 = vcmp.lt.f32.partialorder %v8917_v37, 18.5  ;;  %vm611_vm8 = vcmp.lt.f32.partialorder %v8929_v41, 18.5  ;;  %vm8971_vm9 = vmand %vm562_vm1, %vm608_vm5 }
  0x1f   : > { %7147 = vmatpush3.bf16.msra.mxu1 %v8704_v23  ;;  %14565 = vst [vmem:[#allocation7_spill] sm:$0xff] %v8955_v53  ;;  %14566 = vst [vmem:[#allocation8_spill] sm:$0xff] %v8957_v54  ;;  %vm14204_vm11 = vcmp.gt.f32.partialorder %v8955_v53, 0.5  ;;  %vm14207_vm12 = vcmp.gt.f32.partialorder %v8957_v54, 0.5  ;;  %vm14216_vm13 = vcmp.gt.f32.partialorder %v8959_v55, 0.5  ;;  %vm14217_vm14 = vcmp.lt.f32.partialorder %v8955_v53, 16.5 }
  0x20   : > { %7547 = vmatpush3.bf16.msra.mxu0 %v8705_v24  ;;  %7148 = vmatprep.subr.bf16.mxu1 %v14230_v2  ;;  %14567 = vst [vmem:[#allocation9_spill] sm:$0xff] %v8959_v55  ;;  %14568 = vst [vmem:[#allocation10_spill] sm:$0xff] %v8964_v57  ;;  %vm14215_vm1 = vcmp.gt.f32.partialorder %v8964_v57, 0.5  ;;  %vm14211_vm5 = vcmp.lt.f32.partialorder %v8959_v55, 16.5  ;;  %v1164_v11 = vmul.f32 %v8922_v38, %v1111_v59  ;;  %v1304_v15 = vmul.f32 0.01, %v1212_v1 }
  0x21   : > { %7548 = vmatprep.subr.bf16.mxu0 %v14230_v2  ;;  %vm8979_vm10 = vmand %vm563_vm2, %vm609_vm6  ;;  %vm14212_vm2 = vcmp.lt.f32.partialorder %v8957_v54, 16.5  ;;  %v1305_v16 = vmul.f32 0.01, %v1213_v3  ;;  %v1306_v17 = vmul.f32 0.01, %v1214_v4  ;;  %v1216_v18 = vadd.f32 %v8953_v52, %v1163_v10  ;;  %v1115_v23 = vld [vmem:[%s8894_s16 + $0x58] sm:$0xff] }
  0x22   : > { %vm8989_vm15 = vmand %vm564_vm3, %vm610_vm7  ;;  %vm1261_vm6 = vcmp.ge.f32.partialorder %v1215_v13, 0.0  ;;  %v1217_v28 = vadd.f32 %v8953_v52, %v1164_v11  ;;  %v383_v31 = vmul.f32 0.055555556, %v336_v21  ;;  %v9074_v32 = vfloor.f32 %v382_v22 }
  0x23   : > { %7149 = vmatpush3.bf16.msra.mxu1 %v8706_v34  ;;  %vm9004_vm3 = vmand %vm565_vm4, %vm611_vm8  ;;  %vm1258_vm8 = vcmp.ge.f32.partialorder %v1212_v1, 0.0  ;;  %v1353_v29 = vsel %vm1261_vm6, %v1215_v13, %v1307_v20  ;;  %v1308_v34 = vmul.f32 0.01, %v1216_v18  ;;  %vm14588_vm6 = vcmp.lt.f32.partialorder %v8964_v57, 16.5 }
  0x24   : > { %7549 = vmatpush3.bf16.msra.mxu0 %v8707_v40  ;;  %7150 = vmatprep.subr.bf16.mxu1 %v14230_v2  ;;  %vm9020_vm4 = vmand %vm8971_vm9, %vm14204_vm11  ;;  %vm1259_vm9 = vcmp.ge.f32.partialorder %v1213_v3, 0.0  ;;  %vm1260_vm11 = vcmp.ge.f32.partialorder %v1214_v4, 0.0  ;;  %v1350_v24 = vsel %vm1258_vm8, %v1212_v1, %v1304_v15  ;;  %14587 = vst [vmem:[#allocation11_spill] sm:$0xff] %v9074_v32  ;;  %vm1263_vm8 = vcmp.ge.f32.partialorder %v1217_v28, 0.0 }
  0x25   : > { %7550 = vmatprep.subr.bf16.mxu0 %v14230_v2  ;;  %vm9034_vm7 = vmand %vm8979_vm10, %vm14207_vm12  ;;  %vm1611_vm10 = vcmask 1046528   ;;  %v1351_v26 = vsel %vm1259_vm9, %v1213_v3, %v1305_v16  ;;  %v1352_v27 = vsel %vm1260_vm11, %v1214_v4, %v1306_v17  ;;  %v9088_v43 = vfloor.f32 %v383_v31  ;;  %v1114_v3 = vld [vmem:[%s8894_s16 + $0x50] sm:$0xff] }
  0x26   : > { %vm9043_vm0 = vmand %vm8989_vm15, %vm14216_vm13  ;;  %v474_v44 = vmul.f32 18.0, %v9074_v32  ;;  %vm612_vm9 = vcmp.lt.f32.partialorder %v9074_v32, 18.5  ;;  %v1309_v46 = vmul.f32 0.01, %v1217_v28  ;;  %v9126_v0 = vadd.s32 72, %v8848_v6 }
  0x27   : > { %7151 = vmatpush3.bf16.msra.mxu1 %v8708_v45  ;;  %vm9052_vm12 = vmand %vm9004_vm3, %vm14215_vm1  ;;  %14589 = vst [vmem:[#allocation12_spill] sm:$0xff] %v9088_v43  ;;  %v1165_v1 = vmul.f32 %v8922_v38, %v1112_v51  ;;  %v1166_v7 = vmul.f32 %v8922_v38, %v1113_v56  ;;  %v291_v9 = vcvt.s32.f32 %v9123_v63  ;;  %v9158_v14 = vadd.s32 80, %v8848_v6  ;;  %v8714_v51 = vld [vmem:[%s14199_s1 + $0x148] sm:$0xff]  }
  0x28   : > { %7551 = vmatpush3.bf16.msra.mxu0 %v8709_v49  ;;  %7152 = vmatprep.subr.bf16.mxu1 %v14230_v2  ;;  %vm9060_vm15 = vmand %vm9020_vm4, %vm14217_vm14  ;;  %vm1262_vm4 = vcmp.ge.f32.partialorder %v1216_v18, 0.0  ;;  %v475_v49 = vmul.f32 18.0, %v9088_v43  ;;  %v9099_v50 = vsub.f32 %v289_v39, %v474_v44  ;;  %v1355_v59 = vsel %vm1263_vm8, %v1217_v28, %v1309_v46  ;;  %v8713_v39 = vld [vmem:[%s14199_s1] sm:$0xff]  }
  0x29   : > { %7552 = vmatprep.subr.bf16.mxu0 %v14230_v2  ;;  %vm839_vm3 = vmand %vm9034_vm7, %vm14212_vm2  ;;  %v1488_v30 = vsel %vm9060_vm15, %v1350_v24, 0.0  ;;  %vm567_vm15 = vcmp.gt.f32.partialorder %v9088_v43, 2.5  ;;  %v1354_v58 = vsel %vm1262_vm4, %v1216_v18, %v1308_v34  ;;  %v292_v10 = vcvt.s32.f32 %v9126_v0 }
  0x2a   : > { %vm840_vm11 = vmand %vm9043_vm0, %vm14211_vm5  ;;  %v1489_v33 = vsel %vm839_vm3, %v1351_v26, 0.0  ;;  %vm566_vm0 = vcmp.gt.f32.partialorder %v9074_v32, 2.5  ;;  %14590 = vst [vmem:[#allocation13_spill] sm:$0xff] %v9099_v50  ;;  %vm613_vm3 = vcmp.lt.f32.partialorder %v9088_v43, 18.5  ;;  %v9108_v61 = vsub.f32 %v290_v8, %v475_v49  ;;  %v8738_v32 = vld [vmem:[%s14199_s1 + $0x1b8] sm:$0xff]  }
  0x2b   : > { %7153 = vmatpush3.bf16.msra.mxu1 %v8710_v62  ;;  %vm841_vm7 = vmand %vm9052_vm12, %vm14588_vm6  ;;  %v1490_v40 = vsel %vm840_vm11, %v1352_v27, 0.0  ;;  %v9086_v42 = vpack.c.bf16 %v1489_v33, %v1488_v30  ;;  %vm14508_vm11 = vcmask 1045504   ;;  %v1218_v11 = vadd.f32 %v8953_v52, %v1165_v1  ;;  %v8712_v30 = vld [vmem:[%s14199_s1 + $0x140] sm:$0xff]  }
  0x2c   : > { %7553 = vmatpush3.bf16.msra.mxu0 %v8711_v5  ;;  %7238 = vmatprep.subr.bf16.mxu1 %v14230_v2  ;;  %v1491_v45 = vsel %vm841_vm7, %v1353_v29, 0.0  ;;  %vm658_vm12 = vmand %vm566_vm0, %vm612_vm9  ;;  %14591 = vst [vmem:[#allocation14_spill] sm:$0xff] %v9108_v61  ;;  %vm14213_vm7 = vcmp.gt.f32.partialorder %v9099_v50, 0.5  ;;  %vm14209_vm0 = vcmp.lt.f32.partialorder %v9099_v50, 16.5  ;;  %vm14210_vm8 = vcmp.gt.f32.partialorder %v9108_v61, 0.5  ;;  %v1120_v1 = vld [vmem:[%s8894_s16 + $0x80] sm:$0xff] }
  0x2d   : > { %7638 = vmatprep.subr.bf16.mxu0 %v14230_v2  ;;  %v9093_v47 = vpack.c.bf16 %v1491_v45, %v1490_v40  ;;  %v1612_v48 = vrot.slane %v9086_v42, 1  ;;  %vm9110_vm6 = vmand %vm567_vm15, %vm613_vm3  ;;  %vm14208_vm9 = vcmp.lt.f32.partialorder %v9108_v61, 16.5  ;;  %v1219_v13 = vadd.f32 %v8953_v52, %v1166_v7 }
  0x2e   : > { %vm750_vm4 = vmand %vm658_vm12, %vm14213_vm7  ;;  %v9161_v15 = vadd.s32 88, %v8848_v6  ;;  %v1167_v16 = vmul.f32 %v8922_v38, %v1114_v3  ;;  %v337_v18 = vadd.f32 0.5, %v291_v9  ;;  %v338_v19 = vadd.f32 0.5, %v292_v10 }
  0x2f   : > { %v1613_v60 = vrot.slane %v9093_v47, 1  ;;  %v3106_v62 = vrot.slane %v9093_v47, 2  ;;  %vm9135_vm12 = vmand %vm750_vm4, %vm14209_vm0  ;;  %vm14596_vm4 = vmmov 0   ;;  %v1310_v21 = vmul.f32 0.01, %v1218_v11 }
  0x30   : > { %vm751_vm15 = vmand %vm9110_vm6, %vm14210_vm8  ;;  %v1492_v8 = vsel %vm9135_vm12, %v1354_v58, 0.0  ;;  %vm1264_vm6 = vcmp.ge.f32.partialorder %v1218_v11, 0.0  ;;  %vm1265_vm12 = vcmp.ge.f32.partialorder %v1219_v13, 0.0  ;;  %v1311_v22 = vmul.f32 0.01, %v1219_v13 }
  0x31   : > { %v1614_v4 = vsel %vm1611_vm10, %v1612_v48, %v1613_v60  ;;  %vm843_vm3 = vmand %vm751_vm15, %vm14208_vm9  ;;  %v384_v24 = vmul.f32 0.055555556, %v337_v18  ;;  %v385_v26 = vmul.f32 0.055555556, %v338_v19  ;;  %v293_v27 = vcvt.s32.f32 %v9158_v14  ;;  %v8725_v19 = vld [vmem:[%s14199_s1 + $0x20] sm:$0xff]  }
  0x32   : > { %7155 = vmatmul.mubr.bf16.vlgmr.msra.gmra.mrb[0].mxu1 %v1614_v4  ;;  %v1493_v17 = vsel %vm843_vm3, %v1355_v59, 0.0  ;;  %v294_v28 = vcvt.s32.f32 %v9161_v15  ;;  %v9175_v33 = vsel %vm1264_vm6, %v1218_v11, %v1310_v21  ;;  %v9177_v34 = vsel %vm1265_vm12, %v1219_v13, %v1311_v22  ;;  %v8719_v59 = vld [vmem:[%s14199_s1 + $0x10] sm:$0xff]  }
  0x33   : > { %7158 = vmatprep.mubr.msk.bf16.mxu1 %vm14596_vm4, %v14230_v2  ;;  %7239 = vmatpush3.bf16.msra.mxu1 %v8713_v39  ;;  %v9165_v20 = vpack.c.bf16 %v1493_v17, %v1492_v8  ;;  %v9179_v40 = vfloor.f32 %v384_v24  ;;  %v9181_v44 = vfloor.f32 %v385_v26  ;;  %v339_v45 = vadd.f32 0.5, %v293_v27  ;;  %v1116_v17 = vld [vmem:[%s8894_s16 + $0x60] sm:$0xff] }
  0x34   : > { %7240 = vmatprep.subr.bf16.mxu1 %v14230_v2  ;;  %v340_v46 = vadd.f32 0.5, %v294_v28  ;;  %v1168_v56 = vmul.f32 %v8922_v38, %v1115_v23  ;;  %v1220_v58 = vadd.f32 %v8953_v52, %v1167_v16  ;;  %v8715_v16 = vld [vmem:[%s14199_s1 + $0x150] sm:$0xff]   ;;  %v9285_v26 = vadd.s32 104, %v8848_v6 }
  0x35   : > { %14597 = vst [vmem:[#allocation15_spill] sm:$0xff] %v9165_v20  ;;  %v3107_v29 = vrot.slane %v9165_v20, 2  ;;  %v1615_v31 = vrot.slane %v9165_v20, 1  ;;  %14598 = vst [vmem:[#allocation16_spill] sm:$0xff] %v9179_v40  ;;  %v476_v25 = vmul.f32 18.0, %v9179_v40  ;;  %v477_v39 = vmul.f32 18.0, %v9181_v44 }
  0x36   : > { %14599 = vst [vmem:[#allocation17_spill] sm:$0xff] %v9181_v44  ;;  %vm568_vm15 = vcmp.gt.f32.partialorder %v9179_v40, 2.5  ;;  %vm569_vm3 = vcmp.gt.f32.partialorder %v9181_v44, 2.5  ;;  %vm614_vm6 = vcmp.lt.f32.partialorder %v9179_v40, 18.5  ;;  %vm615_vm12 = vcmp.lt.f32.partialorder %v9181_v44, 18.5 }
  0x37   : > { %7241 = vmatpush3.bf16.msra.mxu1 %v8716_v12  ;;  %v3108_v48 = vsel %vm14508_vm11, %v3106_v62, %v3107_v29  ;;  %v1616_v49 = vsel %vm1611_vm10, %v1613_v60, %v1615_v31  ;;  %v386_v60 = vmul.f32 0.055555556, %v339_v45  ;;  %v387_v62 = vmul.f32 0.055555556, %v340_v46  ;;  %vm9214_vm9 = vmand %vm568_vm15, %vm614_vm6  ;;  %v1117_v45 = vld [vmem:[%s8894_s16 + $0x68] sm:$0xff] }
  0x38   : > { %7242 = vmatprep.subr.bf16.mxu1 %v14230_v2  ;;  %7555 = vmatmul.mubr.bf16.vlgmr.msra.gmra.mrb[0].mxu0 %v3108_v48  ;;  %v9210_v63 = vsub.f32 %v291_v9, %v476_v25  ;;  %v9212_v0 = vsub.f32 %v292_v10, %v477_v39  ;;  %v1221_v3 = vadd.f32 %v8953_v52, %v1168_v56  ;;  %vm1266_vm0 = vcmp.ge.f32.partialorder %v1220_v58, 0.0  ;;  %vm9222_vm8 = vmand %vm569_vm3, %vm615_vm12  ;;  %v8722_v10 = vld [vmem:[%s14199_s1 + $0x18] sm:$0xff]  }
  0x39   : > { %7639 = vmatpush3.bf16.msra.mxu0 %v8712_v30  ;;  %7558 = vmatprep.mubr.msk.bf16.mxu0 %vm14596_vm4, %v14230_v2  ;;  %v9226_v5 = vfloor.f32 %v386_v60  ;;  %v9228_v7 = vfloor.f32 %v387_v62  ;;  %v1312_v8 = vmul.f32 0.01, %v1220_v58  ;;  %v9231_v9 = vadd.s32 96, %v8848_v6  ;;  %v8718_v62 = vld [vmem:[%s14199_s1 + $0x160] sm:$0xff]  }
  0x3a   : > { %7159 = vmatmul.mubr.bf16.gmra.mrb[4].mxu1 %v1616_v49  ;;  %14600 = vst [vmem:[#allocation18_spill] sm:$0xff] %v9210_v63  ;;  %14601 = vst [vmem:[#allocation19_spill] sm:$0xff] %v9212_v0  ;;  %7640 = vmatprep.subr.bf16.mxu0 %v14230_v2  ;;  %vm14214_vm15 = vcmp.gt.f32.partialorder %v9210_v63, 0.5  ;;  %vm14501_vm3 = vcmp.gt.f32.partialorder %v9212_v0, 0.5  ;;  %vm14417_vm6 = vcmp.lt.f32.partialorder %v9210_v63, 16.5  ;;  %vm14298_vm12 = vcmp.lt.f32.partialorder %v9212_v0, 16.5 }
  0x3b   : > { %7162 = vmatprep.mubr.msk.bf16.mxu1 %vm14596_vm4, %v14230_v2  ;;  %14606 = vst [vmem:[#allocation20_spill] sm:$0xff] %v9226_v5  ;;  %14607 = vst [vmem:[#allocation21_spill] sm:$0xff] %v9228_v7  ;;  %7243 = vmatpush3.bf16.msra.mxu1 %v8719_v59  ;;  %v478_v12 = vmul.f32 18.0, %v9226_v5  ;;  %v479_v13 = vmul.f32 18.0, %v9228_v7  ;;  %vm570_vm2 = vcmp.gt.f32.partialorder %v9226_v5, 2.5  ;;  %vm571_vm7 = vcmp.gt.f32.partialorder %v9228_v7, 2.5 }
  0x3c   : > { %7244 = vmatprep.subr.bf16.mxu1 %v14230_v2  ;;  %vm9245_vm5 = vmand %vm9214_vm9, %vm14214_vm15  ;;  %vm616_vm15 = vcmp.lt.f32.partialorder %v9226_v5, 18.5  ;;  %vm617_vm1 = vcmp.lt.f32.partialorder %v9228_v7, 18.5  ;;  %vm1267_vm13 = vcmp.ge.f32.partialorder %v1221_v3, 0.0  ;;  %v1313_v18 = vmul.f32 0.01, %v1221_v3 }
  0x3d   : > { %7641 = vmatpush3.bf16.msra.mxu0 %v8714_v51  ;;  %vm753_vm9 = vmand %vm9222_vm8, %vm14501_vm3  ;;  %v9277_v22 = vsub.f32 %v293_v27, %v478_v12  ;;  %v9281_v23 = vsub.f32 %v294_v28, %v479_v13  ;;  %v1358_v24 = vsel %vm1266_vm0, %v1220_v58, %v1312_v8  ;;  %v295_v27 = vcvt.s32.f32 %v9231_v9  ;;  %v8721_v9 = vld [vmem:[%s14199_s1 + $0x170] sm:$0xff]  }
  0x3e   : > { %7642 = vmatprep.subr.bf16.mxu0 %v14230_v2  ;;  %vm9271_vm14 = vmand %vm9245_vm5, %vm14417_vm6  ;;  %v1359_v14 = vsel %vm1267_vm13, %v1221_v3, %v1313_v18  ;;  %v1169_v15 = vmul.f32 %v8922_v38, %v1116_v17  ;;  %v1170_v49 = vmul.f32 %v8922_v38, %v1117_v45  ;;  %v9323_v56 = vadd.s32 112, %v8848_v6 }
  0x3f   : > { %14612 = vst [vmem:[#allocation22_spill] sm:$0xff] %v9277_v22  ;;  %14613 = vst [vmem:[#allocation23_spill] sm:$0xff] %v9281_v23  ;;  %7245 = vmatpush3.bf16.msra.mxu1 %v8722_v10  ;;  %v1494_v30 = vsel %vm9271_vm14, %v9175_v33, 0.0  ;;  %vm14297_vm8 = vcmp.gt.f32.partialorder %v9277_v22, 0.5  ;;  %vm14224_vm13 = vcmp.lt.f32.partialorder %v9277_v22, 16.5  ;;  %v8717_v33 = vld [vmem:[%s14199_s1 + $0x158] sm:$0xff]  }
  0x40   : > { %vm845_vm5 = vmand %vm753_vm9, %vm14298_vm12  ;;  %7246 = vmatprep.subr.bf16.mxu1 %v14230_v2  ;;  %vm14219_vm9 = vcmp.gt.f32.partialorder %v9281_v23, 0.5  ;;  %v341_v48 = vadd.f32 0.5, %v295_v27  ;;  %v1222_v51 = vadd.f32 %v8953_v52, %v1169_v15  ;;  %v9326_v58 = vadd.s32 120, %v8848_v6  ;;  %v8727_v10 = vld [vmem:[%s14199_s1 + $0x28] sm:$0xff]   ;;  %v1119_v15 = vld [vmem:[%s8894_s16 + $0x78] sm:$0xff] }
  0x41   : > { %v1495_v28 = vsel %vm845_vm5, %v9177_v34, 0.0  ;;  %vm662_vm0 = vmand %vm570_vm2, %vm616_vm15  ;;  %7643 = vmatpush3.bf16.msra.mxu0 %v8715_v16  ;;  %vm14218_vm2 = vcmp.lt.f32.partialorder %v9281_v23, 16.5  ;;  %v296_v34 = vcvt.s32.f32 %v9285_v26  ;;  %v1223_v3 = vadd.f32 %v8953_v52, %v1170_v49 }
  0x42   : > { %v9307_v46 = vpack.c.bf16 %v1495_v28, %v1494_v30  ;;  %vm663_vm14 = vmand %vm571_vm7, %vm617_vm1  ;;  %7644 = vmatprep.subr.bf16.mxu0 %v14230_v2  ;;  %v388_v60 = vmul.f32 0.055555556, %v341_v48  ;;  %vm1268_vm5 = vcmp.ge.f32.partialorder %v1222_v51, 0.0  ;;  %v1314_v4 = vmul.f32 0.01, %v1222_v51  ;;  %v1118_v30 = vld [vmem:[%s8894_s16 + $0x70] sm:$0xff] }
  0x43   : > { %vm754_vm15 = vmand %vm662_vm0, %vm14297_vm8  ;;  %7247 = vmatpush3.bf16.msra.mxu1 %v8725_v19  ;;  %v342_v39 = vadd.f32 0.5, %v296_v34  ;;  %v297_v8 = vcvt.s32.f32 %v9323_v56  ;;  %v8720_v28 = vld [vmem:[%s14199_s1 + $0x168] sm:$0xff]   ;;  %v1172_v26 = vmul.f32 %v8922_v38, %v1119_v15  ;;  %v1173_v15 = vmul.f32 %v8922_v38, %v1120_v1 }
  0x44   : > { %14614 = vst [vmem:[#allocation24_spill] sm:$0xff] %v9307_v46  ;;  %v3109_v59 = vrot.slane %v9307_v46, 2  ;;  %v1617_v25 = vrot.slane %v9307_v46, 1  ;;  %vm755_vm1 = vmand %vm663_vm14, %vm14219_vm9  ;;  %7248 = vmatprep.subr.bf16.mxu1 %v14230_v2  ;;  %v9360_v18 = vfloor.f32 %v388_v60  ;;  %vm1269_vm14 = vcmp.ge.f32.partialorder %v1223_v3, 0.0  ;;  %v1121_v1 = vld [vmem:[%s8894_s16 + $0x88] sm:$0xff] }
  0x45   : > { %vm9340_vm7 = vmand %vm754_vm15, %vm14224_vm13  ;;  %7645 = vmatpush3.bf16.msra.mxu0 %v8717_v33  ;;  %v389_v16 = vmul.f32 0.055555556, %v342_v39  ;;  %v9371_v21 = vsel %vm1268_vm5, %v1222_v51, %v1314_v4  ;;  %v343_v60 = vadd.f32 0.5, %v297_v8  ;;  %v9994_v7 = vadd.s32 248, %v8848_v6 }
  0x46   : > { %v3110_v11 = vsel %vm14508_vm11, %v3107_v29, %v3109_v59  ;;  %v1618_v12 = vsel %vm1611_vm10, %v1615_v31, %v1617_v25  ;;  %vm847_vm0 = vmand %vm755_vm1, %vm14218_vm2  ;;  %v1496_v13 = vsel %vm9340_vm7, %v1358_v24, 0.0  ;;  %7646 = vmatprep.subr.bf16.mxu0 %v14230_v2  ;;  %14617 = vst [vmem:[#allocation25_spill] sm:$0xff] %v9360_v18  ;;  %v1315_v29 = vmul.f32 0.01, %v1223_v3 }
  0x47   : > { %7559 = vmatmul.mubr.bf16.gmra.mrb[4].mxu0 %v3110_v11  ;;  %7163 = vmatmul.mubr.bf16.gmra.mrb[8].mxu1 %v1618_v12  ;;  %v1497_v17 = vsel %vm847_vm0, %v1359_v14, 0.0  ;;  %v9368_v19 = vfloor.f32 %v389_v16  ;;  %v298_v24 = vcvt.s32.f32 %v9326_v58  ;;  %v480_v14 = vmul.f32 18.0, %v9360_v18 }
  0x48   : > { %7562 = vmatprep.mubr.msk.bf16.mxu0 %vm14596_vm4, %v14230_v2  ;;  %v9364_v31 = vpack.c.bf16 %v1497_v17, %v1496_v13  ;;  %7166 = vmatprep.mubr.msk.bf16.mxu1 %vm14596_vm4, %v14230_v2  ;;  %vm572_vm15 = vcmp.gt.f32.partialorder %v9360_v18, 2.5  ;;  %vm618_vm1 = vcmp.lt.f32.partialorder %v9360_v18, 18.5  ;;  %v1361_v45 = vsel %vm1269_vm14, %v1223_v3, %v1315_v29 }
  0x49   : > { %14619 = vst [vmem:[#allocation27_spill] sm:$0xff] %v9368_v19  ;;  %7647 = vmatpush3.bf16.msra.mxu0 %v8718_v62  ;;  %7249 = vmatpush3.bf16.msra.mxu1 %v8727_v10  ;;  %v481_v49 = vmul.f32 18.0, %v9368_v19  ;;  %vm573_vm7 = vcmp.gt.f32.partialorder %v9368_v19, 2.5  ;;  %v9390_v51 = vsub.f32 %v295_v27, %v480_v14  ;;  %vm619_vm5 = vcmp.lt.f32.partialorder %v9368_v19, 18.5  ;;  %vm9395_vm0 = vmand %vm572_vm15, %vm618_vm1 }
  0x4a   : > { %14618 = vst [vmem:[#allocation26_spill] sm:$0xff] %v9364_v31  ;;  %v3111_v33 = vrot.slane %v9364_v31, 2  ;;  %v1619_v48 = vrot.slane %v9364_v31, 1  ;;  %7648 = vmatprep.subr.bf16.mxu0 %v14230_v2  ;;  %7250 = vmatprep.subr.bf16.mxu1 %v14230_v2  ;;  %v344_v62 = vadd.f32 0.5, %v298_v24  ;;  %vm9417_vm14 = vmand %vm573_vm7, %vm619_vm5  ;;  %v1171_v11 = vmul.f32 %v8922_v38, %v1118_v30 }
  0x4b   : > { %14620 = vst [vmem:[#allocation28_spill] sm:$0xff] %v9390_v51  ;;  %v9415_v4 = vsub.f32 %v296_v34, %v481_v49  ;;  %vm14223_vm15 = vcmp.gt.f32.partialorder %v9390_v51, 0.5  ;;  %vm14221_vm1 = vcmp.lt.f32.partialorder %v9390_v51, 16.5  ;;  %v390_v12 = vmul.f32 0.055555556, %v343_v60  ;;  %v8723_v60 = vld [vmem:[%s14199_s1 + $0x178] sm:$0xff]  }
  0x4c   : > { %v3112_v27 = vsel %vm14508_vm11, %v3109_v59, %v3111_v33  ;;  %v1620_v3 = vsel %vm1611_vm10, %v1617_v25, %v1619_v48  ;;  %v391_v59 = vmul.f32 0.055555556, %v344_v62  ;;  %vm756_vm9 = vmand %vm9395_vm0, %vm14223_vm15  ;;  %v1224_v34 = vadd.f32 %v8953_v52, %v1171_v11 }
  0x4d   : > { %14623 = vst [vmem:[#allocation29_spill] sm:$0xff] %v9415_v4  ;;  %7649 = vmatpush3.bf16.msra.mxu0 %v8720_v28  ;;  %vm14220_vm2 = vcmp.gt.f32.partialorder %v9415_v4, 0.5  ;;  %vm14222_vm7 = vcmp.lt.f32.partialorder %v9415_v4, 16.5  ;;  %v9437_v25 = vfloor.f32 %v390_v12  ;;  %v9442_v16 = vadd.s32 128, %v8848_v6  ;;  %vm9451_vm0 = vmand %vm756_vm9, %vm14221_vm1 }
  0x4e   : > { %7650 = vmatprep.subr.bf16.mxu0 %v14230_v2  ;;  %vm757_vm5 = vmand %vm9417_vm14, %vm14220_vm2  ;;  %v9439_v13 = vfloor.f32 %v391_v59  ;;  %v9445_v17 = vadd.s32 136, %v8848_v6  ;;  %v1225_v30 = vadd.f32 %v8953_v52, %v1172_v26  ;;  %vm1270_vm14 = vcmp.ge.f32.partialorder %v1224_v34, 0.0  ;;  %v1122_v26 = vld [vmem:[%s8894_s16 + $0x90] sm:$0xff] }
  0x4f   : > { %7563 = vmatmul.mubr.bf16.gmra.mrb[8].mxu0 %v3112_v27  ;;  %7167 = vmatmul.mubr.bf16.gmra.mrb[12].mxu1 %v1620_v3  ;;  %14626 = vst [vmem:[#allocation30_spill] sm:$0xff] %v9437_v25  ;;  %v1316_v14 = vmul.f32 0.01, %v1224_v34  ;;  %vm849_vm2 = vmand %vm757_vm5, %vm14222_vm7  ;;  %v1498_v28 = vsel %vm9451_vm0, %v9371_v21, 0.0  ;;  %v482_v49 = vmul.f32 18.0, %v9437_v25  ;;  %vm574_vm9 = vcmp.gt.f32.partialorder %v9437_v25, 2.5 }
  0x50   : > { %14627 = vst [vmem:[#allocation31_spill] sm:$0xff] %v9439_v13  ;;  %7566 = vmatprep.mubr.msk.bf16.mxu0 %vm14596_vm4, %v14230_v2  ;;  %7170 = vmatprep.mubr.msk.bf16.mxu1 %vm14596_vm4, %v14230_v2  ;;  %v483_v39 = vmul.f32 18.0, %v9439_v13  ;;  %v1499_v62 = vsel %vm849_vm2, %v1361_v45, 0.0  ;;  %vm575_vm1 = vcmp.gt.f32.partialorder %v9439_v13, 2.5  ;;  %vm620_vm5 = vcmp.lt.f32.partialorder %v9437_v25, 18.5 }
  0x51   : > { %7651 = vmatpush3.bf16.msra.mxu0 %v8721_v9  ;;  %vm621_vm7 = vcmp.lt.f32.partialorder %v9439_v13, 18.5  ;;  %v9475_v21 = vpack.c.bf16 %v1499_v62, %v1498_v28  ;;  %v9479_v27 = vsub.f32 %v297_v8, %v482_v49  ;;  %vm666_vm2 = vmand %vm574_vm9, %vm620_vm5  ;;  %vm1271_vm0 = vcmp.ge.f32.partialorder %v1225_v30, 0.0 }
  0x52   : > { %7652 = vmatprep.subr.bf16.mxu0 %v14230_v2  ;;  %v9483_v9 = vsub.f32 %v298_v24, %v483_v39  ;;  %vm9485_vm15 = vmand %vm575_vm1, %vm621_vm7  ;;  %v1317_v3 = vmul.f32 0.01, %v1225_v30  ;;  %v1362_v10 = vsel %vm1270_vm14, %v1224_v34, %v1316_v14  ;;  %v299_v11 = vcvt.s32.f32 %v9442_v16 }
  0x53   : > { %14630 = vst [vmem:[#allocation32_spill] sm:$0xff] %v9475_v21  ;;  %14631 = vst [vmem:[#allocation33_spill] sm:$0xff] %v9479_v27  ;;  %v300_v56 = vcvt.s32.f32 %v9445_v17  ;;  %v3113_v8 = vrot.slane %v9475_v21, 2  ;;  %v1621_v58 = vrot.slane %v9475_v21, 1  ;;  %vm14238_vm13 = vcmp.gt.f32.partialorder %v9479_v27, 0.5 }
  0x54   : > { %14632 = vst [vmem:[#allocation34_spill] sm:$0xff] %v9483_v9  ;;  %vm14226_vm9 = vcmp.gt.f32.partialorder %v9483_v9, 0.5  ;;  %vm9498_vm1 = vmand %vm666_vm2, %vm14238_vm13  ;;  %vm14227_vm7 = vcmp.lt.f32.partialorder %v9479_v27, 16.5  ;;  %vm14225_vm14 = vcmp.lt.f32.partialorder %v9483_v9, 16.5  ;;  %v1363_v12 = vsel %vm1271_vm0, %v1225_v30, %v1317_v3  ;;  %v8729_v30 = vld [vmem:[%s14199_s1 + $0x30] sm:$0xff]  }
  0x55   : > { %7653 = vmatpush3.bf16.msra.mxu0 %v8723_v60  ;;  %v345_v59 = vadd.f32 0.5, %v299_v11  ;;  %v3114_v34 = vsel %vm14508_vm11, %v3111_v33, %v3113_v8  ;;  %v1622_v16 = vsel %vm1611_vm10, %v1619_v48, %v1621_v58  ;;  %vm759_vm5 = vmand %vm9485_vm15, %vm14226_vm9  ;;  %v346_v17 = vadd.f32 0.5, %v300_v56  ;;  %7251 = vmatpush3.bf16.msra.mxu1 %v8729_v30 }
  0x56   : > { %7738 = vmatprep.subr.bf16.mxu0 %v14230_v2  ;;  %v1174_v29 = vmul.f32 %v8922_v38, %v1121_v1  ;;  %vm9524_vm2 = vmand %vm9498_vm1, %vm14227_vm7  ;;  %v1226_v14 = vadd.f32 %v8953_v52, %v1173_v15  ;;  %v9530_v28 = vadd.s32 144, %v8848_v6  ;;  %v9533_v49 = vadd.s32 152, %v8848_v6  ;;  %7252 = vmatprep.subr.bf16.mxu1 %v14230_v2 }
  0x57   : > { %7567 = vmatmul.mubr.bf16.gmra.mrb[12].mxu0 %v3114_v34  ;;  %7171 = vmatmul.mubr.bf16.gmra.mrb[16].mxu1 %v1622_v16  ;;  %v392_v48 = vmul.f32 0.055555556, %v345_v59  ;;  %vm851_vm15 = vmand %vm759_vm5, %vm14225_vm14  ;;  %v1500_v39 = vsel %vm9524_vm2, %v1362_v10, 0.0  ;;  %v393_v60 = vmul.f32 0.055555556, %v346_v17  ;;  %v1175_v62 = vmul.f32 %v8922_v38, %v1122_v26  ;;  %v1123_v26 = vld [vmem:[%s8894_s16 + $0x98] sm:$0xff] }
  0x58   : > { %7570 = vmatprep.mubr.msk.bf16.mxu0 %vm14596_vm4, %v14230_v2  ;;  %7174 = vmatprep.mubr.msk.bf16.mxu1 %vm14596_vm4, %v14230_v2  ;;  %v1227_v15 = vadd.f32 %v8953_v52, %v1174_v29  ;;  %v1501_v1 = vsel %vm851_vm15, %v1363_v12, 0.0  ;;  %vm1272_vm0 = vcmp.ge.f32.partialorder %v1226_v14, 0.0  ;;  %v1318_v3 = vmul.f32 0.01, %v1226_v14 }
  0x59   : > { %v9545_v45 = vfloor.f32 %v392_v48  ;;  %v9547_v24 = vpack.c.bf16 %v1501_v1, %v1500_v39  ;;  %v9549_v59 = vfloor.f32 %v393_v60  ;;  %v10171_v44 = vadd.s32 272, %v8848_v6 }
  0x5a   : > { %vm1273_vm1 = vcmp.ge.f32.partialorder %v1227_v15, 0.0  ;;  %v1319_v10 = vmul.f32 0.01, %v1227_v15  ;;  %v1364_v12 = vsel %vm1272_vm0, %v1226_v14, %v1318_v3  ;;  %v301_v14 = vcvt.s32.f32 %v9530_v28 }
  0x5b   : > { %14639 = vst [vmem:[#allocation35_spill] sm:$0xff] %v9545_v45  ;;  %14640 = vst [vmem:[#allocation36_spill] sm:$0xff] %v9547_v24  ;;  %v484_v34 = vmul.f32 18.0, %v9545_v45  ;;  %vm576_vm5 = vcmp.gt.f32.partialorder %v9545_v45, 2.5  ;;  %vm622_vm2 = vcmp.lt.f32.partialorder %v9545_v45, 18.5  ;;  %v14234_v16 = vrot.slane %v9547_v24, 2 }
  0x5c   : > { %14641 = vst [vmem:[#allocation37_spill] sm:$0xff] %v9549_v59  ;;  %v14232_v17 = vrot.slane %v9547_v24, 1  ;;  %v485_v29 = vmul.f32 18.0, %v9549_v59  ;;  %vm577_vm15 = vcmp.gt.f32.partialorder %v9549_v59, 2.5  ;;  %vm623_vm14 = vcmp.lt.f32.partialorder %v9549_v59, 18.5  ;;  %vm9563_vm9 = vmand %vm576_vm5, %vm622_vm2 }
  0x5d   : > { %v9560_v30 = vsub.f32 %v299_v11, %v484_v34  ;;  %v1365_v48 = vsel %vm1273_vm1, %v1227_v15, %v1319_v10  ;;  %v3116_v39 = vsel %vm14508_vm11, %v3113_v8, %v14234_v16  ;;  %vm9577_vm0 = vmand %vm577_vm15, %vm623_vm14  ;;  %v302_v3 = vcvt.s32.f32 %v9533_v49  ;;  %v1124_v15 = vld [vmem:[%s8894_s16 + $0xa0] sm:$0xff] }
  0x5e   : > { %v1624_v11 = vsel %vm1611_vm10, %v1621_v58, %v14232_v17  ;;  %v9575_v60 = vsub.f32 %v300_v56, %v485_v29  ;;  %v347_v28 = vadd.f32 0.5, %v301_v14  ;;  %v1176_v8 = vmul.f32 %v8922_v38, %v1123_v26  ;;  %v9613_v29 = vld [vmem:[%s14200_s2] ss:$0 sm:$0xff] }
  0x5f   : > { %14642 = vst [vmem:[#allocation38_spill] sm:$0xff] %v9560_v30  ;;  %7571 = vmatmul.mubr.bf16.gmra.mrb[16].mxu0 %v3116_v39  ;;  %7175 = vmatmul.mubr.bf16.gmra.mrb[20].mxu1 %v1624_v11  ;;  %vm14228_vm1 = vcmp.gt.f32.partialorder %v9560_v30, 0.5  ;;  %vm14237_vm5 = vcmp.lt.f32.partialorder %v9560_v30, 16.5  ;;  %v348_v56 = vadd.f32 0.5, %v302_v3  ;;  %v1228_v58 = vadd.f32 %v8953_v52, %v1175_v62 }
  0x60   : > { %14645 = vst [vmem:[#allocation39_spill] sm:$0xff] %v9575_v60  ;;  %7574 = vmatprep.mubr.msk.bf16.mxu0 %vm14596_vm4, %v14230_v2  ;;  %vm14229_vm14 = vcmp.gt.f32.partialorder %v9575_v60, 0.5  ;;  %vm760_vm2 = vmand %vm9563_vm9, %vm14228_vm1  ;;  %vm14233_vm15 = vcmp.lt.f32.partialorder %v9575_v60, 16.5  ;;  %7178 = vmatprep.mubr.msk.bf16.mxu1 %vm14596_vm4, %v14230_v2  ;;  %v394_v38 = vmul.f32 0.055555556, %v347_v28  ;;  %v1229_v49 = vadd.f32 %v8953_v52, %v1176_v8 }
  0x61   : > { %vm761_vm7 = vmand %vm9577_vm0, %vm14229_vm14  ;;  %v9603_v10 = vadd.s32 160, %v8848_v6  ;;  %v9606_v34 = vadd.s32 168, %v8848_v6  ;;  %v395_v26 = vmul.f32 0.055555556, %v348_v56  ;;  %vm1274_vm1 = vcmp.ge.f32.partialorder %v1228_v58, 0.0 }
  0x62   : > { %vm852_vm9 = vmand %vm760_vm2, %vm14237_vm5  ;;  %v1320_v62 = vmul.f32 0.01, %v1228_v58  ;;  %v1177_v52 = vmul.f32 %v9613_v29, %v1124_v15  ;;  %v9618_v39 = vfloor.f32 %v394_v38  ;;  %vm1275_vm14 = vcmp.ge.f32.partialorder %v1229_v49, 0.0 }
  0x63   : > { %vm853_vm0 = vmand %vm761_vm7, %vm14233_vm15  ;;  %v1502_v33 = vsel %vm852_vm9, %v1364_v12, 0.0  ;;  %v1321_v11 = vmul.f32 0.01, %v1229_v49  ;;  %v9620_v28 = vfloor.f32 %v395_v26  ;;  %v303_v56 = vcvt.s32.f32 %v9603_v10  ;;  %v1125_v12 = vld [vmem:[%s8894_s16 + $0xa8] sm:$0xff] }
  0x64   : > { %14648 = vst [vmem:[#allocation40_spill] sm:$0xff] %v9618_v39  ;;  %v1503_v1 = vsel %vm853_vm0, %v1365_v48, 0.0  ;;  %v1366_v8 = vsel %vm1274_vm1, %v1228_v58, %v1320_v62  ;;  %v486_v17 = vmul.f32 18.0, %v9618_v39  ;;  %vm578_vm2 = vcmp.gt.f32.partialorder %v9618_v39, 2.5 }
  0x65   : > { %14649 = vst [vmem:[#allocation41_spill] sm:$0xff] %v9620_v28  ;;  %v9623_v2 = vpack.c.bf16 %v1503_v1, %v1502_v33  ;;  %vm624_vm7 = vcmp.lt.f32.partialorder %v9618_v39, 18.5  ;;  %v487_v15 = vmul.f32 18.0, %v9620_v28  ;;  %vm579_vm9 = vcmp.gt.f32.partialorder %v9620_v28, 2.5  ;;  %v1126_v33 = vld [vmem:[%s8894_s16 + $0xb0] sm:$0xff] }
  0x66   : > { %vm625_vm0 = vcmp.lt.f32.partialorder %v9620_v28, 18.5  ;;  %v1367_v48 = vsel %vm1275_vm14, %v1229_v49, %v1321_v11  ;;  %v9634_v10 = vsub.f32 %v301_v14, %v486_v17  ;;  %vm9636_vm1 = vmand %vm578_vm2, %vm624_vm7  ;;  %v304_v62 = vcvt.s32.f32 %v9606_v34  ;;  %v9652_v17 = vld [vmem:[%s14201_s3] ss:$0 sm:$0xff] }
  0x67   : > { %14650 = vst [vmem:[#allocation42_spill] sm:$0xff] %v9623_v2  ;;  %v14241_v58 = vrot.slane %v9623_v2, 2  ;;  %v14239_v38 = vrot.slane %v9623_v2, 1  ;;  %v9642_v1 = vsub.f32 %v302_v3, %v487_v15  ;;  %vm9644_vm15 = vmand %vm579_vm9, %vm625_vm0  ;;  %v349_v49 = vadd.f32 0.5, %v303_v56 }
  0x68   : > { %14651 = vst [vmem:[#allocation43_spill] sm:$0xff] %v9634_v10  ;;  %v1178_v11 = vmul.f32 %v9613_v29, %v1125_v12  ;;  %v1230_v14 = vadd.f32 %v9652_v17, %v1177_v52  ;;  %v14657_v34 = vrot.slane %v9547_v24, 2  ;;  %v14658_v15 = vrot.slane %v9547_v24, 1 }
  0x69   : > { %14654 = vst [vmem:[#allocation44_spill] sm:$0xff] %v9642_v1  ;;  %vm14296_vm14 = vcmp.gt.f32.partialorder %v9634_v10, 0.5  ;;  %vm14248_vm2 = vcmp.lt.f32.partialorder %v9634_v10, 16.5  ;;  %vm14240_vm7 = vcmp.gt.f32.partialorder %v9642_v1, 0.5  ;;  %vm14255_vm0 = vcmp.lt.f32.partialorder %v9642_v1, 16.5  ;;  %v1127_v1 = vld [vmem:[%s8894_s16 + $0xb8] sm:$0xff] }
  0x6a   : > { %v3118_v3 = vsel %vm14508_vm11, %v14657_v34, %v14241_v58  ;;  %v1626_v28 = vsel %vm1611_vm10, %v14658_v15, %v14239_v38  ;;  %vm762_vm9 = vmand %vm9636_vm1, %vm14296_vm14  ;;  %v350_v52 = vadd.f32 0.5, %v304_v62  ;;  %v396_v12 = vmul.f32 0.055555556, %v349_v49 }
  0x6b   : > { %7575 = vmatmul.mubr.bf16.gmra.mrb[20].mxu0 %v3118_v3  ;;  %7179 = vmatmul.mubr.bf16.gmra.mrb[24].mxu1 %v1626_v28  ;;  %v14659_v34 = vmov 0.0   ;;  %vm763_vm5 = vmand %vm9644_vm15, %vm14240_vm7  ;;  %v1231_v28 = vadd.f32 %v9652_v17, %v1178_v11  ;;  %vm1276_vm13 = vcmp.ge.f32.partialorder %v1230_v14, 0.0  ;;  %v1322_v26 = vmul.f32 0.01, %v1230_v14 }
  0x6c   : > { %7578 = vmatprep.mubr.msk.bf16.mxu0 %vm14596_vm4, %v14659_v34  ;;  %7182 = vmatprep.mubr.msk.bf16.mxu1 %vm14596_vm4, %v14659_v34  ;;  %v9683_v3 = vadd.s32 176, %v8848_v6  ;;  %vm854_vm1 = vmand %vm762_vm9, %vm14248_vm2  ;;  %v397_v49 = vmul.f32 0.055555556, %v350_v52  ;;  %v9687_v15 = vfloor.f32 %v396_v12  ;;  %v9690_v16 = vadd.s32 184, %v8848_v6 }
  0x6d   : > { %v1179_v38 = vmul.f32 %v9613_v29, %v1126_v33  ;;  %vm855_vm15 = vmand %vm763_vm5, %vm14255_vm0  ;;  %v1504_v11 = vsel %vm854_vm1, %v1366_v8, 0.0  ;;  %vm1277_vm7 = vcmp.ge.f32.partialorder %v1231_v28, 0.0  ;;  %v1323_v58 = vmul.f32 0.01, %v1231_v28 }
  0x6e   : > { %14660 = vst [vmem:[#allocation45_spill] sm:$0xff] %v9687_v15  ;;  %v1368_v39 = vsel %vm1276_vm13, %v1230_v14, %v1322_v26  ;;  %v1505_v60 = vsel %vm855_vm15, %v1367_v48, 0.0  ;;  %v9695_v59 = vfloor.f32 %v397_v49  ;;  %v488_v52 = vmul.f32 18.0, %v9687_v15 }
  0x6f   : > { %vm580_vm9 = vcmp.gt.f32.partialorder %v9687_v15, 2.5  ;;  %v9699_v12 = vpack.c.bf16 %v1505_v60, %v1504_v11  ;;  %vm626_vm2 = vcmp.lt.f32.partialorder %v9687_v15, 18.5  ;;  %v1369_v10 = vsel %vm1277_vm7, %v1231_v28, %v1323_v58 }
  0x70   : > { %14661 = vst [vmem:[#allocation46_spill] sm:$0xff] %v9695_v59  ;;  %v305_v33 = vcvt.s32.f32 %v9683_v3  ;;  %v489_v8 = vmul.f32 18.0, %v9695_v59  ;;  %v9705_v30 = vsub.f32 %v303_v56, %v488_v52  ;;  %vm581_vm13 = vcmp.gt.f32.partialorder %v9695_v59, 2.5  ;;  %vm672_vm1 = vmand %vm580_vm9, %vm626_vm2 }
  0x71   : > { %14662 = vst [vmem:[#allocation47_spill] sm:$0xff] %v9699_v12  ;;  %vm627_vm5 = vcmp.lt.f32.partialorder %v9695_v59, 18.5  ;;  %v3119_v48 = vrot.slane %v9699_v12, 2  ;;  %v1627_v60 = vrot.slane %v9699_v12, 1  ;;  %v306_v14 = vcvt.s32.f32 %v9690_v16 }
  0x72   : > { %14663 = vst [vmem:[#allocation48_spill] sm:$0xff] %v9705_v30  ;;  %v351_v26 = vadd.f32 0.5, %v305_v33  ;;  %v9712_v58 = vsub.f32 %v304_v62, %v489_v8  ;;  %vm9714_vm7 = vmand %vm581_vm13, %vm627_vm5  ;;  %vm14257_vm15 = vcmp.gt.f32.partialorder %v9705_v30, 0.5  ;;  %vm14256_vm0 = vcmp.lt.f32.partialorder %v9705_v30, 16.5  ;;  %v8731_v8 = vld [vmem:[%s14199_s1 + $0x38] sm:$0xff]   ;;  %v1128_v30 = vld [vmem:[%s8894_s16 + $0xc0] sm:$0xff] }
  0x73   : > { %v1180_v56 = vmul.f32 %v9613_v29, %v1127_v1  ;;  %v14667_v3 = vrot.slane %v9623_v2, 2  ;;  %v14668_v11 = vrot.slane %v9623_v2, 1  ;;  %vm764_vm2 = vmand %vm672_vm1, %vm14257_vm15  ;;  %v352_v62 = vadd.f32 0.5, %v306_v14  ;;  %7253 = vmatpush3.bf16.msra.mxu1 %v8731_v8 }
  0x74   : > { %14664 = vst [vmem:[#allocation49_spill] sm:$0xff] %v9712_v58  ;;  %v398_v52 = vmul.f32 0.055555556, %v351_v26  ;;  %vm14267_vm9 = vcmp.gt.f32.partialorder %v9712_v58, 0.5  ;;  %vm14266_vm13 = vcmp.lt.f32.partialorder %v9712_v58, 16.5  ;;  %vm9736_vm5 = vmand %vm764_vm2, %vm14256_vm0  ;;  %7338 = vmatprep.subr.bf16.mxu1 %v14659_v34 }
  0x75   : > { %v3120_v49 = vsel %vm14508_vm11, %v14667_v3, %v3119_v48  ;;  %v1628_v16 = vsel %vm1611_vm10, %v14668_v11, %v1627_v60  ;;  %v1232_v3 = vadd.f32 %v9652_v17, %v1179_v38  ;;  %v1233_v26 = vadd.f32 %v9652_v17, %v1180_v56  ;;  %vm765_vm1 = vmand %vm9714_vm7, %vm14267_vm9 }
  0x76   : > { %7579 = vmatmul.mubr.bf16.gmra.mrb[24].mxu0 %v3120_v49  ;;  %7183 = vmatmul.mubr.bf16.gmra.mrb[28].mxu1 %v1628_v16  ;;  %v1506_v49 = vsel %vm9736_vm5, %v1368_v39, 0.0  ;;  %v399_v11 = vmul.f32 0.055555556, %v352_v62  ;;  %v9752_v16 = vfloor.f32 %v398_v52  ;;  %v9755_v38 = vadd.s32 192, %v8848_v6  ;;  %vm857_vm2 = vmand %vm765_vm1, %vm14266_vm13 }
  0x77   : > { %7582 = vmatprep.mubr.msk.bf16.mxu0 %vm14596_vm4, %v14659_v34  ;;  %7186 = vmatprep.mubr.msk.bf16.mxu1 %vm14596_vm4, %v14659_v34  ;;  %vm1278_vm0 = vcmp.ge.f32.partialorder %v1232_v3, 0.0  ;;  %vm1279_vm15 = vcmp.ge.f32.partialorder %v1233_v26, 0.0  ;;  %v1324_v28 = vmul.f32 0.01, %v1232_v3  ;;  %v1325_v56 = vmul.f32 0.01, %v1233_v26 }
  0x78   : > { %14671 = vst [vmem:[#allocation50_spill] sm:$0xff] %v9752_v16  ;;  %v1507_v1 = vsel %vm857_vm2, %v1369_v10, 0.0  ;;  %v9759_v39 = vfloor.f32 %v399_v11  ;;  %v490_v59 = vmul.f32 18.0, %v9752_v16  ;;  %vm582_vm7 = vcmp.gt.f32.partialorder %v9752_v16, 2.5 }
  0x79   : > { %v9764_v62 = vpack.c.bf16 %v1507_v1, %v1506_v49  ;;  %vm628_vm5 = vcmp.lt.f32.partialorder %v9752_v16, 18.5  ;;  %v1370_v52 = vsel %vm1278_vm0, %v1232_v3, %v1324_v28  ;;  %v1371_v58 = vsel %vm1279_vm15, %v1233_v26, %v1325_v56  ;;  %v1129_v3 = vld [vmem:[%s8894_s16 + $0xc8] sm:$0xff] }
  0x7a   : > { %14672 = vst [vmem:[#allocation51_spill] sm:$0xff] %v9759_v39  ;;  %v491_v15 = vmul.f32 18.0, %v9759_v39  ;;  %v9769_v8 = vsub.f32 %v305_v33, %v490_v59  ;;  %vm583_vm1 = vcmp.gt.f32.partialorder %v9759_v39, 2.5  ;;  %vm629_vm2 = vcmp.lt.f32.partialorder %v9759_v39, 18.5  ;;  %vm674_vm13 = vmand %vm582_vm7, %vm628_vm5 }
  0x7b   : > { %14673 = vst [vmem:[#allocation52_spill] sm:$0xff] %v9764_v62  ;;  %v3121_v10 = vrot.slane %v9764_v62, 2  ;;  %v1629_v11 = vrot.slane %v9764_v62, 1  ;;  %v262_v49 = vadd.s32 200, %v8848_v6  ;;  %v307_v1 = vcvt.s32.f32 %v9755_v38  ;;  %vm9780_vm0 = vmand %vm583_vm1, %vm629_vm2 }
  0x7c   : > { %14674 = vst [vmem:[#allocation53_spill] sm:$0xff] %v9769_v8  ;;  %v9778_v26 = vsub.f32 %v306_v14, %v491_v15  ;;  %vm14283_vm15 = vcmp.gt.f32.partialorder %v9769_v8, 0.5  ;;  %vm14268_vm9 = vcmp.lt.f32.partialorder %v9769_v8, 16.5  ;;  %v1181_v59 = vmul.f32 %v9613_v29, %v1128_v30 }
  0x7d   : > { %v3122_v33 = vsel %vm14508_vm11, %v3119_v48, %v3121_v10  ;;  %v1630_v56 = vsel %vm1611_vm10, %v1627_v60, %v1629_v11  ;;  %vm766_vm7 = vmand %vm674_vm13, %vm14283_vm15  ;;  %v308_v38 = vcvt.s32.f32 %v262_v49  ;;  %v353_v15 = vadd.f32 0.5, %v307_v1 }
  0x7e   : > { %14675 = vst [vmem:[#allocation54_spill] sm:$0xff] %v9778_v26  ;;  %7583 = vmatmul.mubr.bf16.gmra.mrb[28].mxu0 %v3122_v33  ;;  %7187 = vmatmul.mubr.bf16.gmra.mrb[32].mxu1 %v1630_v56  ;;  %vm14282_vm5 = vcmp.gt.f32.partialorder %v9778_v26, 0.5  ;;  %vm14281_vm1 = vcmp.lt.f32.partialorder %v9778_v26, 16.5  ;;  %vm9795_vm2 = vmand %vm766_vm7, %vm14268_vm9  ;;  %v1182_v30 = vmul.f32 %v9613_v29, %v1129_v3  ;;  %v1234_v48 = vadd.f32 %v9652_v17, %v1181_v59 }
  0x7f   : > { %7586 = vmatprep.mubr.msk.bf16.mxu0 %vm14596_vm4, %v14659_v34  ;;  %vm767_vm13 = vmand %vm9780_vm0, %vm14282_vm5  ;;  %v1508_v60 = vsel %vm9795_vm2, %v1370_v52, 0.0  ;;  %7190 = vmatprep.mubr.msk.bf16.mxu1 %vm14596_vm4, %v14659_v34  ;;  %v354_v49 = vadd.f32 0.5, %v308_v38  ;;  %v400_v33 = vmul.f32 0.055555556, %v353_v15  ;;  %v9812_v3 = vadd.s32 208, %v8848_v6 }
  0x80   : > { %vm859_vm7 = vmand %vm767_vm13, %vm14281_vm1  ;;  %v1235_v59 = vadd.f32 %v9652_v17, %v1182_v30  ;;  %vm1280_vm9 = vcmp.ge.f32.partialorder %v1234_v48, 0.0  ;;  %v1326_v56 = vmul.f32 0.01, %v1234_v48  ;;  %v9818_v28 = vadd.s32 216, %v8848_v6 }
  0x81   : > { %v1509_v14 = vsel %vm859_vm7, %v1371_v58, 0.0  ;;  %v401_v52 = vmul.f32 0.055555556, %v354_v49  ;;  %v9820_v39 = vfloor.f32 %v400_v33  ;;  %v309_v15 = vcvt.s32.f32 %v9812_v3  ;;  %v1130_v3 = vld [vmem:[%s8894_s16 + $0xd0] sm:$0xff] }
  0x82   : > { %v9823_v8 = vpack.c.bf16 %v1509_v14, %v1508_v60  ;;  %vm1281_vm0 = vcmp.ge.f32.partialorder %v1235_v59, 0.0  ;;  %v1327_v16 = vmul.f32 0.01, %v1235_v59  ;;  %v1372_v26 = vsel %vm1280_vm9, %v1234_v48, %v1326_v56  ;;  %v1131_v48 = vld [vmem:[%s8894_s16 + $0xd8] sm:$0xff] }
  0x83   : > { %14680 = vst [vmem:[#allocation55_spill] sm:$0xff] %v9820_v39  ;;  %v9825_v45 = vfloor.f32 %v401_v52  ;;  %v492_v30 = vmul.f32 18.0, %v9820_v39  ;;  %vm584_vm2 = vcmp.gt.f32.partialorder %v9820_v39, 2.5  ;;  %vm630_vm13 = vcmp.lt.f32.partialorder %v9820_v39, 18.5 }
  0x84   : > { %14681 = vst [vmem:[#allocation56_spill] sm:$0xff] %v9823_v8  ;;  %v14286_v58 = vrot.slane %v9823_v8, 2  ;;  %v14284_v49 = vrot.slane %v9823_v8, 1  ;;  %v1373_v33 = vsel %vm1281_vm0, %v1235_v59, %v1327_v16  ;;  %v310_v60 = vcvt.s32.f32 %v9818_v28  ;;  %vm676_vm1 = vmand %vm584_vm2, %vm630_vm13 }
  0x85   : > { %14682 = vst [vmem:[#allocation57_spill] sm:$0xff] %v9825_v45  ;;  %v493_v14 = vmul.f32 18.0, %v9825_v45  ;;  %v9835_v9 = vsub.f32 %v307_v1, %v492_v30  ;;  %vm585_vm9 = vcmp.gt.f32.partialorder %v9825_v45, 2.5  ;;  %vm631_vm7 = vcmp.lt.f32.partialorder %v9825_v45, 18.5 }
  0x86   : > { %v3124_v56 = vsel %vm14508_vm11, %v3121_v10, %v14286_v58  ;;  %v1632_v16 = vsel %vm1611_vm10, %v1629_v11, %v14284_v49  ;;  %v355_v59 = vadd.f32 0.5, %v309_v15  ;;  %v356_v28 = vadd.f32 0.5, %v310_v60  ;;  %vm9848_vm0 = vmand %vm585_vm9, %vm631_vm7 }
  0x87   : > { %14683 = vst [vmem:[#allocation58_spill] sm:$0xff] %v9835_v9  ;;  %7587 = vmatmul.mubr.bf16.gmra.mrb[32].mxu0 %v3124_v56  ;;  %7191 = vmatmul.mubr.bf16.gmra.mrb[36].mxu1 %v1632_v16  ;;  %v9846_v1 = vsub.f32 %v308_v38, %v493_v14  ;;  %vm14291_vm2 = vcmp.gt.f32.partialorder %v9835_v9, 0.5  ;;  %vm14285_vm13 = vcmp.lt.f32.partialorder %v9835_v9, 16.5  ;;  %v1183_v10 = vmul.f32 %v9613_v29, %v1130_v3 }
  0x88   : > { %7590 = vmatprep.mubr.msk.bf16.mxu0 %vm14596_vm4, %v14659_v34  ;;  %vm768_vm5 = vmand %vm676_vm1, %vm14291_vm2  ;;  %7194 = vmatprep.mubr.msk.bf16.mxu1 %vm14596_vm4, %v14659_v34  ;;  %v402_v11 = vmul.f32 0.055555556, %v355_v59  ;;  %v403_v38 = vmul.f32 0.055555556, %v356_v28  ;;  %v1184_v30 = vmul.f32 %v9613_v29, %v1131_v48  ;;  %v9863_v14 = vshll.u32 %v9093_v47, 16 }
  0x89   : > { %14684 = vst [vmem:[#allocation59_spill] sm:$0xff] %v9846_v1  ;;  %vm14288_vm9 = vcmp.gt.f32.partialorder %v9846_v1, 0.5  ;;  %vm14287_vm7 = vcmp.lt.f32.partialorder %v9846_v1, 16.5  ;;  %vm9869_vm15 = vmand %vm768_vm5, %vm14285_vm13  ;;  %v1236_v56 = vadd.f32 %v9652_v17, %v1183_v10  ;;  %v9875_v16 = vshrl.u32 %v9093_v47, 16 }
  0x8a   : > { %14687 = vst [vmem:[#allocation60_spill] sm:$0xff] %v9863_v14  ;;  %vm769_vm1 = vmand %vm9848_vm0, %vm14288_vm9  ;;  %v1510_v48 = vsel %vm9869_vm15, %v1372_v26, 0.0  ;;  %v9883_v59 = vfloor.f32 %v402_v11  ;;  %v9885_v28 = vfloor.f32 %v403_v38  ;;  %v1237_v49 = vadd.f32 %v9652_v17, %v1184_v30 }
  0x8b   : > { %14690 = vst [vmem:[#allocation61_spill] sm:$0xff] %v9875_v16  ;;  %vm861_vm5 = vmand %vm769_vm1, %vm14287_vm7  ;;  %vm1282_vm13 = vcmp.ge.f32.partialorder %v1236_v56, 0.0  ;;  %v1328_v47 = vmul.f32 0.01, %v1236_v56  ;;  %v9891_v10 = vshll.u32 %v9165_v20, 16  ;;  %v9894_v52 = vshrl.u32 %v9165_v20, 16 }
  0x8c   : > { %14691 = vst [vmem:[#allocation62_spill] sm:$0xff] %v9883_v59  ;;  %14692 = vst [vmem:[#allocation63_spill] sm:$0xff] %v9885_v28  ;;  %v1511_v58 = vsel %vm861_vm5, %v1373_v33, 0.0  ;;  %v494_v26 = vmul.f32 18.0, %v9883_v59  ;;  %v495_v11 = vmul.f32 18.0, %v9885_v28  ;;  %vm586_vm15 = vcmp.gt.f32.partialorder %v9883_v59, 2.5 }
  0x8d   : > { %14693 = vst [vmem:[#allocation64_spill] sm:$0xff] %v9891_v10  ;;  %14694 = vst [vmem:[#allocation65_spill] sm:$0xff] %v9894_v52  ;;  %v9899_v38 = vpack.c.bf16 %v1511_v58, %v1510_v48  ;;  %vm587_vm0 = vcmp.gt.f32.partialorder %v9885_v28, 2.5  ;;  %vm632_vm1 = vcmp.lt.f32.partialorder %v9883_v59, 18.5  ;;  %vm633_vm7 = vcmp.lt.f32.partialorder %v9885_v28, 18.5 }
  0x8e   : > { %v9904_v30 = vsub.f32 %v309_v15, %v494_v26  ;;  %v9906_v3 = vsub.f32 %v310_v60, %v495_v11  ;;  %vm9908_vm5 = vmand %vm586_vm15, %vm632_vm1  ;;  %vm1283_vm9 = vcmp.ge.f32.partialorder %v1237_v49, 0.0  ;;  %v1329_v1 = vmul.f32 0.01, %v1237_v49  ;;  %v1132_v15 = vld [vmem:[%s8894_s16 + $0xe0] sm:$0xff]  ;;  %v1133_v60 = vld [vmem:[%s8894_s16 + $0xe8] sm:$0xff] }
  0x8f   : > { %14695 = vst [vmem:[#allocation66_spill] sm:$0xff] %v9899_v38  ;;  %v3125_v58 = vrot.slane %v9899_v38, 2  ;;  %v1633_v48 = vrot.slane %v9899_v38, 1  ;;  %vm9914_vm2 = vmand %vm587_vm0, %vm633_vm7  ;;  %v1374_v28 = vsel %vm1282_vm13, %v1236_v56, %v1328_v47  ;;  %vm3474_vm14 = vsmask.f32 5376 }
  0x90   : > { %14696 = vst [vmem:[#allocation67_spill] sm:$0xff] %v9904_v30  ;;  %14697 = vst [vmem:[#allocation68_spill] sm:$0xff] %v9906_v3  ;;  %vm14375_vm8 = vcmp.gt.f32.partialorder %v9904_v30, 0.5  ;;  %vm14330_vm15 = vcmp.gt.f32.partialorder %v9906_v3, 0.5  ;;  %vm14331_vm1 = vcmp.lt.f32.partialorder %v9904_v30, 16.5  ;;  %vm14329_vm12 = vcmp.lt.f32.partialorder %v9906_v3, 16.5 }
  0x91   : > { %v14702_v26 = vrot.slane %v9823_v8, 2  ;;  %v14703_v45 = vrot.slane %v9823_v8, 1  ;;  %vm770_vm13 = vmand %vm9908_vm5, %vm14375_vm8  ;;  %v1375_v56 = vsel %vm1283_vm9, %v1237_v49, %v1329_v1  ;;  %v3475_v47 = vrot.slane %v9875_v16, 2 }
  0x92   : > { %vm771_vm7 = vmand %vm9914_vm2, %vm14330_vm15  ;;  %v3479_v39 = vrot.slane %v9891_v10, 3  ;;  %v265_v33 = vadd.s32 224, %v8848_v6  ;;  %v1185_v49 = vmul.f32 %v9613_v29, %v1132_v15  ;;  %v1186_v1 = vmul.f32 %v9613_v29, %v1133_v60 }
  0x93   : > { %v3126_v11 = vsel %vm14508_vm11, %v14702_v26, %v3125_v58  ;;  %v1634_v9 = vsel %vm1611_vm10, %v14703_v45, %v1633_v48  ;;  %v3476_v26 = vrot.slane %v9863_v14, 3  ;;  %v3478_v45 = vrot.slane %v9894_v52, 2  ;;  %vm862_vm9 = vmand %vm770_vm13, %vm14331_vm1 }
  0x94   : > { %7591 = vmatmul.mubr.bf16.gmra.mrb[36].mxu0 %v3126_v11  ;;  %7195 = vmatmul.mubr.bf16.gmra.mrb[40].mxu1 %v1634_v9  ;;  %v266_v9 = vadd.s32 232, %v8848_v6  ;;  %v9955_v59 = vshll.u32 %v9307_v46, 16  ;;  %vm863_vm2 = vmand %vm771_vm7, %vm14329_vm12  ;;  %v1512_v11 = vsel %vm862_vm9, %v1374_v28, 0.0  ;;  %v311_v30 = vcvt.s32.f32 %v265_v33 }
  0x95   : > { %7594 = vmatprep.mubr.msk.bf16.mxu0 %vm14596_vm4, %v14659_v34  ;;  %7198 = vmatprep.mubr.msk.bf16.mxu1 %vm14596_vm4, %v14659_v34  ;;  %v3477_v27 = vor.u32 %v3476_v26, %v3475_v47  ;;  %v3480_v13 = vor.u32 %v3479_v39, %v3478_v45  ;;  %v1513_v4 = vsel %vm863_vm2, %v1375_v56, 0.0  ;;  %v1238_v51 = vadd.f32 %v9652_v17, %v1185_v49  ;;  %v1134_v49 = vld [vmem:[%s8894_s16 + $0xf0] sm:$0xff] }
  0x96   : > { %14704 = vst [vmem:[#allocation69_spill] sm:$0xff] %v9955_v59  ;;  %v312_v25 = vcvt.s32.f32 %v266_v9  ;;  %v1239_v19 = vadd.f32 %v9652_v17, %v1186_v1  ;;  %v9961_v18 = vpack.c.bf16 %v1513_v4, %v1512_v11  ;;  %v357_v60 = vadd.f32 0.5, %v311_v30 }
  0x97   : > { %v9964_v15 = vsel %vm3474_vm14, %v3477_v27, %v3480_v13  ;;  %v9967_v3 = vshrl.u32 %v9307_v46, 16  ;;  %vm1284_vm0 = vcmp.ge.f32.partialorder %v1238_v51, 0.0  ;;  %v1330_v39 = vmul.f32 0.01, %v1238_v51 }
  0x98   : > { %14705 = vst [vmem:[#allocation70_spill] sm:$0xff] %v9961_v18  ;;  %v358_v28 = vadd.f32 0.5, %v312_v25  ;;  %vm1285_vm5 = vcmp.ge.f32.partialorder %v1239_v19, 0.0  ;;  %v14327_v56 = vrot.slane %v9961_v18, 2  ;;  %v14328_v47 = vrot.slane %v9961_v18, 1 }
  0x99   : > { %14706 = vst [vmem:[#allocation71_spill] sm:$0xff] %v9967_v3  ;;  %v404_v26 = vmul.f32 0.055555556, %v357_v60  ;;  %v1331_v45 = vmul.f32 0.01, %v1239_v19  ;;  %v9971_v33 = vsel %vm1284_vm0, %v1238_v51, %v1330_v39  ;;  %v3482_v27 = vrot.slane %v9967_v3, 2 }
  0x9a   : > { %v405_v4 = vmul.f32 0.055555556, %v358_v28  ;;  %v3483_v9 = vrot.slane %v9955_v59, 3  ;;  %v3128_v1 = vsel %vm14508_vm11, %v3125_v58, %v14327_v56  ;;  %v1636_v11 = vsel %vm1611_vm10, %v1633_v48, %v14328_v47  ;;  %v1135_v58 = vld [vmem:[%s8894_s16 + $0xf8] sm:$0xff]  ;;  %v1136_v47 = vld [vmem:[%s8894_s16 + $0x100] sm:$0xff] }
  0x9b   : > { %v9982_v23 = vfloor.f32 %v404_v26  ;;  %v9984_v60 = vsel %vm1285_vm5, %v1239_v19, %v1331_v45  ;;  %v9991_v39 = vadd.s32 240, %v8848_v6  ;;  %v1187_v48 = vmul.f32 %v9613_v29, %v1134_v49 }
  0x9c   : > { %7595 = vmatmul.mubr.bf16.gmra.mrb[40].mxu0 %v3128_v1  ;;  %7199 = vmatmul.mubr.bf16.gmra.mrb[44].mxu1 %v1636_v11  ;;  %v9986_v51 = vfloor.f32 %v405_v4  ;;  %v9988_v28 = vor.u32 %v3483_v9, %v3482_v27  ;;  %v314_v49 = vcvt.s32.f32 %v9994_v7  ;;  %v1188_v1 = vmul.f32 %v9613_v29, %v1135_v58  ;;  %v8724_v7 = vld [vmem:[%s14199_s1 + $0x180] sm:$0xff]  }
  0x9d   : > { %14707 = vst [vmem:[#allocation72_spill] sm:$0xff] %v9982_v23  ;;  %7654 = vmatprep.mubr.msk.bf16.mxu0 %vm14596_vm4, %v14659_v34  ;;  %7202 = vmatprep.mubr.msk.bf16.mxu1 %vm14596_vm4, %v14659_v34  ;;  %v496_v19 = vmul.f32 18.0, %v9982_v23  ;;  %vm588_vm13 = vcmp.gt.f32.partialorder %v9982_v23, 2.5  ;;  %vm634_vm7 = vcmp.lt.f32.partialorder %v9982_v23, 18.5  ;;  %v313_v9 = vcvt.s32.f32 %v9991_v39 }
  0x9e   : > { %14708 = vst [vmem:[#allocation73_spill] sm:$0xff] %v9986_v51  ;;  %v497_v26 = vmul.f32 18.0, %v9986_v51  ;;  %vm589_vm9 = vcmp.gt.f32.partialorder %v9986_v51, 2.5  ;;  %vm635_vm2 = vcmp.lt.f32.partialorder %v9986_v51, 18.5  ;;  %v10010_v45 = vsel %vm3474_vm14, %v3480_v13, %v9988_v28  ;;  %vm10014_vm0 = vmand %vm588_vm13, %vm634_vm7 }
  0x9f   : > { %v10012_v4 = vsub.f32 %v311_v30, %v496_v19  ;;  %vm10023_vm5 = vmand %vm589_vm9, %vm635_vm2  ;;  %v1240_v13 = vadd.f32 %v9652_v17, %v1187_v48  ;;  %v10029_v30 = vshll.u32 %v9364_v31, 16  ;;  %v10032_v19 = vshrl.u32 %v9364_v31, 16 }
  0xa0   : > { %v10021_v11 = vsub.f32 %v312_v25, %v497_v26  ;;  %v359_v25 = vadd.f32 0.5, %v313_v9  ;;  %v360_v39 = vadd.f32 0.5, %v314_v49  ;;  %v1241_v58 = vadd.f32 %v9652_v17, %v1188_v1 }
  0xa1   : > { %14709 = vst [vmem:[#allocation74_spill] sm:$0xff] %v10012_v4  ;;  %14715 = vst [vmem:[#allocation76_spill] sm:$0xff] %v10029_v30  ;;  %vm14336_vm13 = vcmp.gt.f32.partialorder %v10012_v4, 0.5  ;;  %vm14347_vm7 = vcmp.lt.f32.partialorder %v10012_v4, 16.5  ;;  %vm1286_vm15 = vcmp.ge.f32.partialorder %v1240_v13, 0.0  ;;  %v1189_v23 = vmul.f32 %v9613_v29, %v1136_v47 }
  0xa2   : > { %14712 = vst [vmem:[#allocation75_spill] sm:$0xff] %v10021_v11  ;;  %14716 = vst [vmem:[#allocation77_spill] sm:$0xff] %v10032_v19  ;;  %vm14346_vm9 = vcmp.gt.f32.partialorder %v10021_v11, 0.5  ;;  %vm14345_vm12 = vcmp.lt.f32.partialorder %v10021_v11, 16.5  ;;  %v406_v48 = vmul.f32 0.055555556, %v359_v25 }
  0xa3   : > { %vm772_vm2 = vmand %vm10014_vm0, %vm14336_vm13  ;;  %v407_v26 = vmul.f32 0.055555556, %v360_v39  ;;  %v1332_v51 = vmul.f32 0.01, %v1240_v13  ;;  %vm1287_vm13 = vcmp.ge.f32.partialorder %v1241_v58, 0.0  ;;  %v3486_v22 = vrot.slane %v10032_v19, 2 }
  0xa4   : > { %vm773_vm1 = vmand %vm10023_vm5, %vm14346_vm9  ;;  %7655 = vmatmul.mubr.bf16.vlgmr.msra.gmra.mrb[0].mxu0 %v9964_v15  ;;  %v1333_v1 = vmul.f32 0.01, %v1241_v58  ;;  %v3487_v56 = vrot.slane %v10029_v30, 3  ;;  %v10068_v47 = vfloor.f32 %v406_v48  ;;  %v10523_v35 = vshll.u32 %v9764_v62, 16 }
  0xa5   : > { %vm10055_vm0 = vmand %vm772_vm2, %vm14347_vm7  ;;  %7739 = vmatpush3.bf16.msra.mxu0 %v8724_v7  ;;  %7658 = vmatprep.mubr.msk.bf16.mxu0 %vm14596_vm4, %v14659_v34  ;;  %v10070_v25 = vfloor.f32 %v407_v26  ;;  %v10073_v39 = vsel %vm1286_vm15, %v1240_v13, %v1332_v51  ;;  %v8726_v7 = vld [vmem:[%s14199_s1 + $0x188] sm:$0xff]   ;;  %v10709_v46 = vadd.s32 360, %v8848_v6 }
  0xa6   : > { %vm865_vm5 = vmand %vm773_vm1, %vm14345_vm12  ;;  %v1514_v15 = vsel %vm10055_vm0, %v9971_v33, 0.0  ;;  %14719 = vst [vmem:[#allocation78_spill] sm:$0xff] %v10068_v47  ;;  %v1379_v11 = vsel %vm1287_vm13, %v1241_v58, %v1333_v1  ;;  %v10079_v5 = vor.u32 %v3487_v56, %v3486_v22  ;;  %7740 = vmatprep.subr.bf16.mxu0 %v14659_v34  ;;  %v10083_v33 = vadd.s32 256, %v8848_v6  ;;  %v1137_v13 = vld [vmem:[%s8894_s16 + $0x108] sm:$0xff] }
  0xa7   : > { %14720 = vst [vmem:[#allocation79_spill] sm:$0xff] %v10070_v25  ;;  %v1515_v4 = vsel %vm865_vm5, %v9984_v60, 0.0  ;;  %v498_v26 = vmul.f32 18.0, %v10068_v47  ;;  %v499_v51 = vmul.f32 18.0, %v10070_v25  ;;  %vm590_vm15 = vcmp.gt.f32.partialorder %v10068_v47, 2.5 }
  0xa8   : > { %v10085_v48 = vpack.c.bf16 %v1515_v4, %v1514_v15  ;;  %vm591_vm1 = vcmp.gt.f32.partialorder %v10070_v25, 2.5  ;;  %vm636_vm13 = vcmp.lt.f32.partialorder %v10068_v47, 18.5  ;;  %vm637_vm2 = vcmp.lt.f32.partialorder %v10070_v25, 18.5 }
  0xa9   : > { %v10097_v22 = vsel %vm3474_vm14, %v9988_v28, %v10079_v5  ;;  %v10100_v4 = vsub.f32 %v313_v9, %v498_v26  ;;  %v10102_v58 = vsub.f32 %v314_v49, %v499_v51  ;;  %vm10104_vm0 = vmand %vm590_vm15, %vm636_vm13  ;;  %7741 = vmatpush3.bf16.msra.mxu0 %v8726_v7  ;;  %v10109_v1 = vadd.s32 264, %v8848_v6  ;;  %v8728_v7 = vld [vmem:[%s14199_s1 + $0x190] sm:$0xff]  }
  0xaa   : > { %14721 = vst [vmem:[#allocation80_spill] sm:$0xff] %v10085_v48  ;;  %v14348_v60 = vrot.slane %v10085_v48, 1  ;;  %vm10111_vm5 = vmand %vm591_vm1, %vm637_vm2  ;;  %v315_v28 = vcvt.s32.f32 %v10083_v33  ;;  %v1190_v15 = vmul.f32 %v9613_v29, %v1137_v13  ;;  %v1242_v9 = vadd.f32 %v9652_v17, %v1189_v23  ;;  %7742 = vmatprep.subr.bf16.mxu0 %v14659_v34 }
  0xab   : > { %14722 = vst [vmem:[#allocation81_spill] sm:$0xff] %v10100_v4  ;;  %14723 = vst [vmem:[#allocation82_spill] sm:$0xff] %v10102_v58  ;;  %v10119_v49 = vshll.u32 %v9475_v21, 16  ;;  %v14729_v26 = vrot.slane %v9961_v18, 1  ;;  %vm14374_vm15 = vcmp.gt.f32.partialorder %v10100_v4, 0.5  ;;  %vm14351_vm1 = vcmp.gt.f32.partialorder %v10102_v58, 0.5 }
  0xac   : > { %vm14371_vm13 = vcmp.lt.f32.partialorder %v10100_v4, 16.5  ;;  %7659 = vmatmul.mubr.bf16.gmra.mrb[4].mxu0 %v10010_v45  ;;  %vm774_vm2 = vmand %vm10104_vm0, %vm14374_vm15  ;;  %vm14370_vm12 = vcmp.lt.f32.partialorder %v10102_v58, 16.5  ;;  %v316_v23 = vcvt.s32.f32 %v10109_v1  ;;  %v361_v33 = vadd.f32 0.5, %v315_v28 }
  0xad   : > { %14728 = vst [vmem:[#allocation83_spill] sm:$0xff] %v10119_v49  ;;  %v1638_v51 = vsel %vm1611_vm10, %v14729_v26, %v14348_v60  ;;  %v1243_v13 = vadd.f32 %v9652_v17, %v1190_v15  ;;  %7662 = vmatprep.mubr.msk.bf16.mxu0 %vm14596_vm4, %v14659_v34  ;;  %vm775_vm9 = vmand %vm10111_vm5, %vm14351_vm1  ;;  %vm1288_vm7 = vcmp.ge.f32.partialorder %v1242_v9, 0.0  ;;  %v1334_v27 = vmul.f32 0.01, %v1242_v9  ;;  %v8730_v15 = vld [vmem:[%s14199_s1 + $0x198] sm:$0xff]   ;;  %7743 = vmatpush3.bf16.msra.mxu0 %v8728_v7 }
  0xae   : > { %7203 = vmatmul.mubr.bf16.gmra.mrb[48].mxu1 %v1638_v51  ;;  %v10150_v26 = vshrl.u32 %v9475_v21, 16  ;;  %v3491_v1 = vrot.slane %v10119_v49, 3  ;;  %vm10158_vm0 = vmand %vm774_vm2, %vm14371_vm13  ;;  %v362_v60 = vadd.f32 0.5, %v316_v23  ;;  %v408_v56 = vmul.f32 0.055555556, %v361_v33  ;;  %7744 = vmatprep.subr.bf16.mxu0 %v14659_v34 }
  0xaf   : > { %7206 = vmatprep.mubr.msk.bf16.mxu1 %vm14596_vm4, %v14659_v34  ;;  %vm1289_vm5 = vcmp.ge.f32.partialorder %v1243_v13, 0.0  ;;  %v1335_v25 = vmul.f32 0.01, %v1243_v13  ;;  %vm867_vm1 = vmand %vm775_vm9, %vm14370_vm12  ;;  %v1516_v47 = vsel %vm10158_vm0, %v10073_v39, 0.0  ;;  %v10167_v0 = vsel %vm1288_vm7, %v1242_v9, %v1334_v27 }
  0xb0   : > { %14730 = vst [vmem:[#allocation84_spill] sm:$0xff] %v10150_v26  ;;  %v3490_v4 = vrot.slane %v10150_v26, 2  ;;  %v1517_v33 = vsel %vm867_vm1, %v1379_v11, 0.0  ;;  %v409_v63 = vmul.f32 0.055555556, %v362_v60  ;;  %v10174_v7 = vfloor.f32 %v408_v56  ;;  %v1138_v11 = vld [vmem:[%s8894_s16 + $0x110] sm:$0xff] }
  0xb1   : > { %v10176_v58 = vsel %vm1289_vm5, %v1243_v13, %v1335_v25  ;;  %v10178_v40 = vpack.c.bf16 %v1517_v33, %v1516_v47  ;;  %v10183_v9 = vadd.s32 280, %v8848_v6  ;;  %v317_v27 = vcvt.s32.f32 %v10171_v44  ;;  %7745 = vmatpush3.bf16.msra.mxu0 %v8730_v15  ;;  %v8732_v47 = vld [vmem:[%s14199_s1 + $0x1a0] sm:$0xff]  }
  0xb2   : > { %14733 = vst [vmem:[#allocation85_spill] sm:$0xff] %v10174_v7  ;;  %v10180_v39 = vor.u32 %v3491_v1, %v3490_v4  ;;  %v10186_v51 = vfloor.f32 %v409_v63  ;;  %v500_v61 = vmul.f32 18.0, %v10174_v7  ;;  %vm592_vm7 = vcmp.gt.f32.partialorder %v10174_v7, 2.5  ;;  %v1139_v4 = vld [vmem:[%s8894_s16 + $0x118] sm:$0xff]  ;;  %7746 = vmatprep.subr.bf16.mxu0 %v14659_v34 }
  0xb3   : > { %14734 = vst [vmem:[#allocation86_spill] sm:$0xff] %v10178_v40  ;;  %vm638_vm9 = vcmp.lt.f32.partialorder %v10174_v7, 18.5  ;;  %v14376_v25 = vrot.slane %v10178_v40, 1  ;;  %v318_v63 = vcvt.s32.f32 %v10183_v9  ;;  %v363_v60 = vadd.f32 0.5, %v317_v27 }
  0xb4   : > { %14735 = vst [vmem:[#allocation87_spill] sm:$0xff] %v10186_v51  ;;  %v10199_v44 = vsel %vm3474_vm14, %v10079_v5, %v10180_v39  ;;  %7663 = vmatmul.mubr.bf16.gmra.mrb[8].mxu0 %v10097_v22  ;;  %v501_v13 = vmul.f32 18.0, %v10186_v51  ;;  %v10206_v1 = vsub.f32 %v315_v28, %v500_v61  ;;  %vm593_vm1 = vcmp.gt.f32.partialorder %v10186_v51, 2.5  ;;  %vm10214_vm0 = vmand %vm592_vm7, %vm638_vm9 }
  0xb5   : > { %vm639_vm2 = vcmp.lt.f32.partialorder %v10186_v51, 18.5  ;;  %v14739_v15 = vrot.slane %v10085_v48, 1  ;;  %7666 = vmatprep.mubr.msk.bf16.mxu0 %vm14596_vm4, %v14659_v34  ;;  %v364_v61 = vadd.f32 0.5, %v318_v63  ;;  %v410_v28 = vmul.f32 0.055555556, %v363_v60  ;;  %7747 = vmatpush3.bf16.msra.mxu0 %v8732_v47  ;;  %v8734_v60 = vld [vmem:[%s14199_s1 + $0x1a8] sm:$0xff]  }
  0xb6   : > { %14736 = vst [vmem:[#allocation88_spill] sm:$0xff] %v10206_v1  ;;  %v1191_v33 = vmul.f32 %v9613_v29, %v1138_v11  ;;  %v10226_v9 = vsub.f32 %v316_v23, %v501_v13  ;;  %vm10228_vm5 = vmand %vm593_vm1, %vm639_vm2  ;;  %vm14373_vm7 = vcmp.gt.f32.partialorder %v10206_v1, 0.5  ;;  %vm14372_vm9 = vcmp.lt.f32.partialorder %v10206_v1, 16.5  ;;  %7748 = vmatprep.subr.bf16.mxu0 %v14659_v34 }
  0xb7   : > { %v1640_v56 = vsel %vm1611_vm10, %v14739_v15, %v14376_v25  ;;  %v1192_v15 = vmul.f32 %v9613_v29, %v1139_v4  ;;  %vm776_vm1 = vmand %vm10214_vm0, %vm14373_vm7  ;;  %v411_v23 = vmul.f32 0.055555556, %v364_v61  ;;  %v10244_v11 = vfloor.f32 %v410_v28  ;;  %v1140_v25 = vld [vmem:[%s8894_s16 + $0x120] sm:$0xff] }
  0xb8   : > { %7207 = vmatmul.mubr.bf16.gmra.mrb[52].mxu1 %v1640_v56  ;;  %14740 = vst [vmem:[#allocation89_spill] sm:$0xff] %v10226_v9  ;;  %v1244_v13 = vadd.f32 %v9652_v17, %v1191_v33  ;;  %v10248_v29 = vshll.u32 %v9547_v24, 16  ;;  %vm14413_vm2 = vcmp.gt.f32.partialorder %v10226_v9, 0.5  ;;  %vm14377_vm12 = vcmp.lt.f32.partialorder %v10226_v9, 16.5  ;;  %vm10255_vm13 = vmand %vm776_vm1, %vm14372_vm9 }
  0xb9   : > { %7210 = vmatprep.mubr.msk.bf16.mxu1 %vm14596_vm4, %v14659_v34  ;;  %14743 = vst [vmem:[#allocation90_spill] sm:$0xff] %v10244_v11  ;;  %v1245_v4 = vadd.f32 %v9652_v17, %v1192_v15  ;;  %v10261_v5 = vshrl.u32 %v9547_v24, 16  ;;  %vm777_vm0 = vmand %vm10228_vm5, %vm14413_vm2  ;;  %v1518_v56 = vsel %vm10255_vm13, %v10167_v0, 0.0  ;;  %v10270_v61 = vfloor.f32 %v411_v23  ;;  %7749 = vmatpush3.bf16.msra.mxu0 %v8734_v60  ;;  %v8736_v0 = vld [vmem:[%s14199_s1 + $0x1b0] sm:$0xff]  }
  0xba   : > { %v502_v28 = vmul.f32 18.0, %v10244_v11  ;;  %vm594_vm1 = vcmp.gt.f32.partialorder %v10244_v11, 2.5  ;;  %vm869_vm9 = vmand %vm777_vm0, %vm14377_vm12  ;;  %vm640_vm7 = vcmp.lt.f32.partialorder %v10244_v11, 18.5  ;;  %vm1290_vm15 = vcmp.ge.f32.partialorder %v1244_v13, 0.0  ;;  %7750 = vmatprep.subr.bf16.mxu0 %v14659_v34 }
  0xbb   : > { %14746 = vst [vmem:[#allocation91_spill] sm:$0xff] %v10270_v61  ;;  %vm1291_vm8 = vcmp.ge.f32.partialorder %v1245_v4, 0.0  ;;  %v1336_v17 = vmul.f32 0.01, %v1244_v13  ;;  %v1519_v51 = vsel %vm869_vm9, %v10176_v58, 0.0  ;;  %v503_v33 = vmul.f32 18.0, %v10270_v61  ;;  %vm10285_vm5 = vmand %vm594_vm1, %vm640_vm7 }
  0xbc   : > { %v10282_v15 = vsub.f32 %v317_v27, %v502_v28  ;;  %vm595_vm13 = vcmp.gt.f32.partialorder %v10270_v61, 2.5  ;;  %v10290_v47 = vpack.c.bf16 %v1519_v51, %v1518_v56  ;;  %7667 = vmatmul.mubr.bf16.gmra.mrb[12].mxu0 %v10199_v44  ;;  %vm641_vm0 = vcmp.lt.f32.partialorder %v10270_v61, 18.5 }
  0xbd   : > { %v1337_v58 = vmul.f32 0.01, %v1245_v4  ;;  %v1382_v60 = vsel %vm1290_vm15, %v1244_v13, %v1336_v17  ;;  %7670 = vmatprep.mubr.msk.bf16.mxu0 %vm14596_vm4, %v14659_v34  ;;  %v10297_v27 = vsub.f32 %v318_v63, %v503_v33  ;;  %vm10299_vm7 = vmand %vm595_vm13, %vm641_vm0  ;;  %v3494_v56 = vrot.slane %v10261_v5, 2  ;;  %v1141_v33 = vld [vmem:[%s8894_s16 + $0x128] sm:$0xff]  ;;  %7751 = vmatpush3.bf16.msra.mxu0 %v8736_v0 }
  0xbe   : > { %14747 = vst [vmem:[#allocation92_spill] sm:$0xff] %v10282_v15  ;;  %14750 = vst [vmem:[#allocation93_spill] sm:$0xff] %v10290_v47  ;;  %vm14412_vm9 = vcmp.gt.f32.partialorder %v10282_v15, 0.5  ;;  %vm14411_vm1 = vcmp.lt.f32.partialorder %v10282_v15, 16.5  ;;  %v1641_v51 = vrot.slane %v10290_v47, 1  ;;  %v3495_v13 = vrot.slane %v10248_v29, 3  ;;  %7752 = vmatprep.subr.bf16.mxu0 %v14659_v34 }
  0xbf   : > { %14751 = vst [vmem:[#allocation94_spill] sm:$0xff] %v10297_v27  ;;  %vm778_vm15 = vmand %vm10285_vm5, %vm14412_vm9  ;;  %v1383_v63 = vsel %vm1291_vm8, %v1245_v4, %v1337_v58  ;;  %v10314_v17 = vadd.s32 288, %v8848_v6  ;;  %vm14408_vm13 = vcmp.gt.f32.partialorder %v10297_v27, 0.5  ;;  %vm14406_vm0 = vcmp.lt.f32.partialorder %v10297_v27, 16.5  ;;  %v10331_v4 = vld [vmem:[%s14200_s2] ss:$0 sm:$0xff] }
  0xc0   : > { %vm10321_vm12 = vmand %vm778_vm15, %vm14411_vm1  ;;  %v10326_v23 = vadd.s32 296, %v8848_v6  ;;  %v1193_v0 = vmul.f32 %v10331_v4, %v1140_v25  ;;  %v14756_v58 = vrot.slane %v10178_v40, 1  ;;  %v3496_v9 = vor.u32 %v3495_v13, %v3494_v56 }
  0xc1   : > { %vm779_vm8 = vmand %vm10299_vm7, %vm14408_vm13  ;;  %v1520_v11 = vsel %vm10321_vm12, %v1382_v60, 0.0  ;;  %v319_v1 = vcvt.s32.f32 %v10314_v17  ;;  %v1194_v7 = vmul.f32 %v10331_v4, %v1141_v33  ;;  %v10356_v61 = vshll.u32 %v9623_v2, 16  ;;  %7753 = vmatpush3.bf16.msra.mxu0 %v8738_v32 }
  0xc2   : > { %v1642_v15 = vsel %vm1611_vm10, %v14756_v58, %v1641_v51  ;;  %vm871_vm5 = vmand %vm779_vm8, %vm14406_vm0  ;;  %v320_v25 = vcvt.s32.f32 %v10326_v23  ;;  %v10352_v58 = vld [vmem:[%s14201_s3] ss:$0 sm:$0xff]  ;;  %v10362_v60 = vsel %vm3474_vm14, %v10180_v39, %v3496_v9  ;;  %v10365_v13 = vshrl.u32 %v9623_v2, 16  ;;  %7838 = vmatprep.subr.bf16.mxu0 %v14659_v34 }
  0xc3   : > { %7211 = vmatmul.mubr.bf16.gmra.mrb[56].mxu1 %v1642_v15  ;;  %v1246_v28 = vadd.f32 %v10352_v58, %v1193_v0  ;;  %v1521_v15 = vsel %vm871_vm5, %v1383_v63, 0.0  ;;  %v365_v56 = vadd.f32 0.5, %v319_v1  ;;  %v1247_v23 = vadd.f32 %v10352_v58, %v1194_v7 }
  0xc4   : > { %7214 = vmatprep.mubr.msk.bf16.mxu1 %vm14596_vm4, %v14659_v34  ;;  %v10367_v17 = vpack.c.bf16 %v1521_v15, %v1520_v11  ;;  %v366_v33 = vadd.f32 0.5, %v320_v25  ;;  %7671 = vmatmul.mubr.bf16.gmra.mrb[16].mxu0 %v10362_v60  ;;  %v3498_v63 = vrot.slane %v10365_v13, 2  ;;  %v3499_v39 = vrot.slane %v10356_v61, 3 }
  0xc5   : > { %vm1292_vm12 = vcmp.ge.f32.partialorder %v1246_v28, 0.0  ;;  %v412_v0 = vmul.f32 0.055555556, %v365_v56  ;;  %v1338_v27 = vmul.f32 0.01, %v1246_v28  ;;  %7674 = vmatprep.mubr.msk.bf16.mxu0 %vm14596_vm4, %v14659_v34  ;;  %vm1293_vm7 = vcmp.ge.f32.partialorder %v1247_v23, 0.0 }
  0xc6   : > { %14757 = vst [vmem:[#allocation95_spill] sm:$0xff] %v10367_v17  ;;  %v14407_v43 = vrot.slane %v10367_v17, 1  ;;  %v413_v11 = vmul.f32 0.055555556, %v366_v33  ;;  %v1339_v7 = vmul.f32 0.01, %v1247_v23  ;;  %v10378_v50 = vor.u32 %v3499_v39, %v3498_v63 }
  0xc7   : > { %v10376_v15 = vfloor.f32 %v412_v0  ;;  %v10381_v56 = vadd.s32 304, %v8848_v6  ;;  %v1384_v33 = vsel %vm1292_vm12, %v1246_v28, %v1338_v27  ;;  %v10393_v0 = vadd.s32 312, %v8848_v6  ;;  %v1142_v63 = vld [vmem:[%s8894_s16 + $0x130] sm:$0xff]  ;;  %v1143_v39 = vld [vmem:[%s8894_s16 + $0x138] sm:$0xff] }
  0xc8   : > { %v1644_v57 = vsel %vm1611_vm10, %v1641_v51, %v14407_v43  ;;  %v10389_v41 = vfloor.f32 %v413_v11  ;;  %v10402_v37 = vsel %vm3474_vm14, %v3496_v9, %v10378_v50  ;;  %v1195_v32 = vmul.f32 %v10331_v4, %v1142_v63 }
  0xc9   : > { %14758 = vst [vmem:[#allocation96_spill] sm:$0xff] %v10376_v15  ;;  %v504_v55 = vmul.f32 18.0, %v10376_v15  ;;  %vm596_vm15 = vcmp.gt.f32.partialorder %v10376_v15, 2.5  ;;  %vm642_vm8 = vcmp.lt.f32.partialorder %v10376_v15, 18.5  ;;  %v321_v27 = vcvt.s32.f32 %v10381_v56 }
  0xca   : > { %14759 = vst [vmem:[#allocation97_spill] sm:$0xff] %v10389_v41  ;;  %v505_v51 = vmul.f32 18.0, %v10389_v41  ;;  %vm597_vm5 = vcmp.gt.f32.partialorder %v10389_v41, 2.5  ;;  %vm643_vm12 = vcmp.lt.f32.partialorder %v10389_v41, 18.5  ;;  %vm10413_vm0 = vmand %vm596_vm15, %vm642_vm8  ;;  %v1196_v11 = vmul.f32 %v10331_v4, %v1143_v39 }
  0xcb   : > { %7215 = vmatmul.mubr.bf16.gmra.mrb[60].mxu1 %v1644_v57  ;;  %v10411_v28 = vsub.f32 %v319_v1, %v504_v55  ;;  %v322_v57 = vcvt.s32.f32 %v10393_v0  ;;  %vm10422_vm13 = vmand %vm597_vm5, %vm643_vm12  ;;  %v367_v41 = vadd.f32 0.5, %v321_v27  ;;  %v10427_v55 = vshll.u32 %v9699_v12, 16 }
  0xcc   : > { %7218 = vmatprep.mubr.msk.bf16.mxu1 %vm14596_vm4, %v14659_v34  ;;  %v10420_v43 = vsub.f32 %v320_v25, %v505_v51  ;;  %v10430_v1 = vshrl.u32 %v9699_v12, 16  ;;  %7675 = vmatmul.mubr.bf16.gmra.mrb[20].mxu0 %v10402_v37  ;;  %v1248_v25 = vadd.f32 %v10352_v58, %v1195_v32  ;;  %v1249_v39 = vadd.f32 %v10352_v58, %v1196_v11 }
  0xcd   : > { %14760 = vst [vmem:[#allocation98_spill] sm:$0xff] %v10411_v28  ;;  %vm14416_vm15 = vcmp.gt.f32.partialorder %v10411_v28, 0.5  ;;  %vm14450_vm8 = vcmp.lt.f32.partialorder %v10411_v28, 16.5  ;;  %v368_v0 = vadd.f32 0.5, %v322_v57  ;;  %7678 = vmatprep.mubr.msk.bf16.mxu0 %vm14596_vm4, %v14659_v34  ;;  %v414_v63 = vmul.f32 0.055555556, %v367_v41 }
  0xce   : > { %14763 = vst [vmem:[#allocation99_spill] sm:$0xff] %v10420_v43  ;;  %vm14455_vm5 = vcmp.gt.f32.partialorder %v10420_v43, 0.5  ;;  %vm780_vm12 = vmand %vm10413_vm0, %vm14416_vm15  ;;  %vm14434_vm1 = vcmp.lt.f32.partialorder %v10420_v43, 16.5  ;;  %v1385_v51 = vsel %vm1293_vm7, %v1247_v23, %v1339_v7  ;;  %vm1294_vm2 = vcmp.ge.f32.partialorder %v1248_v25, 0.0 }
  0xcf   : > { %vm781_vm9 = vmand %vm10422_vm13, %vm14455_vm5  ;;  %v415_v32 = vmul.f32 0.055555556, %v368_v0  ;;  %v1340_v9 = vmul.f32 0.01, %v1248_v25  ;;  %v10452_v15 = vfloor.f32 %v414_v63  ;;  %vm1295_vm15 = vcmp.ge.f32.partialorder %v1249_v39, 0.0  ;;  %v1144_v63 = vld [vmem:[%s8894_s16 + $0x140] sm:$0xff] }
  0xd0   : > { %vm872_vm0 = vmand %vm780_vm12, %vm14450_vm8  ;;  %v3502_v41 = vrot.slane %v10430_v1, 2  ;;  %v3503_v11 = vrot.slane %v10427_v55, 3  ;;  %v1341_v23 = vmul.f32 0.01, %v1249_v39  ;;  %v10461_v7 = vadd.s32 320, %v8848_v6 }
  0xd1   : > { %14766 = vst [vmem:[#allocation100_spill] sm:$0xff] %v10452_v15  ;;  %vm873_vm6 = vmand %vm781_vm9, %vm14434_vm1  ;;  %v1522_v56 = vsel %vm872_vm0, %v1384_v33, 0.0  ;;  %v10458_v54 = vfloor.f32 %v415_v32  ;;  %v506_v28 = vmul.f32 18.0, %v10452_v15  ;;  %vm598_vm13 = vcmp.gt.f32.partialorder %v10452_v15, 2.5 }
  0xd2   : > { %v1523_v0 = vsel %vm873_vm6, %v1385_v51, 0.0  ;;  %vm644_vm7 = vcmp.lt.f32.partialorder %v10452_v15, 18.5  ;;  %v1386_v32 = vsel %vm1294_vm2, %v1248_v25, %v1340_v9  ;;  %v10479_v53 = vor.u32 %v3503_v11, %v3502_v41 }
  0xd3   : > { %14767 = vst [vmem:[#allocation101_spill] sm:$0xff] %v10458_v54  ;;  %v10467_v36 = vpack.c.bf16 %v1523_v0, %v1522_v56  ;;  %v507_v43 = vmul.f32 18.0, %v10458_v54  ;;  %vm599_vm9 = vcmp.gt.f32.partialorder %v10458_v54, 2.5  ;;  %vm645_vm12 = vcmp.lt.f32.partialorder %v10458_v54, 18.5  ;;  %vm10474_vm0 = vmand %vm598_vm13, %vm644_vm7 }
  0xd4   : > { %v10472_v33 = vsub.f32 %v321_v27, %v506_v28  ;;  %v278_v15 = vadd.s32 328, %v8848_v6  ;;  %vm10485_vm6 = vmand %vm599_vm9, %vm645_vm12  ;;  %v323_v27 = vcvt.s32.f32 %v10461_v7  ;;  %v1145_v28 = vld [vmem:[%s8894_s16 + $0x148] sm:$0xff]  ;;  %v1197_v54 = vmul.f32 %v10331_v4, %v1144_v63 }
  0xd5   : > { %14768 = vst [vmem:[#allocation102_spill] sm:$0xff] %v10467_v36  ;;  %v1645_v56 = vrot.slane %v10467_v36, 1  ;;  %v10483_v0 = vsub.f32 %v322_v57, %v507_v43  ;;  %v10497_v25 = vsel %vm3474_vm14, %v10378_v50, %v10479_v53  ;;  %v14775_v57 = vrot.slane %v10367_v17, 1 }
  0xd6   : > { %14769 = vst [vmem:[#allocation103_spill] sm:$0xff] %v10472_v33  ;;  %vm14451_vm13 = vcmp.gt.f32.partialorder %v10472_v33, 0.5  ;;  %vm14449_vm2 = vcmp.lt.f32.partialorder %v10472_v33, 16.5  ;;  %v324_v43 = vcvt.s32.f32 %v278_v15  ;;  %7679 = vmatmul.mubr.bf16.gmra.mrb[24].mxu0 %v10497_v25  ;;  %v369_v41 = vadd.f32 0.5, %v323_v27 }
  0xd7   : > { %14772 = vst [vmem:[#allocation104_spill] sm:$0xff] %v10483_v0  ;;  %v1646_v9 = vsel %vm1611_vm10, %v14775_v57, %v1645_v56  ;;  %vm14442_vm7 = vcmp.gt.f32.partialorder %v10483_v0, 0.5  ;;  %vm782_vm9 = vmand %vm10474_vm0, %vm14451_vm13  ;;  %vm14441_vm12 = vcmp.lt.f32.partialorder %v10483_v0, 16.5  ;;  %v1387_v50 = vsel %vm1295_vm15, %v1249_v39, %v1341_v23  ;;  %7682 = vmatprep.mubr.msk.bf16.mxu0 %vm14596_vm4, %v14659_v34 }
  0xd8   : > { %7219 = vmatmul.mubr.bf16.gmra.mrb[64].mxu1 %v1646_v9  ;;  %vm783_vm1 = vmand %vm10485_vm6, %vm14442_vm7  ;;  %v370_v15 = vadd.f32 0.5, %v324_v43  ;;  %v1198_v11 = vmul.f32 %v10331_v4, %v1145_v28  ;;  %v1250_v7 = vadd.f32 %v10352_v58, %v1197_v54  ;;  %v416_v63 = vmul.f32 0.055555556, %v369_v41 }
  0xd9   : > { %7222 = vmatprep.mubr.msk.bf16.mxu1 %vm14596_vm4, %v14659_v34  ;;  %vm874_vm0 = vmand %vm782_vm9, %vm14449_vm2  ;;  %v10526_v39 = vshrl.u32 %v9764_v62, 16  ;;  %v10529_v23 = vadd.s32 336, %v8848_v6  ;;  %v10535_v57 = vadd.s32 344, %v8848_v6  ;;  %v3507_v2 = vrot.slane %v10523_v35, 3 }
  0xda   : > { %vm875_vm15 = vmand %vm783_vm1, %vm14441_vm12  ;;  %v1524_v54 = vsel %vm874_vm0, %v1386_v32, 0.0  ;;  %v417_v51 = vmul.f32 0.055555556, %v370_v15  ;;  %v1251_v28 = vadd.f32 %v10352_v58, %v1198_v11  ;;  %v10537_v41 = vfloor.f32 %v416_v63  ;;  %v1146_v11 = vld [vmem:[%s8894_s16 + $0x150] sm:$0xff] }
  0xdb   : > { %v1525_v9 = vsel %vm875_vm15, %v1387_v50, 0.0  ;;  %vm1296_vm6 = vcmp.ge.f32.partialorder %v1250_v7, 0.0  ;;  %v1342_v33 = vmul.f32 0.01, %v1250_v7  ;;  %v3506_v0 = vrot.slane %v10526_v39, 2 }
  0xdc   : > { %14776 = vst [vmem:[#allocation105_spill] sm:$0xff] %v10537_v41  ;;  %v10539_v62 = vpack.c.bf16 %v1525_v9, %v1524_v54  ;;  %v463_v12 = vfloor.f32 %v417_v51  ;;  %vm1297_vm9 = vcmp.ge.f32.partialorder %v1251_v28, 0.0  ;;  %v508_v32 = vmul.f32 18.0, %v10537_v41 }
  0xdd   : > { %vm600_vm1 = vcmp.gt.f32.partialorder %v10537_v41, 2.5  ;;  %vm646_vm0 = vcmp.lt.f32.partialorder %v10537_v41, 18.5  ;;  %v1343_v15 = vmul.f32 0.01, %v1251_v28  ;;  %v1388_v9 = vsel %vm1296_vm6, %v1250_v7, %v1342_v33  ;;  %v1147_v41 = vld [vmem:[%s8894_s16 + $0x158] sm:$0xff] }
  0xde   : > { %14777 = vst [vmem:[#allocation106_spill] sm:$0xff] %v10539_v62  ;;  %v14452_v50 = vrot.slane %v10539_v62, 1  ;;  %v509_v63 = vmul.f32 18.0, %v463_v12  ;;  %vm601_vm15 = vcmp.gt.f32.partialorder %v463_v12, 2.5  ;;  %vm647_vm12 = vcmp.lt.f32.partialorder %v463_v12, 18.5  ;;  %vm10549_vm7 = vmand %vm600_vm1, %vm646_vm0 }
  0xdf   : > { %v10547_v54 = vsub.f32 %v323_v27, %v508_v32  ;;  %v325_v24 = vcvt.s32.f32 %v10529_v23  ;;  %vm693_vm2 = vmand %vm601_vm15, %vm647_vm12  ;;  %v326_v12 = vcvt.s32.f32 %v10535_v57  ;;  %v1199_v27 = vmul.f32 %v10331_v4, %v1146_v11 }
  0xe0   : > { %v1648_v21 = vsel %vm1611_vm10, %v1645_v56, %v14452_v50  ;;  %v555_v31 = vsub.f32 %v324_v43, %v509_v63  ;;  %v3508_v33 = vor.u32 %v3507_v2, %v3506_v0  ;;  %v1200_v43 = vmul.f32 %v10331_v4, %v1147_v41 }
  0xe1   : > { %14778 = vst [vmem:[#allocation107_spill] sm:$0xff] %v10547_v54  ;;  %7223 = vmatmul.mubr.bf16.gmra.mrb[68].mxu1 %v1648_v21  ;;  %vm14454_vm1 = vcmp.gt.f32.partialorder %v10547_v54, 0.5  ;;  %vm14453_vm6 = vcmp.lt.f32.partialorder %v10547_v54, 16.5  ;;  %v371_v7 = vadd.f32 0.5, %v325_v24  ;;  %v372_v56 = vadd.f32 0.5, %v326_v12 }
  0xe2   : > { %7226 = vmatprep.mubr.msk.bf16.mxu1 %vm14596_vm4, %v14659_v34  ;;  %vm739_vm0 = vcmp.gt.f32.partialorder %v555_v31, 0.5  ;;  %vm784_vm12 = vmand %vm10549_vm7, %vm14454_vm1  ;;  %vm831_vm15 = vcmp.lt.f32.partialorder %v555_v31, 16.5  ;;  %v1389_v21 = vsel %vm1297_vm9, %v1251_v28, %v1343_v15  ;;  %v10574_v2 = vsel %vm3474_vm14, %v10479_v53, %v3508_v33 }
  0xe3   : > { %vm785_vm8 = vmand %vm693_vm2, %vm739_vm0  ;;  %v418_v0 = vmul.f32 0.055555556, %v371_v7  ;;  %v1252_v23 = vadd.f32 %v10352_v58, %v1199_v27  ;;  %7683 = vmatmul.mubr.bf16.gmra.mrb[28].mxu0 %v10574_v2  ;;  %v419_v57 = vmul.f32 0.055555556, %v372_v56  ;;  %v1253_v31 = vadd.f32 %v10352_v58, %v1200_v43 }
  0xe4   : > { %vm876_vm13 = vmand %vm784_vm12, %vm14453_vm6  ;;  %v10582_v41 = vshll.u32 %v9823_v8, 16  ;;  %7686 = vmatprep.mubr.msk.bf16.mxu0 %vm14596_vm4, %v14659_v34  ;;  %v10587_v32 = vshrl.u32 %v9823_v8, 16  ;;  %v10590_v15 = vshll.u32 %v9899_v38, 16 }
  0xe5   : > { %vm877_vm2 = vmand %vm785_vm8, %vm831_vm15  ;;  %v1526_v28 = vsel %vm876_vm13, %v1388_v9, 0.0  ;;  %v464_v53 = vfloor.f32 %v418_v0  ;;  %v465_v63 = vfloor.f32 %v419_v57  ;;  %vm1298_vm7 = vcmp.ge.f32.partialorder %v1252_v23, 0.0 }
  0xe6   : > { %v1527_v11 = vsel %vm877_vm2, %v1389_v21, 0.0  ;;  %v1344_v51 = vmul.f32 0.01, %v1252_v23  ;;  %vm1299_vm12 = vcmp.ge.f32.partialorder %v1253_v31, 0.0  ;;  %v1345_v0 = vmul.f32 0.01, %v1253_v31 }
  0xe7   : > { %v10592_v27 = vpack.c.bf16 %v1527_v11, %v1526_v28  ;;  %v510_v7 = vmul.f32 18.0, %v464_v53  ;;  %vm602_vm9 = vcmp.gt.f32.partialorder %v464_v53, 2.5  ;;  %vm648_vm8 = vcmp.lt.f32.partialorder %v464_v53, 18.5 }
  0xe8   : > { %v511_v9 = vmul.f32 18.0, %v465_v63  ;;  %vm603_vm13 = vcmp.gt.f32.partialorder %v465_v63, 2.5  ;;  %vm649_vm0 = vcmp.lt.f32.partialorder %v465_v63, 18.5  ;;  %vm694_vm15 = vmand %vm602_vm9, %vm648_vm8  ;;  %v3510_v50 = vrot.slane %v10587_v32, 2 }
  0xe9   : > { %v1649_v56 = vrot.slane %v10592_v27, 1  ;;  %v556_v43 = vsub.f32 %v325_v24, %v510_v7  ;;  %vm10596_vm2 = vmand %vm603_vm13, %vm649_vm0  ;;  %v1390_v28 = vsel %vm1298_vm7, %v1252_v23, %v1344_v51  ;;  %v3511_v53 = vrot.slane %v10582_v41, 3 }
  0xea   : > { %v557_v21 = vsub.f32 %v326_v12, %v511_v9  ;;  %v10603_v11 = vshrl.u32 %v9899_v38, 16  ;;  %v14783_v63 = vrot.slane %v10539_v62, 1  ;;  %v3515_v7 = vrot.slane %v10590_v15, 3 }
  0xeb   : > { %vm740_vm9 = vcmp.gt.f32.partialorder %v556_v43, 0.5  ;;  %vm832_vm8 = vcmp.lt.f32.partialorder %v556_v43, 16.5  ;;  %v3512_v12 = vor.u32 %v3511_v53, %v3510_v50  ;;  %v1391_v51 = vsel %vm1299_vm12, %v1253_v31, %v1345_v0 }
  0xec   : > { %v1650_v24 = vsel %vm1611_vm10, %v14783_v63, %v1649_v56  ;;  %vm741_vm13 = vcmp.gt.f32.partialorder %v557_v21, 0.5  ;;  %vm786_vm0 = vmand %vm694_vm15, %vm740_vm9  ;;  %vm833_vm6 = vcmp.lt.f32.partialorder %v557_v21, 16.5  ;;  %v3514_v23 = vrot.slane %v10603_v11, 2 }
  0xed   : > { %7227 = vmatmul.mubr.bf16.gmra.mrb[72].mxu1 %v1650_v24  ;;  %vm787_vm7 = vmand %vm10596_vm2, %vm741_vm13  ;;  %v10616_v9 = vsel %vm3474_vm14, %v3508_v33, %v3512_v12  ;;  %v10622_v53 = vshll.u32 %v9961_v18, 16  ;;  %v10625_v57 = vshrl.u32 %v9961_v18, 16 }
  0xee   : > { %7230 = vmatprep.mubr.msk.bf16.mxu1 %vm14596_vm4, %v14659_v34  ;;  %vm878_vm1 = vmand %vm786_vm0, %vm832_vm8  ;;  %7687 = vmatmul.mubr.bf16.gmra.mrb[32].mxu0 %v10616_v9  ;;  %v3516_v50 = vor.u32 %v3515_v7, %v3514_v23  ;;  %v14458_v7 = vshll.u32 %v9086_v42, 16 }
  0xef   : > { %vm879_vm5 = vmand %vm787_vm7, %vm833_vm6  ;;  %v1528_v43 = vsel %vm878_vm1, %v1390_v28, 0.0  ;;  %7690 = vmatprep.mubr.msk.bf16.mxu0 %vm14596_vm4, %v14659_v34  ;;  %v3518_v28 = vrot.slane %v10625_v57, 2  ;;  %v3519_v63 = vrot.slane %v10622_v53, 3 }
  0xf0   : > { %v1529_v21 = vsel %vm879_vm5, %v1391_v51, 0.0  ;;  %v10631_v0 = vsel %vm3474_vm14, %v3512_v12, %v3516_v50  ;;  %v10643_v12 = vshll.u32 %v10085_v48, 16  ;;  %v10646_v51 = vshrl.u32 %v10085_v48, 16 }
  0xf1   : > { %v10627_v31 = vpack.c.bf16 %v1529_v21, %v1528_v43  ;;  %v3520_v23 = vor.u32 %v3519_v63, %v3518_v28  ;;  %v1928_v43 = vrot.slane %v14458_v7, 1  ;;  %v1933_v63 = vrot.slane %v9863_v14, 1 }
  0xf2   : > { %v3523_v54 = vrot.slane %v10643_v12, 3  ;;  %v10665_v7 = vshll.u32 %v10178_v40, 16 }
  0xf3   : > { %v1651_v33 = vrot.slane %v10627_v31, 1  ;;  %v10652_v21 = vsel %vm3474_vm14, %v3516_v50, %v3520_v23 }
  0xf4   : > { %14784 = vst [vmem:[#allocation108_spill] sm:$0xff] %v10652_v21  ;;  %v3527_v38 = vrot.slane %v10665_v7, 3 }
  0xf5   : > { %v1652_v24 = vsel %vm1611_vm10, %v1649_v56, %v1651_v33  ;;  %v14463_v56 = vshrl.u32 %v9086_v42, 16  ;;  %vm1922_vm10 = vsmask.f32 7424 }
  0xf6   : > { %7231 = vmatmul.mubr.bf16.gmra.mrb[76].mxu1 %v1652_v24  ;;  %7691 = vmatmul.mubr.bf16.gmra.mrb[36].mxu0 %v10631_v0  ;;  %v3522_v24 = vrot.slane %v10646_v51, 2 }
  0xf7   : > { %7234 = vmatprep.mubr.msk.bf16.mxu1 %vm14596_vm4, %v14659_v34  ;;  %7694 = vmatprep.mubr.msk.bf16.mxu0 %vm14596_vm4, %v14659_v34  ;;  %v1929_v28 = vor.u32 %v1928_v43, %v14463_v56  ;;  %v8733_v43 = vld [vmem:[%s14199_s1 + $0x80] sm:$0xff]  }
  0xf8   : > { %v3524_v50 = vor.u32 %v3523_v54, %v3522_v24  ;;  %v1937_v54 = vor.u32 %v9875_v16, %v1933_v63  ;;  %v1941_v24 = vrot.slane %v9891_v10, 1  ;;  %v8741_v10 = vld [vmem:[%s14199_s1 + $0xa0] sm:$0xff]  }
  0xf9   : > { %v1934_v48 = vsel %vm1922_vm10, %v1929_v28, %v1933_v63  ;;  %v10687_v28 = vshll.u32 %v10290_v47, 16 }
  0xfa   : > { %v10672_v18 = vsel %vm3474_vm14, %v3520_v23, %v3524_v50  ;;  %v1942_v63 = vsel %vm1922_vm10, %v1937_v54, %v1941_v24  ;;  %v1949_v54 = vrot.slane %v9955_v59, 1  ;;  %v328_v59 = vcvt.s32.f32 %v10709_v46 }
  0xfb   : > { %14785 = vst [vmem:[#allocation109_spill] sm:$0xff] %v10672_v18 }
  0xfc   : > { %v1953_v46 = vor.u32 %v9967_v3, %v1949_v54  ;;  %v1149_v3 = vld [vmem:[%s8894_s16 + $0x168] sm:$0xff] }
  0xfe   : > { %7235 = vmatmul.mubr.bf16.gmra.mrb[80].mxu1 %v1651_v33  ;;  %7695 = vmatmul.mubr.bf16.gmra.mrb[40].mxu0 %v10652_v21  ;;  %v10668_v33 = vshrl.u32 %v10178_v40, 16  ;;  %v10690_v40 = vshrl.u32 %v10290_v47, 16  ;;  %v8737_v47 = vld [vmem:[%s14199_s1 + $0x90] sm:$0xff]  }
  0xff   : > { %7254 = vmatprep.mubr.msk.bf16.mxu1 %vm14596_vm4, %v14659_v34  ;;  %7698 = vmatprep.mubr.msk.bf16.mxu0 %vm14596_vm4, %v14659_v34 }
 0x100   : > { %v3526_v56 = vrot.slane %v10668_v33, 2 }
 0x102   : > { %v3528_v23 = vor.u32 %v3527_v38, %v3526_v56  ;;  %v3530_v38 = vrot.slane %v10690_v40, 2  ;;  %v3531_v56 = vrot.slane %v10687_v28, 3 }
 0x104   : > { %v10701_v8 = vsel %vm3474_vm14, %v3524_v50, %v3528_v23  ;;  %v1945_v50 = vor.u32 %v9894_v52, %v1941_v24  ;;  %v3532_v20 = vor.u32 %v3531_v56, %v3530_v38  ;;  %v8739_v24 = vld [vmem:[%s14199_s1 + $0x98] sm:$0xff]   ;;  %v10749_v52 = vshll.u32 %v10467_v36, 16 }
 0x105   : > { %14786 = vst [vmem:[#allocation110_spill] sm:$0xff] %v10701_v8 }
 0x106   : > { %7255 = vmatmul.mubr.bf16.vlgmr.msra.gmra.mrb[0].mxu1 %v1934_v48  ;;  %7699 = vmatmul.mubr.bf16.gmra.mrb[44].mxu0 %v10672_v18  ;;  %v8735_v48 = vld [vmem:[%s14199_s1 + $0x88] sm:$0xff]   ;;  %v10733_v38 = vsel %vm3474_vm14, %v3528_v23, %v3532_v20  ;;  %v1957_v23 = vrot.slane %v10029_v30, 1  ;;  %v10752_v18 = vshrl.u32 %v10467_v36, 16  ;;  %v3539_v36 = vrot.slane %v10749_v52, 3 }
 0x107   : > { %7258 = vmatprep.mubr.msk.bf16.mxu1 %vm14596_vm4, %v14659_v34  ;;  %7339 = vmatpush3.bf16.msra.mxu1 %v8733_v43  ;;  %v10698_v43 = vadd.s32 352, %v8848_v6  ;;  %v10721_v6 = vshll.u32 %v10367_v17, 16  ;;  %14787 = vst [vmem:[#allocation111_spill] sm:$0xff] %v10733_v38 }
 0x108   : > { %7702 = vmatprep.mubr.msk.bf16.mxu0 %vm14596_vm4, %v14659_v34  ;;  %7340 = vmatprep.subr.bf16.mxu1 %v14659_v34 }
 0x10b   : > { %7341 = vmatpush3.bf16.msra.mxu1 %v8735_v48  ;;  %v327_v48 = vcvt.s32.f32 %v10698_v43  ;;  %v1950_v43 = vsel %vm1922_vm10, %v1945_v50, %v1949_v54  ;;  %v8743_v54 = vld [vmem:[%s14199_s1 + $0xa8] sm:$0xff]  }
 0x10c   : > { %7342 = vmatprep.subr.bf16.mxu1 %v14659_v34 }
 0x10e   : > { %7259 = vmatmul.mubr.bf16.gmra.mrb[4].mxu1 %v1942_v63  ;;  %7703 = vmatmul.mubr.bf16.gmra.mrb[48].mxu0 %v10701_v8  ;;  %v10724_v63 = vshrl.u32 %v10367_v17, 16  ;;  %v373_v8 = vadd.f32 0.5, %v327_v48  ;;  %v3535_v17 = vrot.slane %v10721_v6, 3 }
 0x10f   : > { %7262 = vmatprep.mubr.msk.bf16.mxu1 %vm14596_vm4, %v14659_v34  ;;  %7706 = vmatprep.mubr.msk.bf16.mxu0 %vm14596_vm4, %v14659_v34 }
 0x110   : > { %7343 = vmatpush3.bf16.msra.mxu1 %v8737_v47  ;;  %v3534_v56 = vrot.slane %v10724_v63, 2  ;;  %v374_v47 = vadd.f32 0.5, %v328_v59  ;;  %v420_v50 = vmul.f32 0.055555556, %v373_v8  ;;  %v1958_v8 = vsel %vm1922_vm10, %v1953_v46, %v1957_v23 }
 0x111   : > { %7344 = vmatprep.subr.bf16.mxu1 %v14659_v34  ;;  %v1965_v46 = vrot.slane %v10119_v49, 1 }
 0x112   : > { %v466_v30 = vfloor.f32 %v420_v50  ;;  %v10774_v50 = vshll.u32 %v10539_v62, 16 }
 0x114   : > { %7345 = vmatpush3.bf16.msra.mxu1 %v8739_v24  ;;  %v3536_v24 = vor.u32 %v3535_v17, %v3534_v56  ;;  %v3538_v56 = vrot.slane %v10752_v18, 2  ;;  %14789 = vst [vmem:[#allocation113_spill] sm:$0xff] %v10774_v50  ;;  %v3543_v16 = vrot.slane %v10774_v50, 3  ;;  %vm604_vm5 = vcmp.gt.f32.partialorder %v466_v30, 2.5 }
 0x115   : > { %7346 = vmatprep.subr.bf16.mxu1 %v14659_v34  ;;  %vm650_vm1 = vcmp.lt.f32.partialorder %v466_v30, 18.5 }
 0x116   : > { %7263 = vmatmul.mubr.bf16.gmra.mrb[8].mxu1 %v1950_v43  ;;  %7707 = vmatmul.mubr.bf16.gmra.mrb[52].mxu0 %v10733_v38  ;;  %v421_v43 = vmul.f32 0.055555556, %v374_v47  ;;  %v10760_v17 = vsel %vm3474_vm14, %v3532_v20, %v3536_v24  ;;  %v1961_v20 = vor.u32 %v10032_v19, %v1957_v23  ;;  %v1148_v38 = vld [vmem:[%s8894_s16 + $0x160] sm:$0xff]  ;;  %v8747_v23 = vld [vmem:[%s14199_s1 + $0xb8] sm:$0xff]   ;;  %vm696_vm15 = vmand %vm604_vm5, %vm650_vm1 }
 0x117   : > { %7266 = vmatprep.mubr.msk.bf16.mxu1 %vm14596_vm4, %v14659_v34  ;;  %7710 = vmatprep.mubr.msk.bf16.mxu0 %vm14596_vm4, %v14659_v34  ;;  %14788 = vst [vmem:[#allocation112_spill] sm:$0xff] %v10760_v17 }
 0x118   : > { %7347 = vmatpush3.bf16.msra.mxu1 %v8741_v10  ;;  %v467_v47 = vfloor.f32 %v421_v43  ;;  %v8745_v10 = vld [vmem:[%s14199_s1 + $0xb0] sm:$0xff]   ;;  %v10777_v43 = vshrl.u32 %v10539_v62, 16  ;;  %v1202_v62 = vmul.f32 %v10331_v4, %v1149_v3  ;;  %v1966_v19 = vsel %vm1922_vm10, %v1961_v20, %v1965_v46 }
 0x119   : > { %7348 = vmatprep.subr.bf16.mxu1 %v14659_v34  ;;  %v1969_v3 = vor.u32 %v10150_v26, %v1965_v46  ;;  %v1989_v20 = vrot.slane %v10427_v55, 1 }
 0x11a   : > { %v513_v49 = vmul.f32 18.0, %v467_v47  ;;  %v3542_v14 = vrot.slane %v10777_v43, 2  ;;  %vm605_vm6 = vcmp.gt.f32.partialorder %v467_v47, 2.5  ;;  %vm651_vm12 = vcmp.lt.f32.partialorder %v467_v47, 18.5 }
 0x11b   : > { %vm697_vm9 = vmand %vm605_vm6, %vm651_vm12 }
 0x11c   : > { %7349 = vmatpush3.bf16.msra.mxu1 %v8743_v54  ;;  %v512_v54 = vmul.f32 18.0, %v466_v30 }
 0x11d   : > { %7350 = vmatprep.subr.bf16.mxu1 %v14659_v34 }
 0x11e   : > { %7267 = vmatmul.mubr.bf16.gmra.mrb[12].mxu1 %v1958_v8  ;;  %7711 = vmatmul.mubr.bf16.gmra.mrb[56].mxu0 %v10760_v17  ;;  %v3540_v8 = vor.u32 %v3539_v36, %v3538_v56  ;;  %v1201_v17 = vmul.f32 %v10331_v4, %v1148_v38  ;;  %v558_v21 = vsub.f32 %v327_v48, %v512_v54  ;;  %v1973_v48 = vrot.slane %v10248_v29, 1 }
 0x11f   : > { %7270 = vmatprep.mubr.msk.bf16.mxu1 %vm14596_vm4, %v14659_v34  ;;  %7714 = vmatprep.mubr.msk.bf16.mxu0 %vm14596_vm4, %v14659_v34  ;;  %v559_v56 = vsub.f32 %v328_v59, %v513_v49  ;;  %v1255_v38 = vadd.f32 %v10352_v58, %v1202_v62  ;;  %v14790_v59 = vshrl.u32 %v9086_v42, 16  ;;  %v3544_v62 = vor.u32 %v3543_v16, %v3542_v14 }
 0x120   : > { %7351 = vmatpush3.bf16.msra.mxu1 %v8745_v10  ;;  %v10793_v36 = vsel %vm3474_vm14, %v3536_v24, %v3540_v8  ;;  %v1254_v4 = vadd.f32 %v10352_v58, %v1201_v17  ;;  %vm742_vm2 = vcmp.gt.f32.partialorder %v558_v21, 0.5  ;;  %v10814_v58 = vshll.u32 %v10592_v27, 16 }
 0x121   : > { %7352 = vmatprep.subr.bf16.mxu1 %v14659_v34  ;;  %v10805_v30 = vrot.slane %v14790_v59, 1  ;;  %v10817_v24 = vshrl.u32 %v10592_v27, 16  ;;  %vm743_vm8 = vcmp.gt.f32.partialorder %v559_v56, 0.5  ;;  %vm788_vm13 = vmand %vm696_vm15, %vm742_vm2  ;;  %vm834_vm0 = vcmp.lt.f32.partialorder %v558_v21, 16.5 }
 0x122   : > { %14792 = vst [vmem:[#allocation114_spill] sm:$0xff] %v10814_v58  ;;  %v1347_v10 = vmul.f32 0.01, %v1255_v38  ;;  %v1974_v46 = vsel %vm1922_vm10, %v1969_v3, %v1973_v48  ;;  %vm789_vm7 = vmand %vm697_vm9, %vm743_vm8  ;;  %vm835_vm5 = vcmp.lt.f32.partialorder %v559_v56, 16.5  ;;  %vm1300_vm1 = vcmp.ge.f32.partialorder %v1254_v4, 0.0 }
 0x123   : > { %vm1301_vm3 = vcmp.ge.f32.partialorder %v1255_v38, 0.0  ;;  %v10825_v14 = vsel %vm3474_vm14, %v3540_v8, %v3544_v62  ;;  %v3546_v16 = vrot.slane %v10817_v24, 2  ;;  %v3547_v47 = vrot.slane %v10814_v58, 3  ;;  %vm10829_vm6 = vmand %vm788_vm13, %vm834_vm0 }
 0x124   : > { %7353 = vmatpush3.bf16.msra.mxu1 %v8747_v23  ;;  %vm10833_vm12 = vmand %vm789_vm7, %vm835_vm5  ;;  %v1393_v23 = vsel %vm1301_vm3, %v1255_v38, %v1347_v10  ;;  %v1977_v8 = vor.u32 %v10261_v5, %v1973_v48  ;;  %v1981_v56 = vrot.slane %v10356_v61, 1  ;;  %v10845_v59 = vshll.u32 %v10627_v31, 16 }
 0x125   : > { %7438 = vmatprep.subr.bf16.mxu1 %v14659_v34  ;;  %v3548_v3 = vor.u32 %v3547_v47, %v3546_v16  ;;  %v1531_v38 = vsel %vm10833_vm12, %v1393_v23, 0.0  ;;  %vm2376_vm3 = vsmask.f32 6400 }
 0x126   : > { %7271 = vmatmul.mubr.bf16.gmra.mrb[16].mxu1 %v1966_v19  ;;  %7715 = vmatmul.mubr.bf16.gmra.mrb[60].mxu0 %v10793_v36  ;;  %v14791_v19 = vshll.u32 %v9086_v42, 16  ;;  %v1346_v42 = vmul.f32 0.01, %v1254_v4  ;;  %v1982_v48 = vsel %vm1922_vm10, %v1977_v8, %v1981_v56  ;;  %v1985_v47 = vor.u32 %v10365_v13, %v1981_v56 }
 0x127   : > { %7274 = vmatprep.mubr.msk.bf16.mxu1 %vm14596_vm4, %v14659_v34  ;;  %7718 = vmatprep.mubr.msk.bf16.mxu0 %vm14596_vm4, %v14659_v34 }
 0x128   : > { %v10809_v49 = vrot.slane %v14791_v19, 2  ;;  %v1392_v54 = vsel %vm1300_vm1, %v1254_v4, %v1346_v42  ;;  %v10848_v19 = vshrl.u32 %v10627_v31, 16  ;;  %v10856_v42 = vsel %vm3474_vm14, %v3544_v62, %v3548_v3 }
 0x129   : > { %v1530_v4 = vsel %vm10829_vm6, %v1392_v54, 0.0  ;;  %v1990_v23 = vsel %vm1922_vm10, %v1985_v47, %v1989_v20 }
 0x12a   : > { %v2379_v17 = vor.u32 %v10809_v49, %v10805_v30  ;;  %v3550_v10 = vrot.slane %v10848_v19, 2  ;;  %v10860_v16 = vpack.c.bf16 %v1531_v38, %v1530_v4  ;;  %v1993_v38 = vor.u32 %v10430_v1, %v1989_v20  ;;  %v8751_v30 = vld [vmem:[%s14199_s1 + $0xc8] sm:$0xff]  }
 0x12b   : > { %v2005_v20 = vrot.slane %v10582_v41, 1 }
 0x12c   : > { %v10870_v21 = vshrl.u32 %v10860_v16, 16  ;;  %v10873_v54 = vshll.u32 %v10860_v16, 16 }
 0x12e   : > { %7275 = vmatmul.mubr.bf16.gmra.mrb[20].mxu1 %v1974_v46  ;;  %7719 = vmatmul.mubr.bf16.gmra.mrb[64].mxu0 %v10825_v14  ;;  %v3551_v46 = vrot.slane %v10845_v59, 3  ;;  %14797 = vst [vmem:[#allocation115_spill] sm:$0xff] %v10870_v21  ;;  %14798 = vst [vmem:[#allocation116_spill] sm:$0xff] %v10873_v54  ;;  %v3554_v56 = vrot.slane %v10870_v21, 2  ;;  %v3555_v4 = vrot.slane %v10873_v54, 3 }
 0x12f   : > { %7278 = vmatprep.mubr.msk.bf16.mxu1 %vm14596_vm4, %v14659_v34  ;;  %7722 = vmatprep.mubr.msk.bf16.mxu0 %vm14596_vm4, %v14659_v34 }
 0x130   : > { %v3552_v62 = vor.u32 %v3551_v46, %v3550_v10  ;;  %v10888_v10 = vor.u32 %v3555_v4, %v3554_v56  ;;  %v2013_v56 = vrot.slane %v10590_v15, 1 }
 0x132   : > { %v10877_v8 = vsel %vm3474_vm14, %v3548_v3, %v3552_v62  ;;  %v10893_v46 = vsel %vm3474_vm14, %v3552_v62, %v10888_v10  ;;  %v2009_v62 = vor.u32 %v10587_v32, %v2005_v20 }
 0x134   : > { %v2014_v4 = vsel %vm1922_vm10, %v2009_v62, %v2013_v56  ;;  %v2029_v62 = vrot.slane %v10643_v12, 1 }
 0x136   : > { %7279 = vmatmul.mubr.bf16.gmra.mrb[24].mxu1 %v1982_v48  ;;  %7723 = vmatmul.mubr.bf16.gmra.mrb[68].mxu0 %v10856_v42  ;;  %v1997_v48 = vrot.slane %v10523_v35, 1 }
 0x137   : > { %7282 = vmatprep.mubr.msk.bf16.mxu1 %vm14596_vm4, %v14659_v34  ;;  %7726 = vmatprep.mubr.msk.bf16.mxu0 %vm14596_vm4, %v14659_v34 }
 0x138   : > { %v1998_v3 = vsel %vm1922_vm10, %v1993_v38, %v1997_v48  ;;  %v2001_v47 = vor.u32 %v10526_v39, %v1997_v48  ;;  %v8740_v38 = vld [vmem:[%s14199_s1 + $0x1c0] sm:$0xff]   ;;  %v2017_v48 = vor.u32 %v10603_v11, %v2013_v56  ;;  %v8746_v56 = vld [vmem:[%s14199_s1 + $0x1d8] sm:$0xff]  }
 0x13e   : > { %7283 = vmatmul.mubr.bf16.gmra.mrb[28].mxu1 %v1990_v23  ;;  %7727 = vmatmul.mubr.bf16.gmra.mrb[72].mxu0 %v10877_v8  ;;  %v2006_v23 = vsel %vm1922_vm10, %v2001_v47, %v2005_v20  ;;  %v8742_v47 = vld [vmem:[%s14199_s1 + $0x1c8] sm:$0xff]  }
 0x13f   : > { %7286 = vmatprep.mubr.msk.bf16.mxu1 %vm14596_vm4, %v14659_v34  ;;  %7730 = vmatprep.mubr.msk.bf16.mxu0 %vm14596_vm4, %v14659_v34 }
 0x146   : > { %7287 = vmatmul.mubr.bf16.gmra.mrb[32].mxu1 %v1998_v3  ;;  %7731 = vmatmul.mubr.bf16.gmra.mrb[76].mxu0 %v10893_v46  ;;  %v2021_v3 = vrot.slane %v10622_v53, 1 }
 0x147   : > { %7290 = vmatprep.mubr.msk.bf16.mxu1 %vm14596_vm4, %v14659_v34  ;;  %7734 = vmatprep.mubr.msk.bf16.mxu0 %vm14596_vm4, %v14659_v34 }
 0x148   : > { %v2022_v20 = vsel %vm1922_vm10, %v2017_v48, %v2021_v3  ;;  %v2037_v48 = vrot.slane %v10665_v7, 1 }
 0x14e   : > { %7291 = vmatmul.mubr.bf16.gmra.mrb[36].mxu1 %v2006_v23  ;;  %7735 = vmatmul.mubr.bf16.gmra.mrb[80].mxu0 %v10888_v10  ;;  %v8744_v23 = vld [vmem:[%s14199_s1 + $0x1d0] sm:$0xff]  }
 0x14f   : > { %7294 = vmatprep.mubr.msk.bf16.mxu1 %vm14596_vm4, %v14659_v34  ;;  %7754 = vmatprep.mubr.msk.bf16.mxu0 %vm14596_vm4, %v14659_v34 }
 0x156   : > { %7295 = vmatmul.mubr.bf16.gmra.mrb[40].mxu1 %v2014_v4  ;;  %7755 = vmatmul.mubr.bf16.vlgmr.msra.gmra.mrb[0].mxu0 %v10010_v45  ;;  %v2025_v45 = vor.u32 %v10625_v57, %v2021_v3  ;;  %v8750_v3 = vld [vmem:[%s14199_s1 + $0x1e8] sm:$0xff]  }
 0x157   : > { %7298 = vmatprep.mubr.msk.bf16.mxu1 %vm14596_vm4, %v14659_v34  ;;  %7839 = vmatpush3.bf16.msra.mxu0 %v8740_v38  ;;  %v8748_v38 = vld [vmem:[%s14199_s1 + $0x1e0] sm:$0xff]  }
 0x158   : > { %7758 = vmatprep.mubr.msk.bf16.mxu0 %vm14596_vm4, %v14659_v34  ;;  %7840 = vmatprep.subr.bf16.mxu0 %v14659_v34  ;;  %v2030_v4 = vsel %vm1922_vm10, %v2025_v45, %v2029_v62  ;;  %v8754_v45 = vld [vmem:[%s14199_s1 + $0x1f8] sm:$0xff]  }
 0x15b   : > { %7841 = vmatpush3.bf16.msra.mxu0 %v8742_v47 }
 0x15c   : > { %7842 = vmatprep.subr.bf16.mxu0 %v14659_v34 }
 0x15e   : > { %7299 = vmatmul.mubr.bf16.gmra.mrb[44].mxu1 %v2022_v20  ;;  %7759 = vmatmul.mubr.bf16.gmra.mrb[4].mxu0 %v10097_v22  ;;  %v2033_v22 = vor.u32 %v10646_v51, %v2029_v62  ;;  %v8752_v20 = vld [vmem:[%s14199_s1 + $0x1f0] sm:$0xff]  }
 0x15f   : > { %7302 = vmatprep.mubr.msk.bf16.mxu1 %vm14596_vm4, %v14659_v34  ;;  %7762 = vmatprep.mubr.msk.bf16.mxu0 %vm14596_vm4, %v14659_v34 }
 0x160   : > { %7843 = vmatpush3.bf16.msra.mxu0 %v8744_v23  ;;  %v2038_v47 = vsel %vm1922_vm10, %v2033_v22, %v2037_v48  ;;  %v2045_v23 = vrot.slane %v10687_v28, 1  ;;  %v2061_v22 = vrot.slane %v10749_v52, 1 }
 0x161   : > { %7844 = vmatprep.subr.bf16.mxu0 %v14659_v34 }
 0x164   : > { %7845 = vmatpush3.bf16.msra.mxu0 %v8746_v56  ;;  %v2053_v56 = vrot.slane %v10721_v6, 1 }
 0x165   : > { %7846 = vmatprep.subr.bf16.mxu0 %v14659_v34 }
 0x166   : > { %7303 = vmatmul.mubr.bf16.gmra.mrb[48].mxu1 %v2030_v4  ;;  %7763 = vmatmul.mubr.bf16.gmra.mrb[8].mxu0 %v10199_v44  ;;  %v2041_v44 = vor.u32 %v10668_v33, %v2037_v48  ;;  %v2065_v48 = vor.u32 %v10752_v18, %v2061_v22 }
 0x167   : > { %7306 = vmatprep.mubr.msk.bf16.mxu1 %vm14596_vm4, %v14659_v34  ;;  %7766 = vmatprep.mubr.msk.bf16.mxu0 %vm14596_vm4, %v14659_v34 }
 0x168   : > { %7847 = vmatpush3.bf16.msra.mxu0 %v8748_v38  ;;  %v2046_v62 = vsel %vm1922_vm10, %v2041_v44, %v2045_v23  ;;  %v2057_v38 = vor.u32 %v10724_v63, %v2053_v56 }
 0x169   : > { %7848 = vmatprep.subr.bf16.mxu0 %v14659_v34 }
 0x16c   : > { %7849 = vmatpush3.bf16.msra.mxu0 %v8750_v3  ;;  %v2069_v3 = vrot.slane %v10774_v50, 1 }
 0x16d   : > { %7850 = vmatprep.subr.bf16.mxu0 %v14659_v34 }
 0x16e   : > { %7307 = vmatmul.mubr.bf16.gmra.mrb[52].mxu1 %v2038_v47  ;;  %7767 = vmatmul.mubr.bf16.gmra.mrb[12].mxu0 %v10362_v60  ;;  %v2049_v60 = vor.u32 %v10690_v40, %v2045_v23  ;;  %v2073_v47 = vor.u32 %v10777_v43, %v2069_v3  ;;  %v2085_v23 = vrot.slane %v10845_v59, 1 }
 0x16f   : > { %7310 = vmatprep.mubr.msk.bf16.mxu1 %vm14596_vm4, %v14659_v34  ;;  %7770 = vmatprep.mubr.msk.bf16.mxu0 %vm14596_vm4, %v14659_v34 }
 0x170   : > { %7851 = vmatpush3.bf16.msra.mxu0 %v8752_v20  ;;  %v2054_v4 = vsel %vm1922_vm10, %v2049_v60, %v2053_v56  ;;  %v2077_v20 = vrot.slane %v10814_v58, 1  ;;  %v14800_v60 = vld [vmem:[#allocation61_spill] sm:$0xff] }
 0x171   : > { %7852 = vmatprep.subr.bf16.mxu0 %v14659_v34  ;;  %v2380_v56 = vrot.slane %v14800_v60, 1 }
 0x172   : > { %v2081_v44 = vor.u32 %v10817_v24, %v2077_v20 }
 0x174   : > { %7853 = vmatpush3.bf16.msra.mxu0 %v8754_v45  ;;  %v14799_v45 = vld [vmem:[#allocation108_spill] sm:$0xff] }
 0x175   : > { %7938 = vmatprep.subr.bf16.mxu0 %v14659_v34 }
 0x176   : > { %7311 = vmatmul.mubr.bf16.gmra.mrb[56].mxu1 %v2046_v62  ;;  %7771 = vmatmul.mubr.bf16.gmra.mrb[16].mxu0 %v10402_v37  ;;  %v2062_v37 = vsel %vm1922_vm10, %v2057_v38, %v2061_v22  ;;  %v2089_v62 = vor.u32 %v10848_v19, %v2085_v23  ;;  %v14802_v22 = vld [vmem:[#allocation109_spill] sm:$0xff] }
 0x177   : > { %7314 = vmatprep.mubr.msk.bf16.mxu1 %vm14596_vm4, %v14659_v34  ;;  %7774 = vmatprep.mubr.msk.bf16.mxu0 %vm14596_vm4, %v14659_v34 }
 0x17e   : > { %7315 = vmatmul.mubr.bf16.gmra.mrb[60].mxu1 %v2054_v4  ;;  %7775 = vmatmul.mubr.bf16.gmra.mrb[20].mxu0 %v10497_v25  ;;  %v2070_v25 = vsel %vm1922_vm10, %v2065_v48, %v2069_v3  ;;  %v14801_v4 = vld [vmem:[#allocation60_spill] sm:$0xff]  ;;  %v14803_v48 = vld [vmem:[#allocation65_spill] sm:$0xff] }
 0x17f   : > { %7318 = vmatprep.mubr.msk.bf16.mxu1 %vm14596_vm4, %v14659_v34  ;;  %7778 = vmatprep.mubr.msk.bf16.mxu0 %vm14596_vm4, %v14659_v34  ;;  %v2384_v3 = vrot.slane %v14803_v48, 1 }
 0x186   : > { %7319 = vmatmul.mubr.bf16.gmra.mrb[64].mxu1 %v2062_v37  ;;  %7779 = vmatmul.mubr.bf16.gmra.mrb[24].mxu0 %v10574_v2  ;;  %v2078_v2 = vsel %vm1922_vm10, %v2073_v47, %v2077_v20  ;;  %v8749_v20 = vld [vmem:[%s14199_s1 + $0xc0] sm:$0xff]  }
 0x187   : > { %7322 = vmatprep.mubr.msk.bf16.mxu1 %vm14596_vm4, %v14659_v34  ;;  %7782 = vmatprep.mubr.msk.bf16.mxu0 %vm14596_vm4, %v14659_v34 }
 0x18e   : > { %7323 = vmatmul.mubr.bf16.gmra.mrb[68].mxu1 %v2070_v25  ;;  %7783 = vmatmul.mubr.bf16.gmra.mrb[28].mxu0 %v10616_v9  ;;  %v2086_v9 = vsel %vm1922_vm10, %v2081_v44, %v2085_v23  ;;  %v14804_v25 = vld [vmem:[#allocation64_spill] sm:$0xff]  ;;  %v14805_v44 = vld [vmem:[#allocation110_spill] sm:$0xff] }
 0x18f   : > { %7326 = vmatprep.mubr.msk.bf16.mxu1 %vm14596_vm4, %v14659_v34  ;;  %7786 = vmatprep.mubr.msk.bf16.mxu0 %vm14596_vm4, %v14659_v34  ;;  %v2385_v47 = vrot.slane %v14804_v25, 2 }
 0x196   : > { %7327 = vmatmul.mubr.bf16.gmra.mrb[72].mxu1 %v2078_v2  ;;  %7787 = vmatmul.mubr.bf16.gmra.mrb[32].mxu0 %v10631_v0  ;;  %v2381_v0 = vrot.slane %v14801_v4, 2  ;;  %v2386_v2 = vor.u32 %v2385_v47, %v2384_v3 }
 0x197   : > { %7330 = vmatprep.mubr.msk.bf16.mxu1 %vm14596_vm4, %v14659_v34  ;;  %7790 = vmatprep.mubr.msk.bf16.mxu0 %vm14596_vm4, %v14659_v34 }
 0x198   : > { %v2382_v38 = vor.u32 %v2381_v0, %v2380_v56  ;;  %v8753_v56 = vld [vmem:[%s14199_s1 + $0xd0] sm:$0xff]  }
 0x19a   : > { %v2383_v37 = vsel %vm2376_vm3, %v2379_v17, %v2382_v38  ;;  %v11047_v49 = vsel %vm2376_vm3, %v2382_v38, %v2386_v2  ;;  %v14806_v17 = vld [vmem:[#allocation71_spill] sm:$0xff] }
 0x19b   : > { %v2388_v23 = vrot.slane %v14806_v17, 1  ;;  %v14809_v38 = vld [vmem:[#allocation111_spill] sm:$0xff] }
 0x19e   : > { %7331 = vmatmul.mubr.bf16.gmra.mrb[76].mxu1 %v2086_v9  ;;  %7791 = vmatmul.mubr.bf16.gmra.mrb[36].mxu0 %v14799_v45  ;;  %v14807_v9 = vld [vmem:[#allocation69_spill] sm:$0xff] }
 0x19f   : > { %7334 = vmatprep.mubr.msk.bf16.mxu1 %vm14596_vm4, %v14659_v34  ;;  %7794 = vmatprep.mubr.msk.bf16.mxu0 %vm14596_vm4, %v14659_v34  ;;  %v2389_v45 = vrot.slane %v14807_v9, 2 }
 0x1a1   : > { %v2390_v0 = vor.u32 %v2389_v45, %v2388_v23 }
 0x1a3   : > { %v11068_v47 = vsel %vm2376_vm3, %v2386_v2, %v2390_v0 }
 0x1a6   : > { %7335 = vmatmul.mubr.bf16.gmra.mrb[80].mxu1 %v2089_v62  ;;  %7795 = vmatmul.mubr.bf16.gmra.mrb[40].mxu0 %v14802_v22  ;;  %v14808_v62 = vld [vmem:[#allocation2_spill] sm:$0xff] }
 0x1a7   : > { %7354 = vmatprep.mubr.msk.bf16.mxu1 %vm14596_vm4, %v14659_v34  ;;  %7798 = vmatprep.mubr.msk.bf16.mxu0 %vm14596_vm4, %v14659_v34  ;;  %v283_v60 = vadd.s32 368, %v14808_v62  ;;  %v284_v4 = vadd.s32 376, %v14808_v62  ;;  %v8759_v62 = vld [vmem:[%s14199_s1 + $0xe8] sm:$0xff]  }
 0x1a9   : > { %v329_v22 = vcvt.s32.f32 %v283_v60  ;;  %v330_v3 = vcvt.s32.f32 %v284_v4  ;;  %v14812_v4 = vld [vmem:[#allocation112_spill] sm:$0xff] }
 0x1ab   : > { %v375_v45 = vadd.f32 0.5, %v329_v22  ;;  %v376_v60 = vadd.f32 0.5, %v330_v3 }
 0x1ae   : > { %7355 = vmatmul.mubr.bf16.vlgmr.msra.gmra.mrb[0].mxu1 %v2383_v37  ;;  %7799 = vmatmul.mubr.bf16.gmra.mrb[44].mxu0 %v14805_v44  ;;  %v8755_v37 = vld [vmem:[%s14199_s1 + $0xd8] sm:$0xff]  }
 0x1af   : > { %7358 = vmatprep.mubr.msk.bf16.mxu1 %vm14596_vm4, %v14659_v34  ;;  %7439 = vmatpush3.bf16.msra.mxu1 %v8749_v20  ;;  %v14810_v20 = vld [vmem:[#allocation77_spill] sm:$0xff] }
 0x1b0   : > { %7802 = vmatprep.mubr.msk.bf16.mxu0 %vm14596_vm4, %v14659_v34  ;;  %7440 = vmatprep.subr.bf16.mxu1 %v14659_v34  ;;  %v2392_v44 = vrot.slane %v14810_v20, 1 }
 0x1b3   : > { %7441 = vmatpush3.bf16.msra.mxu1 %v8751_v30  ;;  %v14811_v30 = vld [vmem:[#allocation76_spill] sm:$0xff] }
 0x1b4   : > { %7442 = vmatprep.subr.bf16.mxu1 %v14659_v34  ;;  %v2393_v23 = vrot.slane %v14811_v30, 2  ;;  %v2401_v30 = vrot.slane %v10248_v29, 2 }
 0x1b6   : > { %7359 = vmatmul.mubr.bf16.gmra.mrb[4].mxu1 %v11047_v49  ;;  %7803 = vmatmul.mubr.bf16.gmra.mrb[48].mxu0 %v14809_v38  ;;  %v2394_v2 = vor.u32 %v2393_v23, %v2392_v44  ;;  %v422_v38 = vmul.f32 0.055555556, %v375_v45  ;;  %v2396_v44 = vrot.slane %v10150_v26, 1  ;;  %v14813_v23 = vld [vmem:[#allocation83_spill] sm:$0xff]  ;;  %v1150_v26 = vld [vmem:[%s8894_s16 + $0x170] sm:$0xff] }
 0x1b7   : > { %7362 = vmatprep.mubr.msk.bf16.mxu1 %vm14596_vm4, %v14659_v34  ;;  %7806 = vmatprep.mubr.msk.bf16.mxu0 %vm14596_vm4, %v14659_v34  ;;  %v2397_v45 = vrot.slane %v14813_v23, 2  ;;  %v1151_v23 = vld [vmem:[%s8894_s16 + $0x178] sm:$0xff] }
 0x1b8   : > { %7443 = vmatpush3.bf16.msra.mxu1 %v8753_v56  ;;  %v8757_v56 = vld [vmem:[%s14199_s1 + $0xe0] sm:$0xff]   ;;  %v11087_v54 = vsel %vm2376_vm3, %v2390_v0, %v2394_v2 }
 0x1b9   : > { %7444 = vmatprep.subr.bf16.mxu1 %v14659_v34  ;;  %v2398_v0 = vor.u32 %v2397_v45, %v2396_v44 }
 0x1bb   : > { %v11113_v20 = vsel %vm2376_vm3, %v2394_v2, %v2398_v0  ;;  %v2405_v2 = vrot.slane %v10356_v61, 2 }
 0x1bc   : > { %7445 = vmatpush3.bf16.msra.mxu1 %v8755_v37  ;;  %v423_v37 = vmul.f32 0.055555556, %v376_v60  ;;  %v8761_v60 = vld [vmem:[%s14199_s1 + $0xf0] sm:$0xff]  }
 0x1bd   : > { %7446 = vmatprep.subr.bf16.mxu1 %v14659_v34 }
 0x1be   : > { %7363 = vmatmul.mubr.bf16.gmra.mrb[8].mxu1 %v11068_v47  ;;  %7807 = vmatmul.mubr.bf16.gmra.mrb[52].mxu0 %v14812_v4  ;;  %v468_v4 = vfloor.f32 %v422_v38  ;;  %v469_v21 = vfloor.f32 %v423_v37  ;;  %v8763_v38 = vld [vmem:[%s14199_s1 + $0xf8] sm:$0xff]   ;;  %v2400_v37 = vrot.slane %v10261_v5, 1 }
 0x1bf   : > { %7366 = vmatprep.mubr.msk.bf16.mxu1 %vm14596_vm4, %v14659_v34  ;;  %7810 = vmatprep.mubr.msk.bf16.mxu0 %vm14596_vm4, %v14659_v34 }
 0x1c0   : > { %7447 = vmatpush3.bf16.msra.mxu1 %v8757_v56  ;;  %v514_v56 = vmul.f32 18.0, %v468_v4  ;;  %vm606_vm10 = vcmp.gt.f32.partialorder %v468_v4, 2.5  ;;  %vm652_vm15 = vcmp.lt.f32.partialorder %v468_v4, 18.5  ;;  %v2402_v17 = vor.u32 %v2401_v30, %v2400_v37 }
 0x1c1   : > { %7448 = vmatprep.subr.bf16.mxu1 %v14659_v34  ;;  %vm607_vm2 = vcmp.gt.f32.partialorder %v469_v21, 2.5  ;;  %vm653_vm9 = vcmp.lt.f32.partialorder %v469_v21, 18.5  ;;  %vm698_vm8 = vmand %vm606_vm10, %vm652_vm15  ;;  %v2409_v37 = vrot.slane %v10427_v55, 2 }
 0x1c2   : > { %vm699_vm0 = vmand %vm607_vm2, %vm653_vm9 }
 0x1c4   : > { %7449 = vmatpush3.bf16.msra.mxu1 %v8759_v62  ;;  %v515_v62 = vmul.f32 18.0, %v469_v21  ;;  %v11126_v21 = vsel %vm2376_vm3, %v2398_v0, %v2402_v17 }
 0x1c5   : > { %7450 = vmatprep.subr.bf16.mxu1 %v14659_v34 }
 0x1c6   : > { %7367 = vmatmul.mubr.bf16.gmra.mrb[12].mxu1 %v11087_v54  ;;  %7811 = vmatmul.mubr.bf16.gmra.mrb[56].mxu0 %v10793_v36  ;;  %v8772_v36 = vld [vmem:[%s14200_s2] ss:$0 sm:$0xff]  ;;  %v561_v9 = vsub.f32 %v330_v3, %v515_v62 }
 0x1c7   : > { %7370 = vmatprep.mubr.msk.bf16.mxu1 %vm14596_vm4, %v14659_v34  ;;  %7814 = vmatprep.mubr.msk.bf16.mxu0 %vm14596_vm4, %v14659_v34  ;;  %v1203_v44 = vmul.f32 %v8772_v36, %v1150_v26  ;;  %v1204_v45 = vmul.f32 %v8772_v36, %v1151_v23  ;;  %v8773_v26 = vld [vmem:[%s14201_s3] ss:$0 sm:$0xff] }
 0x1c8   : > { %7451 = vmatpush3.bf16.msra.mxu1 %v8761_v60  ;;  %v560_v60 = vsub.f32 %v329_v22, %v514_v56  ;;  %vm745_vm7 = vcmp.gt.f32.partialorder %v561_v9, 0.5  ;;  %v2404_v22 = vrot.slane %v10365_v13, 1  ;;  %vm837_vm12 = vcmp.lt.f32.partialorder %v561_v9, 16.5 }
 0x1c9   : > { %7452 = vmatprep.subr.bf16.mxu1 %v14659_v34  ;;  %v1256_v23 = vadd.f32 %v8773_v26, %v1203_v44  ;;  %v1257_v36 = vadd.f32 %v8773_v26, %v1204_v45  ;;  %vm791_vm6 = vmand %vm699_vm0, %vm745_vm7  ;;  %v2412_v26 = vrot.slane %v10526_v39, 1 }
 0x1ca   : > { %vm744_vm13 = vcmp.gt.f32.partialorder %v560_v60, 0.5  ;;  %vm836_vm1 = vcmp.lt.f32.partialorder %v560_v60, 16.5  ;;  %vm883_vm2 = vmand %vm791_vm6, %vm837_vm12  ;;  %v2406_v0 = vor.u32 %v2405_v2, %v2404_v22  ;;  %v2416_v2 = vrot.slane %v10587_v32, 1 }
 0x1cb   : > { %vm790_vm5 = vmand %vm698_vm8, %vm744_vm13  ;;  %v1348_v3 = vmul.f32 0.01, %v1256_v23  ;;  %v1349_v30 = vmul.f32 0.01, %v1257_v36  ;;  %vm1302_vm10 = vcmp.ge.f32.partialorder %v1256_v23, 0.0  ;;  %vm1303_vm15 = vcmp.ge.f32.partialorder %v1257_v36, 0.0 }
 0x1cc   : > { %7453 = vmatpush3.bf16.msra.mxu1 %v8763_v38  ;;  %vm882_vm11 = vmand %vm790_vm5, %vm836_vm1  ;;  %v11137_v9 = vsel %vm2376_vm3, %v2402_v17, %v2406_v0  ;;  %v2408_v38 = vrot.slane %v10430_v1, 1 }
 0x1cd   : > { %8038 = vmatprep.subr.bf16.mxu1 %v14659_v34  ;;  %v1395_v4 = vsel %vm1303_vm15, %v1257_v36, %v1349_v30 }
 0x1ce   : > { %7371 = vmatmul.mubr.bf16.gmra.mrb[16].mxu1 %v11113_v20  ;;  %7815 = vmatmul.mubr.bf16.gmra.mrb[60].mxu0 %v10825_v14  ;;  %v1394_v14 = vsel %vm1302_vm10, %v1256_v23, %v1348_v3  ;;  %v1533_v62 = vsel %vm883_vm2, %v1395_v4, 0.0  ;;  %v2413_v23 = vrot.slane %v10523_v35, 2 }
 0x1cf   : > { %7374 = vmatprep.mubr.msk.bf16.mxu1 %vm14596_vm4, %v14659_v34  ;;  %7818 = vmatprep.mubr.msk.bf16.mxu0 %vm14596_vm4, %v14659_v34  ;;  %v1532_v56 = vsel %vm882_vm11, %v1394_v14, 0.0  ;;  %v2417_v14 = vrot.slane %v10582_v41, 2  ;;  %vm4203_vm11 = vcmask 1044480  }
 0x1d0   : > { %v11141_v44 = vpack.c.bf16 %v1533_v62, %v1532_v56  ;;  %v2414_v22 = vor.u32 %v2413_v23, %v2412_v26  ;;  %v2420_v56 = vrot.slane %v10603_v11, 1  ;;  %v2421_v62 = vrot.slane %v10590_v15, 2 }
 0x1d2   : > { %v14510_v17 = vshrl.u32 %v11141_v44, 16  ;;  %v14509_v45 = vshll.u32 %v11141_v44, 16 }
 0x1d4   : > { %v3888_v36 = vrot.slane %v14510_v17, 2  ;;  %v2449_v17 = vrot.slane %v10774_v50, 2  ;;  %v2453_v50 = vrot.slane %v10814_v58, 2  ;;  %v2457_v58 = vrot.slane %v10845_v59, 2 }
 0x1d6   : > { %7375 = vmatmul.mubr.bf16.gmra.mrb[20].mxu1 %v11126_v21  ;;  %7819 = vmatmul.mubr.bf16.gmra.mrb[64].mxu0 %v10856_v42  ;;  %v2410_v42 = vor.u32 %v2409_v37, %v2408_v38  ;;  %v14814_v38 = vld [vmem:[#allocation15_spill] sm:$0xff] }
 0x1d7   : > { %7378 = vmatprep.mubr.msk.bf16.mxu1 %vm14596_vm4, %v14659_v34  ;;  %7822 = vmatprep.mubr.msk.bf16.mxu0 %vm14596_vm4, %v14659_v34  ;;  %v4204_v37 = vrot.slane %v14814_v38, 3  ;;  %v2429_v38 = vrot.slane %v10643_v12, 2 }
 0x1d8   : > { %v11152_v60 = vsel %vm2376_vm3, %v2406_v0, %v2410_v42  ;;  %v11167_v30 = vsel %vm2376_vm3, %v2410_v42, %v2414_v22  ;;  %v14815_v42 = vld [vmem:[#allocation24_spill] sm:$0xff] }
 0x1d9   : > { %v4205_v26 = vrot.slane %v14815_v42, 3  ;;  %v8760_v42 = vld [vmem:[%s14199_s1 + $0x210] sm:$0xff]  }
 0x1de   : > { %7379 = vmatmul.mubr.bf16.gmra.mrb[24].mxu1 %v11137_v9  ;;  %7823 = vmatmul.mubr.bf16.gmra.mrb[68].mxu0 %v10877_v8  ;;  %v3891_v8 = vrot.slane %v14509_v45, 3  ;;  %v2444_v45 = vrot.slane %v10752_v18, 1 }
 0x1df   : > { %7382 = vmatprep.mubr.msk.bf16.mxu1 %vm14596_vm4, %v14659_v34  ;;  %7826 = vmatprep.mubr.msk.bf16.mxu0 %vm14596_vm4, %v14659_v34 }
 0x1e0   : > { %v3892_v3 = vor.u32 %v3891_v8, %v3888_v36  ;;  %v2424_v36 = vrot.slane %v10625_v57, 1  ;;  %v2425_v8 = vrot.slane %v10622_v53, 2 }
 0x1e2   : > { %v3893_v4 = vsel %vm3474_vm14, %v10888_v10, %v3892_v3  ;;  %v2422_v10 = vor.u32 %v2421_v62, %v2420_v56  ;;  %v2428_v62 = vrot.slane %v10646_v51, 1  ;;  %vm4572_vm14 = vsmask.f32 4352 }
 0x1e6   : > { %7383 = vmatmul.mubr.bf16.gmra.mrb[28].mxu1 %v11152_v60  ;;  %7827 = vmatmul.mubr.bf16.gmra.mrb[72].mxu0 %v10893_v46  ;;  %v2418_v46 = vor.u32 %v2417_v14, %v2416_v2  ;;  %v2426_v2 = vor.u32 %v2425_v8, %v2424_v36  ;;  %v14816_v14 = vld [vmem:[#allocation26_spill] sm:$0xff]  ;;  %v14817_v36 = vld [vmem:[#allocation32_spill] sm:$0xff] }
 0x1e7   : > { %7386 = vmatprep.mubr.msk.bf16.mxu1 %vm14596_vm4, %v14659_v34  ;;  %7830 = vmatprep.mubr.msk.bf16.mxu0 %vm14596_vm4, %v14659_v34  ;;  %v4209_v8 = vrot.slane %v14817_v36, 3  ;;  %v2436_v36 = vrot.slane %v10690_v40, 1 }
 0x1e8   : > { %v11179_v0 = vsel %vm2376_vm3, %v2414_v22, %v2418_v46  ;;  %v11191_v23 = vsel %vm2376_vm3, %v2418_v46, %v2422_v10  ;;  %v4206_v22 = vsel %vm4203_vm11, %v4204_v37, %v4205_v26  ;;  %v8758_v46 = vld [vmem:[%s14199_s1 + $0x208] sm:$0xff]   ;;  %v11210_v56 = vsel %vm2376_vm3, %v2422_v10, %v2426_v2 }
 0x1e9   : > { %v2430_v10 = vor.u32 %v2429_v38, %v2428_v62  ;;  %v8764_v62 = vld [vmem:[%s14199_s1 + $0x220] sm:$0xff]   ;;  %v14818_v38 = vld [vmem:[#allocation36_spill] sm:$0xff] }
 0x1ee   : > { %7387 = vmatmul.mubr.bf16.gmra.mrb[32].mxu1 %v11167_v30  ;;  %7831 = vmatmul.mubr.bf16.gmra.mrb[76].mxu0 %v3893_v4  ;;  %v4207_v4 = vrot.slane %v14816_v14, 3  ;;  %v2433_v14 = vrot.slane %v10665_v7, 2 }
 0x1ef   : > { %7390 = vmatprep.mubr.msk.bf16.mxu1 %vm14596_vm4, %v14659_v34  ;;  %7834 = vmatprep.mubr.msk.bf16.mxu0 %vm14596_vm4, %v14659_v34 }
 0x1f0   : > { %v4208_v37 = vsel %vm4203_vm11, %v4205_v26, %v4207_v4  ;;  %v8762_v26 = vld [vmem:[%s14199_s1 + $0x218] sm:$0xff]  }
 0x1f6   : > { %7391 = vmatmul.mubr.bf16.gmra.mrb[36].mxu1 %v11179_v0  ;;  %7835 = vmatmul.mubr.bf16.gmra.mrb[80].mxu0 %v3892_v3  ;;  %v8756_v3 = vld [vmem:[%s14199_s1 + $0x200] sm:$0xff]  }
 0x1f7   : > { %7394 = vmatprep.mubr.msk.bf16.mxu1 %vm14596_vm4, %v14659_v34  ;;  %7854 = vmatprep.mubr.msk.bf16.mxu0 %vm14596_vm4, %v14659_v34 }
 0x1fe   : > { %7395 = vmatmul.mubr.bf16.gmra.mrb[40].mxu1 %v11191_v23  ;;  %7855 = vmatmul.mubr.bf16.vlgmr.msra.gmra.mrb[0].mxu0 %v4206_v22  ;;  %v11230_v22 = vsel %vm2376_vm3, %v2426_v2, %v2430_v10 }
 0x1ff   : > { %7398 = vmatprep.mubr.msk.bf16.mxu1 %vm14596_vm4, %v14659_v34  ;;  %7939 = vmatpush3.bf16.msra.mxu0 %v8756_v3  ;;  %v2432_v3 = vrot.slane %v10668_v33, 1 }
 0x200   : > { %7858 = vmatprep.mubr.msk.bf16.mxu0 %vm14596_vm4, %v14659_v34  ;;  %7940 = vmatprep.subr.bf16.mxu0 %v14659_v34 }
 0x201   : > { %v2434_v2 = vor.u32 %v2433_v14, %v2432_v3  ;;  %v8766_v14 = vld [vmem:[%s14199_s1 + $0x230] sm:$0xff]  }
 0x203   : > { %7941 = vmatpush3.bf16.msra.mxu0 %v8758_v46  ;;  %v4210_v46 = vsel %vm4203_vm11, %v4207_v4, %v4209_v8  ;;  %v8765_v4 = vld [vmem:[%s14199_s1 + $0x228] sm:$0xff]  }
 0x204   : > { %7942 = vmatprep.subr.bf16.mxu0 %v14659_v34 }
 0x206   : > { %7399 = vmatmul.mubr.bf16.gmra.mrb[44].mxu1 %v11210_v56  ;;  %7859 = vmatmul.mubr.bf16.gmra.mrb[4].mxu0 %v4208_v37  ;;  %v4211_v37 = vrot.slane %v14818_v38, 3 }
 0x207   : > { %7402 = vmatprep.mubr.msk.bf16.mxu1 %vm14596_vm4, %v14659_v34  ;;  %7862 = vmatprep.mubr.msk.bf16.mxu0 %vm14596_vm4, %v14659_v34 }
 0x208   : > { %7943 = vmatpush3.bf16.msra.mxu0 %v8760_v42  ;;  %v11250_v42 = vsel %vm2376_vm3, %v2430_v10, %v2434_v2  ;;  %v4212_v3 = vsel %vm4203_vm11, %v4209_v8, %v4211_v37  ;;  %v8767_v8 = vld [vmem:[%s14199_s1 + $0x238] sm:$0xff]  }
 0x209   : > { %7944 = vmatprep.subr.bf16.mxu0 %v14659_v34 }
 0x20c   : > { %7945 = vmatpush3.bf16.msra.mxu0 %v8762_v26  ;;  %v2437_v26 = vrot.slane %v10687_v28, 2 }
 0x20d   : > { %7946 = vmatprep.subr.bf16.mxu0 %v14659_v34 }
 0x20e   : > { %7403 = vmatmul.mubr.bf16.gmra.mrb[48].mxu1 %v11230_v22  ;;  %7863 = vmatmul.mubr.bf16.gmra.mrb[8].mxu0 %v4210_v46  ;;  %v2438_v10 = vor.u32 %v2437_v26, %v2436_v36  ;;  %v14819_v46 = vld [vmem:[#allocation42_spill] sm:$0xff]  ;;  %v2441_v36 = vrot.slane %v10721_v6, 2 }
 0x20f   : > { %7406 = vmatprep.mubr.msk.bf16.mxu1 %vm14596_vm4, %v14659_v34  ;;  %7866 = vmatprep.mubr.msk.bf16.mxu0 %vm14596_vm4, %v14659_v34 }
 0x210   : > { %7947 = vmatpush3.bf16.msra.mxu0 %v8764_v62  ;;  %v4213_v62 = vrot.slane %v14819_v46, 3  ;;  %v11270_v38 = vsel %vm2376_vm3, %v2434_v2, %v2438_v10 }
 0x211   : > { %7948 = vmatprep.subr.bf16.mxu0 %v14659_v34 }
 0x212   : > { %v4214_v26 = vsel %vm4203_vm11, %v4211_v37, %v4213_v62  ;;  %v2445_v37 = vrot.slane %v10749_v52, 2 }
 0x214   : > { %7949 = vmatpush3.bf16.msra.mxu0 %v8765_v4  ;;  %v2440_v4 = vrot.slane %v10724_v63, 1 }
 0x215   : > { %7950 = vmatprep.subr.bf16.mxu0 %v14659_v34 }
 0x216   : > { %7407 = vmatmul.mubr.bf16.gmra.mrb[52].mxu1 %v11250_v42  ;;  %7867 = vmatmul.mubr.bf16.gmra.mrb[12].mxu0 %v4212_v3  ;;  %v2442_v3 = vor.u32 %v2441_v36, %v2440_v4  ;;  %v2446_v4 = vor.u32 %v2445_v37, %v2444_v45  ;;  %v14821_v36 = vld [vmem:[#allocation52_spill] sm:$0xff] }
 0x217   : > { %7410 = vmatprep.mubr.msk.bf16.mxu1 %vm14596_vm4, %v14659_v34  ;;  %7870 = vmatprep.mubr.msk.bf16.mxu0 %vm14596_vm4, %v14659_v34  ;;  %v14822_v37 = vld [vmem:[#allocation56_spill] sm:$0xff] }
 0x218   : > { %7951 = vmatpush3.bf16.msra.mxu0 %v8766_v14  ;;  %v14820_v14 = vld [vmem:[#allocation47_spill] sm:$0xff]  ;;  %v11282_v46 = vsel %vm2376_vm3, %v2438_v10, %v2442_v3  ;;  %v11294_v10 = vsel %vm2376_vm3, %v2442_v3, %v2446_v4 }
 0x219   : > { %7952 = vmatprep.subr.bf16.mxu0 %v14659_v34  ;;  %v4215_v2 = vrot.slane %v14820_v14, 3  ;;  %v2448_v14 = vrot.slane %v10777_v43, 1 }
 0x21b   : > { %v2450_v45 = vor.u32 %v2449_v17, %v2448_v14  ;;  %v14823_v14 = vld [vmem:[#allocation66_spill] sm:$0xff] }
 0x21c   : > { %7953 = vmatpush3.bf16.msra.mxu0 %v8767_v8  ;;  %v4216_v8 = vsel %vm4203_vm11, %v4213_v62, %v4215_v2 }
 0x21d   : > { %v11306_v3 = vsel %vm2376_vm3, %v2446_v4, %v2450_v45 }
 0x21e   : > { %7411 = vmatmul.mubr.bf16.gmra.mrb[56].mxu1 %v11270_v38  ;;  %7871 = vmatmul.mubr.bf16.gmra.mrb[16].mxu0 %v4214_v26  ;;  %v4217_v26 = vrot.slane %v14821_v36, 3  ;;  %v2452_v36 = vrot.slane %v10817_v24, 1 }
 0x21f   : > { %7414 = vmatprep.mubr.msk.bf16.mxu1 %vm14596_vm4, %v14659_v34  ;;  %7874 = vmatprep.mubr.msk.bf16.mxu0 %vm14596_vm4, %v14659_v34 }
 0x220   : > { %v4218_v62 = vsel %vm4203_vm11, %v4215_v2, %v4217_v26  ;;  %v2454_v17 = vor.u32 %v2453_v50, %v2452_v36  ;;  %v14824_v36 = vld [vmem:[#allocation70_spill] sm:$0xff] }
 0x222   : > { %v11318_v4 = vsel %vm2376_vm3, %v2450_v45, %v2454_v17  ;;  %v4223_v45 = vrot.slane %v14824_v36, 3 }
 0x226   : > { %7415 = vmatmul.mubr.bf16.gmra.mrb[60].mxu1 %v11282_v46  ;;  %7875 = vmatmul.mubr.bf16.gmra.mrb[20].mxu0 %v4216_v8  ;;  %v4219_v8 = vrot.slane %v14822_v37, 3  ;;  %v2456_v37 = vrot.slane %v10848_v19, 1 }
 0x227   : > { %7418 = vmatprep.mubr.msk.bf16.mxu1 %vm14596_vm4, %v14659_v34  ;;  %7878 = vmatprep.mubr.msk.bf16.mxu0 %vm14596_vm4, %v14659_v34 }
 0x228   : > { %v4220_v2 = vsel %vm4203_vm11, %v4217_v26, %v4219_v8  ;;  %v11326_v50 = vor.u32 %v2457_v58, %v2456_v37  ;;  %v14825_v58 = vld [vmem:[#allocation80_spill] sm:$0xff] }
 0x22e   : > { %7419 = vmatmul.mubr.bf16.gmra.mrb[64].mxu1 %v11294_v10  ;;  %7879 = vmatmul.mubr.bf16.gmra.mrb[24].mxu0 %v4218_v62  ;;  %v4221_v62 = vrot.slane %v14823_v14, 3 }
 0x22f   : > { %7422 = vmatprep.mubr.msk.bf16.mxu1 %vm14596_vm4, %v14659_v34  ;;  %7882 = vmatprep.mubr.msk.bf16.mxu0 %vm14596_vm4, %v14659_v34 }
 0x230   : > { %v4222_v26 = vsel %vm4203_vm11, %v4219_v8, %v4221_v62  ;;  %v4224_v14 = vsel %vm4203_vm11, %v4221_v62, %v4223_v45  ;;  %v4225_v8 = vrot.slane %v14825_v58, 3 }
 0x232   : > { %v4226_v37 = vsel %vm4203_vm11, %v4223_v45, %v4225_v8  ;;  %v8774_v45 = vld [vmem:[%s14199_s1 + $0x100] sm:$0xff]  }
 0x236   : > { %7423 = vmatmul.mubr.bf16.gmra.mrb[68].mxu1 %v11306_v3  ;;  %7883 = vmatmul.mubr.bf16.gmra.mrb[28].mxu0 %v4220_v2  ;;  %v11333_v2 = vsel %vm2376_vm3, %v2454_v17, %v11326_v50  ;;  %v14826_v17 = vld [vmem:[#allocation86_spill] sm:$0xff] }
 0x237   : > { %7426 = vmatprep.mubr.msk.bf16.mxu1 %vm14596_vm4, %v14659_v34  ;;  %7886 = vmatprep.mubr.msk.bf16.mxu0 %vm14596_vm4, %v14659_v34  ;;  %v4227_v62 = vrot.slane %v14826_v17, 3 }
 0x23e   : > { %7427 = vmatmul.mubr.bf16.gmra.mrb[72].mxu1 %v11318_v4  ;;  %7887 = vmatmul.mubr.bf16.gmra.mrb[32].mxu0 %v4222_v26  ;;  %v4228_v26 = vsel %vm4203_vm11, %v4225_v8, %v4227_v62 }
 0x23f   : > { %7430 = vmatprep.mubr.msk.bf16.mxu1 %vm14596_vm4, %v14659_v34  ;;  %7890 = vmatprep.mubr.msk.bf16.mxu0 %vm14596_vm4, %v14659_v34 }
 0x246   : > { %7431 = vmatmul.mubr.bf16.gmra.mrb[76].mxu1 %v11333_v2  ;;  %7891 = vmatmul.mubr.bf16.gmra.mrb[36].mxu0 %v4224_v14  ;;  %v14827_v14 = vld [vmem:[#allocation93_spill] sm:$0xff] }
 0x247   : > { %7434 = vmatprep.mubr.msk.bf16.mxu1 %vm14596_vm4, %v14659_v34  ;;  %7894 = vmatprep.mubr.msk.bf16.mxu0 %vm14596_vm4, %v14659_v34 }
 0x24e   : > { %7435 = vmatmul.mubr.bf16.gmra.mrb[80].mxu1 %v11326_v50  ;;  %7895 = vmatmul.mubr.bf16.gmra.mrb[40].mxu0 %v4226_v37  ;;  %v4229_v37 = vrot.slane %v14827_v14, 3 }
 0x24f   : > { %7454 = vmatprep.mubr.msk.bf16.mxu1 %vm14596_vm4, %v14659_v34  ;;  %7898 = vmatprep.mubr.msk.bf16.mxu0 %vm14596_vm4, %v14659_v34 }
 0x250   : > { %v4230_v8 = vsel %vm4203_vm11, %v4227_v62, %v4229_v37  ;;  %v8776_v62 = vld [vmem:[%s14199_s1 + $0x110] sm:$0xff]  }
 0x256   : > { %7455 = vmatmul.mubr.bf16.vlgmr.msra.gmra.mrb[0].mxu1 %v11047_v49  ;;  %7899 = vmatmul.mubr.bf16.gmra.mrb[44].mxu0 %v4228_v26  ;;  %v8775_v49 = vld [vmem:[%s14199_s1 + $0x108] sm:$0xff]  }
 0x257   : > { %7458 = vmatprep.mubr.msk.bf16.mxu1 %vm14596_vm4, %v14659_v34  ;;  %8046 = vmatpush3.bf16.msra.mxu1 %v8774_v45  ;;  %v14828_v26 = vld [vmem:[#allocation95_spill] sm:$0xff] }
 0x258   : > { %7902 = vmatprep.mubr.msk.bf16.mxu0 %vm14596_vm4, %v14659_v34  ;;  %8039 = vmatprep.subr.bf16.mxu1 %v14659_v34  ;;  %v4231_v45 = vrot.slane %v14828_v26, 3 }
 0x25b   : > { %8047 = vmatpush3.bf16.msra.mxu1 %v8775_v49  ;;  %v4232_v49 = vsel %vm4203_vm11, %v4229_v37, %v4231_v45  ;;  %v8778_v37 = vld [vmem:[%s14199_s1 + $0x120] sm:$0xff]  }
 0x25c   : > { %8040 = vmatprep.subr.bf16.mxu1 %v14659_v34 }
 0x25e   : > { %7459 = vmatmul.mubr.bf16.gmra.mrb[4].mxu1 %v11068_v47  ;;  %7903 = vmatmul.mubr.bf16.gmra.mrb[48].mxu0 %v4230_v8  ;;  %v8777_v47 = vld [vmem:[%s14199_s1 + $0x118] sm:$0xff]   ;;  %v14829_v8 = vld [vmem:[#allocation102_spill] sm:$0xff] }
 0x25f   : > { %7462 = vmatprep.mubr.msk.bf16.mxu1 %vm14596_vm4, %v14659_v34  ;;  %7906 = vmatprep.mubr.msk.bf16.mxu0 %vm14596_vm4, %v14659_v34 }
 0x260   : > { %8048 = vmatpush3.bf16.msra.mxu1 %v8776_v62  ;;  %v4233_v62 = vrot.slane %v14829_v8, 3 }
 0x261   : > { %8041 = vmatprep.subr.bf16.mxu1 %v14659_v34 }
 0x264   : > { %8049 = vmatpush3.bf16.msra.mxu1 %v8777_v47  ;;  %v4234_v47 = vsel %vm4203_vm11, %v4231_v45, %v4233_v62  ;;  %v8780_v45 = vld [vmem:[%s14199_s1 + $0x130] sm:$0xff]  }
 0x265   : > { %8042 = vmatprep.subr.bf16.mxu1 %v14659_v34 }
 0x266   : > { %7463 = vmatmul.mubr.bf16.gmra.mrb[8].mxu1 %v11087_v54  ;;  %7907 = vmatmul.mubr.bf16.gmra.mrb[52].mxu0 %v4232_v49  ;;  %v8779_v54 = vld [vmem:[%s14199_s1 + $0x128] sm:$0xff]   ;;  %v14830_v49 = vld [vmem:[#allocation106_spill] sm:$0xff] }
 0x267   : > { %7466 = vmatprep.mubr.msk.bf16.mxu1 %vm14596_vm4, %v14659_v34  ;;  %7910 = vmatprep.mubr.msk.bf16.mxu0 %vm14596_vm4, %v14659_v34 }
 0x268   : > { %8050 = vmatpush3.bf16.msra.mxu1 %v8778_v37  ;;  %v4235_v37 = vrot.slane %v14830_v49, 3 }
 0x269   : > { %8043 = vmatprep.subr.bf16.mxu1 %v14659_v34 }
 0x26c   : > { %8051 = vmatpush3.bf16.msra.mxu1 %v8779_v54  ;;  %v4236_v54 = vsel %vm4203_vm11, %v4233_v62, %v4235_v37 }
 0x26d   : > { %8044 = vmatprep.subr.bf16.mxu1 %v14659_v34 }
 0x26e   : > { %7467 = vmatmul.mubr.bf16.gmra.mrb[12].mxu1 %v11113_v20  ;;  %7911 = vmatmul.mubr.bf16.gmra.mrb[56].mxu0 %v4234_v47  ;;  %v8781_v20 = vld [vmem:[%s14199_s1 + $0x138] sm:$0xff]   ;;  %v4237_v47 = vrot.slane %v10592_v27, 3 }
 0x26f   : > { %7470 = vmatprep.mubr.msk.bf16.mxu1 %vm14596_vm4, %v14659_v34  ;;  %7914 = vmatprep.mubr.msk.bf16.mxu0 %vm14596_vm4, %v14659_v34 }
 0x270   : > { %8052 = vmatpush3.bf16.msra.mxu1 %v8780_v45  ;;  %v4238_v45 = vsel %vm4203_vm11, %v4235_v37, %v4237_v47 }
 0x271   : > { %8045 = vmatprep.subr.bf16.mxu1 %v14659_v34 }
 0x274   : > { %8053 = vmatpush3.bf16.msra.mxu1 %v8781_v20  ;;  %v4574_v20 = vrot.slane %v14804_v25, 4 }
 0x276   : > { %7471 = vmatmul.mubr.bf16.gmra.mrb[16].mxu1 %v11126_v21  ;;  %7915 = vmatmul.mubr.bf16.gmra.mrb[60].mxu0 %v4236_v54  ;;  %v4239_v21 = vrot.slane %v10627_v31, 3 }
 0x277   : > { %7474 = vmatprep.mubr.msk.bf16.mxu1 %vm14596_vm4, %v14659_v34  ;;  %7918 = vmatprep.mubr.msk.bf16.mxu0 %vm14596_vm4, %v14659_v34 }
 0x278   : > { %v4240_v62 = vsel %vm4203_vm11, %v4237_v47, %v4239_v21  ;;  %v14831_v47 = vld [vmem:[#allocation71_spill] sm:$0xff] }
 0x27e   : > { %7475 = vmatmul.mubr.bf16.gmra.mrb[20].mxu1 %v11137_v9  ;;  %7919 = vmatmul.mubr.bf16.gmra.mrb[64].mxu0 %v4238_v45  ;;  %v4241_v9 = vrot.slane %v10860_v16, 3  ;;  %v4576_v45 = vrot.slane %v14831_v47, 3 }
 0x27f   : > { %7478 = vmatprep.mubr.msk.bf16.mxu1 %vm14596_vm4, %v14659_v34  ;;  %7922 = vmatprep.mubr.msk.bf16.mxu0 %vm14596_vm4, %v14659_v34 }
 0x280   : > { %v4242_v37 = vsel %vm4203_vm11, %v4239_v21, %v4241_v9  ;;  %v14832_v21 = vld [vmem:[#allocation69_spill] sm:$0xff] }
 0x286   : > { %7479 = vmatmul.mubr.bf16.gmra.mrb[24].mxu1 %v11152_v60  ;;  %7923 = vmatmul.mubr.bf16.gmra.mrb[68].mxu0 %v4240_v62  ;;  %v4243_v60 = vrot.slane %v11141_v44, 3  ;;  %v4577_v62 = vrot.slane %v14832_v21, 4 }
 0x287   : > { %7482 = vmatprep.mubr.msk.bf16.mxu1 %vm14596_vm4, %v14659_v34  ;;  %7926 = vmatprep.mubr.msk.bf16.mxu0 %vm14596_vm4, %v14659_v34 }
 0x288   : > { %v4244_v54 = vsel %vm4203_vm11, %v4241_v9, %v4243_v60  ;;  %v4578_v9 = vor.u32 %v4577_v62, %v4576_v45  ;;  %v14836_v45 = vld [vmem:[#allocation83_spill] sm:$0xff] }
 0x289   : > { %v4585_v21 = vrot.slane %v14836_v45, 4 }
 0x28e   : > { %7483 = vmatmul.mubr.bf16.gmra.mrb[28].mxu1 %v11167_v30  ;;  %7927 = vmatmul.mubr.bf16.gmra.mrb[72].mxu0 %v4242_v37  ;;  %v4573_v30 = vrot.slane %v14803_v48, 3  ;;  %v14833_v37 = vld [vmem:[#allocation77_spill] sm:$0xff] }
 0x28f   : > { %7486 = vmatprep.mubr.msk.bf16.mxu1 %vm14596_vm4, %v14659_v34  ;;  %7930 = vmatprep.mubr.msk.bf16.mxu0 %vm14596_vm4, %v14659_v34  ;;  %v4580_v25 = vrot.slane %v14833_v37, 3  ;;  %v4592_v37 = vrot.slane %v10365_v13, 3 }
 0x296   : > { %7487 = vmatmul.mubr.bf16.gmra.mrb[32].mxu1 %v11179_v0  ;;  %7931 = vmatmul.mubr.bf16.gmra.mrb[76].mxu0 %v4244_v54  ;;  %v4575_v0 = vor.u32 %v4574_v20, %v4573_v30  ;;  %v14834_v54 = vld [vmem:[#allocation76_spill] sm:$0xff] }
 0x297   : > { %7490 = vmatprep.mubr.msk.bf16.mxu1 %vm14596_vm4, %v14659_v34  ;;  %7934 = vmatprep.mubr.msk.bf16.mxu0 %vm14596_vm4, %v14659_v34  ;;  %v4581_v47 = vrot.slane %v14834_v54, 4  ;;  %v14835_v30 = vld [vmem:[#allocation84_spill] sm:$0xff]  ;;  %v4597_v54 = vrot.slane %v10427_v55, 4 }
 0x298   : > { %v4579_v48 = vsel %vm4572_vm14, %v4575_v0, %v4578_v9  ;;  %v4584_v20 = vrot.slane %v14835_v30, 3  ;;  %v4588_v0 = vrot.slane %v10261_v5, 3  ;;  %v14838_v30 = vld [vmem:[#allocation116_spill] sm:$0xff] }
 0x29e   : > { %7491 = vmatmul.mubr.bf16.gmra.mrb[36].mxu1 %v11191_v23  ;;  %7935 = vmatmul.mubr.bf16.gmra.mrb[80].mxu0 %v4243_v60  ;;  %v4582_v23 = vor.u32 %v4581_v47, %v4580_v25  ;;  %v4593_v25 = vrot.slane %v10356_v61, 4  ;;  %v4601_v47 = vrot.slane %v10523_v35, 4 }
 0x29f   : > { %7494 = vmatprep.mubr.msk.bf16.mxu1 %vm14596_vm4, %v14659_v34  ;;  %7954 = vmatprep.mubr.msk.bf16.mxu0 %vm14596_vm4, %v14659_v34 }
 0x2a0   : > { %v4583_v60 = vsel %vm4572_vm14, %v4578_v9, %v4582_v23  ;;  %v4589_v9 = vrot.slane %v10248_v29, 4  ;;  %v4594_v29 = vor.u32 %v4593_v25, %v4592_v37  ;;  %v4616_v37 = vrot.slane %v10646_v51, 3 }
 0x2a1   : > { %v4617_v25 = vrot.slane %v10643_v12, 4  ;;  %v4621_v51 = vrot.slane %v10665_v7, 4 }
 0x2a6   : > { %7495 = vmatmul.mubr.bf16.gmra.mrb[40].mxu1 %v11210_v56  ;;  %7955 = vmatmul.mubr.bf16.vlgmr.msra.gmra.mrb[0].mxu0 %v4579_v48  ;;  %v4586_v56 = vor.u32 %v4585_v21, %v4584_v20  ;;  %v2793_v20 = vrot.slane %v14838_v30, 2  ;;  %v14839_v21 = vld [vmem:[#allocation2_spill] sm:$0xff] }
 0x2a7   : > { %7498 = vmatprep.mubr.msk.bf16.mxu1 %vm14596_vm4, %v14659_v34  ;;  %7958 = vmatprep.mubr.msk.bf16.mxu0 %vm14596_vm4, %v14659_v34 }
 0x2a8   : > { %v4587_v62 = vsel %vm4572_vm14, %v4582_v23, %v4586_v56  ;;  %v4605_v23 = vrot.slane %v10582_v41, 4 }
 0x2ae   : > { %7499 = vmatmul.mubr.bf16.gmra.mrb[44].mxu1 %v11230_v22  ;;  %7959 = vmatmul.mubr.bf16.gmra.mrb[4].mxu0 %v4583_v60  ;;  %v4590_v22 = vor.u32 %v4589_v9, %v4588_v0  ;;  %v4609_v60 = vrot.slane %v10590_v15, 4  ;;  %v4613_v15 = vrot.slane %v10622_v53, 4 }
 0x2af   : > { %7502 = vmatprep.mubr.msk.bf16.mxu1 %vm14596_vm4, %v14659_v34  ;;  %7962 = vmatprep.mubr.msk.bf16.mxu0 %vm14596_vm4, %v14659_v34 }
 0x2b0   : > { %v4591_v48 = vsel %vm4572_vm14, %v4586_v56, %v4590_v22  ;;  %v4595_v5 = vsel %vm4572_vm14, %v4590_v22, %v4594_v29  ;;  %v885_v56 = vcvt.s32.f32 %v14839_v21 }
 0x2b2   : > { %v887_v9 = vadd.f32 0.5, %v885_v56 }
 0x2b6   : > { %7503 = vmatmul.mubr.bf16.gmra.mrb[48].mxu1 %v11250_v42  ;;  %7963 = vmatmul.mubr.bf16.gmra.mrb[8].mxu0 %v4587_v62  ;;  %v4596_v42 = vrot.slane %v10430_v1, 3  ;;  %v884_v62 = vadd.s32 8, %v14839_v21 }
 0x2b7   : > { %7506 = vmatprep.mubr.msk.bf16.mxu1 %vm14596_vm4, %v14659_v34  ;;  %7966 = vmatprep.mubr.msk.bf16.mxu0 %vm14596_vm4, %v14659_v34 }
 0x2b8   : > { %v4598_v61 = vor.u32 %v4597_v54, %v4596_v42  ;;  %v886_v22 = vcvt.s32.f32 %v884_v62 }
 0x2ba   : > { %v4599_v13 = vsel %vm4572_vm14, %v4594_v29, %v4598_v61 }
 0x2be   : > { %7507 = vmatmul.mubr.bf16.gmra.mrb[52].mxu1 %v11270_v38  ;;  %7967 = vmatmul.mubr.bf16.gmra.mrb[12].mxu0 %v4591_v48  ;;  %v4600_v38 = vrot.slane %v10526_v39, 3 }
 0x2bf   : > { %7510 = vmatprep.mubr.msk.bf16.mxu1 %vm14596_vm4, %v14659_v34  ;;  %7970 = vmatprep.mubr.msk.bf16.mxu0 %vm14596_vm4, %v14659_v34 }
 0x2c0   : > { %v4602_v55 = vor.u32 %v4601_v47, %v4600_v38  ;;  %v4620_v38 = vrot.slane %v10668_v33, 3 }
 0x2c2   : > { %v4603_v1 = vsel %vm4572_vm14, %v4598_v61, %v4602_v55 }
 0x2c6   : > { %7511 = vmatmul.mubr.bf16.gmra.mrb[56].mxu1 %v11282_v46  ;;  %7971 = vmatmul.mubr.bf16.gmra.mrb[16].mxu0 %v4595_v5  ;;  %v4604_v46 = vrot.slane %v10587_v32, 3  ;;  %v14837_v32 = vld [vmem:[#allocation115_spill] sm:$0xff] }
 0x2c7   : > { %7514 = vmatprep.mubr.msk.bf16.mxu1 %vm14596_vm4, %v14659_v34  ;;  %7974 = vmatprep.mubr.msk.bf16.mxu0 %vm14596_vm4, %v14659_v34 }
 0x2c8   : > { %v4606_v35 = vor.u32 %v4605_v23, %v4604_v46 }
 0x2ca   : > { %v4607_v39 = vsel %vm4572_vm14, %v4602_v55, %v4606_v35 }
 0x2ce   : > { %7515 = vmatmul.mubr.bf16.gmra.mrb[60].mxu1 %v11294_v10  ;;  %7975 = vmatmul.mubr.bf16.gmra.mrb[20].mxu0 %v4599_v13  ;;  %v4608_v10 = vrot.slane %v10603_v11, 3  ;;  %v4612_v11 = vrot.slane %v10625_v57, 3  ;;  %v889_v57 = vmul.f32 0.055555556, %v887_v9  ;;  %v4625_v9 = vrot.slane %v10687_v28, 4 }
 0x2cf   : > { %7518 = vmatprep.mubr.msk.bf16.mxu1 %vm14596_vm4, %v14659_v34  ;;  %7978 = vmatprep.mubr.msk.bf16.mxu0 %vm14596_vm4, %v14659_v34 }
 0x2d0   : > { %v4610_v41 = vor.u32 %v4609_v60, %v4608_v10  ;;  %v4614_v0 = vor.u32 %v4613_v15, %v4612_v11  ;;  %v891_v29 = vfloor.f32 %v889_v57  ;;  %v3129_v10 = vrot.slane %v14825_v58, 2 }
 0x2d1   : > { %v4622_v60 = vor.u32 %v4621_v51, %v4620_v38  ;;  %v4628_v38 = vrot.slane %v10724_v63, 3  ;;  %v4629_v51 = vrot.slane %v10721_v6, 4 }
 0x2d2   : > { %v4611_v45 = vsel %vm4572_vm14, %v4606_v35, %v4610_v41  ;;  %v4615_v48 = vsel %vm4572_vm14, %v4610_v41, %v4614_v0  ;;  %v893_v42 = vmul.f32 18.0, %v891_v29  ;;  %v6592_v12 = vadd.f32 -1.0, %v891_v29 }
 0x2d3   : > { %vm897_vm9 = vcmp.gt.f32.partialorder %v891_v29, 0.5  ;;  %vm938_vm8 = vcmp.lt.f32.partialorder %v891_v29, 16.5  ;;  %v4630_v6 = vor.u32 %v4629_v51, %v4628_v38  ;;  %v14865_v51 = vshrl.u32 %v11141_v44, 16 }
 0x2d4   : > { %v895_v61 = vsub.f32 %v885_v56, %v893_v42  ;;  %v5171_v46 = vadd.f32 0.5, %v6592_v12  ;;  %vm979_vm7 = vmand %vm897_vm9, %vm938_vm8  ;;  %vm14845_vm8 = vcmask 1045504  }
 0x2d6   : > { %7519 = vmatmul.mubr.bf16.gmra.mrb[64].mxu1 %v11306_v3  ;;  %7979 = vmatmul.mubr.bf16.gmra.mrb[24].mxu0 %v4603_v1  ;;  %v2790_v3 = vrot.slane %v14837_v32, 1  ;;  %v6633_v47 = vadd.f32 -1.0, %v895_v61  ;;  %v5213_v41 = vmul.f32 0.5, %v5171_v46  ;;  %vm1020_vm13 = vcmp.gt.f32.partialorder %v895_v61, 0.5 }
 0x2d7   : > { %7522 = vmatprep.mubr.msk.bf16.mxu1 %vm14596_vm4, %v14659_v34  ;;  %7982 = vmatprep.mubr.msk.bf16.mxu0 %vm14596_vm4, %v14659_v34  ;;  %vm1063_vm0 = vcmp.lt.f32.partialorder %v895_v61, 16.5  ;;  %vm1022_vm5 = vmand %vm979_vm7, %vm1020_vm13  ;;  %v4632_v46 = vrot.slane %v10752_v18, 3 }
 0x2d8   : > { %v5295_v35 = vadd.f32 0.5, %v6633_v47  ;;  %vm11556_vm1 = vmand %vm1022_vm5, %vm1063_vm0 }
 0x2da   : > { %v5336_v7 = vmul.f32 0.5, %v5295_v35 }
 0x2dc   : > { %v5377_v11 = vfloor.f32 %v5336_v7  ;;  %v14857_v7 = vld [vmem:[#allocation7_spill] sm:$0xff] }
 0x2de   : > { %7523 = vmatmul.mubr.bf16.gmra.mrb[68].mxu1 %v11318_v4  ;;  %7983 = vmatmul.mubr.bf16.gmra.mrb[28].mxu0 %v4607_v39  ;;  %v2794_v4 = vor.u32 %v2793_v20, %v2790_v3  ;;  %v5254_v20 = vfloor.f32 %v5213_v41  ;;  %v14856_v41 = vld [vmem:[#allocation113_spill] sm:$0xff] }
 0x2df   : > { %7526 = vmatprep.mubr.msk.bf16.mxu1 %vm14596_vm4, %v14659_v34  ;;  %7986 = vmatprep.mubr.msk.bf16.mxu0 %vm14596_vm4, %v14659_v34 }
 0x2e0   : > { %v2795_v53 = vsel %vm2376_vm3, %v11326_v50, %v2794_v4  ;;  %v4618_v50 = vor.u32 %v4617_v25, %v4616_v37  ;;  %vm14841_vm3 = vcmask 1045504   ;;  %v5418_v56 = vmul.f32 2.0, %v5254_v20 }
 0x2e2   : > { %v4619_v1 = vsel %vm4572_vm14, %v4614_v0, %v4618_v50  ;;  %v4623_v21 = vsel %vm4572_vm14, %v4618_v50, %v4622_v60  ;;  %v4624_v0 = vrot.slane %v10690_v40, 3  ;;  %v5459_v57 = vsub.f32 %v6592_v12, %v5418_v56 }
 0x2e3   : > { %v14842_v40 = vmov 0  ;;  %v14848_v12 = vmov 0 }
 0x2e4   : > { %v14843_v40 = vsel %vm11556_vm1, 4294967295, %v14842_v40  ;;  %v5500_v28 = vand.u32 2147483647, %v5459_v57 }
 0x2e5   : > { %14844 = vst [vmem:[#allocation108_spill] sm:$0xff] %v14843_v40 }
 0x2e6   : > { %7527 = vmatmul.mubr.bf16.gmra.mrb[72].mxu1 %v11333_v2  ;;  %7987 = vmatmul.mubr.bf16.gmra.mrb[32].mxu0 %v4611_v45  ;;  %v888_v2 = vadd.f32 0.5, %v886_v22  ;;  %vm5541_vm10 = vcmp.lt.f32.partialorder %v5500_v28, 0.5  ;;  %v14863_v28 = vld [vmem:[#allocation5_spill] sm:$0xff] }
 0x2e7   : > { %7530 = vmatprep.mubr.msk.bf16.mxu1 %vm14596_vm4, %v14659_v34  ;;  %7990 = vmatprep.mubr.msk.bf16.mxu0 %vm14596_vm4, %v14659_v34 }
 0x2e8   : > { %v890_v5 = vmul.f32 0.055555556, %v888_v2 }
 0x2ea   : > { %v892_v54 = vfloor.f32 %v890_v5  ;;  %v4626_v5 = vor.u32 %v4625_v9, %v4624_v0 }
 0x2ec   : > { %v894_v13 = vmul.f32 18.0, %v892_v54  ;;  %v6593_v23 = vadd.f32 -1.0, %v892_v54  ;;  %vm898_vm6 = vcmp.gt.f32.partialorder %v892_v54, 0.5  ;;  %vm939_vm12 = vcmp.lt.f32.partialorder %v892_v54, 16.5 }
 0x2ed   : > { %vm980_vm2 = vmand %vm898_vm6, %vm939_vm12  ;;  %v4627_v54 = vsel %vm4572_vm14, %v4622_v60, %v4626_v5 }
 0x2ee   : > { %7531 = vmatmul.mubr.bf16.gmra.mrb[76].mxu1 %v2795_v53  ;;  %7991 = vmatmul.mubr.bf16.gmra.mrb[36].mxu0 %v4615_v48  ;;  %v11538_v55 = vsub.f32 %v886_v22, %v894_v13  ;;  %v5172_v3 = vadd.f32 0.5, %v6593_v23  ;;  %v5623_v22 = vmul.f32 2.0, %v5377_v11  ;;  %v3131_v48 = vrot.slane %v14826_v17, 2  ;;  %v14858_v11 = vld [vmem:[#allocation114_spill] sm:$0xff]  ;;  %v14897_v13 = vld [vmem:[#allocation20_spill] sm:$0xff] }
 0x2ef   : > { %7534 = vmatprep.mubr.msk.bf16.mxu1 %vm14596_vm4, %v14659_v34  ;;  %7994 = vmatprep.mubr.msk.bf16.mxu0 %vm14596_vm4, %v14659_v34 }
 0x2f0   : > { %v6634_v39 = vadd.f32 -1.0, %v11538_v55  ;;  %v5214_v45 = vmul.f32 0.5, %v5172_v3  ;;  %v5664_v2 = vsub.f32 %v6633_v47, %v5623_v22  ;;  %vm1021_vm11 = vcmp.gt.f32.partialorder %v11538_v55, 0.5 }
 0x2f1   : > { %vm1064_vm9 = vcmp.lt.f32.partialorder %v11538_v55, 16.5  ;;  %v3132_v61 = vsel %vm14845_vm8, %v3129_v10, %v3131_v48  ;;  %vm1023_vm7 = vmand %vm980_vm2, %vm1021_vm11  ;;  %v3133_v47 = vrot.slane %v14827_v14, 2  ;;  %v3135_v14 = vrot.slane %v14828_v26, 2 }
 0x2f2   : > { %v5296_v33 = vadd.f32 0.5, %v6634_v39  ;;  %v5255_v62 = vfloor.f32 %v5214_v45  ;;  %v5705_v25 = vand.u32 2147483647, %v5664_v2  ;;  %vm11574_vm6 = vmand %vm1023_vm7, %vm1064_vm9  ;;  %v4637_v3 = vrot.slane %v14856_v41, 4 }
 0x2f3   : > { %v14849_v12 = vsel %vm11574_vm6, 4294967295, %v14848_v12  ;;  %vm14854_vm2 = vmmov %vm14845_vm8  ;;  %v3137_v26 = vrot.slane %v14829_v8, 2  ;;  %v3139_v8 = vrot.slane %v14830_v49, 2 }
 0x2f4   : > { %v5337_v15 = vmul.f32 0.5, %v5296_v33  ;;  %vm5746_vm15 = vcmp.lt.f32.partialorder %v5705_v25, 0.5  ;;  %14850 = vst [vmem:[#allocation61_spill] sm:$0xff] %v14849_v12  ;;  %v11606_v33 = vadd.f32 -1.0, %v14857_v7  ;;  %vm14859_vm11 = vmmov %vm14854_vm2  ;;  %v11635_v25 = vadd.f32 -1.0, %v14863_v28 }
 0x2f6   : > { %7535 = vmatmul.mubr.bf16.gmra.mrb[80].mxu1 %v2794_v4  ;;  %7995 = vmatmul.mubr.bf16.gmra.mrb[40].mxu0 %v4619_v1  ;;  %v14840_v4 = vrot.slane %v14824_v36, 2  ;;  %v5378_v53 = vfloor.f32 %v5337_v15  ;;  %v5419_v36 = vmul.f32 2.0, %v5255_v62  ;;  %v4631_v1 = vsel %vm4572_vm14, %v4626_v5, %v4630_v6  ;;  %v14860_v62 = vld [vmem:[#allocation4_spill] sm:$0xff] }
 0x2f7   : > { %7598 = vmatprep.mubr.msk.bf16.mxu1 %vm14596_vm4, %v14659_v34  ;;  %7998 = vmatprep.mubr.msk.bf16.mxu0 %vm14596_vm4, %v14659_v34  ;;  %v4641_v15 = vrot.slane %v14858_v11, 4  ;;  %v11621_v0 = vadd.f32 -1.0, %v14860_v62  ;;  %v4644_v5 = vrot.slane %v10848_v19, 3 }
 0x2f8   : > { %v3130_v58 = vsel %vm14841_vm3, %v14840_v4, %v3129_v10  ;;  %v5624_v37 = vmul.f32 2.0, %v5378_v53  ;;  %v5460_v29 = vsub.f32 %v6593_v23, %v5419_v36  ;;  %vm5582_vm3 = vmand %vm11556_vm1, %vm5541_vm10  ;;  %v4633_v23 = vrot.slane %v10749_v52, 4  ;;  %v14855_v10 = vld [vmem:[#allocation3_spill] sm:$0xff]  ;;  %v14861_v53 = vld [vmem:[#allocation8_spill] sm:$0xff] }
 0x2f9   : > { %vm11567_vm13 = vmand %vm5582_vm3, %vm5746_vm15  ;;  %v11600_v60 = vadd.f32 -1.0, %v14855_v10  ;;  %v4636_v52 = vrot.slane %v10777_v43, 3  ;;  %v4640_v43 = vrot.slane %v10817_v24, 3  ;;  %v5297_v4 = vadd.f32 0.5, %v11606_v33 }
 0x2fa   : > { %v5665_v17 = vsub.f32 %v6634_v39, %v5624_v37  ;;  %v5501_v42 = vand.u32 2147483647, %v5460_v29  ;;  %vm14853_vm15 = vmmov %vm14845_vm8  ;;  %v4634_v35 = vor.u32 %v4633_v23, %v4632_v46  ;;  %v3136_v39 = vsel %vm14854_vm2, %v3133_v47, %v3135_v14  ;;  %v14868_v46 = vld [vmem:[#allocation10_spill] sm:$0xff] }
 0x2fb   : > { %v3134_v55 = vsel %vm14853_vm15, %v3131_v48, %v3133_v47  ;;  %v5173_v20 = vadd.f32 0.5, %v11600_v60  ;;  %v4638_v45 = vor.u32 %v4637_v3, %v4636_v52  ;;  %v4642_v9 = vor.u32 %v4641_v15, %v4640_v43  ;;  %vm14862_vm3 = vmmov %vm14854_vm2  ;;  %v14875_v43 = vld [vmem:[#allocation13_spill] sm:$0xff] }
 0x2fc   : > { %v5706_v50 = vand.u32 2147483647, %v5665_v17  ;;  %vm5542_vm0 = vcmp.lt.f32.partialorder %v5501_v42, 0.5  ;;  %v4635_v18 = vsel %vm4572_vm14, %v4630_v6, %v4634_v35  ;;  %v5338_v22 = vmul.f32 0.5, %v5297_v4 }
 0x2fd   : > { %vm5583_vm12 = vmand %vm11574_vm6, %vm5542_vm0  ;;  %v4639_v56 = vsel %vm4572_vm14, %v4634_v35, %v4638_v45  ;;  %v11628_v57 = vadd.f32 -1.0, %v14861_v53  ;;  %v3140_v2 = vsel %vm14862_vm3, %v3137_v26, %v3139_v8  ;;  %v5174_v49 = vadd.f32 0.5, %v11621_v0 }
 0x2fe   : > { %7599 = vmatmul.mubr.bf16.vlgmr.msra.gmra.mrb[44].mxu1 %v3130_v58  ;;  %7999 = vmatmul.mubr.bf16.gmra.mrb[44].mxu0 %v4623_v21  ;;  %vm5747_vm5 = vcmp.lt.f32.partialorder %v5706_v50, 0.5  ;;  %v3138_v58 = vsel %vm14859_vm11, %v3135_v14, %v3137_v26  ;;  %v5215_v21 = vmul.f32 0.5, %v5173_v20  ;;  %v3141_v36 = vrot.slane %v10592_v27, 2  ;;  %v14864_v27 = vld [vmem:[#allocation9_spill] sm:$0xff]  ;;  %v14869_v14 = vld [vmem:[#allocation11_spill] sm:$0xff]  ;;  %vm14871_vm0 = vmmov %vm14854_vm2 }
 0x2ff   : > { %7602 = vmatprep.mubr.msk.bf16.mxu1 %vm14596_vm4, %v14659_v34  ;;  %8002 = vmatprep.mubr.msk.bf16.mxu0 %vm14596_vm4, %v14659_v34  ;;  %vm11583_vm10 = vmand %vm5583_vm12, %vm5747_vm5  ;;  %v4643_v48 = vsel %vm4572_vm14, %v4638_v45, %v4642_v9  ;;  %v5379_v37 = vfloor.f32 %v5338_v22  ;;  %v3143_v29 = vrot.slane %v10627_v31, 2  ;;  %v4645_v17 = vrot.slane %v10845_v59, 4 }
 0x300   : > { %v5256_v24 = vfloor.f32 %v5215_v21  ;;  %v4648_v50 = vrot.slane %v14837_v32, 3  ;;  %v11644_v38 = vadd.f32 -1.0, %v14864_v27  ;;  %v4652_v47 = vrot.slane %v14865_v51, 3  ;;  %vm14872_vm7 = vmmov %vm14871_vm0 }
 0x301   : > { %v14866_v6 = vshll.u32 %v11141_v44, 16  ;;  %vm899_vm9 = vcmp.gt.f32.partialorder %v14855_v10, 0.5  ;;  %v5216_v19 = vmul.f32 0.5, %v5174_v49  ;;  %vm940_vm8 = vcmp.lt.f32.partialorder %v14855_v10, 16.5  ;;  %vm14877_vm12 = vmmov %vm14871_vm0 }
 0x302   : > { %v5420_v42 = vmul.f32 2.0, %v5256_v24  ;;  %v5625_v59 = vmul.f32 2.0, %v5379_v37  ;;  %v5175_v32 = vadd.f32 0.5, %v11635_v25  ;;  %v11660_v23 = vadd.f32 -1.0, %v14868_v46  ;;  %vm11679_vm5 = vmand %vm899_vm9, %vm940_vm8 }
 0x303   : > { %v4653_v31 = vrot.slane %v14866_v6, 4  ;;  %v11663_v35 = vadd.f32 -1.0, %v14869_v14  ;;  %v5299_v41 = vadd.f32 0.5, %v11644_v38  ;;  %v3142_v26 = vsel %vm14871_vm0, %v3139_v8, %v3141_v36 }
 0x304   : > { %v5461_v44 = vsub.f32 %v11600_v60, %v5420_v42  ;;  %v11673_v60 = vsel %vm14872_vm7, %v3141_v36, %v3143_v29  ;;  %v5257_v45 = vfloor.f32 %v5216_v19  ;;  %v11684_v11 = vadd.f32 -1.0, %v14875_v43 }
 0x305   : > { %v11686_v4 = vor.u32 %v4653_v31, %v4652_v47  ;;  %v5217_v21 = vmul.f32 0.5, %v5175_v32  ;;  %v5300_v24 = vadd.f32 0.5, %v11660_v23  ;;  %vm14878_vm15 = vcmp.gt.f32.partialorder %v14857_v7, 0.5  ;;  %v14884_v31 = vld [vmem:[#allocation14_spill] sm:$0xff] }
 0x306   : > { %7603 = vmatmul.mubr.bf16.gmra.mrb[48].mxu1 %v3132_v61  ;;  %8003 = vmatmul.mubr.bf16.gmra.mrb[48].mxu0 %v4627_v54  ;;  %v4649_v61 = vrot.slane %v14838_v30, 4  ;;  %v5298_v54 = vadd.f32 0.5, %v11628_v57  ;;  %v14867_v30 = vld [vmem:[#allocation6_spill] sm:$0xff]  ;;  %v5502_v22 = vand.u32 2147483647, %v5461_v44  ;;  %vm1024_vm2 = vmand %vm11679_vm5, %vm14878_vm15  ;;  %v5421_v37 = vmul.f32 2.0, %v5257_v45 }
 0x307   : > { %7606 = vmatprep.mubr.msk.bf16.mxu1 %vm14596_vm4, %v14659_v34  ;;  %8006 = vmatprep.mubr.msk.bf16.mxu0 %vm14596_vm4, %v14659_v34  ;;  %vm14880_vm11 = vcmp.lt.f32.partialorder %v14857_v7, 16.5  ;;  %v14881_v51 = vmov 0  ;;  %v5341_v47 = vmul.f32 0.5, %v5300_v24  ;;  %v11722_v19 = vadd.f32 -1.0, %v14884_v31  ;;  %v14886_v44 = vld [vmem:[#allocation16_spill] sm:$0xff]  ;;  %v14888_v45 = vld [vmem:[#allocation18_spill] sm:$0xff] }
 0x308   : > { %v5339_v52 = vmul.f32 0.5, %v5298_v54  ;;  %vm11717_vm3 = vmand %vm1024_vm2, %vm14880_vm11  ;;  %vm5543_vm9 = vcmp.lt.f32.partialorder %v5502_v22, 0.5  ;;  %vm900_vm0 = vcmp.gt.f32.partialorder %v14860_v62, 0.5  ;;  %vm941_vm7 = vcmp.lt.f32.partialorder %v14860_v62, 16.5 }
 0x309   : > { %v14882_v51 = vsel %vm11717_vm3, 4294967295, %v14881_v51  ;;  %vm942_vm5 = vcmp.lt.f32.partialorder %v14863_v28, 16.5  ;;  %vm943_vm15 = vcmp.lt.f32.partialorder %v14867_v30, 16.5  ;;  %vm944_vm11 = vcmp.lt.f32.partialorder %v14869_v14, 16.5 }
 0x30a   : > { %14883 = vst [vmem:[#allocation65_spill] sm:$0xff] %v14882_v51 }
 0x30e   : > { %7607 = vmatmul.mubr.bf16.gmra.mrb[52].mxu1 %v3134_v55  ;;  %8007 = vmatmul.mubr.bf16.gmra.mrb[52].mxu0 %v4631_v1  ;;  %v11654_v55 = vadd.f32 -1.0, %v14867_v30  ;;  %v4646_v1 = vor.u32 %v4645_v17, %v4644_v5  ;;  %v5301_v5 = vadd.f32 0.5, %v11684_v11  ;;  %v14879_v17 = vld [vmem:[#allocation12_spill] sm:$0xff] }
 0x30f   : > { %7610 = vmatprep.mubr.msk.bf16.mxu1 %vm14596_vm4, %v14659_v34  ;;  %8010 = vmatprep.mubr.msk.bf16.mxu0 %vm14596_vm4, %v14659_v34  ;;  %v11707_v42 = vadd.f32 -1.0, %v14879_v17 }
 0x310   : > { %v4647_v10 = vsel %vm4572_vm14, %v4642_v9, %v4646_v1  ;;  %v5340_v9 = vmul.f32 0.5, %v5299_v41  ;;  %v5462_v41 = vsub.f32 %v11621_v0, %v5421_v37 }
 0x311   : > { %v5178_v20 = vadd.f32 0.5, %v11707_v42 }
 0x316   : > { %7611 = vmatmul.mubr.bf16.gmra.mrb[56].mxu1 %v3136_v39  ;;  %8011 = vmatmul.mubr.bf16.gmra.mrb[56].mxu0 %v4635_v18  ;;  %v14513_v39 = vrot.slane %v10860_v16, 2  ;;  %v4650_v18 = vor.u32 %v4649_v61, %v4648_v50  ;;  %v5258_v61 = vfloor.f32 %v5217_v21 }
 0x317   : > { %7614 = vmatprep.mubr.msk.bf16.mxu1 %vm14596_vm4, %v14659_v34  ;;  %8014 = vmatprep.mubr.msk.bf16.mxu0 %vm14596_vm4, %v14659_v34 }
 0x318   : > { %v11698_v36 = vsel %vm14877_vm12, %v3143_v29, %v14513_v39  ;;  %v11711_v29 = vsel %vm4572_vm14, %v4650_v18, %v11686_v4  ;;  %v5422_v21 = vmul.f32 2.0, %v5258_v61  ;;  %v11779_v39 = vadd.f32 -1.0, %v14897_v13 }
 0x319   : > { %vm902_vm12 = vcmp.gt.f32.partialorder %v14867_v30, 0.5 }
 0x31e   : > { %7615 = vmatmul.mubr.bf16.gmra.mrb[60].mxu1 %v3138_v58  ;;  %8015 = vmatmul.mubr.bf16.gmra.mrb[60].mxu0 %v4639_v56  ;;  %v5666_v58 = vsub.f32 %v11606_v33, %v5625_v59  ;;  %v5176_v56 = vadd.f32 0.5, %v11654_v55  ;;  %v4651_v33 = vsel %vm4572_vm14, %v4646_v1, %v4650_v18  ;;  %v14514_v59 = vmov 0   ;;  %vm11744_vm14 = vmand %vm11717_vm3, %vm5543_vm9 }
 0x31f   : > { %7618 = vmatprep.mubr.msk.bf16.mxu1 %vm14596_vm4, %v14659_v34  ;;  %8018 = vmatprep.mubr.msk.bf16.mxu0 %vm14596_vm4, %v14659_v34  ;;  %v11729_v32 = vsel %vm11567_vm13, 1, %v14514_v59  ;;  %v5381_v1 = vfloor.f32 %v5340_v9  ;;  %v11732_v18 = vadd.f32 -1.0, %v14886_v44  ;;  %v14893_v9 = vld [vmem:[#allocation19_spill] sm:$0xff]  ;;  %vm904_vm9 = vcmp.gt.f32.partialorder %v14879_v17, 0.5 }
 0x320   : > { %v5707_v50 = vand.u32 2147483647, %v5666_v58  ;;  %v5218_v54 = vmul.f32 0.5, %v5176_v56  ;;  %14885 = vst [vmem:[#allocation64_spill] sm:$0xff] %v11729_v32  ;;  %v11755_v22 = vadd.f32 -1.0, %v14893_v9 }
 0x321   : > { %v5627_v61 = vmul.f32 2.0, %v5381_v1 }
 0x322   : > { %vm5748_vm13 = vcmp.lt.f32.partialorder %v5707_v50, 0.5  ;;  %v5259_v56 = vfloor.f32 %v5218_v54  ;;  %v5179_v54 = vadd.f32 0.5, %v11732_v18 }
 0x323   : > { %vm11766_vm8 = vmand %vm11744_vm14, %vm5748_vm13  ;;  %vm945_vm14 = vcmp.lt.f32.partialorder %v14879_v17, 16.5 }
 0x324   : > { %vm11841_vm13 = vmand %vm900_vm0, %vm941_vm7  ;;  %vm14946_vm7 = vcmp.lt.f32.partialorder %v14868_v46, 16.5 }
 0x326   : > { %7619 = vmatmul.mubr.bf16.gmra.mrb[64].mxu1 %v3140_v2  ;;  %8019 = vmatmul.mubr.bf16.gmra.mrb[64].mxu0 %v4643_v48  ;;  %v5177_v2 = vadd.f32 0.5, %v11663_v35  ;;  %v5380_v48 = vfloor.f32 %v5339_v52 }
 0x327   : > { %7622 = vmatprep.mubr.msk.bf16.mxu1 %vm14596_vm4, %v14659_v34  ;;  %8022 = vmatprep.mubr.msk.bf16.mxu0 %vm14596_vm4, %v14659_v34 }
 0x328   : > { %v5219_v6 = vmul.f32 0.5, %v5177_v2  ;;  %v5626_v7 = vmul.f32 2.0, %v5380_v48  ;;  %v5382_v2 = vfloor.f32 %v5341_v47  ;;  %v5302_v48 = vadd.f32 0.5, %v11722_v19 }
 0x329   : > { %v11669_v3 = vpop.f32.mrb[0].mxu1 }
 0x32a   : > { %14870 = vst [vmem:[#allocation60_spill] sm:$0xff] %v11669_v3  ;;  %v7456_v15 = vpop.f32.mrb[1].mxu1  ;;  %v5667_v50 = vsub.f32 %v11628_v57, %v5626_v7  ;;  %v5463_v57 = vsub.f32 %v11635_v25, %v5422_v21  ;;  %v5423_v7 = vmul.f32 2.0, %v5259_v56  ;;  %v5668_v56 = vsub.f32 %v11644_v38, %v5627_v61 }
 0x32b   : > { %v11690_v8 = vpop.f32.mrb[2].mxu1  ;;  %v11739_v15 = vadd.f32 -1.0, %v14888_v45  ;;  %v5181_v61 = vadd.f32 0.5, %v11779_v39 }
 0x32c   : > { %14876 = vst [vmem:[#allocation109_spill] sm:$0xff] %v11690_v8  ;;  %v7457_v49 = vpop.f32.mrb[3].mxu1  ;;  %v11791_v21 = vand.u32 2147483647, %v5667_v50  ;;  %v11801_v12 = vand.u32 2147483647, %v5463_v57  ;;  %v5464_v38 = vsub.f32 %v11654_v55, %v5423_v7 }
 0x32d   : > { %v5260_v49 = vfloor.f32 %v5219_v6  ;;  %v11772_v6 = vand.u32 2147483647, %v5462_v41  ;;  %v5628_v41 = vmul.f32 2.0, %v5382_v2  ;;  %v14903_v55 = vld [vmem:[#allocation21_spill] sm:$0xff] }
 0x32e   : > { %7623 = vmatmul.mubr.bf16.gmra.mrb[68].mxu1 %v3142_v26  ;;  %8023 = vmatmul.mubr.bf16.gmra.mrb[68].mxu0 %v4647_v10  ;;  %v5342_v26 = vmul.f32 0.5, %v5301_v5  ;;  %v14891_v10 = vld [vmem:[#allocation17_spill] sm:$0xff]  ;;  %v11760_v5 = vsel %vm11583_vm10, 1, %v14514_v59  ;;  %vm901_vm10 = vcmp.gt.f32.partialorder %v14863_v28, 0.5  ;;  %v11816_v7 = vadd.f32 -1.0, %v14903_v55 }
 0x32f   : > { %7626 = vmatprep.mubr.msk.bf16.mxu1 %vm14596_vm4, %v14659_v34  ;;  %8026 = vmatprep.mubr.msk.bf16.mxu0 %vm14596_vm4, %v14659_v34  ;;  %v11749_v24 = vadd.f32 -1.0, %v14891_v10  ;;  %14894 = vst [vmem:[#allocation112_spill] sm:$0xff] %v11760_v5  ;;  %v5424_v59 = vmul.f32 2.0, %v5260_v49  ;;  %vm11877_vm2 = vmand %vm901_vm10, %vm942_vm5  ;;  %vm14920_vm5 = vcmp.gt.f32.partialorder %v14869_v14, 0.5 }
 0x330   : > { %v5383_v63 = vfloor.f32 %v5342_v26  ;;  %v5343_v26 = vmul.f32 0.5, %v5302_v48  ;;  %v14901_v48 = vld [vmem:[#allocation22_spill] sm:$0xff] }
 0x331   : > { %v11734_v52 = vpop.f32.mrb[4].mxu1  ;;  %v5180_v1 = vadd.f32 0.5, %v11749_v24 }
 0x332   : > { %14887 = vst [vmem:[#allocation110_spill] sm:$0xff] %v11734_v52  ;;  %v7460_v58 = vpop.f32.mrb[5].mxu1  ;;  %v11799_v52 = vadd.f32 -1.0, %v14901_v48 }
 0x333   : > { %v11751_v0 = vpop.f32.mrb[6].mxu1  ;;  %v5220_v58 = vmul.f32 0.5, %v5178_v20  ;;  %v5304_v20 = vadd.f32 0.5, %v11755_v22  ;;  %v5222_v50 = vmul.f32 0.5, %v5180_v1 }
 0x334   : > { %14892 = vst [vmem:[#allocation111_spill] sm:$0xff] %v11751_v0  ;;  %v7461_v37 = vpop.f32.mrb[7].mxu1  ;;  %v5221_v0 = vmul.f32 0.5, %v5179_v54 }
 0x335   : > { %v5303_v37 = vadd.f32 0.5, %v11739_v15  ;;  %v5261_v2 = vfloor.f32 %v5220_v58  ;;  %v5465_v58 = vsub.f32 %v11663_v35, %v5424_v59  ;;  %v5345_v57 = vmul.f32 0.5, %v5304_v20 }
 0x336   : > { %7627 = vmatmul.mubr.bf16.gmra.mrb[72].mxu1 %v11673_v60  ;;  %8027 = vmatmul.mubr.bf16.gmra.mrb[72].mxu0 %v4651_v33  ;;  %v14898_v60 = vmov 0   ;;  %v5629_v33 = vmul.f32 2.0, %v5383_v63  ;;  %v5669_v63 = vsub.f32 %v11660_v23, %v5628_v41  ;;  %v5262_v8 = vfloor.f32 %v5221_v0 }
 0x337   : > { %7630 = vmatprep.mubr.msk.bf16.mxu1 %vm14596_vm4, %v14659_v34  ;;  %8030 = vmatprep.mubr.msk.bf16.mxu0 %vm14596_vm4, %v14659_v34  ;;  %v11789_v25 = vsel %vm11766_vm8, 1, %v14898_v60  ;;  %v5344_v49 = vmul.f32 0.5, %v5303_v37  ;;  %v5384_v37 = vfloor.f32 %v5343_v26  ;;  %v5305_v23 = vadd.f32 0.5, %v11799_v52  ;;  %v14904_v26 = vld [vmem:[#allocation23_spill] sm:$0xff] }
 0x338   : > { %14899 = vst [vmem:[#allocation15_spill] sm:$0xff] %v11789_v25  ;;  %v5670_v1 = vsub.f32 %v11684_v11, %v5629_v33  ;;  %v11821_v35 = vand.u32 2147483647, %v5464_v38  ;;  %v5263_v59 = vfloor.f32 %v5222_v50  ;;  %v5223_v41 = vmul.f32 0.5, %v5181_v61  ;;  %v14909_v25 = vld [vmem:[#allocation27_spill] sm:$0xff]  ;;  %v14916_v33 = vld [vmem:[#allocation28_spill] sm:$0xff] }
 0x339   : > { %v11794_v51 = vpop.f32.mrb[8].mxu1  ;;  %v5385_v40 = vfloor.f32 %v5344_v49  ;;  %v11824_v20 = vadd.f32 -1.0, %v14904_v26  ;;  %v11829_v0 = vand.u32 2147483647, %v5669_v63  ;;  %v11831_v11 = vand.u32 2147483647, %v5465_v58 }
 0x33a   : > { %14900 = vst [vmem:[#allocation24_spill] sm:$0xff] %v11794_v51  ;;  %v7464_v47 = vpop.f32.mrb[9].mxu1  ;;  %v11812_v51 = vand.u32 2147483647, %v5668_v56  ;;  %v5386_v56 = vfloor.f32 %v5345_v57  ;;  %v14907_v49 = vld [vmem:[#allocation25_spill] sm:$0xff]  ;;  %v5346_v63 = vmul.f32 0.5, %v5305_v23  ;;  %v5264_v57 = vfloor.f32 %v5223_v41 }
 0x33b   : > { %v11807_v54 = vpop.f32.mrb[10].mxu1  ;;  %v11849_v38 = vadd.f32 -1.0, %v14907_v49  ;;  %v5631_v61 = vmul.f32 2.0, %v5385_v40  ;;  %vm14951_vm8 = vcmp.gt.f32.partialorder %v14886_v44, 0.5 }
 0x33c   : > { %14902 = vst [vmem:[#allocation26_spill] sm:$0xff] %v11807_v54  ;;  %v7465_v47 = vpop.f32.mrb[11].mxu1  ;;  %v5425_v54 = vmul.f32 2.0, %v5261_v2  ;;  %v5182_v2 = vadd.f32 0.5, %v11816_v7 }
 0x33d   : > { %v5306_v47 = vadd.f32 0.5, %v11824_v20 }
 0x33e   : > { %7631 = vmatmul.mubr.bf16.gmra.mrb[76].mxu1 %v11698_v36  ;;  %8031 = vmatmul.mubr.bf16.gmra.mrb[76].mxu0 %v11711_v29  ;;  %v5630_v36 = vmul.f32 2.0, %v5384_v37  ;;  %v5426_v29 = vmul.f32 2.0, %v5262_v8  ;;  %v5466_v62 = vsub.f32 %v11707_v42, %v5425_v54  ;;  %v5427_v37 = vmul.f32 2.0, %v5263_v59 }
 0x33f   : > { %7634 = vmatprep.mubr.msk.bf16.mxu1 %vm14596_vm4, %v14659_v34  ;;  %8034 = vmatprep.mubr.msk.bf16.mxu0 %vm14596_vm4, %v14659_v34  ;;  %v11853_v34 = vand.u32 2147483647, %v5670_v1  ;;  %v11858_v8 = vadd.f32 -1.0, %v14909_v25  ;;  %vm14911_vm4 = vcmp.gt.f32.partialorder %v14861_v53, 0.5  ;;  %v5632_v42 = vmul.f32 2.0, %v5386_v56  ;;  %v14954_v1 = vld [vmem:[#allocation31_spill] sm:$0xff] }
 0x340   : > { %vm11866_vm0 = vmand %vm11841_vm13, %vm14911_vm4  ;;  %v5671_v40 = vsub.f32 %v11722_v19, %v5630_v36  ;;  %v5467_v59 = vsub.f32 %v11732_v18, %v5426_v29  ;;  %v5224_v41 = vmul.f32 0.5, %v5182_v2  ;;  %v5183_v19 = vadd.f32 0.5, %v11849_v38 }
 0x341   : > { %v11851_v50 = vpop.f32.mrb[12].mxu1  ;;  %vm11890_vm13 = vmand %vm902_vm12, %vm943_vm15  ;;  %v11894_v28 = vand.u32 2147483647, %v5466_v62  ;;  %v5672_v56 = vsub.f32 %v11739_v15, %v5631_v61  ;;  %v5387_v18 = vfloor.f32 %v5346_v63  ;;  %v14919_v29 = vrot.slane %v10860_v16, 2 }
 0x342   : > { %14908 = vst [vmem:[#allocation32_spill] sm:$0xff] %v11851_v50  ;;  %v7468_v58 = vpop.f32.mrb[13].mxu1  ;;  %vm11904_vm4 = vmand %vm14920_vm5, %vm944_vm11  ;;  %v5468_v2 = vsub.f32 %v11749_v24, %v5427_v37  ;;  %v5428_v62 = vmul.f32 2.0, %v5264_v57  ;;  %v5184_v15 = vadd.f32 0.5, %v11858_v8  ;;  %vm14923_vm12 = vcmp.gt.f32.partialorder %v14864_v27, 0.5  ;;  %v14926_v24 = vld [vmem:[#allocation30_spill] sm:$0xff] }
 0x343   : > { %v11860_v3 = vpop.f32.mrb[14].mxu1  ;;  %v11883_v58 = vadd.f32 -1.0, %v14916_v33  ;;  %vm11915_vm15 = vmand %vm11877_vm2, %vm14923_vm12  ;;  %v11919_v14 = vand.u32 2147483647, %v5671_v40  ;;  %v5673_v61 = vsub.f32 %v11755_v22, %v5632_v42  ;;  %v11924_v63 = vadd.f32 -1.0, %v14926_v24  ;;  %v14967_v50 = vld [vmem:[#allocation34_spill] sm:$0xff] }
 0x344   : > { %14910 = vst [vmem:[#allocation36_spill] sm:$0xff] %v11860_v3  ;;  %v7469_v54 = vpop.f32.mrb[15].mxu1  ;;  %vm14927_vm5 = vcmp.gt.f32.partialorder %v14868_v46, 0.5  ;;  %v11934_v37 = vand.u32 2147483647, %v5467_v59  ;;  %v5265_v57 = vfloor.f32 %v5224_v41  ;;  %vm14931_vm2 = vcmp.gt.f32.partialorder %v14875_v43, 0.5 }
 0x345   : > { %v5347_v54 = vmul.f32 0.5, %v5306_v47  ;;  %vm11930_vm10 = vmand %vm11890_vm13, %vm14927_vm5  ;;  %v5225_v47 = vmul.f32 0.5, %v5183_v19  ;;  %v5307_v40 = vadd.f32 0.5, %v11883_v58  ;;  %v11947_v23 = vand.u32 2147483647, %v5672_v56  ;;  %v14934_v59 = vld [vmem:[#allocation29_spill] sm:$0xff] }
 0x346   : > { %7635 = vmatmul.mubr.bf16.gmra.mrb[80].mxu1 %v14919_v29  ;;  %8035 = vmatmul.mubr.bf16.gmra.mrb[80].mxu0 %v11686_v4  ;;  %vm11943_vm12 = vmand %vm11904_vm4, %vm14931_vm2  ;;  %v5633_v36 = vmul.f32 2.0, %v5387_v18  ;;  %v11951_v41 = vadd.f32 -1.0, %v14934_v59  ;;  %v11961_v30 = vand.u32 2147483647, %v5468_v2  ;;  %v5469_v56 = vsub.f32 %v11779_v39, %v5428_v62 }
 0x347   : > { %vm11957_vm5 = vmand %vm904_vm9, %vm945_vm14  ;;  %v5226_v18 = vmul.f32 0.5, %v5184_v15  ;;  %vm14938_vm4 = vcmp.lt.f32.partialorder %v14861_v53, 16.5  ;;  %vm14942_vm14 = vcmp.lt.f32.partialorder %v14864_v27, 16.5  ;;  %v14943_v39 = vmov 0 }
 0x348   : > { %vm11970_vm2 = vmand %vm11866_vm0, %vm14938_vm4  ;;  %v14947_v53 = vmov 0  ;;  %vm14950_vm9 = vcmp.lt.f32.partialorder %v14886_v44, 16.5  ;;  %v12001_v17 = vand.u32 2147483647, %v5673_v61  ;;  %v5185_v46 = vadd.f32 0.5, %v11924_v63  ;;  %v14960_v61 = vld [vmem:[#allocation33_spill] sm:$0xff] }
 0x349   : > { %v11937_v22 = vpop.f32.mrb[16].mxu1  ;;  %vm11979_vm13 = vmand %vm11915_vm15, %vm14942_vm14  ;;  %v12006_v2 = vadd.f32 -1.0, %v14954_v1  ;;  %v5266_v15 = vfloor.f32 %v5225_v47  ;;  %v5348_v16 = vmul.f32 0.5, %v5307_v40  ;;  %v12017_v4 = vadd.f32 -1.0, %v14960_v61  ;;  %v14983_v61 = vld [vmem:[#allocation38_spill] sm:$0xff] }
 0x34a   : > { %14930 = vst [vmem:[#allocation42_spill] sm:$0xff] %v11937_v22  ;;  %v7472_v19 = vpop.f32.mrb[17].mxu1  ;;  %v5388_v22 = vfloor.f32 %v5347_v54  ;;  %v14944_v39 = vsel %vm11979_vm13, 4294967295, %v14943_v39  ;;  %vm11988_vm0 = vmand %vm11930_vm10, %vm14946_vm7  ;;  %vm14956_vm7 = vcmp.lt.f32.partialorder %v14891_v10, 16.5  ;;  %vm14957_vm10 = vcmp.gt.f32.partialorder %v14891_v10, 0.5 }
 0x34b   : > { %v11964_v3 = vpop.f32.mrb[18].mxu1  ;;  %v14939_v19 = vmov 0  ;;  %14945 = vst [vmem:[#allocation56_spill] sm:$0xff] %v14944_v39  ;;  %v14948_v53 = vsel %vm11988_vm0, 4294967295, %v14947_v53  ;;  %vm11997_vm15 = vmand %vm14951_vm8, %vm14950_vm9  ;;  %v5429_v54 = vmul.f32 2.0, %v5265_v57  ;;  %vm14961_vm8 = vcmp.gt.f32.partialorder %v14884_v31, 0.5 }
 0x34c   : > { %14937 = vst [vmem:[#allocation47_spill] sm:$0xff] %v11964_v3  ;;  %v14940_v19 = vsel %vm11970_vm2, 4294967295, %v14939_v19  ;;  %14949 = vst [vmem:[#allocation66_spill] sm:$0xff] %v14948_v53  ;;  %v7473_v62 = vpop.f32.mrb[19].mxu1  ;;  %v5674_v10 = vsub.f32 %v11799_v52, %v5633_v36  ;;  %v5308_v57 = vadd.f32 0.5, %v11951_v41  ;;  %vm14964_vm11 = vcmp.gt.f32.partialorder %v14888_v45, 0.5 }
 0x34d   : > { %14941 = vst [vmem:[#allocation52_spill] sm:$0xff] %v14940_v19  ;;  %14955 = vst [vmem:[#allocation70_spill] sm:$0xff] %v12006_v2  ;;  %v12039_v40 = vand.u32 2147483647, %v5469_v56  ;;  %v5634_v29 = vmul.f32 2.0, %v5388_v22  ;;  %v5267_v3 = vfloor.f32 %v5226_v18  ;;  %v12042_v52 = vadd.f32 -1.0, %v14967_v50 }
 0x34e   : > { %vm12012_vm4 = vmand %vm14957_vm10, %vm14956_vm7  ;;  %v14969_v36 = vmov 0  ;;  %vm14971_vm10 = vcmp.gt.f32.partialorder %v14893_v9, 0.5  ;;  %v5186_v42 = vadd.f32 0.5, %v12006_v2  ;;  %v14974_v56 = vld [vmem:[#allocation35_spill] sm:$0xff]  ;;  %v5470_v44 = vsub.f32 %v11816_v7, %v5429_v54  ;;  %v14984_v7 = vld [vmem:[#allocation37_spill] sm:$0xff] }
 0x34f   : > { %vm12023_vm9 = vmand %vm11957_vm5, %vm14961_vm8  ;;  %vm14968_vm5 = vcmp.lt.f32.partialorder %v14875_v43, 16.5  ;;  %v5227_v43 = vmul.f32 0.5, %v5185_v46  ;;  %v12066_v18 = vadd.f32 -1.0, %v14974_v56  ;;  %v5389_v5 = vfloor.f32 %v5348_v16  ;;  %v15019_v53 = vld [vmem:[#allocation40_spill] sm:$0xff] }
 0x350   : > { %vm12035_vm14 = vmand %vm11997_vm15, %vm14964_vm11  ;;  %v5430_v32 = vmul.f32 2.0, %v5266_v15  ;;  %v5309_v60 = vadd.f32 0.5, %v12017_v4  ;;  %v14981_v50 = vmov 0  ;;  %v5349_v56 = vmul.f32 0.5, %v5308_v57 }
 0x351   : > { %vm12048_vm8 = vmand %vm11943_vm12, %vm14968_vm5  ;;  %vm14975_vm12 = vcmp.lt.f32.partialorder %v14897_v13, 16.5  ;;  %vm14976_vm5 = vcmp.gt.f32.partialorder %v14897_v13, 0.5  ;;  %v12078_v46 = vpop.f32.mrb[20].mxu1  ;;  %v12088_v13 = vand.u32 2147483647, %v5674_v10  ;;  %v12091_v2 = vadd.f32 -1.0, %v14983_v61 }
 0x352   : > { %v14970_v36 = vsel %vm12048_vm8, 4294967295, %v14969_v36  ;;  %vm12059_vm3 = vmand %vm12012_vm4, %vm14971_vm10  ;;  %14979 = vst [vmem:[#allocation80_spill] sm:$0xff] %v12078_v46  ;;  %vm14980_vm4 = vcmp.lt.f32.partialorder %v14884_v31, 16.5  ;;  %v12094_v54 = vadd.f32 -1.0, %v14984_v7  ;;  %v7476_v15 = vpop.f32.mrb[21].mxu1  ;;  %v14986_v31 = vmov 0 }
 0x353   : > { %vm12072_vm7 = vmand %vm14976_vm5, %vm14975_vm12  ;;  %vm14985_vm12 = vcmp.lt.f32.partialorder %v14888_v45, 16.5  ;;  %v5675_v16 = vsub.f32 %v11824_v20, %v5634_v29  ;;  %v5431_v62 = vmul.f32 2.0, %v5267_v3  ;;  %v5310_v10 = vadd.f32 0.5, %v12042_v52  ;;  %v12107_v57 = vpop.f32.mrb[22].mxu1 }
 0x354   : > { %vm12084_vm10 = vmand %vm12023_vm9, %vm14980_vm4  ;;  %14988 = vst [vmem:[#allocation86_spill] sm:$0xff] %v12107_v57  ;;  %vm14989_vm4 = vcmp.lt.f32.partialorder %v14893_v9, 16.5  ;;  %v14990_v45 = vmov 0  ;;  %v5268_v9 = vfloor.f32 %v5227_v43  ;;  %v5228_v20 = vmul.f32 0.5, %v5186_v42  ;;  %v7477_v29 = vpop.f32.mrb[23].mxu1 }
 0x355   : > { %v14982_v50 = vsel %vm12084_vm10, 4294967295, %v14981_v50  ;;  %vm12100_vm5 = vmand %vm12035_vm14, %vm14985_vm12  ;;  %vm14992_vm12 = vcmp.gt.f32.partialorder %v14901_v48, 0.5  ;;  %v5187_v47 = vadd.f32 0.5, %v12066_v18  ;;  %v12137_v27 = vand.u32 2147483647, %v5470_v44  ;;  %v15003_v29 = vld [vmem:[#allocation39_spill] sm:$0xff] }
 0x356   : > { %v14987_v31 = vsel %vm12100_vm5, 4294967295, %v14986_v31  ;;  %vm12113_vm15 = vmand %vm12059_vm3, %vm14989_vm4  ;;  %vm14995_vm3 = vcmp.lt.f32.partialorder %v14903_v55, 16.5  ;;  %vm14996_vm4 = vcmp.gt.f32.partialorder %v14903_v55, 0.5  ;;  %v5471_v15 = vsub.f32 %v11849_v38, %v5430_v32 }
 0x357   : > { %v14991_v45 = vsel %vm12113_vm15, 4294967295, %v14990_v45  ;;  %vm12122_vm11 = vmand %vm12072_vm7, %vm14992_vm12  ;;  %v5635_v57 = vmul.f32 2.0, %v5389_v5  ;;  %v5350_v46 = vmul.f32 0.5, %v5309_v60  ;;  %vm14999_vm7 = vcmp.lt.f32.partialorder %v14907_v49, 16.5 }
 0x358   : > { %vm12133_vm14 = vmand %vm14996_vm4, %vm14995_vm3  ;;  %vm15000_vm12 = vcmp.gt.f32.partialorder %v14907_v49, 0.5  ;;  %v5390_v42 = vfloor.f32 %v5349_v56  ;;  %v5311_v55 = vadd.f32 0.5, %v12091_v2  ;;  %v12150_v61 = vadd.f32 -1.0, %v15003_v29 }
 0x359   : > { %vm12144_vm6 = vmand %vm15000_vm12, %vm14999_vm7  ;;  %v5188_v44 = vadd.f32 0.5, %v12094_v54  ;;  %vm15004_vm3 = vcmp.lt.f32.partialorder %v11772_v6, 0.5  ;;  %vm15007_vm12 = vcmp.lt.f32.partialorder %v11801_v12, 0.5  ;;  %vm15010_vm15 = vcmp.lt.f32.partialorder %v11821_v35, 0.5 }
 0x35a   : > { %vm12157_vm4 = vmand %vm11970_vm2, %vm15004_vm3  ;;  %v15011_v6 = vmov 0  ;;  %vm15013_vm2 = vcmp.lt.f32.partialorder %v14901_v48, 16.5  ;;  %v15014_v12 = vmov 0  ;;  %v12188_v60 = vand.u32 2147483647, %v5675_v16 }
 0x35b   : > { %vm12166_vm9 = vmand %vm11979_vm13, %vm15007_vm12  ;;  %v5472_v35 = vsub.f32 %v11858_v8, %v5431_v62  ;;  %v5351_v49 = vmul.f32 0.5, %v5310_v10  ;;  %v5432_v48 = vmul.f32 2.0, %v5268_v9  ;;  %v5269_v56 = vfloor.f32 %v5228_v20  ;;  %v12213_v9 = vpop.f32.mrb[24].mxu1 }
 0x35c   : > { %vm12175_vm3 = vmand %vm11988_vm0, %vm15010_vm15  ;;  %vm15016_vm15 = vcmp.gt.f32.partialorder %v14904_v26, 0.5  ;;  %v5229_v3 = vmul.f32 0.5, %v5187_v47  ;;  %v12201_v39 = vadd.f32 -1.0, %v15019_v53  ;;  %v5512_v16 = vand.u32 2147483647, %v5471_v15  ;;  %15023 = vst [vmem:[#allocation93_spill] sm:$0xff] %v12213_v9 }
 0x35d   : > { %v15012_v6 = vsel %vm12175_vm3, 4294967295, %v15011_v6  ;;  %vm12184_vm12 = vmand %vm12122_vm11, %vm15013_vm2  ;;  %vm15020_vm11 = vcmp.gt.f32.partialorder %v14916_v33, 0.5  ;;  %v5676_v62 = vsub.f32 %v11883_v58, %v5635_v57  ;;  %v5391_v10 = vfloor.f32 %v5350_v46  ;;  %v7480_v29 = vpop.f32.mrb[25].mxu1  ;;  %v15040_v57 = vld [vmem:[#allocation43_spill] sm:$0xff]  ;;  %v15076_v9 = vld [vmem:[#allocation44_spill] sm:$0xff] }
 0x35e   : > { %v15015_v12 = vsel %vm12184_vm12, 4294967295, %v15014_v12  ;;  %vm12196_vm7 = vmand %vm12133_vm14, %vm15016_vm15  ;;  %vm15024_vm14 = vcmp.lt.f32.partialorder %v14909_v25, 16.5  ;;  %vm15025_vm15 = vcmp.gt.f32.partialorder %v14909_v25, 0.5  ;;  %v5636_v47 = vmul.f32 2.0, %v5390_v42  ;;  %v12263_v42 = vpop.f32.mrb[26].mxu1 }
 0x35f   : > { %vm12208_vm1 = vmand %vm12144_vm6, %vm15020_vm11  ;;  %v5352_v22 = vmul.f32 0.5, %v5311_v55  ;;  %v5230_v43 = vmul.f32 0.5, %v5188_v44  ;;  %v5312_v19 = vadd.f32 0.5, %v12150_v61  ;;  %vm15028_vm6 = vcmp.lt.f32.partialorder %v11831_v11, 0.5  ;;  %15041 = vst [vmem:[#allocation95_spill] sm:$0xff] %v12263_v42 }
 0x360   : > { %vm12219_vm0 = vmand %vm15025_vm15, %vm15024_vm14  ;;  %vm15031_vm14 = vcmp.lt.f32.partialorder %v11894_v28, 0.5  ;;  %v15032_v25 = vmov 0  ;;  %vm15034_vm3 = vcmp.lt.f32.partialorder %v11934_v37, 0.5  ;;  %v15035_v11 = vmov 0 }
 0x361   : > { %vm12228_vm11 = vmand %vm12048_vm8, %vm15028_vm6  ;;  %vm15037_vm8 = vcmp.lt.f32.partialorder %v14904_v26, 16.5  ;;  %v15038_v28 = vmov 0  ;;  %v5513_v46 = vand.u32 2147483647, %v5472_v35  ;;  %v5392_v37 = vfloor.f32 %v5351_v49  ;;  %v7481_v49 = vpop.f32.mrb[27].mxu1 }
 0x362   : > { %vm12237_vm15 = vmand %vm12084_vm10, %vm15031_vm14  ;;  %v12261_v15 = vadd.f32 -1.0, %v15040_v57  ;;  %v15043_v26 = vmov 0  ;;  %v5473_v55 = vsub.f32 %v11924_v63, %v5432_v48  ;;  %v5433_v29 = vmul.f32 2.0, %v5269_v56 }
 0x363   : > { %v15033_v25 = vsel %vm12237_vm15, 4294967295, %v15032_v25  ;;  %vm12246_vm6 = vmand %vm12100_vm5, %vm15034_vm3  ;;  %vm15042_vm3 = vcmp.lt.f32.partialorder %v14916_v33, 16.5  ;;  %v5270_v44 = vfloor.f32 %v5229_v3  ;;  %v5189_v35 = vadd.f32 0.5, %v12201_v39  ;;  %v15075_v33 = vld [vmem:[#allocation35_spill] sm:$0xff] }
 0x364   : > { %v15036_v11 = vsel %vm12246_vm6, 4294967295, %v15035_v11  ;;  %vm12255_vm14 = vmand %vm12196_vm7, %vm15037_vm8  ;;  %v12275_v38 = vand.u32 2147483647, %v5676_v62  ;;  %vm15046_vm7 = vcmp.gt.f32.partialorder %v14934_v59, 0.5  ;;  %v5637_v8 = vmul.f32 2.0, %v5391_v10 }
 0x365   : > { %v15039_v28 = vsel %vm12255_vm14, 4294967295, %v15038_v28  ;;  %vm12269_vm2 = vmand %vm12208_vm1, %vm15042_vm3  ;;  %v5677_v63 = vsub.f32 %v11951_v41, %v5636_v47  ;;  %vm15049_vm3 = vcmp.lt.f32.partialorder %v14926_v24, 16.5  ;;  %vm15050_vm5 = vcmp.gt.f32.partialorder %v14926_v24, 0.5 }
 0x366   : > { %v15044_v26 = vsel %vm12269_vm2, 4294967295, %v15043_v26  ;;  %vm12281_vm13 = vmand %vm12219_vm0, %vm15046_vm7  ;;  %v5393_v56 = vfloor.f32 %v5352_v22  ;;  %v5271_v3 = vfloor.f32 %v5230_v43  ;;  %v5353_v62 = vmul.f32 0.5, %v5312_v19  ;;  %v15060_v19 = vld [vmem:[#allocation41_spill] sm:$0xff]  ;;  %v15070_v43 = vld [vmem:[#allocation70_spill] sm:$0xff] }
 0x367   : > { %15045 = vst [vmem:[#allocation102_spill] sm:$0xff] %v15044_v26  ;;  %vm12291_vm8 = vmand %vm15050_vm5, %vm15049_vm3  ;;  %vm15053_vm0 = vcmp.lt.f32.partialorder %v11961_v30, 0.5  ;;  %vm15054_vm7 = vnez %v14991_v45  ;;  %vm15057_vm6 = vcmp.lt.f32.partialorder %v12039_v40, 0.5  ;;  %v5638_v41 = vmul.f32 2.0, %v5392_v37 }
 0x368   : > { %vm12299_vm10 = vmand %vm15054_vm7, %vm15053_vm0  ;;  %v5313_v30 = vadd.f32 0.5, %v12261_v15  ;;  %v12315_v20 = vadd.f32 -1.0, %v15060_v19  ;;  %vm15061_vm0 = vcmp.lt.f32.partialorder %v12137_v27, 0.5  ;;  %vm15067_vm15 = vcmp.lt.f32.partialorder %v14934_v59, 16.5 }
 0x369   : > { %vm12308_vm5 = vmand %vm12184_vm12, %vm15057_vm6  ;;  %vm15064_vm12 = vcmp.lt.f32.partialorder %v5512_v16, 0.5  ;;  %v15068_v27 = vmov 0  ;;  %v5514_v22 = vand.u32 2147483647, %v5473_v55  ;;  %v5474_v37 = vsub.f32 %v15070_v43, %v5433_v29  ;;  %v15071_v16 = vld [vmem:[#allocation33_spill] sm:$0xff]  ;;  %v12356_v29 = vpop.f32.mrb[28].mxu1 }
 0x36a   : > { %vm12321_vm1 = vmand %vm12255_vm14, %vm15061_vm0  ;;  %v5434_v49 = vmul.f32 2.0, %v5270_v44  ;;  %v5231_v42 = vmul.f32 0.5, %v5189_v35  ;;  %v5678_v59 = vsub.f32 %v12017_v4, %v5637_v8  ;;  %v12354_v55 = vadd.f32 -1.0, %v15076_v9  ;;  %15077 = vst [vmem:[#allocation106_spill] sm:$0xff] %v12356_v29  ;;  %v7484_v48 = vpop.f32.mrb[29].mxu1 }
 0x36b   : > { %vm12329_vm3 = vmand %vm12269_vm2, %vm15064_vm12  ;;  %vm15072_vm12 = vcmp.gt.f32.partialorder %v15071_v16, 0.5  ;;  %v15079_v44 = vmov 0  ;;  %v15082_v4 = vmov 0  ;;  %vm15085_vm2 = vnez %v15012_v6  ;;  %v12400_v43 = vpop.f32.mrb[30].mxu1 }
 0x36c   : > { %vm12337_vm7 = vmand %vm12281_vm13, %vm15067_vm15  ;;  %vm15078_vm15 = vcmp.lt.f32.partialorder %v11791_v21, 0.5  ;;  %vm15084_vm13 = vcmp.lt.f32.partialorder %v11829_v0, 0.5  ;;  %v15086_v21 = vmov 0  ;;  %v5718_v32 = vand.u32 2147483647, %v5677_v63  ;;  %15095 = vst [vmem:[#allocation71_spill] sm:$0xff] %v12400_v43 }
 0x36d   : > { %v15069_v27 = vsel %vm12337_vm7, 4294967295, %v15068_v27  ;;  %vm12347_vm6 = vmand %vm12291_vm8, %vm15072_vm12  ;;  %vm15081_vm8 = vcmp.lt.f32.partialorder %v11812_v51, 0.5  ;;  %v5639_v5 = vmul.f32 2.0, %v5393_v56  ;;  %v5394_v35 = vfloor.f32 %v5353_v62  ;;  %v7485_v62 = vpop.f32.mrb[31].mxu1  ;;  %v15123_v51 = vld [vmem:[#allocation48_spill] sm:$0xff] }
 0x36e   : > { %vm12362_vm0 = vmand %vm12157_vm4, %vm15078_vm15  ;;  %vm15088_vm4 = vcmp.lt.f32.partialorder %v14954_v1, 16.5  ;;  %vm15089_vm15 = vcmp.gt.f32.partialorder %v14954_v1, 0.5  ;;  %v5435_v8 = vmul.f32 2.0, %v5271_v3  ;;  %v5679_v6 = vsub.f32 %v12042_v52, %v5638_v41 }
 0x36f   : > { %v15080_v44 = vsel %vm12362_vm0, 4294967295, %v15079_v44  ;;  %vm12370_vm12 = vmand %vm12166_vm9, %vm15081_vm8  ;;  %vm15092_vm9 = vcmp.lt.f32.partialorder %v5513_v46, 0.5  ;;  %v5354_v1 = vmul.f32 0.5, %v5313_v30  ;;  %v5190_v63 = vadd.f32 0.5, %v12315_v20  ;;  %v15100_v30 = vld [vmem:[#allocation34_spill] sm:$0xff] }
 0x370   : > { %v15083_v4 = vsel %vm12370_vm12, 4294967295, %v15082_v4  ;;  %vm12378_vm14 = vmand %vm15085_vm2, %vm15084_vm13  ;;  %vm15096_vm8 = vcmp.lt.f32.partialorder %v15071_v16, 16.5  ;;  %v15097_v46 = vmov 0  ;;  %v5515_v56 = vand.u32 2147483647, %v5474_v37 }
 0x371   : > { %v15087_v21 = vsel %vm12378_vm14, 4294967295, %v15086_v21  ;;  %vm12386_vm0 = vmand %vm15089_vm15, %vm15088_vm4  ;;  %v5475_v3 = vsub.f32 %v12066_v18, %v5434_v49  ;;  %v5272_v52 = vfloor.f32 %v5231_v42  ;;  %v5719_v41 = vand.u32 2147483647, %v5678_v59 }
 0x372   : > { %vm12393_vm2 = vmand %vm12337_vm7, %vm15092_vm9  ;;  %vm15101_vm9 = vcmp.gt.f32.partialorder %v15100_v30, 0.5  ;;  %v5314_v26 = vadd.f32 0.5, %v12354_v55  ;;  %vm15104_vm15 = vcmp.lt.f32.partialorder %v11853_v34, 0.5  ;;  %v15105_v18 = vmov 0 }
 0x373   : > { %vm12406_vm4 = vmand %vm12347_vm6, %vm15096_vm8  ;;  %vm15107_vm14 = vcmp.lt.f32.partialorder %v11919_v14, 0.5  ;;  %v15109_v42 = vmov 0  ;;  %vm15111_vm6 = vcmp.lt.f32.partialorder %v11947_v23, 0.5  ;;  %vm15112_vm8 = vnez %v15036_v11  ;;  %v15119_v23 = vld [vmem:[#allocation45_spill] sm:$0xff] }
 0x374   : > { %v15098_v46 = vsel %vm12406_vm4, 4294967295, %v15097_v46  ;;  %vm12415_vm13 = vmand %vm12386_vm0, %vm15101_vm9  ;;  %vm15108_vm0 = vnez %v15033_v25  ;;  %v15113_v34 = vmov 0  ;;  %v5680_v58 = vsub.f32 %v12091_v2, %v5639_v5  ;;  %v15128_v5 = vld [vmem:[#allocation38_spill] sm:$0xff]  ;;  %v15160_v14 = vld [vmem:[#allocation49_spill] sm:$0xff] }
 0x375   : > { %15099 = vst [vmem:[#allocation69_spill] sm:$0xff] %v15098_v46  ;;  %vm12426_vm7 = vmand %vm12228_vm11, %vm15104_vm15  ;;  %vm15115_vm11 = vcmp.lt.f32.partialorder %v15075_v33, 16.5  ;;  %vm15116_vm15 = vcmp.gt.f32.partialorder %v15075_v33, 0.5  ;;  %v5476_v25 = vsub.f32 %v12094_v54, %v5435_v8  ;;  %v5640_v37 = vmul.f32 2.0, %v5394_v35 }
 0x376   : > { %v15106_v18 = vsel %vm12426_vm7, 4294967295, %v15105_v18  ;;  %vm12434_vm9 = vmand %vm15108_vm0, %vm15107_vm14  ;;  %v12457_v49 = vadd.f32 -1.0, %v15119_v23  ;;  %vm15120_vm14 = vcmp.lt.f32.partialorder %v5514_v22, 0.5  ;;  %v5720_v16 = vand.u32 2147483647, %v5679_v6  ;;  %v12487_v6 = vpop.f32.mrb[32].mxu1 }
 0x377   : > { %v15110_v42 = vsel %vm12434_vm9, 4294967295, %v15109_v42  ;;  %vm12442_vm12 = vmand %vm15112_vm8, %vm15111_vm6  ;;  %v5395_v59 = vfloor.f32 %v5354_v1  ;;  %v5232_v33 = vmul.f32 0.5, %v5190_v63  ;;  %v12467_v62 = vadd.f32 -1.0, %v15123_v51  ;;  %15132 = vst [vmem:[#allocation76_spill] sm:$0xff] %v12487_v6  ;;  %v15199_v6 = vld [vmem:[#allocation64_spill] sm:$0xff] }
 0x378   : > { %v15114_v34 = vsel %vm12442_vm12, 4294967295, %v15113_v34  ;;  %vm12450_vm7 = vmand %vm15116_vm15, %vm15115_vm11  ;;  %vm15124_vm0 = vcmp.lt.f32.partialorder %v15100_v30, 16.5  ;;  %v15125_v2 = vmov 0  ;;  %vm5556_vm15 = vcmp.lt.f32.partialorder %v5515_v56, 0.5  ;;  %v7488_v30 = vpop.f32.mrb[33].mxu1  ;;  %v15159_v56 = vld [vmem:[#allocation46_spill] sm:$0xff] }
 0x379   : > { %vm12462_vm6 = vmand %vm12406_vm4, %vm15120_vm14  ;;  %v5516_v54 = vand.u32 2147483647, %v5475_v3  ;;  %v5436_v22 = vmul.f32 2.0, %v5272_v52  ;;  %vm15129_vm4 = vcmp.gt.f32.partialorder %v15128_v5, 0.5  ;;  %v5355_v8 = vmul.f32 0.5, %v5314_v26  ;;  %v12546_v48 = vpop.f32.mrb[34].mxu1 }
 0x37a   : > { %vm12473_vm11 = vmand %vm12415_vm13, %vm15124_vm0  ;;  %vm15133_vm13 = vcmp.lt.f32.partialorder %v12001_v17, 0.5  ;;  %v5721_v3 = vand.u32 2147483647, %v5680_v58  ;;  %vm15139_vm8 = vcmp.lt.f32.partialorder %v14984_v7, 16.5  ;;  %vm15140_vm9 = vcmp.gt.f32.partialorder %v14984_v7, 0.5  ;;  %15154 = vst [vmem:[#allocation84_spill] sm:$0xff] %v12546_v48 }
 0x37b   : > { %v15126_v2 = vsel %vm12473_vm11, 4294967295, %v15125_v2  ;;  %vm12481_vm12 = vmand %vm12450_vm7, %vm15129_vm4  ;;  %vm15136_vm7 = vcmp.lt.f32.partialorder %v12088_v13, 0.5  ;;  %v5517_v10 = vand.u32 2147483647, %v5476_v25  ;;  %v5681_v52 = vsub.f32 %v12150_v61, %v5640_v37  ;;  %v7489_v25 = vpop.f32.mrb[35].mxu1  ;;  %v15207_v1 = vld [vmem:[#allocation112_spill] sm:$0xff] }
 0x37c   : > { %15127 = vst [vmem:[#allocation77_spill] sm:$0xff] %v15126_v2  ;;  %vm12493_vm0 = vmand %vm12299_vm10, %vm15133_vm13  ;;  %v5191_v13 = vadd.f32 0.5, %v12457_v49  ;;  %vm15143_vm10 = vcmp.lt.f32.partialorder %v12188_v60, 0.5  ;;  %vm15146_vm13 = vcmp.lt.f32.partialorder %v12275_v38, 0.5  ;;  %v15150_v61 = vmov 0  ;;  %v15185_v25 = vld [vmem:[#allocation53_spill] sm:$0xff] }
 0x37d   : > { %vm12501_vm4 = vmand %vm12308_vm5, %vm15136_vm7  ;;  %v5641_v38 = vmul.f32 2.0, %v5395_v59  ;;  %v5273_v40 = vfloor.f32 %v5232_v33  ;;  %v5315_v47 = vadd.f32 0.5, %v12467_v62  ;;  %v5477_v0 = vsub.f32 %v12201_v39, %v5436_v22 }
 0x37e   : > { %vm12509_vm14 = vmand %vm15140_vm9, %vm15139_vm8  ;;  %vm15149_vm8 = vcmp.lt.f32.partialorder %v5718_v32, 0.5  ;;  %v15156_v32 = vmov 0  ;;  %v12558_v26 = vadd.f32 -1.0, %v15159_v56  ;;  %v12561_v58 = vadd.f32 -1.0, %v15160_v14 }
 0x37f   : > { %vm12519_vm5 = vmand %vm12321_vm1, %vm15143_vm10  ;;  %v15161_v37 = vmov 0   ;;  %v15166_v22 = vmov 0  ;;  %v5682_v35 = vsub.f32 %v12261_v15, %v5641_v38  ;;  %v5356_v17 = vmul.f32 0.5, %v5315_v47  ;;  %v15206_v47 = vld [vmem:[#allocation51_spill] sm:$0xff] }
 0x380   : > { %vm12527_vm9 = vmand %vm12329_vm3, %vm15146_vm13  ;;  %vm15155_vm3 = vcmp.lt.f32.partialorder %v15128_v5, 16.5  ;;  %v5233_v5 = vmul.f32 0.5, %v5191_v13  ;;  %v5192_v13 = vadd.f32 0.5, %v12558_v26  ;;  %v5316_v60 = vadd.f32 0.5, %v12561_v58 }
 0x381   : > { %vm12534_vm7 = vmand %vm12393_vm2, %vm15149_vm8  ;;  %vm15164_vm8 = vnez %v15087_v21  ;;  %v12624_v48 = vadd.f32 -1.0, %v15185_v25  ;;  %v12707_v63 = vsel %vm12519_vm5, 1, %v15161_v37 }
 0x382   : > { %v15151_v61 = vsel %vm12534_vm7, 4294967295, %v15150_v61  ;;  %vm12541_vm1 = vmand %vm12473_vm11, %vm5556_vm15  ;;  %vm15162_vm15 = vnez %v15080_v44  ;;  %v12576_v39 = vsel %vm15164_vm8, 1, %v15161_v37  ;;  %v15168_v44 = vld [vmem:[#allocation39_spill] sm:$0xff]  ;;  %vm5762_vm8 = vcmp.lt.f32.partialorder %v5721_v3, 0.5 }
 0x383   : > { %vm12552_vm2 = vmand %vm12481_vm12, %vm15155_vm3  ;;  %v12566_v59 = vsel %vm15162_vm15, 1, %v15161_v37  ;;  %vm15163_vm12 = vnez %v15083_v4  ;;  %vm15165_vm3 = vcmp.lt.f32.partialorder %v5719_v41, 0.5  ;;  %vm15169_vm15 = vcmp.gt.f32.partialorder %v15168_v44, 0.5 }
 0x384   : > { %v15157_v32 = vsel %vm12552_vm2, 4294967295, %v15156_v32  ;;  %v12571_v33 = vsel %vm15163_vm12, 1, %v15161_v37  ;;  %vm12581_vm13 = vmand %vm12462_vm6, %vm15165_vm3  ;;  %v5396_v4 = vfloor.f32 %v5355_v8  ;;  %vm15170_vm12 = vcmp.lt.f32.partialorder %v5720_v16, 0.5 }
 0x385   : > { %15158 = vst [vmem:[#allocation83_spill] sm:$0xff] %v15157_v32  ;;  %v15167_v22 = vsel %vm12581_vm13, 4294967295, %v15166_v22  ;;  %vm1039_vm10 = vmand %vm12509_vm14, %vm15169_vm15  ;;  %v5722_v41 = vand.u32 2147483647, %v5681_v52  ;;  %vm15173_vm6 = vcmp.lt.f32.partialorder %v15019_v53, 16.5  ;;  %vm15174_vm3 = vcmp.gt.f32.partialorder %v15019_v53, 0.5 }
 0x386   : > { %vm12592_vm11 = vmand %vm12541_vm1, %vm15170_vm12  ;;  %vm15177_vm14 = vcmp.lt.f32.partialorder %v5516_v54, 0.5  ;;  %v5437_v8 = vmul.f32 2.0, %v5273_v40  ;;  %v15180_v52 = vld [vmem:[#allocation50_spill] sm:$0xff]  ;;  %vm15181_vm1 = vcmp.lt.f32.partialorder %v15168_v44, 16.5  ;;  %v15182_v53 = vmov 0 }
 0x387   : > { %vm12600_vm13 = vmand %vm15174_vm3, %vm15173_vm6  ;;  %v12613_v30 = vadd.f32 -1.0, %v15180_v52  ;;  %v5518_v54 = vand.u32 2147483647, %v5477_v0  ;;  %vm15186_vm6 = vnez %v15106_v18  ;;  %vm15187_vm3 = vnez %v15110_v42  ;;  %v12649_v0 = vpop.f32.mrb[36].mxu1 }
 0x388   : > { %vm12607_vm15 = vmand %vm12552_vm2, %vm15177_vm14  ;;  %v12629_v15 = vsel %vm15186_vm6, 1, %v15161_v37  ;;  %v12634_v38 = vsel %vm15187_vm3, 1, %v15161_v37  ;;  %vm15189_vm14 = vcmp.gt.f32.partialorder %v15040_v57, 0.5  ;;  %v5642_v18 = vmul.f32 2.0, %v5396_v4  ;;  %15192 = vst [vmem:[#allocation116_spill] sm:$0xff] %v12649_v0  ;;  %v7492_v44 = vpop.f32.mrb[37].mxu1 }
 0x389   : > { %vm12617_vm12 = vmand %vm1039_vm10, %vm15181_vm1  ;;  %vm15188_vm10 = vnez %v15114_v34  ;;  %vm957_vm7 = vcmp.lt.f32.partialorder %v15060_v19, 16.5  ;;  %v5274_v34 = vfloor.f32 %v5233_v5  ;;  %v5723_v3 = vand.u32 2147483647, %v5682_v35  ;;  %v12669_v32 = vpop.f32.mrb[38].mxu1 }
 0x38a   : > { %v15183_v53 = vsel %vm12617_vm12, 4294967295, %v15182_v53  ;;  %v12639_v40 = vsel %vm15188_vm10, 1, %v15161_v37  ;;  %vm12645_vm1 = vmand %vm12600_vm13, %vm15189_vm14  ;;  %vm916_vm10 = vcmp.gt.f32.partialorder %v15060_v19, 0.5  ;;  %vm15195_vm13 = vcmp.lt.f32.partialorder %v5517_v10, 0.5  ;;  %15198 = vst [vmem:[#allocation2_spill] sm:$0xff] %v12669_v32 }
 0x38b   : > { %15184 = vst [vmem:[#allocation115_spill] sm:$0xff] %v15183_v53  ;;  %vm12654_vm6 = vmand %vm12607_vm15, %vm5762_vm8  ;;  %v5478_v11 = vsub.f32 %v12315_v20, %v5437_v8  ;;  %v5397_v16 = vfloor.f32 %v5356_v17  ;;  %v5193_v0 = vadd.f32 0.5, %v12613_v30  ;;  %vm5869_vm8 = vcmp.eq.s32.totalorder %v15199_v6, 1  ;;  %v7493_v8 = vpop.f32.mrb[39].mxu1 }
 0x38c   : > { %vm12663_vm14 = vmand %vm12617_vm12, %vm15195_vm13  ;;  %vm15200_vm15 = vcmp.lt.f32.partialorder %v15040_v57, 16.5  ;;  %v15201_v10 = vmov 0  ;;  %vm5559_vm13 = vcmp.lt.f32.partialorder %v5518_v54, 0.5  ;;  %v5234_v5 = vmul.f32 0.5, %v5192_v13  ;;  %v12755_v2 = vpop.f32.mrb[40].mxu1 }
 0x38d   : > { %vm12676_vm3 = vmand %vm12645_vm1, %vm15200_vm15  ;;  %v5357_v35 = vmul.f32 0.5, %v5316_v60  ;;  %v5317_v20 = vadd.f32 0.5, %v12624_v48  ;;  %v12684_v17 = vsel %vm12493_vm0, 1, %v15161_v37  ;;  %v12689_v57 = vsel %vm12501_vm4, 1, %v15161_v37  ;;  %15219 = vst [vmem:[#allocation113_spill] sm:$0xff] %v12755_v2 }
 0x38e   : > { %v15202_v10 = vsel %vm12676_vm3, 4294967295, %v15201_v10  ;;  %vm12695_vm1 = vmand %vm916_vm10, %vm957_vm7  ;;  %v5683_v60 = vsub.f32 %v12354_v55, %v5642_v18  ;;  %v12701_v44 = vadd.f32 -1.0, %v15206_v47  ;;  %vm5870_vm0 = vcmp.eq.s32.totalorder %v15207_v1, 1 }
 0x38f   : > { %15203 = vst [vmem:[#allocation3_spill] sm:$0xff] %v15202_v10  ;;  %v12712_v19 = vsel %vm12527_vm9, 1, %v15161_v37  ;;  %vm15208_vm4 = vnez %v15151_v61  ;;  %vm15209_vm7 = vcmp.lt.f32.partialorder %v5722_v41, 0.5  ;;  %v5438_v24 = vmul.f32 2.0, %v5274_v34  ;;  %vm12729_vm5 = vmand %vm12676_vm3, %vm5559_vm13 }
 0x390   : > { %v12717_v8 = vsel %vm15208_vm4, 1, %v15161_v37  ;;  %vm12722_vm10 = vmand %vm12663_vm14, %vm15209_vm7  ;;  %vm5764_vm9 = vcmp.lt.f32.partialorder %v5723_v3, 0.5  ;;  %v5519_v18 = vand.u32 2147483647, %v5478_v11  ;;  %v5643_v61 = vmul.f32 2.0, %v5397_v16 }
 0x391   : > { %v5235_v32 = vmul.f32 0.5, %v5193_v0  ;;  %vm15214_vm15 = vnez %v15167_v22  ;;  %vm15215_vm14 = vcmp.gt.f32.partialorder %v15076_v9, 0.5  ;;  %v5275_v34 = vfloor.f32 %v5234_v5  ;;  %v15218_v22 = vld [vmem:[#allocation54_spill] sm:$0xff] }
 0x392   : > { %v12736_v41 = vsel %vm15214_vm15, 1, %v15161_v37  ;;  %vm12742_vm4 = vmand %vm12695_vm1, %vm15215_vm14  ;;  %v5398_v4 = vfloor.f32 %v5357_v35  ;;  %v5358_v10 = vmul.f32 0.5, %v5317_v20  ;;  %v12749_v0 = vsel %vm12592_vm11, 1, %v15161_v37  ;;  %v7496_v35 = vpop.f32.mrb[41].mxu1  ;;  %v4759_v20 = vpop.f32.mrb[0].mxu0 }
 0x393   : > { %v5724_v11 = vand.u32 2147483647, %v5683_v60  ;;  %v12752_v16 = vadd.f32 -1.0, %v15218_v22  ;;  %v5194_v53 = vadd.f32 0.5, %v12701_v44  ;;  %v12760_v13 = vsel %vm12654_vm6, 1, %v15161_v37  ;;  %vm12770_vm11 = vmand %vm12729_vm5, %vm5764_vm9  ;;  %v12788_v7 = vpop.f32.mrb[42].mxu1 }
 0x394   : > { %15220 = vst [vmem:[#allocation7_spill] sm:$0xff] %v12760_v13  ;;  %v12765_v5 = vsel %vm12722_vm10, 1, %v15161_v37  ;;  %vm917_vm13 = vcmp.gt.f32.partialorder %v15119_v23, 0.5  ;;  %vm958_vm1 = vcmp.lt.f32.partialorder %v15119_v23, 16.5  ;;  %v5479_v42 = vsub.f32 %v12457_v49, %v5438_v24  ;;  %15228 = vst [vmem:[#allocation8_spill] sm:$0xff] %v12788_v7  ;;  %v15229_v49 = vld [vmem:[#allocation60_spill] sm:$0xff] }
 0x395   : > { %15221 = vst [vmem:[#allocation114_spill] sm:$0xff] %v12765_v5  ;;  %vm15224_vm6 = vcmp.lt.f32.partialorder %v15076_v9, 16.5  ;;  %v15225_v3 = vmov 0  ;;  %vm5560_vm10 = vcmp.lt.f32.partialorder %v5519_v18, 0.5  ;;  %v5684_v60 = vsub.f32 %v12467_v62, %v5643_v61  ;;  %v7956_v35 = vpop.f32.mrb[1].mxu0  ;;  %v15230_v9 = vld [vmem:[#allocation15_spill] sm:$0xff] }
 0x396   : > { %vm12781_vm7 = vmand %vm12742_vm4, %vm15224_vm6  ;;  %vm918_vm5 = vcmp.gt.f32.partialorder %v15159_v56, 0.5  ;;  %vm959_vm9 = vcmp.lt.f32.partialorder %v15159_v56, 16.5  ;;  %v5276_v55 = vfloor.f32 %v5235_v32  ;;  %v8054_v24 = vadd.f32 %v4759_v20, %v15229_v49  ;;  %v7497_v43 = vpop.f32.mrb[43].mxu1  ;;  %v4762_v46 = vpop.f32.mrb[2].mxu0  ;;  %v15232_v7 = vld [vmem:[#allocation108_spill] sm:$0xff]  ;;  %v15234_v49 = vld [vmem:[#allocation109_spill] sm:$0xff] }
 0x397   : > { %v15226_v3 = vsel %vm12781_vm7, 4294967295, %v15225_v3  ;;  %v5439_v54 = vmul.f32 2.0, %v5275_v34  ;;  %v5644_v2 = vmul.f32 2.0, %v5398_v4  ;;  %v5399_v5 = vfloor.f32 %v5358_v10  ;;  %v7957_v13 = vpop.f32.mrb[3].mxu0  ;;  %vm5601_vm15 = vmand %vm12781_vm7, %vm5560_vm10  ;;  %v15235_v10 = vld [vmem:[#allocation55_spill] sm:$0xff]  ;;  %v15237_v18 = vld [vmem:[#allocation61_spill] sm:$0xff] }
 0x398   : > { %15227 = vst [vmem:[#allocation4_spill] sm:$0xff] %v15226_v3  ;;  %v12796_v62 = vsel %vm12770_vm11, 1, %v15161_v37  ;;  %vm5765_vm14 = vcmp.lt.f32.partialorder %v5724_v11, 0.5  ;;  %v5236_v32 = vmul.f32 0.5, %v5194_v53  ;;  %v5318_v61 = vadd.f32 0.5, %v12752_v16  ;;  %v15254_v56 = vld [vmem:[#allocation59_spill] sm:$0xff] }
 0x399   : > { %15231 = vst [vmem:[#allocation5_spill] sm:$0xff] %v12796_v62  ;;  %vm15233_vm4 = vnez %v15232_v7  ;;  %v8055_v35 = vadd.f32 %v4762_v46, %v15234_v49  ;;  %vm5872_vm6 = vcmp.eq.s32.totalorder %v12566_v59, 1  ;;  %v12806_v43 = vand.u32 2147483647, %v5479_v42  ;;  %v15236_v7 = vld [vmem:[#allocation58_spill] sm:$0xff] }
 0x39a   : > { %v5048_v20 = vsel %vm15233_vm4, %v8054_v24, 0.0  ;;  %v12809_v34 = vadd.f32 -1.0, %v15235_v10  ;;  %v12813_v4 = vand.u32 2147483647, %v5684_v60  ;;  %v5440_v21 = vmul.f32 2.0, %v5276_v55 }
 0x39b   : > { %v5910_v53 = vsel %vm5869_vm8, %v5048_v20, 0.0  ;;  %v12816_v46 = vadd.f32 -1.0, %v15236_v7  ;;  %vm15238_vm11 = vnez %v15237_v18  ;;  %v5480_v42 = vsub.f32 %v12558_v26, %v5439_v54  ;;  %vm12832_vm8 = vmand %vm5601_vm15, %vm5765_vm14 }
 0x39c   : > { %v5049_v13 = vsel %vm15238_vm11, %v8055_v35, 0.0  ;;  %v5685_v6 = vsub.f32 %v12561_v58, %v5644_v2  ;;  %v12827_v24 = vmul.f32 2.0, %v5399_v5  ;;  %v5277_v3 = vfloor.f32 %v5236_v32  ;;  %v4767_v2 = vpop.f32.mrb[4].mxu0  ;;  %v15241_v5 = vld [vmem:[#allocation110_spill] sm:$0xff]  ;;  %vm12854_vm14 = vmand %vm917_vm13, %vm958_vm1 }
 0x39d   : > { %v5911_v60 = vsel %vm5870_vm0, %v5049_v13, 0.0  ;;  %v6761_v55 = vpack.c.bf16 %v5049_v13, %v5048_v20  ;;  %v5359_v62 = vmul.f32 0.5, %v5318_v61  ;;  %v5999_v18 = vmul.f32 %v5910_v53, %v5910_v53  ;;  %v7960_v32 = vpop.f32.mrb[5].mxu0  ;;  %vm1000_vm13 = vmand %vm918_vm5, %vm959_vm9 }
 0x39e   : > { %v5951_v29 = vadd.f32 %v5911_v60, %v5910_v53  ;;  %v6000_v35 = vmul.f32 %v5911_v60, %v5911_v60  ;;  %v5195_v26 = vadd.f32 0.5, %v12809_v34  ;;  %vm919_vm10 = vcmp.gt.f32.partialorder %v15180_v52, 0.5  ;;  %v4770_v20 = vpop.f32.mrb[6].mxu0 }
 0x39f   : > { %6762 = vst [vmem:[%s12821_s24] sm:$0xff] %v6761_v55   ;;  %vm960_vm4 = vcmp.lt.f32.partialorder %v15180_v52, 16.5  ;;  %v5481_v58 = vsub.f32 %v12613_v30, %v5440_v21  ;;  %v5319_v1 = vadd.f32 0.5, %v12816_v46  ;;  %v8056_v54 = vadd.f32 %v4767_v2, %v15241_v5  ;;  %v15244_v55 = vld [vmem:[#allocation65_spill] sm:$0xff]  ;;  %v7961_v2 = vpop.f32.mrb[7].mxu0 }
 0x3a0   : > { %v6040_v11 = vadd.f32 %v6000_v35, %v5999_v18  ;;  %v12847_v61 = vsel %vm12832_vm8, 1, %v15161_v37  ;;  %vm5561_vm15 = vcmp.lt.f32.partialorder %v12806_v43, 0.5  ;;  %v5521_v53 = vand.u32 2147483647, %v5480_v42  ;;  %v15246_v18 = vld [vmem:[#allocation111_spill] sm:$0xff]  ;;  %v15248_v5 = vld [vmem:[#allocation57_spill] sm:$0xff] }
 0x3a1   : > { %v12858_v21 = vand.u32 2147483647, %v5685_v6  ;;  %v5400_v13 = vfloor.f32 %v5359_v62  ;;  %v5441_v60 = vmul.f32 2.0, %v5277_v3  ;;  %vm15245_vm11 = vnez %v15244_v55  ;;  %v15249_v55 = vld [vmem:[#allocation52_spill] sm:$0xff] }
 0x3a2   : > { %v5050_v49 = vsel %vm15245_vm11, %v8056_v54, 0.0  ;;  %v8057_v35 = vadd.f32 %v4770_v20, %v15246_v18  ;;  %vm5874_vm8 = vcmp.eq.s32.totalorder %v12576_v39, 1  ;;  %v5686_v23 = vsub.f32 %v12624_v48, %v12827_v24  ;;  %v15288_v48 = vld [vmem:[#allocation63_spill] sm:$0xff] }
 0x3a3   : > { %v5237_v62 = vmul.f32 0.5, %v5195_v26  ;;  %vm15247_vm1 = vcmp.eq.s32.totalorder %v15230_v9, 1  ;;  %v12873_v42 = vand.u32 2147483647, %v5481_v58  ;;  %v5360_v6 = vmul.f32 0.5, %v5319_v1 }
 0x3a4   : > { %v5912_v3 = vsel %vm15247_vm1, %v5050_v49, 0.0  ;;  %v12876_v54 = vadd.f32 -1.0, %v15248_v5  ;;  %vm15250_vm11 = vnez %v15249_v55  ;;  %vm15251_vm5 = vcmp.gt.f32.partialorder %v15123_v51, 0.5 }
 0x3a5   : > { %v5952_v32 = vadd.f32 %v5951_v29, %v5912_v3  ;;  %v6001_v20 = vmul.f32 %v5912_v3, %v5912_v3  ;;  %v5051_v18 = vsel %vm15250_vm11, %v8057_v35, 0.0  ;;  %vm12884_vm9 = vmand %vm12854_vm14, %vm15251_vm5  ;;  %v12889_v9 = vadd.f32 -1.0, %v15254_v56  ;;  %v4775_v3 = vpop.f32.mrb[8].mxu0 }
 0x3a6   : > { %v5913_v24 = vsel %vm5872_vm6, %v5051_v18, 0.0  ;;  %v6766_v29 = vpack.c.bf16 %v5051_v18, %v5050_v49  ;;  %vm15255_vm1 = vcmp.gt.f32.partialorder %v15160_v14, 0.5  ;;  %v5482_v58 = vsub.f32 %v12701_v44, %v5441_v60  ;;  %vm12908_vm6 = vmand %vm919_vm10, %vm960_vm4  ;;  %v7964_v55 = vpop.f32.mrb[9].mxu0 }
 0x3a7   : > { %vm12895_vm0 = vmand %vm1000_vm13, %vm15255_vm1  ;;  %v12902_v1 = vmul.f32 2.0, %v5400_v13  ;;  %v6041_v30 = vadd.f32 %v6040_v11, %v6001_v20  ;;  %v5953_v35 = vadd.f32 %v5952_v32, %v5913_v24  ;;  %v6002_v2 = vmul.f32 %v5913_v24, %v5913_v24  ;;  %v15263_v13 = vld [vmem:[#allocation62_spill] sm:$0xff]  ;;  %v15264_v20 = vld [vmem:[#allocation24_spill] sm:$0xff]  ;;  %v4778_v18 = vpop.f32.mrb[10].mxu0 }
 0x3a8   : > { %v5278_v49 = vfloor.f32 %v5237_v62  ;;  %6858 = vst [vmem:[%s12821_s24 + $0x8] sm:$0xff] %v6766_v29   ;;  %vm15260_vm5 = vcmp.lt.f32.partialorder %v15123_v51, 16.5  ;;  %v15261_v44 = vmov 0  ;;  %vm5562_vm11 = vcmp.lt.f32.partialorder %v5521_v53, 0.5  ;;  %v15271_v29 = vld [vmem:[#allocation56_spill] sm:$0xff] }
 0x3a9   : > { %vm12918_vm1 = vmand %vm12884_vm9, %vm15260_vm5  ;;  %v5401_v11 = vfloor.f32 %v5360_v6  ;;  %v5196_v52 = vadd.f32 0.5, %v12876_v54  ;;  %v12924_v60 = vadd.f32 -1.0, %v15263_v13  ;;  %v6042_v32 = vadd.f32 %v6041_v30, %v6002_v2  ;;  %v15273_v30 = vld [vmem:[#allocation26_spill] sm:$0xff] }
 0x3aa   : > { %v15262_v44 = vsel %vm12918_vm1, 4294967295, %v15261_v44  ;;  %v8058_v62 = vadd.f32 %v4775_v3, %v15264_v20  ;;  %vm15265_vm4 = vcmp.lt.f32.partialorder %v15160_v14, 16.5  ;;  %v15266_v51 = vmov 0  ;;  %v7965_v3 = vpop.f32.mrb[11].mxu0 }
 0x3ab   : > { %vm12932_vm9 = vmand %vm12895_vm0, %vm15265_vm4  ;;  %v5320_v6 = vadd.f32 0.5, %v12889_v9  ;;  %vm5767_vm13 = vcmp.lt.f32.partialorder %v12858_v21, 0.5  ;;  %vm15268_vm14 = vcmp.gt.f32.partialorder %v15185_v25, 0.5  ;;  %v5727_v14 = vand.u32 2147483647, %v5686_v23 }
 0x3ac   : > { %v15267_v51 = vsel %vm12932_vm9, 4294967295, %v15266_v51  ;;  %vm12943_vm10 = vmand %vm12908_vm6, %vm15268_vm14  ;;  %v5687_v24 = vsub.f32 %v12752_v16, %v12902_v1  ;;  %vm15272_vm4 = vnez %v15271_v29  ;;  %v8059_v2 = vadd.f32 %v4778_v18, %v15273_v30 }
 0x3ad   : > { %v5052_v26 = vsel %vm15272_vm4, %v8058_v62, 0.0  ;;  %vm12958_vm14 = vmand %vm12918_vm1, %vm5561_vm15  ;;  %v12962_v23 = vand.u32 2147483647, %v5482_v58  ;;  %v5442_v20 = vmul.f32 2.0, %v5278_v49  ;;  %vm15276_vm6 = vcmp.eq.s32.totalorder %v12571_v33, 1  ;;  %v15279_v58 = vld [vmem:[#allocation66_spill] sm:$0xff] }
 0x3ae   : > { %v5914_v16 = vsel %vm15276_vm6, %v5052_v26, 0.0  ;;  %vm12969_vm4 = vmand %vm12932_vm9, %vm5562_vm11  ;;  %v5647_v43 = vmul.f32 2.0, %v5401_v11  ;;  %v5238_v62 = vmul.f32 0.5, %v5196_v52  ;;  %v5197_v55 = vadd.f32 0.5, %v12924_v60 }
 0x3af   : > { %v5954_v18 = vadd.f32 %v5953_v35, %v5914_v16  ;;  %v6003_v29 = vmul.f32 %v5914_v16, %v5914_v16  ;;  %vm15280_vm15 = vnez %v15279_v58  ;;  %vm15281_vm5 = vcmp.lt.f32.partialorder %v15185_v25, 16.5  ;;  %v15287_v25 = vld [vmem:[#allocation67_spill] sm:$0xff] }
 0x3b0   : > { %v5053_v49 = vsel %vm15280_vm15, %v8059_v2, 0.0  ;;  %vm12980_vm6 = vmand %vm12943_vm10, %vm15281_vm5  ;;  %v15282_v33 = vmov 0  ;;  %v5361_v53 = vmul.f32 0.5, %v5320_v6  ;;  %vm15284_vm11 = vcmp.lt.f32.partialorder %v12813_v4, 0.5 }
 0x3b1   : > { %v15283_v33 = vsel %vm12980_vm6, 4294967295, %v15282_v33  ;;  %v5915_v11 = vsel %vm5874_vm8, %v5053_v49, 0.0  ;;  %v6771_v52 = vpack.c.bf16 %v5053_v49, %v5052_v26  ;;  %vm12990_vm0 = vmand %vm12958_vm14, %vm15284_vm11  ;;  %v12995_v30 = vadd.f32 -1.0, %v15287_v25  ;;  %v4783_v26 = vpop.f32.mrb[12].mxu0 }
 0x3b2   : > { %v12998_v2 = vadd.f32 -1.0, %v15288_v48  ;;  %v6043_v3 = vadd.f32 %v6042_v32, %v6003_v29  ;;  %v5955_v6 = vadd.f32 %v5954_v18, %v5915_v11  ;;  %v6004_v16 = vmul.f32 %v5915_v11, %v5915_v11  ;;  %vm13004_vm8 = vmand %vm12969_vm4, %vm5767_vm13  ;;  %v15294_v29 = vld [vmem:[#allocation32_spill] sm:$0xff]  ;;  %v7968_v49 = vpop.f32.mrb[13].mxu0 }
 0x3b3   : > { %v5483_v4 = vsub.f32 %v12809_v34, %v5442_v20  ;;  %6859 = vst [vmem:[%s12821_s24 + $0x10] sm:$0xff] %v6771_v52   ;;  %vm15291_vm10 = vcmp.lt.f32.partialorder %v12873_v42, 0.5  ;;  %v5688_v21 = vsub.f32 %v12816_v46, %v5647_v43  ;;  %v5279_v59 = vfloor.f32 %v5238_v62  ;;  %v4786_v20 = vpop.f32.mrb[14].mxu0  ;;  %v15304_v11 = vld [vmem:[#allocation36_spill] sm:$0xff] }
 0x3b4   : > { %vm13014_vm5 = vmand %vm12980_vm6, %vm15291_vm10  ;;  %v5239_v1 = vmul.f32 0.5, %v5197_v55  ;;  %v6044_v18 = vadd.f32 %v6043_v3, %v6004_v16  ;;  %v8060_v58 = vadd.f32 %v4783_v26, %v15294_v29  ;;  %v13024_v34 = vsel %vm12990_vm0, 1, %v15161_v37  ;;  %v7969_v35 = vpop.f32.mrb[15].mxu0  ;;  %v15308_v3 = vld [vmem:[#allocation68_spill] sm:$0xff] }
 0x3b5   : > { %vm15295_vm4 = vcmp.lt.f32.partialorder %v15206_v47, 16.5  ;;  %vm15296_vm15 = vcmp.gt.f32.partialorder %v15206_v47, 0.5  ;;  %v5402_v46 = vfloor.f32 %v5361_v53  ;;  %v13035_v43 = vand.u32 2147483647, %v5687_v24 }
 0x3b6   : > { %vm13030_vm11 = vmand %vm15296_vm15, %vm15295_vm4  ;;  %vm15299_vm13 = vcmp.lt.f32.partialorder %v15235_v10, 16.5  ;;  %vm15300_vm14 = vcmp.gt.f32.partialorder %v15235_v10, 0.5  ;;  %v5321_v47 = vadd.f32 0.5, %v12995_v30  ;;  %v5198_v55 = vadd.f32 0.5, %v12998_v2  ;;  %v15325_v10 = vld [vmem:[#allocation72_spill] sm:$0xff] }
 0x3b7   : > { %vm13041_vm0 = vmand %vm15300_vm14, %vm15299_vm13  ;;  %vm15303_vm4 = vnez %v14970_v36  ;;  %v8061_v52 = vadd.f32 %v4786_v20, %v15304_v11  ;;  %vm15305_vm10 = vcmp.lt.f32.partialorder %v5727_v14, 0.5  ;;  %v5524_v24 = vand.u32 2147483647, %v5483_v4 }
 0x3b8   : > { %v5054_v53 = vsel %vm15303_vm4, %v8060_v58, 0.0  ;;  %vm13054_vm6 = vmand %vm13014_vm5, %vm15305_vm10  ;;  %v13059_v16 = vadd.f32 -1.0, %v15308_v3  ;;  %vm15309_vm14 = vcmp.eq.s32.totalorder %v12629_v15, 1  ;;  %vm15310_vm13 = vcmp.gt.f32.partialorder %v15218_v22, 0.5  ;;  %v15330_v15 = vld [vmem:[#allocation47_spill] sm:$0xff] }
 0x3b9   : > { %v5916_v36 = vsel %vm15309_vm14, %v5054_v53, 0.0  ;;  %vm13067_vm4 = vmand %vm13030_vm11, %vm15310_vm13  ;;  %v5729_v14 = vand.u32 2147483647, %v5688_v21  ;;  %v13071_v32 = vmul.f32 2.0, %v5279_v59  ;;  %v5280_v29 = vfloor.f32 %v5239_v1 }
 0x3ba   : > { %v5956_v4 = vadd.f32 %v5955_v6, %v5916_v36  ;;  %v6005_v58 = vmul.f32 %v5916_v36, %v5916_v36  ;;  %vm15313_vm5 = vnez %v14982_v50  ;;  %vm15314_vm10 = vcmp.gt.f32.partialorder %v15236_v7, 0.5 }
 0x3bb   : > { %v5055_v49 = vsel %vm15313_vm5, %v8061_v52, 0.0  ;;  %vm13079_vm14 = vmand %vm13041_vm0, %vm15314_vm10  ;;  %v13083_v42 = vmul.f32 2.0, %v5402_v46  ;;  %vm15317_vm11 = vcmp.eq.s32.totalorder %v12634_v38, 1  ;;  %v5362_v1 = vmul.f32 0.5, %v5321_v47  ;;  %v4791_v52 = vpop.f32.mrb[16].mxu0 }
 0x3bc   : > { %v5917_v21 = vsel %vm15317_vm11, %v5055_v49, 0.0  ;;  %v6776_v59 = vpack.c.bf16 %v5055_v49, %v5054_v53  ;;  %v5240_v6 = vmul.f32 0.5, %v5198_v55  ;;  %v6045_v20 = vadd.f32 %v6044_v18, %v6005_v58  ;;  %v15324_v53 = vld [vmem:[#allocation42_spill] sm:$0xff]  ;;  %v7972_v35 = vpop.f32.mrb[17].mxu0 }
 0x3bd   : > { %v5957_v11 = vadd.f32 %v5956_v4, %v5917_v21  ;;  %v6006_v50 = vmul.f32 %v5917_v21, %v5917_v21  ;;  %vm15318_vm13 = vcmp.lt.f32.partialorder %v15218_v22, 16.5  ;;  %v15319_v62 = vmov 0 }
 0x3be   : > { %vm13091_vm5 = vmand %vm13067_vm4, %vm15318_vm13  ;;  %v5322_v46 = vadd.f32 0.5, %v13059_v16  ;;  %6860 = vst [vmem:[%s12821_s24 + $0x18] sm:$0xff] %v6776_v59   ;;  %v13100_v38 = vsel %vm13004_vm8, 1, %v15161_v37  ;;  %v13105_v18 = vsel %vm13054_vm6, 1, %v15161_v37  ;;  %vm15321_vm0 = vcmp.lt.f32.partialorder %v15236_v7, 16.5  ;;  %v4794_v7 = vpop.f32.mrb[18].mxu0 }
 0x3bf   : > { %v15320_v62 = vsel %vm13091_vm5, 4294967295, %v15319_v62  ;;  %vm13111_vm4 = vmand %vm13079_vm14, %vm15321_vm0  ;;  %v15322_v22 = vmov 0  ;;  %vm5565_vm10 = vcmp.lt.f32.partialorder %v5524_v24, 0.5  ;;  %v5444_v47 = vmul.f32 2.0, %v5280_v29  ;;  %v7973_v59 = vpop.f32.mrb[19].mxu0 }
 0x3c0   : > { %v15323_v22 = vsel %vm13111_vm4, 4294967295, %v15322_v22  ;;  %v6046_v55 = vadd.f32 %v6045_v20, %v6006_v50  ;;  %v8062_v39 = vadd.f32 %v4791_v52, %v15324_v53  ;;  %v13119_v36 = vadd.f32 -1.0, %v15325_v10  ;;  %v15335_v20 = vld [vmem:[#allocation73_spill] sm:$0xff] }
 0x3c1   : > { %vm15326_vm6 = vcmp.lt.f32.partialorder %v12962_v23, 0.5  ;;  %v5484_v29 = vsub.f32 %v12876_v54, %v13071_v32  ;;  %v5403_v4 = vfloor.f32 %v5362_v1  ;;  %v5281_v58 = vfloor.f32 %v5240_v6  ;;  %v15334_v1 = vld [vmem:[#allocation74_spill] sm:$0xff] }
 0x3c2   : > { %vm13125_vm14 = vmand %vm13091_vm5, %vm15326_vm6  ;;  %vm15329_vm0 = vnez %v14987_v31  ;;  %v8063_v21 = vadd.f32 %v4794_v7, %v15330_v15  ;;  %v5689_v31 = vsub.f32 %v12889_v9, %v13083_v42  ;;  %v5363_v54 = vmul.f32 0.5, %v5322_v46  ;;  %v4799_v7 = vpop.f32.mrb[20].mxu0 }
 0x3c3   : > { %v5056_v49 = vsel %vm15329_vm0, %v8062_v39, 0.0  ;;  %vm13138_vm6 = vmand %vm13111_vm4, %vm5565_vm10  ;;  %vm15333_vm0 = vcmp.eq.s32.totalorder %v12639_v40, 1  ;;  %v5485_v24 = vsub.f32 %v12924_v60, %v5444_v47  ;;  %v13152_v6 = vadd.f32 -1.0, %v15334_v1 }
 0x3c4   : > { %v5918_v32 = vsel %vm15333_vm0, %v5056_v49, 0.0  ;;  %v13155_v50 = vadd.f32 -1.0, %v15335_v20  ;;  %vm15336_vm10 = vnez %v14991_v45  ;;  %vm15337_vm0 = vcmp.lt.f32.partialorder %v13035_v43, 0.5 }
 0x3c5   : > { %v5958_v52 = vadd.f32 %v5957_v11, %v5918_v32  ;;  %v6007_v53 = vmul.f32 %v5918_v32, %v5918_v32  ;;  %v5057_v9 = vsel %vm15336_vm10, %v8063_v21, 0.0  ;;  %vm5810_vm8 = vmand %vm13125_vm14, %vm15337_vm0  ;;  %v5199_v40 = vadd.f32 0.5, %v13119_v36  ;;  %v15342_v21 = vld [vmem:[#allocation80_spill] sm:$0xff]  ;;  %v15347_v11 = vld [vmem:[#allocation78_spill] sm:$0xff] }
 0x3c6   : > { %vm15338_vm11 = vcmp.eq.s32.totalorder %v12684_v17, 1  ;;  %v6781_v42 = vpack.c.bf16 %v5057_v9, %v5056_v49  ;;  %vm15339_vm13 = vcmp.lt.f32.partialorder %v5729_v14, 0.5  ;;  %v5649_v45 = vmul.f32 2.0, %v5403_v4 }
 0x3c7   : > { %v5919_v60 = vsel %vm15338_vm11, %v5057_v9, 0.0  ;;  %vm13169_vm15 = vmand %vm13138_vm6, %vm15339_vm13  ;;  %v13173_v46 = vmul.f32 2.0, %v5281_v58  ;;  %v6047_v43 = vadd.f32 %v6046_v55, %v6007_v53  ;;  %v5404_v35 = vfloor.f32 %v5363_v54  ;;  %v7976_v58 = vpop.f32.mrb[21].mxu0 }
 0x3c8   : > { %v5959_v47 = vadd.f32 %v5958_v52, %v5919_v60  ;;  %v6008_v39 = vmul.f32 %v5919_v60, %v5919_v60  ;;  %6861 = vst [vmem:[%s12821_s24 + $0x20] sm:$0xff] %v6781_v42   ;;  %v13177_v17 = vsel %vm5810_vm8, 1, %v15161_v37  ;;  %v13179_v26 = vand.u32 2147483647, %v5484_v29  ;;  %v4802_v23 = vpop.f32.mrb[22].mxu0  ;;  %v15343_v52 = vld [vmem:[#allocation75_spill] sm:$0xff] }
 0x3c9   : > { %v5323_v14 = vadd.f32 0.5, %v13152_v6  ;;  %v5200_v49 = vadd.f32 0.5, %v13155_v50  ;;  %v8064_v4 = vadd.f32 %v4799_v7, %v15342_v21  ;;  %v13188_v55 = vsel %vm13169_vm15, 1, %v15161_v37  ;;  %v15345_v60 = vld [vmem:[#allocation86_spill] sm:$0xff] }
 0x3ca   : > { %v6048_v15 = vadd.f32 %v6047_v43, %v6008_v39  ;;  %v5241_v59 = vmul.f32 0.5, %v5199_v40  ;;  %v13190_v54 = vand.u32 2147483647, %v5689_v31  ;;  %v13192_v29 = vand.u32 2147483647, %v5485_v24  ;;  %v7977_v43 = vpop.f32.mrb[23].mxu0 }
 0x3cb   : > { %v5690_v32 = vsub.f32 %v12995_v30, %v5649_v45  ;;  %v13196_v53 = vadd.f32 -1.0, %v15343_v52  ;;  %vm15344_vm8 = vnez %v15015_v12  ;;  %v8065_v42 = vadd.f32 %v4802_v23, %v15345_v60 }
 0x3cc   : > { %v5058_v9 = vsel %vm15344_vm8, %v8064_v4, 0.0  ;;  %v5486_v31 = vsub.f32 %v12998_v2, %v13173_v46  ;;  %v5650_v24 = vmul.f32 2.0, %v5404_v35  ;;  %vm15346_vm6 = vcmp.eq.s32.totalorder %v12689_v57, 1 }
 0x3cd   : > { %v5920_v30 = vsel %vm15346_vm6, %v5058_v9, 0.0  ;;  %v5364_v12 = vmul.f32 0.5, %v5323_v14  ;;  %v5242_v40 = vmul.f32 0.5, %v5200_v49  ;;  %v13210_v45 = vadd.f32 -1.0, %v15347_v11 }
 0x3ce   : > { %v5960_v39 = vadd.f32 %v5959_v47, %v5920_v30  ;;  %v6009_v7 = vmul.f32 %v5920_v30, %v5920_v30  ;;  %vm15348_vm0 = vnez %v15039_v28  ;;  %v5282_v4 = vfloor.f32 %v5241_v59  ;;  %v15354_v47 = vld [vmem:[#allocation81_spill] sm:$0xff]  ;;  %v4807_v59 = vpop.f32.mrb[24].mxu0 }
 0x3cf   : > { %v5059_v21 = vsel %vm15348_vm0, %v8065_v42, 0.0  ;;  %vm15349_vm8 = vcmp.eq.s32.totalorder %v12707_v63, 1  ;;  %vm15350_vm6 = vcmp.lt.f32.partialorder %v15248_v5, 16.5  ;;  %vm15351_vm10 = vcmp.gt.f32.partialorder %v15248_v5, 0.5  ;;  %v15359_v42 = vld [vmem:[#allocation93_spill] sm:$0xff] }
 0x3d0   : > { %v5921_v2 = vsel %vm15349_vm8, %v5059_v21, 0.0  ;;  %v6786_v46 = vpack.c.bf16 %v5059_v21, %v5058_v9  ;;  %vm13220_vm14 = vmand %vm15351_vm10, %vm15350_vm6  ;;  %v5324_v35 = vadd.f32 0.5, %v13196_v53  ;;  %v13226_v14 = vadd.f32 -1.0, %v15354_v47  ;;  %v15366_v21 = vld [vmem:[#allocation102_spill] sm:$0xff] }
 0x3d1   : > { %v6049_v28 = vadd.f32 %v6048_v15, %v6009_v7  ;;  %v5961_v49 = vadd.f32 %v5960_v39, %v5921_v2  ;;  %v6010_v58 = vmul.f32 %v5921_v2, %v5921_v2  ;;  %vm15355_vm0 = vcmp.lt.f32.partialorder %v15263_v13, 16.5 }
 0x3d2   : > { %vm15356_vm8 = vcmp.gt.f32.partialorder %v15263_v13, 0.5  ;;  %v5691_v5 = vsub.f32 %v13059_v16, %v5650_v24  ;;  %6862 = vst [vmem:[%s12821_s24 + $0x28] sm:$0xff] %v6786_v46   ;;  %v5405_v23 = vfloor.f32 %v5364_v12  ;;  %v5283_v15 = vfloor.f32 %v5242_v40  ;;  %v7980_v13 = vpop.f32.mrb[25].mxu0 }
 0x3d3   : > { %vm13232_vm13 = vmand %vm15356_vm8, %vm15355_vm0  ;;  %v5201_v9 = vadd.f32 0.5, %v13210_v45  ;;  %v6050_v60 = vadd.f32 %v6049_v28, %v6010_v58  ;;  %v8066_v43 = vadd.f32 %v4807_v59, %v15359_v42  ;;  %vm15360_vm8 = vcmp.gt.f32.partialorder %v15254_v56, 0.5  ;;  %v4810_v12 = vpop.f32.mrb[26].mxu0 }
 0x3d4   : > { %vm13247_vm15 = vmand %vm13220_vm14, %vm15360_vm8  ;;  %v13251_v24 = vand.u32 2147483647, %v5690_v32  ;;  %v5446_v30 = vmul.f32 2.0, %v5282_v4  ;;  %vm15363_vm10 = vcmp.gt.f32.partialorder %v15287_v25, 0.5  ;;  %v5365_v39 = vmul.f32 0.5, %v5324_v35  ;;  %v15368_v4 = vld [vmem:[#allocation95_spill] sm:$0xff] }
 0x3d5   : > { %vm13257_vm6 = vmand %vm13232_vm13, %vm15363_vm10  ;;  %v5325_v7 = vadd.f32 0.5, %v13226_v14  ;;  %vm15367_vm14 = vnez %v15366_v21  ;;  %v8067_v2 = vadd.f32 %v4810_v12, %v15368_v4  ;;  %v7981_v46 = vpop.f32.mrb[27].mxu0  ;;  %v13268_v57 = vand.u32 2147483647, %v5486_v31  ;;  %v15390_v4 = vld [vmem:[#allocation7_spill] sm:$0xff] }
 0x3d6   : > { %v5060_v32 = vsel %vm15367_vm14, %v8066_v43, 0.0  ;;  %v13270_v28 = vand.u32 2147483647, %v5691_v5  ;;  %vm15369_vm13 = vcmp.eq.s32.totalorder %v12712_v19, 1  ;;  %vm15370_vm10 = vcmp.lt.f32.partialorder %v15254_v56, 16.5 }
 0x3d7   : > { %v5922_v58 = vsel %vm15369_vm13, %v5060_v32, 0.0  ;;  %vm13278_vm0 = vmand %vm13247_vm15, %vm15370_vm10  ;;  %v15371_v35 = vmov 0  ;;  %v5651_v63 = vmul.f32 2.0, %v5405_v23  ;;  %v5447_v59 = vmul.f32 2.0, %v5283_v15 }
 0x3d8   : > { %v15372_v35 = vsel %vm13278_vm0, 4294967295, %v15371_v35  ;;  %v5243_v42 = vmul.f32 0.5, %v5201_v9  ;;  %v5962_v43 = vadd.f32 %v5961_v49, %v5922_v58  ;;  %v6011_v31 = vmul.f32 %v5922_v58, %v5922_v58  ;;  %v15398_v58 = vld [vmem:[#allocation69_spill] sm:$0xff] }
 0x3d9   : > { %vm15373_vm14 = vnez %v15069_v27  ;;  %vm15374_vm8 = vcmp.lt.f32.partialorder %v15287_v25, 16.5  ;;  %v15375_v19 = vmov 0  ;;  %v5487_v56 = vsub.f32 %v13119_v36, %v5446_v30  ;;  %v15385_v36 = vld [vmem:[#allocation79_spill] sm:$0xff] }
 0x3da   : > { %v5061_v5 = vsel %vm15373_vm14, %v8067_v2, 0.0  ;;  %vm13288_vm13 = vmand %vm13257_vm6, %vm15374_vm8  ;;  %vm15377_vm15 = vcmp.eq.s32.totalorder %v12717_v8, 1  ;;  %vm15378_vm10 = vcmp.lt.f32.partialorder %v15288_v48, 16.5  ;;  %vm15379_vm11 = vcmp.gt.f32.partialorder %v15288_v48, 0.5  ;;  %v4815_v48 = vpop.f32.mrb[28].mxu0  ;;  %v15415_v8 = vld [vmem:[#allocation82_spill] sm:$0xff] }
 0x3db   : > { %v15376_v19 = vsel %vm13288_vm13, 4294967295, %v15375_v19  ;;  %v5923_v23 = vsel %vm15377_vm15, %v5061_v5, 0.0  ;;  %v6791_v15 = vpack.c.bf16 %v5061_v5, %v5060_v32  ;;  %vm13299_vm4 = vmand %vm15379_vm11, %vm15378_vm10  ;;  %v5406_v25 = vfloor.f32 %v5365_v39  ;;  %v7984_v32 = vpop.f32.mrb[29].mxu0 }
 0x3dc   : > { %v5366_v49 = vmul.f32 0.5, %v5325_v7  ;;  %v6051_v9 = vadd.f32 %v6050_v60, %v6011_v31  ;;  %v5963_v13 = vadd.f32 %v5962_v43, %v5923_v23  ;;  %v6012_v16 = vmul.f32 %v5923_v23, %v5923_v23  ;;  %v15389_v7 = vld [vmem:[#allocation106_spill] sm:$0xff] }
 0x3dd   : > { %vm15382_vm6 = vcmp.lt.f32.partialorder %v13179_v26, 0.5  ;;  %v13312_v30 = vadd.f32 -1.0, %v15385_v36  ;;  %6863 = vst [vmem:[%s12821_s24 + $0x30] sm:$0xff] %v6791_v15   ;;  %vm15386_vm11 = vcmp.lt.f32.partialorder %v13192_v29, 0.5  ;;  %v5692_v26 = vsub.f32 %v13152_v6, %v5651_v63  ;;  %v4818_v6 = vpop.f32.mrb[30].mxu0  ;;  %v15401_v31 = vld [vmem:[#allocation114_spill] sm:$0xff] }
 0x3de   : > { %vm13307_vm8 = vmand %vm13278_vm0, %vm15382_vm6  ;;  %v5488_v12 = vsub.f32 %v13155_v50, %v5447_v59  ;;  %v5284_v40 = vfloor.f32 %v5243_v42  ;;  %v6052_v39 = vadd.f32 %v6051_v9, %v6012_v16  ;;  %v8068_v21 = vadd.f32 %v4815_v48, %v15389_v7  ;;  %v15400_v59 = vld [vmem:[#allocation71_spill] sm:$0xff]  ;;  %v7985_v43 = vpop.f32.mrb[31].mxu0  ;;  %v15409_v16 = vld [vmem:[#allocation77_spill] sm:$0xff] }
 0x3df   : > { %vm13319_vm14 = vmand %vm13288_vm13, %vm15386_vm11  ;;  %vm15391_vm6 = vcmp.gt.f32.partialorder %v15308_v3, 0.5  ;;  %vm926_vm15 = vcmp.gt.f32.partialorder %v15335_v20, 0.5  ;;  %vm967_vm13 = vcmp.lt.f32.partialorder %v15335_v20, 16.5  ;;  %vm15394_vm9 = vcmp.lt.f32.partialorder %v15325_v10, 16.5  ;;  %v4823_v20 = vpop.f32.mrb[32].mxu0  ;;  %v15426_v50 = vld [vmem:[#allocation76_spill] sm:$0xff] }
 0x3e0   : > { %vm13332_vm11 = vmand %vm13299_vm4, %vm15391_vm6  ;;  %vm15395_vm10 = vcmp.gt.f32.partialorder %v15325_v10, 0.5  ;;  %v5652_v2 = vmul.f32 2.0, %v5406_v25  ;;  %v5407_v46 = vfloor.f32 %v5366_v49  ;;  %vm15399_vm4 = vnez %v15398_v58  ;;  %v15427_v58 = vld [vmem:[#allocation5_spill] sm:$0xff]  ;;  %v15435_v10 = vld [vmem:[#allocation84_spill] sm:$0xff] }
 0x3e1   : > { %vm13344_vm1 = vmand %vm15395_vm10, %vm15394_vm9  ;;  %v5062_v63 = vsel %vm15399_vm4, %v8068_v21, 0.0  ;;  %v8069_v42 = vadd.f32 %v4818_v6, %v15400_v59  ;;  %vm15402_vm5 = vcmp.lt.f32.partialorder %v13190_v54, 0.5  ;;  %v5528_v5 = vand.u32 2147483647, %v5487_v56 }
 0x3e2   : > { %vm13356_vm0 = vmand %vm13307_vm8, %vm15402_vm5  ;;  %v5202_v23 = vadd.f32 0.5, %v13312_v30  ;;  %vm15405_vm9 = vcmp.eq.s32.totalorder %v12736_v41, 1  ;;  %vm15406_vm10 = vcmp.lt.f32.partialorder %v15308_v3, 16.5  ;;  %v13371_v54 = vand.u32 2147483647, %v5692_v26 }
 0x3e3   : > { %v5924_v15 = vsel %vm15405_vm9, %v5062_v63, 0.0  ;;  %vm13367_vm4 = vmand %vm13332_vm11, %vm15406_vm10  ;;  %v13373_v25 = vand.u32 2147483647, %v5488_v12  ;;  %v5448_v49 = vmul.f32 2.0, %v5284_v40  ;;  %vm15410_vm5 = vnez %v15409_v16 }
 0x3e4   : > { %v5964_v9 = vadd.f32 %v5963_v13, %v5924_v15  ;;  %v6013_v56 = vmul.f32 %v5924_v15, %v5924_v15  ;;  %v5063_v41 = vsel %vm15410_vm5, %v8069_v42, 0.0  ;;  %vm15411_vm8 = vcmp.lt.f32.partialorder %v13251_v24, 0.5  ;;  %v15457_v42 = vld [vmem:[#allocation89_spill] sm:$0xff] }
 0x3e5   : > { %vm13381_vm9 = vmand %vm13319_vm14, %vm15411_vm8  ;;  %vm15414_vm11 = vcmp.gt.f32.partialorder %v15334_v1, 0.5  ;;  %v13390_v13 = vadd.f32 -1.0, %v15415_v8  ;;  %vm15416_vm6 = vcmp.eq.s32.totalorder %v12749_v0, 1  ;;  %v6796_v26 = vpack.c.bf16 %v5063_v41, %v5062_v63 }
 0x3e6   : > { %vm1050_vm10 = vmand %vm13344_vm1, %vm15414_vm11  ;;  %v5925_v48 = vsel %vm15416_vm6, %v5063_v41, 0.0  ;;  %v5693_v60 = vsub.f32 %v13196_v53, %v5652_v2  ;;  %v5653_v12 = vmul.f32 2.0, %v5407_v46  ;;  %v6053_v40 = vadd.f32 %v6052_v39, %v6013_v56  ;;  %v7988_v46 = vpop.f32.mrb[33].mxu0 }
 0x3e7   : > { %vm13398_vm14 = vmand %vm926_vm15, %vm967_vm13  ;;  %v5965_v7 = vadd.f32 %v5964_v9, %v5925_v48  ;;  %v6014_v21 = vmul.f32 %v5925_v48, %v5925_v48  ;;  %vm15419_vm1 = vcmp.lt.f32.partialorder %v13268_v57, 0.5  ;;  %v5244_v32 = vmul.f32 0.5, %v5202_v23  ;;  %6864 = vst [vmem:[%s12821_s24 + $0x38] sm:$0xff] %v6796_v26   ;;  %v15425_v57 = vld [vmem:[#allocation85_spill] sm:$0xff]  ;;  %v4826_v63 = vpop.f32.mrb[34].mxu0  ;;  %v15440_v48 = vld [vmem:[#allocation88_spill] sm:$0xff] }
 0x3e8   : > { %vm13407_vm6 = vmand %vm13367_vm4, %vm15419_vm1  ;;  %vm15422_vm13 = vcmp.lt.f32.partialorder %v15334_v1, 16.5  ;;  %vm968_vm8 = vcmp.lt.f32.partialorder %v15347_v11, 16.5  ;;  %v5489_v53 = vsub.f32 %v13210_v45, %v5448_v49  ;;  %v13422_v39 = vadd.f32 -1.0, %v15425_v57  ;;  %v7989_v9 = vpop.f32.mrb[35].mxu0  ;;  %v15453_v23 = vld [vmem:[#allocation116_spill] sm:$0xff] }
 0x3e9   : > { %vm13414_vm15 = vmand %vm1050_vm10, %vm15422_vm13  ;;  %v6054_v6 = vadd.f32 %v6053_v40, %v6014_v21  ;;  %v8070_v2 = vadd.f32 %v4823_v20, %v15426_v50  ;;  %vm5569_vm1 = vcmp.lt.f32.partialorder %v5528_v5, 0.5  ;;  %vm15428_vm10 = vcmp.gt.f32.partialorder %v15343_v52, 0.5  ;;  %v15449_v20 = vld [vmem:[#allocation87_spill] sm:$0xff]  ;;  %v4831_v1 = vpop.f32.mrb[36].mxu0 }
 0x3ea   : > { %vm13430_vm13 = vmand %vm13398_vm14, %vm15428_vm10  ;;  %v5326_v45 = vadd.f32 0.5, %v13390_v13  ;;  %v13438_v59 = vsel %vm13356_vm0, 1, %v15161_v37  ;;  %vm15431_vm5 = vcmp.lt.f32.partialorder %v13270_v28, 0.5  ;;  %v5694_v43 = vsub.f32 %v13226_v14, %v5653_v12 }
 0x3eb   : > { %vm13444_vm11 = vmand %vm13407_vm6, %vm15431_vm5  ;;  %v5064_v15 = vsel %vm12552_vm2, %v8070_v2, 0.0  ;;  %v8071_v49 = vadd.f32 %v4826_v63, %v15435_v10  ;;  %vm5888_vm0 = vcmp.eq.s32.totalorder %v12847_v61, 1  ;;  %v5734_v28 = vand.u32 2147483647, %v5693_v60  ;;  %v7992_v10 = vpop.f32.mrb[37].mxu0 }
 0x3ec   : > { %vm15436_vm6 = vcmp.gt.f32.partialorder %v15347_v11, 0.5  ;;  %v5285_v56 = vfloor.f32 %v5244_v32  ;;  %vm15437_vm14 = vcmp.eq.s32.totalorder %v15390_v4, 1  ;;  %vm13464_vm10 = vmand %vm13414_vm15, %vm5569_vm1  ;;  %v5530_v41 = vand.u32 2147483647, %v5489_v53  ;;  %v4834_v9 = vpop.f32.mrb[38].mxu0 }
 0x3ed   : > { %vm1009_vm5 = vmand %vm15436_vm6, %vm968_vm8  ;;  %v5926_v16 = vsel %vm15437_vm14, %v5064_v15, 0.0  ;;  %v13469_v26 = vadd.f32 -1.0, %v15440_v48  ;;  %v5203_v24 = vadd.f32 0.5, %v13422_v39  ;;  %v5065_v4 = vsel %vm12617_vm12, %v8071_v49, 0.0 }
 0x3ee   : > { %v5966_v11 = vadd.f32 %v5965_v7, %v5926_v16  ;;  %v6015_v60 = vmul.f32 %v5926_v16, %v5926_v16  ;;  %vm15442_vm2 = vcmp.lt.f32.partialorder %v15343_v52, 16.5  ;;  %v5367_v40 = vmul.f32 0.5, %v5326_v45 }
 0x3ef   : > { %vm13478_vm8 = vmand %vm13430_vm13, %vm15442_vm2  ;;  %vm15445_vm1 = vcmp.eq.s32.totalorder %v15401_v31, 1  ;;  %v6801_v0 = vpack.c.bf16 %v5065_v4, %v5064_v15  ;;  %vm15446_vm14 = vcmp.gt.f32.partialorder %v15354_v47, 0.5  ;;  %v5735_v32 = vand.u32 2147483647, %v5694_v43 }
 0x3f0   : > { %v5927_v21 = vsel %vm15445_vm1, %v5065_v4, 0.0  ;;  %vm13486_vm6 = vmand %vm1009_vm5, %vm15446_vm14  ;;  %v13491_v52 = vadd.f32 -1.0, %v15449_v20  ;;  %v6055_v53 = vadd.f32 %v6054_v6, %v6015_v60  ;;  %vm15450_vm12 = vcmp.lt.f32.partialorder %v13371_v54, 0.5  ;;  %v15462_v60 = vld [vmem:[#allocation2_spill] sm:$0xff]  ;;  %v7993_v4 = vpop.f32.mrb[39].mxu0 }
 0x3f1   : > { %v5967_v50 = vadd.f32 %v5966_v11, %v5927_v21  ;;  %v6016_v2 = vmul.f32 %v5927_v21, %v5927_v21  ;;  %vm13497_vm13 = vmand %vm13464_vm10, %vm15450_vm12  ;;  %v5449_v46 = vmul.f32 2.0, %v5285_v56  ;;  %6865 = vst [vmem:[%s12821_s24 + $0x40] sm:$0xff] %v6801_v0   ;;  %v13505_v45 = vsel %vm13381_vm9, 1, %v15161_v37 }
 0x3f2   : > { %v13510_v6 = vsel %vm13444_vm11, 1, %v15161_v37  ;;  %v5245_v54 = vmul.f32 0.5, %v5203_v24  ;;  %v5327_v63 = vadd.f32 0.5, %v13469_v26  ;;  %v8072_v15 = vadd.f32 %v4831_v1, %v15453_v23 }
 0x3f3   : > { %v6056_v43 = vadd.f32 %v6055_v53, %v6016_v2  ;;  %vm5889_vm10 = vcmp.eq.s32.totalorder %v13024_v34, 1  ;;  %vm15454_vm5 = vcmp.lt.f32.partialorder %v15354_v47, 16.5  ;;  %vm5571_vm2 = vcmp.lt.f32.partialorder %v5530_v41, 0.5  ;;  %v15466_v53 = vld [vmem:[#allocation90_spill] sm:$0xff]  ;;  %v4839_v47 = vpop.f32.mrb[40].mxu0 }
 0x3f4   : > { %vm13519_vm9 = vmand %vm13486_vm6, %vm15454_vm5  ;;  %v13524_v49 = vadd.f32 -1.0, %v15457_v42  ;;  %v13529_v56 = vsel %vm13497_vm13, 1, %v15161_v37  ;;  %vm15458_vm11 = vcmp.lt.f32.partialorder %v13373_v25, 0.5  ;;  %vm5775_vm14 = vcmp.lt.f32.partialorder %v5734_v28, 0.5  ;;  %v15470_v28 = vld [vmem:[#allocation92_spill] sm:$0xff] }
 0x3f5   : > { %vm13535_vm1 = vmand %vm13478_vm8, %vm15458_vm11  ;;  %v5408_v16 = vfloor.f32 %v5367_v40  ;;  %v5204_v14 = vadd.f32 0.5, %v13491_v52  ;;  %v5066_v11 = vsel %vm12676_vm3, %v8072_v15, 0.0  ;;  %v8073_v12 = vadd.f32 %v4834_v9, %v15462_v60 }
 0x3f6   : > { %vm5890_vm6 = vcmp.eq.s32.totalorder %v13100_v38, 1  ;;  %vm5776_vm12 = vcmp.lt.f32.partialorder %v5735_v32, 0.5  ;;  %v5490_v25 = vsub.f32 %v13312_v30, %v5449_v46  ;;  %vm15463_vm13 = vcmp.eq.s32.totalorder %v15427_v58, 1  ;;  %vm13550_vm5 = vmand %vm13519_vm9, %vm5571_vm2  ;;  %v15476_v38 = vld [vmem:[#allocation94_spill] sm:$0xff] }
 0x3f7   : > { %v5928_v21 = vsel %vm15463_vm13, %v5066_v11, 0.0  ;;  %v5286_v0 = vfloor.f32 %v5245_v54  ;;  %v5368_v7 = vmul.f32 0.5, %v5327_v63  ;;  %v13555_v2 = vadd.f32 -1.0, %v15466_v53  ;;  %vm5816_vm3 = vmand %vm13535_vm1, %vm5775_vm14 }
 0x3f8   : > { %v5968_v31 = vadd.f32 %v5967_v50, %v5928_v21  ;;  %v6017_v1 = vmul.f32 %v5928_v21, %v5928_v21  ;;  %v5067_v30 = vsel %vm12781_vm7, %v8073_v12, 0.0  ;;  %v5328_v58 = vadd.f32 0.5, %v13524_v49  ;;  %vm13568_vm2 = vmand %vm13550_vm5, %vm5776_vm12  ;;  %v7996_v12 = vpop.f32.mrb[41].mxu0 }
 0x3f9   : > { %v5929_v41 = vsel %vm5888_vm0, %v5067_v30, 0.0  ;;  %v6806_v46 = vpack.c.bf16 %v5067_v30, %v5066_v11  ;;  %v5654_v54 = vmul.f32 2.0, %v5408_v16  ;;  %v5246_v63 = vmul.f32 0.5, %v5204_v14  ;;  %v15471_v11 = vld [vmem:[#allocation113_spill] sm:$0xff]  ;;  %v4842_v21 = vpop.f32.mrb[42].mxu0  ;;  %v3338_v12 = vpop.f32.mrb[44].mxu1 }
 0x3fa   : > { %v6057_v15 = vadd.f32 %v6056_v43, %v6017_v1  ;;  %v5969_v10 = vadd.f32 %v5968_v31, %v5929_v41  ;;  %v6018_v50 = vmul.f32 %v5929_v41, %v5929_v41  ;;  %vm928_vm7 = vcmp.gt.f32.partialorder %v15385_v36, 0.5  ;;  %v15473_v1 = vld [vmem:[#allocation8_spill] sm:$0xff]  ;;  %v7997_v30 = vpop.f32.mrb[43].mxu0 }
 0x3fb   : > { %vm969_vm11 = vcmp.lt.f32.partialorder %v15385_v36, 16.5  ;;  %v13575_v61 = vadd.f32 -1.0, %v15470_v28  ;;  %6866 = vst [vmem:[%s12821_s24 + $0x48] sm:$0xff] %v6806_v46   ;;  %v13579_v43 = vsel %vm5816_vm3, 1, %v15161_v37  ;;  %v5409_v16 = vfloor.f32 %v5368_v7 }
 0x3fc   : > { %v13581_v32 = vmul.f32 2.0, %v5286_v0  ;;  %v5205_v14 = vadd.f32 0.5, %v13555_v2  ;;  %v6058_v24 = vadd.f32 %v6057_v15, %v6018_v50  ;;  %v8074_v60 = vadd.f32 %v4839_v47, %v15471_v11 }
 0x3fd   : > { %vm5891_vm0 = vcmp.eq.s32.totalorder %v13105_v18, 1  ;;  %vm929_vm1 = vcmp.gt.f32.partialorder %v15425_v57, 0.5  ;;  %v5369_v4 = vmul.f32 0.5, %v5328_v58  ;;  %v13590_v40 = vsel %vm13568_vm2, 1, %v15161_v37  ;;  %vm13626_vm2 = vmand %vm928_vm7, %vm969_vm11 }
 0x3fe   : > { %v13592_v7 = vand.u32 2147483647, %v5490_v25  ;;  %vm970_vm14 = vcmp.lt.f32.partialorder %v15425_v57, 16.5  ;;  %v5287_v0 = vfloor.f32 %v5246_v63  ;;  %vm15472_vm12 = vnez %v15262_v44 }
 0x3ff   : > { %v5068_v31 = vsel %vm15472_vm12, %v8074_v60, 0.0  ;;  %v8075_v23 = vadd.f32 %v4842_v21, %v15473_v1  ;;  %vm5892_vm13 = vcmp.eq.s32.totalorder %v13177_v17, 1  ;;  %v5695_v58 = vsub.f32 %v13390_v13, %v5654_v54  ;;  %v15475_v60 = vld [vmem:[#allocation91_spill] sm:$0xff]  ;;  %vm1011_vm7 = vmand %vm929_vm1, %vm970_vm14 }
 0x400   : > { %v5329_v41 = vadd.f32 0.5, %v13575_v61  ;;  %v5930_v46 = vsel %vm5889_vm10, %v5068_v31, 0.0  ;;  %v5491_v25 = vsub.f32 %v13422_v39, %v13581_v32  ;;  %v5655_v15 = vmul.f32 2.0, %v5409_v16 }
 0x401   : > { %v5247_v63 = vmul.f32 0.5, %v5205_v14  ;;  %v5970_v44 = vadd.f32 %v5969_v10, %v5930_v46  ;;  %v6019_v50 = vmul.f32 %v5930_v46, %v5930_v46  ;;  %vm15474_vm5 = vnez %v15267_v51  ;;  %v7600_v14 = vpop.f32.mrb[45].mxu1  ;;  %v4847_v10 = vpop.f32.mrb[44].mxu0 }
 0x402   : > { %v5069_v9 = vsel %vm15474_vm5, %v8075_v23, 0.0  ;;  %v5410_v47 = vfloor.f32 %v5369_v4  ;;  %v5451_v11 = vmul.f32 2.0, %v5287_v0  ;;  %v13610_v34 = vadd.f32 -1.0, %v15475_v60  ;;  %v3341_v0 = vpop.f32.mrb[46].mxu1  ;;  %v8000_v30 = vpop.f32.mrb[45].mxu0 }
 0x403   : > { %v5931_v13 = vsel %vm5890_vm6, %v5069_v9, 0.0  ;;  %v6811_v54 = vpack.c.bf16 %v5069_v9, %v5068_v31  ;;  %v6059_v21 = vadd.f32 %v6058_v24, %v6019_v50  ;;  %v5370_v32 = vmul.f32 0.5, %v5329_v41  ;;  %v7601_v46 = vpop.f32.mrb[47].mxu1 }
 0x404   : > { %v5971_v39 = vadd.f32 %v5970_v44, %v5931_v13  ;;  %v6020_v16 = vmul.f32 %v5931_v13, %v5931_v13  ;;  %v5696_v51 = vsub.f32 %v13469_v26, %v5655_v15  ;;  %vm930_vm10 = vcmp.gt.f32.partialorder %v15449_v20, 0.5  ;;  %v4850_v44 = vpop.f32.mrb[46].mxu0  ;;  %v3346_v14 = vpop.f32.mrb[48].mxu1 }
 0x405   : > { %6867 = vst [vmem:[%s12821_s24 + $0x50] sm:$0xff] %v6811_v54   ;;  %v5288_v4 = vfloor.f32 %v5247_v63  ;;  %v13616_v1 = vadd.f32 -1.0, %v15476_v38  ;;  %v8076_v23 = vadd.f32 %v4847_v10, %v3338_v12  ;;  %v13620_v24 = vand.u32 2147483647, %v5695_v58  ;;  %v8001_v9 = vpop.f32.mrb[47].mxu0 }
 0x406   : > { %v6060_v31 = vadd.f32 %v6059_v21, %v6020_v16  ;;  %v5656_v41 = vmul.f32 2.0, %v5410_v47  ;;  %vm971_vm12 = vcmp.lt.f32.partialorder %v15449_v20, 16.5  ;;  %v5492_v15 = vsub.f32 %v13491_v52, %v5451_v11 }
 0x407   : > { %vm931_vm5 = vcmp.gt.f32.partialorder %v15466_v53, 0.5  ;;  %v5206_v58 = vadd.f32 0.5, %v13610_v34  ;;  %vm15479_vm3 = vnez %v15283_v33  ;;  %v8077_v50 = vadd.f32 %v4850_v44, %v3341_v0 }
 0x408   : > { %v5070_v63 = vsel %vm15479_vm3, %v8076_v23, 0.0  ;;  %v13641_v36 = vand.u32 2147483647, %v5491_v25  ;;  %v5411_v47 = vfloor.f32 %v5370_v32  ;;  %v13645_v13 = vand.u32 2147483647, %v5696_v51  ;;  %v7604_v23 = vpop.f32.mrb[49].mxu1 }
 0x409   : > { %v5932_v52 = vsel %vm5891_vm0, %v5070_v63, 0.0  ;;  %v5452_v54 = vmul.f32 2.0, %v5288_v4  ;;  %v5330_v33 = vadd.f32 0.5, %v13616_v1  ;;  %vm15480_vm11 = vnez %v15320_v62  ;;  %v3349_v44 = vpop.f32.mrb[50].mxu1 }
 0x40a   : > { %v5972_v11 = vadd.f32 %v5971_v39, %v5932_v52  ;;  %v6021_v12 = vmul.f32 %v5932_v52, %v5932_v52  ;;  %v5071_v21 = vsel %vm15480_vm11, %v8077_v50, 0.0  ;;  %vm15481_vm3 = vcmp.gt.f32.partialorder %v15415_v8, 0.5  ;;  %vm13699_vm11 = vmand %vm930_vm10, %vm971_vm12 }
 0x40b   : > { %vm13654_vm1 = vmand %vm13626_vm2, %vm15481_vm3  ;;  %v5697_v18 = vsub.f32 %v13524_v49, %v5656_v41  ;;  %v5933_v25 = vsel %vm5892_vm13, %v5071_v21, 0.0  ;;  %v6816_v16 = vpack.c.bf16 %v5071_v21, %v5070_v63  ;;  %vm15484_vm0 = vcmp.gt.f32.partialorder %v15440_v48, 0.5  ;;  %v4855_v49 = vpop.f32.mrb[48].mxu0 }
 0x40c   : > { %vm13663_vm14 = vmand %vm1011_vm7, %vm15484_vm0  ;;  %v13667_v62 = vand.u32 2147483647, %v5492_v15  ;;  %v5248_v32 = vmul.f32 0.5, %v5206_v58  ;;  %v6061_v10 = vadd.f32 %v6060_v31, %v6021_v12  ;;  %v5973_v51 = vadd.f32 %v5972_v11, %v5933_v25  ;;  %v15490_v31 = vld [vmem:[#allocation96_spill] sm:$0xff]  ;;  %v8004_v58 = vpop.f32.mrb[49].mxu0  ;;  %v15499_v11 = vld [vmem:[#allocation98_spill] sm:$0xff] }
 0x40d   : > { %v6022_v4 = vmul.f32 %v5933_v25, %v5933_v25  ;;  %v5657_v0 = vmul.f32 2.0, %v5411_v47  ;;  %6868 = vst [vmem:[%s12821_s24 + $0x58] sm:$0xff] %v6816_v16   ;;  %vm15487_vm13 = vcmp.lt.f32.partialorder %v15415_v8, 16.5  ;;  %vm972_vm7 = vcmp.lt.f32.partialorder %v15466_v53, 16.5  ;;  %v4858_v63 = vpop.f32.mrb[50].mxu0 }
 0x40e   : > { %vm13674_vm2 = vmand %vm13654_vm1, %vm15487_vm13  ;;  %v5493_v30 = vsub.f32 %v13555_v2, %v5452_v54  ;;  %v5371_v41 = vmul.f32 0.5, %v5330_v33  ;;  %v13681_v46 = vadd.f32 -1.0, %v15490_v31  ;;  %v8078_v15 = vadd.f32 %v4855_v49, %v3346_v14  ;;  %v7605_v2 = vpop.f32.mrb[51].mxu1  ;;  %v8005_v54 = vpop.f32.mrb[51].mxu0 }
 0x40f   : > { %v6062_v26 = vadd.f32 %v6061_v10, %v6022_v4  ;;  %vm15491_vm1 = vcmp.lt.f32.partialorder %v15440_v48, 16.5  ;;  %v15492_v8 = vmov 0  ;;  %vm5573_vm13 = vcmp.lt.f32.partialorder %v13641_v36, 0.5  ;;  %vm13713_vm10 = vmand %vm931_vm5, %vm972_vm7 }
 0x410   : > { %vm13689_vm0 = vmand %vm13663_vm14, %vm15491_vm1  ;;  %vm5574_vm3 = vcmp.lt.f32.partialorder %v13667_v62, 0.5  ;;  %v13704_v48 = vand.u32 2147483647, %v5697_v18  ;;  %v5289_v9 = vfloor.f32 %v5248_v32  ;;  %vm15496_vm14 = vnez %v15323_v22 }
 0x411   : > { %v15493_v8 = vsel %vm13689_vm0, 4294967295, %v15492_v8  ;;  %v5072_v47 = vsel %vm15496_vm14, %v8078_v15, 0.0  ;;  %v8079_v52 = vadd.f32 %v4858_v63, %v3349_v44  ;;  %v5698_v33 = vsub.f32 %v13575_v61, %v5657_v0  ;;  %v3354_v0 = vpop.f32.mrb[52].mxu1  ;;  %v4863_v15 = vpop.f32.mrb[52].mxu0 }
 0x412   : > { %v13719_v12 = vadd.f32 -1.0, %v15499_v11  ;;  %vm15500_vm12 = vcmp.eq.s32.totalorder %v13188_v55, 1  ;;  %vm15501_vm14 = vcmp.lt.f32.partialorder %v13592_v7, 0.5  ;;  %v5534_v53 = vand.u32 2147483647, %v5493_v30  ;;  %v15508_v7 = vld [vmem:[#allocation97_spill] sm:$0xff] }
 0x413   : > { %v5934_v22 = vsel %vm15500_vm12, %v5072_v47, 0.0  ;;  %vm13727_vm1 = vmand %vm13674_vm2, %vm15501_vm14  ;;  %v5412_v57 = vfloor.f32 %v5371_v41  ;;  %v5207_v18 = vadd.f32 0.5, %v13681_v46  ;;  %vm15504_vm5 = vnez %v15372_v35  ;;  %v7608_v44 = vpop.f32.mrb[53].mxu1 }
 0x414   : > { %v5974_v25 = vadd.f32 %v5973_v51, %v5934_v22  ;;  %v6023_v61 = vmul.f32 %v5934_v22, %v5934_v22  ;;  %v5073_v16 = vsel %vm15504_vm5, %v8079_v52, 0.0  ;;  %vm15505_vm7 = vcmp.gt.f32.partialorder %v15457_v42, 0.5  ;;  %v15513_v51 = vld [vmem:[#allocation99_spill] sm:$0xff]  ;;  %v3357_v63 = vpop.f32.mrb[54].mxu1 }
 0x415   : > { %vm13738_vm12 = vmand %vm13699_vm11, %vm15505_vm7  ;;  %v13743_v39 = vadd.f32 -1.0, %v15508_v7  ;;  %vm15509_vm14 = vcmp.eq.s32.totalorder %v13438_v59, 1  ;;  %v6821_v14 = vpack.c.bf16 %v5073_v16, %v5072_v47  ;;  %vm15510_vm6 = vcmp.gt.f32.partialorder %v15470_v28, 0.5  ;;  %v8008_v47 = vpop.f32.mrb[53].mxu0  ;;  %v7609_v54 = vpop.f32.mrb[55].mxu1 }
 0x416   : > { %v5935_v32 = vsel %vm15509_vm14, %v5073_v16, 0.0  ;;  %vm13751_vm5 = vmand %vm13713_vm10, %vm15510_vm6  ;;  %v5453_v10 = vmul.f32 2.0, %v5289_v9  ;;  %v13756_v4 = vadd.f32 -1.0, %v15513_v51  ;;  %v6063_v23 = vadd.f32 %v6062_v26, %v6023_v61  ;;  %v4866_v20 = vpop.f32.mrb[54].mxu0  ;;  %v3362_v35 = vpop.f32.mrb[56].mxu1 }
 0x417   : > { %v5975_v49 = vadd.f32 %v5974_v25, %v5935_v32  ;;  %v6024_v30 = vmul.f32 %v5935_v32, %v5935_v32  ;;  %vm15514_vm11 = vcmp.lt.f32.partialorder %v13620_v24, 0.5  ;;  %v5331_v41 = vadd.f32 0.5, %v13719_v12  ;;  %6869 = vst [vmem:[%s12821_s24 + $0x60] sm:$0xff] %v6821_v14   ;;  %v15553_v14 = vld [vmem:[#allocation104_spill] sm:$0xff] }
 0x418   : > { %vm13762_vm7 = vmand %vm13727_vm1, %vm15514_vm11  ;;  %vm15517_vm6 = vcmp.lt.f32.partialorder %v15457_v42, 16.5  ;;  %v5739_v24 = vand.u32 2147483647, %v5698_v33  ;;  %v13776_v58 = vmul.f32 2.0, %v5412_v57  ;;  %v5249_v2 = vmul.f32 0.5, %v5207_v18  ;;  %v8009_v18 = vpop.f32.mrb[55].mxu0 }
 0x419   : > { %vm13772_vm10 = vmand %vm13738_vm12, %vm15517_vm6  ;;  %v6064_v50 = vadd.f32 %v6063_v23, %v6024_v30  ;;  %v8080_v9 = vadd.f32 %v4863_v15, %v3354_v0  ;;  %vm15520_vm14 = vcmp.lt.f32.partialorder %v15470_v28, 16.5  ;;  %v5208_v52 = vadd.f32 0.5, %v13743_v39  ;;  %v7612_v30 = vpop.f32.mrb[57].mxu1 }
 0x41a   : > { %vm13783_vm11 = vmand %vm13751_vm5, %vm15520_vm14  ;;  %v5494_v28 = vsub.f32 %v13610_v34, %v5453_v10  ;;  %v5332_v22 = vadd.f32 0.5, %v13756_v4  ;;  %vm15525_vm14 = vnez %v15376_v19  ;;  %v8081_v57 = vadd.f32 %v4866_v20, %v3357_v63  ;;  %v3365_v63 = vpop.f32.mrb[58].mxu1 }
 0x41b   : > { %vm13792_vm6 = vmand %vm13689_vm0, %vm5573_vm13  ;;  %v5074_v21 = vsel %vm15525_vm14, %v8080_v9, 0.0  ;;  %vm5779_vm1 = vcmp.lt.f32.partialorder %v13704_v48, 0.5  ;;  %v5372_v34 = vmul.f32 0.5, %v5331_v41  ;;  %vm15528_vm5 = vcmp.eq.s32.totalorder %v13505_v45, 1  ;;  %v4871_v41 = vpop.f32.mrb[56].mxu0  ;;  %v7613_v20 = vpop.f32.mrb[59].mxu1 }
 0x41c   : > { %vm13807_vm13 = vmand %vm13772_vm10, %vm5574_vm3  ;;  %v5936_v25 = vsel %vm15528_vm5, %v5074_v21, 0.0  ;;  %vm15529_vm0 = vcmp.lt.f32.partialorder %v5534_v53, 0.5  ;;  %v5699_v62 = vsub.f32 %v13616_v1, %v13776_v58  ;;  %v5290_v61 = vfloor.f32 %v5249_v2  ;;  %v15541_v58 = vld [vmem:[#allocation100_spill] sm:$0xff]  ;;  %v8012_v47 = vpop.f32.mrb[57].mxu0 }
 0x41d   : > { %vm13817_vm14 = vmand %vm13783_vm11, %vm15529_vm0  ;;  %v5976_v16 = vadd.f32 %v5975_v49, %v5936_v25  ;;  %v6025_v55 = vmul.f32 %v5936_v25, %v5936_v25  ;;  %v5075_v48 = vsel %vm13367_vm4, %v8081_v57, 0.0  ;;  %vm15532_vm3 = vcmp.lt.f32.partialorder %v13645_v13, 0.5  ;;  %v4874_v33 = vpop.f32.mrb[58].mxu0 }
 0x41e   : > { %vm13829_vm5 = vmand %vm13792_vm6, %vm15532_vm3  ;;  %v5250_v53 = vmul.f32 0.5, %v5208_v52  ;;  %vm15535_vm0 = vcmp.eq.s32.totalorder %v13510_v6, 1  ;;  %v6826_v1 = vpack.c.bf16 %v5075_v48, %v5074_v21  ;;  %v13841_v27 = vand.u32 2147483647, %v5494_v28  ;;  %v8013_v18 = vpop.f32.mrb[59].mxu0 }
 0x41f   : > { %v5937_v32 = vsel %vm15535_vm0, %v5075_v48, 0.0  ;;  %vm13837_vm12 = vmand %vm13807_vm13, %vm5779_vm1  ;;  %v5373_v13 = vmul.f32 0.5, %v5332_v22  ;;  %v6065_v10 = vadd.f32 %v6064_v50, %v6025_v55  ;;  %vm15538_vm4 = vcmp.lt.f32.partialorder %v5739_v24, 0.5 }
 0x420   : > { %v5977_v0 = vadd.f32 %v5976_v16, %v5937_v32  ;;  %v6026_v23 = vmul.f32 %v5937_v32, %v5937_v32  ;;  %vm13846_vm6 = vmand %vm13817_vm14, %vm15538_vm4  ;;  %v5413_v49 = vfloor.f32 %v5372_v34  ;;  %6870 = vst [vmem:[%s12821_s24 + $0x68] sm:$0xff] %v6826_v1   ;;  %v13854_v44 = vsel %vm13762_vm7, 1, %v15161_v37  ;;  %v15546_v34 = vld [vmem:[#allocation101_spill] sm:$0xff] }
 0x421   : > { %v13859_v15 = vsel %vm13829_vm5, 1, %v15161_v37  ;;  %v5454_v24 = vmul.f32 2.0, %v5290_v61  ;;  %v13862_v2 = vadd.f32 -1.0, %v15541_v58  ;;  %v8082_v9 = vadd.f32 %v4871_v41, %v3362_v35  ;;  %v15551_v61 = vld [vmem:[#allocation103_spill] sm:$0xff]  ;;  %v3370_v35 = vpop.f32.mrb[60].mxu1 }
 0x422   : > { %v6066_v50 = vadd.f32 %v6065_v10, %v6026_v23  ;;  %vm5899_vm1 = vcmp.eq.s32.totalorder %v13590_v40, 1  ;;  %v13868_v59 = vsel %vm13837_vm12, 1, %v15161_v37  ;;  %vm15542_vm7 = vcmp.lt.f32.partialorder %v15475_v60, 16.5  ;;  %v7616_v6 = vpop.f32.mrb[61].mxu1 }
 0x423   : > { %vm15543_vm13 = vcmp.gt.f32.partialorder %v15475_v60, 0.5  ;;  %v5291_v54 = vfloor.f32 %v5250_v53  ;;  %v13881_v28 = vsel %vm13846_vm6, 1, %v15161_v37  ;;  %vm5576_vm3 = vcmp.lt.f32.partialorder %v13841_v27, 0.5 }
 0x424   : > { %vm13874_vm14 = vmand %vm15543_vm13, %vm15542_vm7  ;;  %v13884_v22 = vand.u32 2147483647, %v5699_v62  ;;  %v5414_v21 = vfloor.f32 %v5373_v13  ;;  %v5076_v60 = vsel %vm13414_vm15, %v8082_v9, 0.0  ;;  %v8083_v57 = vadd.f32 %v4874_v33, %v3365_v63  ;;  %v15557_v9 = vld [vmem:[#allocation105_spill] sm:$0xff] }
 0x425   : > { %vm5900_vm12 = vcmp.eq.s32.totalorder %v13854_v44, 1  ;;  %v13889_v36 = vmul.f32 2.0, %v5413_v49  ;;  %v13892_v25 = vadd.f32 -1.0, %v15546_v34  ;;  %vm15547_vm5 = vcmp.eq.s32.totalorder %v13529_v56, 1  ;;  %v4879_v49 = vpop.f32.mrb[60].mxu0 }
 0x426   : > { %v5938_v19 = vsel %vm15547_vm5, %v5076_v60, 0.0  ;;  %vm15548_vm0 = vcmp.gt.f32.partialorder %v15476_v38, 0.5  ;;  %vm933_vm15 = vcmp.gt.f32.partialorder %v15490_v31, 0.5  ;;  %vm974_vm6 = vcmp.lt.f32.partialorder %v15490_v31, 16.5 }
 0x427   : > { %vm13900_vm4 = vmand %vm13874_vm14, %vm15548_vm0  ;;  %v5495_v29 = vsub.f32 %v13681_v46, %v5454_v24  ;;  %v13908_v16 = vadd.f32 -1.0, %v15551_v61  ;;  %v5209_v56 = vadd.f32 0.5, %v13862_v2  ;;  %v5978_v55 = vadd.f32 %v5977_v0, %v5938_v19  ;;  %v3373_v24 = vpop.f32.mrb[62].mxu1 }
 0x428   : > { %v6027_v48 = vmul.f32 %v5938_v19, %v5938_v19  ;;  %v5077_v45 = vsel %vm13478_vm8, %v8083_v57, 0.0  ;;  %vm934_vm7 = vcmp.gt.f32.partialorder %v15508_v7, 0.5  ;;  %vm975_vm13 = vcmp.lt.f32.partialorder %v15508_v7, 16.5  ;;  %v7617_v52 = vpop.f32.mrb[63].mxu1 }
 0x429   : > { %v5455_v53 = vmul.f32 2.0, %v5291_v54  ;;  %vm15552_vm14 = vcmp.eq.s32.totalorder %v13579_v43, 1  ;;  %v6831_v46 = vpack.c.bf16 %v5077_v45, %v5076_v60  ;;  %v13917_v1 = vmul.f32 2.0, %v5414_v21 }
 0x42a   : > { %v5939_v32 = vsel %vm15552_vm14, %v5077_v45, 0.0  ;;  %v13920_v13 = vadd.f32 -1.0, %v15553_v14  ;;  %v6067_v10 = vadd.f32 %v6066_v50, %v6027_v48  ;;  %vm15554_vm8 = vcmp.lt.f32.partialorder %v15476_v38, 16.5  ;;  %v8016_v50 = vpop.f32.mrb[61].mxu0 }
 0x42b   : > { %v5979_v0 = vadd.f32 %v5978_v55, %v5939_v32  ;;  %v6028_v5 = vmul.f32 %v5939_v32, %v5939_v32  ;;  %vm13926_vm5 = vmand %vm13900_vm4, %vm15554_vm8  ;;  %v5210_v43 = vadd.f32 0.5, %v13892_v25  ;;  %6871 = vst [vmem:[%s12821_s24 + $0x70] sm:$0xff] %v6831_v46   ;;  %vm5781_vm0 = vcmp.lt.f32.partialorder %v13884_v22, 0.5  ;;  %v4882_v54 = vpop.f32.mrb[62].mxu0 }
 0x42c   : > { %v5251_v30 = vmul.f32 0.5, %v5209_v56  ;;  %v5333_v41 = vadd.f32 0.5, %v13908_v16  ;;  %v8084_v63 = vadd.f32 %v4879_v49, %v3370_v35  ;;  %vm976_vm8 = vcmp.lt.f32.partialorder %v15541_v58, 16.5  ;;  %vm13944_vm14 = vmand %vm13926_vm5, %vm5576_vm3  ;;  %v8017_v27 = vpop.f32.mrb[63].mxu0 }
 0x42d   : > { %v6068_v38 = vadd.f32 %v6067_v10, %v6028_v5  ;;  %v13938_v47 = vadd.f32 -1.0, %v15557_v9  ;;  %v13948_v33 = vand.u32 2147483647, %v5495_v29  ;;  %v5700_v21 = vsub.f32 %v13719_v12, %v13889_v36  ;;  %v15560_v36 = vld [vmem:[#allocation107_spill] sm:$0xff]  ;;  %v4887_v44 = vpop.f32.mrb[64].mxu0 }
 0x42e   : > { %v5496_v60 = vsub.f32 %v13743_v39, %v5455_v53  ;;  %v5334_v57 = vadd.f32 0.5, %v13920_v13  ;;  %v5078_v18 = vsel %vm13519_vm9, %v8084_v63, 0.0  ;;  %v8085_v19 = vadd.f32 %v4882_v54, %v3373_v24  ;;  %vm5822_vm9 = vmand %vm13944_vm14, %vm5781_vm0  ;;  %v8020_v63 = vpop.f32.mrb[65].mxu0 }
 0x42f   : > { %vm5902_vm4 = vcmp.eq.s32.totalorder %v13868_v59, 1  ;;  %v5701_v62 = vsub.f32 %v13756_v4, %v13917_v1  ;;  %v5252_v56 = vmul.f32 0.5, %v5210_v43  ;;  %v5940_v29 = vsel %vm5899_vm1, %v5078_v18, 0.0  ;;  %v3378_v1 = vpop.f32.mrb[64].mxu1  ;;  %vm13991_vm1 = vmand %vm934_vm7, %vm975_vm13  ;;  %v4890_v20 = vpop.f32.mrb[66].mxu0 }
 0x430   : > { %v5292_v55 = vfloor.f32 %v5251_v30  ;;  %v5374_v12 = vmul.f32 0.5, %v5333_v41  ;;  %v13962_v39 = vadd.f32 -1.0, %v15560_v36  ;;  %v5980_v48 = vadd.f32 %v5979_v0, %v5940_v29  ;;  %v7620_v5 = vpop.f32.mrb[65].mxu1 }
 0x431   : > { %v6029_v3 = vmul.f32 %v5940_v29, %v5940_v29  ;;  %v5079_v45 = vsel %vm13674_vm2, %v8085_v19, 0.0  ;;  %v5211_v4 = vadd.f32 0.5, %v13938_v47  ;;  %v13973_v32 = vand.u32 2147483647, %v5496_v60  ;;  %vm13979_vm2 = vmand %vm933_vm15, %vm974_vm6  ;;  %v3381_v41 = vpop.f32.mrb[66].mxu1  ;;  %v8021_v19 = vpop.f32.mrb[67].mxu0 }
 0x432   : > { %v5941_v40 = vsel %vm5900_vm12, %v5079_v45, 0.0  ;;  %v6836_v53 = vpack.c.bf16 %v5079_v45, %v5078_v18  ;;  %v5375_v46 = vmul.f32 0.5, %v5334_v57  ;;  %v5293_v22 = vfloor.f32 %v5252_v56  ;;  %v7621_v54 = vpop.f32.mrb[67].mxu1 }
 0x433   : > { %v6069_v35 = vadd.f32 %v6068_v38, %v6029_v3  ;;  %v5981_v10 = vadd.f32 %v5980_v48, %v5941_v40  ;;  %v6030_v0 = vmul.f32 %v5941_v40, %v5941_v40  ;;  %v13985_v43 = vsel %vm5822_vm9, 1, %v15161_v37 }
 0x434   : > { %6872 = vst [vmem:[%s12821_s24 + $0x78] sm:$0xff] %v6836_v53   ;;  %v5415_v31 = vfloor.f32 %v5374_v12  ;;  %v5456_v49 = vmul.f32 2.0, %v5292_v55  ;;  %v5335_v30 = vadd.f32 0.5, %v13962_v39  ;;  %v8086_v38 = vadd.f32 %v4887_v44, %v3378_v1  ;;  %v3386_v53 = vpop.f32.mrb[68].mxu1 }
 0x435   : > { %v6070_v24 = vadd.f32 %v6069_v35, %v6030_v0  ;;  %v5741_v50 = vand.u32 2147483647, %v5700_v21  ;;  %vm15565_vm3 = vcmp.gt.f32.partialorder %v15541_v58, 0.5  ;;  %v5253_v7 = vmul.f32 0.5, %v5211_v4  ;;  %v4895_v0 = vpop.f32.mrb[68].mxu0 }
 0x436   : > { %vm14000_vm12 = vmand %vm15565_vm3, %vm976_vm8  ;;  %vm15568_vm15 = vcmp.gt.f32.partialorder %v15499_v11, 0.5  ;;  %vm5577_vm7 = vcmp.lt.f32.partialorder %v13948_v33, 0.5  ;;  %v14013_v21 = vand.u32 2147483647, %v5701_v62  ;;  %vm936_vm13 = vcmp.gt.f32.partialorder %v15546_v34, 0.5 }
 0x437   : > { %vm14008_vm6 = vmand %vm13979_vm2, %vm15568_vm15  ;;  %v5416_v58 = vfloor.f32 %v5375_v46  ;;  %vm15571_vm0 = vnez %v15493_v8  ;;  %v8087_v18 = vadd.f32 %v4890_v20, %v3381_v41  ;;  %vm15572_vm14 = vcmp.gt.f32.partialorder %v15513_v51, 0.5 }
 0x438   : > { %v5080_v57 = vsel %vm15571_vm0, %v8086_v38, 0.0  ;;  %vm14022_vm8 = vmand %vm13991_vm1, %vm15572_vm14  ;;  %vm5578_vm9 = vcmp.lt.f32.partialorder %v13973_v32, 0.5  ;;  %v5457_v62 = vmul.f32 2.0, %v5293_v22  ;;  %vm15575_vm2 = vcmp.eq.s32.totalorder %v13859_v15, 1 }
 0x439   : > { %v5942_v56 = vsel %vm15575_vm2, %v5080_v57, 0.0  ;;  %vm15576_vm3 = vcmp.gt.f32.partialorder %v15551_v61, 0.5  ;;  %v5497_v29 = vsub.f32 %v13862_v2, %v5456_v49  ;;  %v5661_v55 = vmul.f32 2.0, %v5415_v31 }
 0x43a   : > { %vm14033_vm15 = vmand %vm14000_vm12, %vm15576_vm3  ;;  %v5376_v12 = vmul.f32 0.5, %v5335_v30  ;;  %v5982_v48 = vadd.f32 %v5981_v10, %v5942_v56  ;;  %v6031_v3 = vmul.f32 %v5942_v56, %v5942_v56  ;;  %v5081_v45 = vsel %vm13772_vm10, %v8087_v18, 0.0  ;;  %v7624_v10 = vpop.f32.mrb[69].mxu1 }
 0x43b   : > { %vm15579_vm1 = vcmp.lt.f32.partialorder %v15499_v11, 16.5  ;;  %v5294_v4 = vfloor.f32 %v5253_v7  ;;  %v5943_v2 = vsel %vm5902_vm4, %v5081_v45, 0.0  ;;  %v6841_v40 = vpack.c.bf16 %v5081_v45, %v5080_v57  ;;  %v3389_v44 = vpop.f32.mrb[70].mxu1 }
 0x43c   : > { %vm14044_vm0 = vmand %vm14008_vm6, %vm15579_vm1  ;;  %vm15582_vm12 = vcmp.lt.f32.partialorder %v15513_v51, 16.5  ;;  %vm977_vm10 = vcmp.lt.f32.partialorder %v15546_v34, 16.5  ;;  %v5662_v11 = vmul.f32 2.0, %v5416_v58  ;;  %v6071_v46 = vadd.f32 %v6070_v24, %v6031_v3  ;;  %v7625_v30 = vpop.f32.mrb[71].mxu1 }
 0x43d   : > { %vm14054_vm14 = vmand %vm14022_vm8, %vm15582_vm12  ;;  %v5983_v1 = vadd.f32 %v5982_v48, %v5943_v2  ;;  %v6032_v35 = vmul.f32 %v5943_v2, %v5943_v2  ;;  %vm15585_vm6 = vcmp.lt.f32.partialorder %v15551_v61, 16.5  ;;  %v5498_v51 = vsub.f32 %v13892_v25, %v5457_v62  ;;  %6873 = vst [vmem:[%s12821_s24 + $0x80] sm:$0xff] %v6841_v40   ;;  %v8024_v25 = vpop.f32.mrb[69].mxu0 }
 0x43e   : > { %vm14063_vm4 = vmand %vm14033_vm15, %vm15585_vm6  ;;  %vm5782_vm2 = vcmp.lt.f32.partialorder %v5741_v50, 0.5  ;;  %v5538_v61 = vand.u32 2147483647, %v5497_v29  ;;  %v5702_v22 = vsub.f32 %v13908_v16, %v5661_v55  ;;  %v5417_v5 = vfloor.f32 %v5376_v12  ;;  %v4898_v41 = vpop.f32.mrb[70].mxu0 }
 0x43f   : > { %vm14073_vm8 = vmand %vm14044_vm0, %vm5577_vm7  ;;  %v6072_v6 = vadd.f32 %v6071_v46, %v6032_v35  ;;  %v8088_v31 = vadd.f32 %v4895_v0, %v3386_v53  ;;  %vm5903_vm3 = vcmp.eq.s32.totalorder %v13881_v28, 1  ;;  %v5458_v49 = vmul.f32 2.0, %v5294_v4  ;;  %v8025_v63 = vpop.f32.mrb[71].mxu0 }
 0x440   : > { %vm14083_vm15 = vmand %vm936_vm13, %vm977_vm10  ;;  %vm5783_vm12 = vcmp.lt.f32.partialorder %v14013_v21, 0.5  ;;  %v5703_v34 = vsub.f32 %v13920_v13, %v5662_v11  ;;  %v8089_v38 = vadd.f32 %v4898_v41, %v3389_v44  ;;  %v5539_v32 = vand.u32 2147483647, %v5498_v51  ;;  %v3394_v21 = vpop.f32.mrb[72].mxu1 }
 0x441   : > { %vm14092_vm1 = vmand %vm14054_vm14, %vm5578_vm9  ;;  %v5082_v24 = vsel %vm13783_vm11, %v8088_v31, 0.0  ;;  %vm978_vm9 = vcmp.lt.f32.partialorder %v15557_v9, 16.5  ;;  %vm5579_vm6 = vcmp.lt.f32.partialorder %v5538_v61, 0.5  ;;  %v5743_v7 = vand.u32 2147483647, %v5702_v22 }
 0x442   : > { %vm5823_vm10 = vmand %vm14073_vm8, %vm5782_vm2  ;;  %v5944_v52 = vsel %vm5903_vm3, %v5082_v24, 0.0  ;;  %vm15594_vm7 = vcmp.gt.f32.partialorder %v15553_v14, 0.5  ;;  %v5663_v13 = vmul.f32 2.0, %v5417_v5  ;;  %v5083_v20 = vsel %vm13926_vm5, %v8089_v38, 0.0 }
 0x443   : > { %vm14111_vm13 = vmand %vm14083_vm15, %vm15594_vm7  ;;  %v5984_v50 = vadd.f32 %v5983_v1, %v5944_v52  ;;  %v6033_v54 = vmul.f32 %v5944_v52, %v5944_v52  ;;  %v5499_v60 = vsub.f32 %v13938_v47, %v5458_v49  ;;  %vm15599_vm8 = vcmp.eq.s32.totalorder %v13985_v43, 1  ;;  %v7628_v43 = vpop.f32.mrb[73].mxu1 }
 0x444   : > { %vm14121_vm11 = vmand %vm14092_vm1, %vm5783_vm12  ;;  %v5945_v58 = vsel %vm15599_vm8, %v5083_v20, 0.0  ;;  %v6846_v57 = vpack.c.bf16 %v5083_v20, %v5082_v24  ;;  %v5864_v18 = vsel %vm5823_vm10, 1, %v15161_v37  ;;  %v5744_v19 = vand.u32 2147483647, %v5703_v34  ;;  %v3397_v55 = vpop.f32.mrb[74].mxu1 }
 0x445   : > { %vm15600_vm5 = vcmp.gt.f32.partialorder %v15557_v9, 0.5  ;;  %v6073_v27 = vadd.f32 %v6072_v6, %v6033_v54  ;;  %v5985_v62 = vadd.f32 %v5984_v50, %v5945_v58  ;;  %v6034_v56 = vmul.f32 %v5945_v58, %v5945_v58  ;;  %v4903_v9 = vpop.f32.mrb[72].mxu0  ;;  %vm14152_vm1 = vmand %vm14063_vm4, %vm5579_vm6  ;;  %v7629_v4 = vpop.f32.mrb[75].mxu1 }
 0x446   : > { %vm14133_vm2 = vmand %vm15600_vm5, %vm978_vm9  ;;  %vm15603_vm3 = vcmp.lt.f32.partialorder %v15553_v14, 16.5  ;;  %vm5580_vm7 = vcmp.lt.f32.partialorder %v5539_v32, 0.5  ;;  %6874 = vst [vmem:[%s12821_s24 + $0x88] sm:$0xff] %v6846_v57   ;;  %v5865_v8 = vsel %vm14121_vm11, 1, %v15161_v37  ;;  %vm5784_vm12 = vcmp.lt.f32.partialorder %v5743_v7, 0.5  ;;  %v8028_v3 = vpop.f32.mrb[73].mxu0 }
 0x447   : > { %vm14141_vm15 = vmand %vm14111_vm13, %vm15603_vm3  ;;  %v5704_v14 = vsub.f32 %v13962_v39, %v5663_v13  ;;  %v6074_v12 = vadd.f32 %v6073_v27, %v6034_v56  ;;  %v8090_v48 = vadd.f32 %v4903_v9, %v3394_v21  ;;  %vm5905_vm13 = vcmp.eq.s32.totalorder %v5864_v18, 1  ;;  %v4906_v2 = vpop.f32.mrb[74].mxu0  ;;  %v3402_v61 = vpop.f32.mrb[76].mxu1 }
 0x448   : > { %vm15608_vm10 = vcmp.gt.f32.partialorder %v15560_v36, 0.5  ;;  %v5540_v45 = vand.u32 2147483647, %v5499_v60  ;;  %vm5621_vm6 = vmand %vm14141_vm15, %vm5580_vm7  ;;  %vm5785_vm11 = vcmp.lt.f32.partialorder %v5744_v19, 0.5  ;;  %v8091_v40 = vadd.f32 %v4906_v2, %v3397_v55  ;;  %v8029_v11 = vpop.f32.mrb[75].mxu0  ;;  %v7632_v44 = vpop.f32.mrb[77].mxu1 }
 0x449   : > { %vm1062_vm9 = vmand %vm14133_vm2, %vm15608_vm10  ;;  %v5084_v39 = vsel %vm14044_vm0, %v8090_v48, 0.0  ;;  %vm5906_vm8 = vcmp.eq.s32.totalorder %v5865_v8, 1  ;;  %vm15609_vm2 = vcmp.lt.f32.partialorder %v15560_v36, 16.5  ;;  %v5745_v1 = vand.u32 2147483647, %v5704_v14  ;;  %v4911_v6 = vpop.f32.mrb[76].mxu0 }
 0x44a   : > { %vm5825_vm5 = vmand %vm14152_vm1, %vm5784_vm12  ;;  %v5946_v53 = vsel %vm5905_vm13, %v5084_v39, 0.0  ;;  %v5085_v15 = vsel %vm14054_vm14, %v8091_v40, 0.0  ;;  %vm5581_vm7 = vcmp.lt.f32.partialorder %v5540_v45, 0.5  ;;  %v3405_v26 = vpop.f32.mrb[78].mxu1  ;;  %v8092_v33 = vadd.f32 %v4911_v6, %v3402_v61  ;;  %v8032_v49 = vpop.f32.mrb[77].mxu0 }
 0x44b   : > { %vm14171_vm3 = vmand %vm1062_vm9, %vm15609_vm2  ;;  %v5986_v35 = vadd.f32 %v5985_v62, %v5946_v53  ;;  %v6035_v51 = vmul.f32 %v5946_v53, %v5946_v53  ;;  %v5947_v10 = vsel %vm5906_vm8, %v5085_v15, 0.0  ;;  %v6851_v0 = vpack.c.bf16 %v5085_v15, %v5084_v39  ;;  %v7633_v30 = vpop.f32.mrb[79].mxu1  ;;  %v4914_v41 = vpop.f32.mrb[78].mxu0 }
 0x44c   : > { %vm5826_vm0 = vmand %vm5621_vm6, %vm5785_vm11  ;;  %v5866_v17 = vsel %vm5825_vm5, 1, %v15161_v37  ;;  %v6036_v5 = vmul.f32 %v5947_v10, %v5947_v10  ;;  %vm5786_vm12 = vcmp.lt.f32.partialorder %v5745_v1, 0.5  ;;  %v5086_v16 = vsel %vm14063_vm4, %v8092_v33, 0.0  ;;  %v8033_v24 = vpop.f32.mrb[79].mxu0  ;;  %v3410_v50 = vpop.f32.mrb[80].mxu1 }
 0x44d   : > { %v6075_v22 = vadd.f32 %v6074_v12, %v6035_v51  ;;  %v5987_v36 = vadd.f32 %v5986_v35, %v5947_v10  ;;  %6875 = vst [vmem:[%s12821_s24 + $0x90] sm:$0xff] %v6851_v0   ;;  %v5867_v31 = vsel %vm5826_vm0, 1, %v15161_v37  ;;  %vm5622_vm1 = vmand %vm14171_vm3, %vm5581_vm7  ;;  %vm5907_vm14 = vcmp.eq.s32.totalorder %v5866_v17, 1  ;;  %v7636_v28 = vpop.f32.mrb[81].mxu1  ;;  %v4919_v60 = vpop.f32.mrb[80].mxu0 }
 0x44e   : > { %v8093_v34 = vadd.f32 %v4914_v41, %v3405_v26  ;;  %vm5908_vm13 = vcmp.eq.s32.totalorder %v5867_v31, 1  ;;  %vm5827_vm10 = vmand %vm5622_vm1, %vm5786_vm12  ;;  %v5948_v38 = vsel %vm5907_vm14, %v5086_v16, 0.0  ;;  %v3413_v58 = vpop.f32.mrb[82].mxu1  ;;  %v8094_v18 = vadd.f32 %v4919_v60, %v3410_v50  ;;  %v8036_v19 = vpop.f32.mrb[81].mxu0 }
 0x44f   : > { %v6076_v25 = vadd.f32 %v6075_v22, %v6036_v5  ;;  %v5988_v63 = vadd.f32 %v5987_v36, %v5948_v38  ;;  %v6037_v32 = vmul.f32 %v5948_v38, %v5948_v38  ;;  %v5868_v13 = vsel %vm5827_vm10, 1, %v15161_v37  ;;  %v7637_v23 = vpop.f32.mrb[83].mxu1  ;;  %v4922_v21 = vpop.f32.mrb[82].mxu0 }
 0x450   : > { %v5087_v52 = vsel %vm14141_vm15, %v8093_v34, 0.0  ;;  %vm5909_vm4 = vcmp.eq.s32.totalorder %v5868_v13, 1  ;;  %vm5990_vm9 = vcmask 1043456   ;;  %v5088_v27 = vsel %vm14171_vm3, %v8094_v18, 0.0  ;;  %v8037_v37 = vpop.f32.mrb[83].mxu0 }
 0x451   : > { %v5949_v7 = vsel %vm5908_vm13, %v5087_v52, 0.0  ;;  %v6856_v42 = vpack.c.bf16 %v5087_v52, %v5086_v16  ;;  %v6077_v54 = vadd.f32 %v6076_v25, %v6037_v32  ;;  %v5950_v62 = vsel %vm5909_vm4, %v5088_v27, 0.0 }
 0x452   : > { %v5989_v20 = vadd.f32 %v5988_v63, %v5949_v7  ;;  %v6038_v59 = vmul.f32 %v5949_v7, %v5949_v7  ;;  %v6757_v56 = vpack.c.bf16 %v5088_v27, %v5088_v27  ;;  %v5991_v47 = vsel %vm5990_vm9, %v5950_v62, 0.0 }
 0x453   : > { %6876 = vst [vmem:[%s12821_s24 + $0x98] sm:$0xff] %v6856_v42   ;;  %v6039_v43 = vmul.f32 %v5950_v62, %v5950_v62  ;;  %vm6087_vm15 = vcmask 1040384  }
 0x454   : > { %v6078_v57 = vadd.f32 %v6077_v54, %v6038_v59  ;;  %v5992_v9 = vadd.f32 %v5991_v47, %v5989_v20  ;;  %6295 = vst [vmem:[%s12821_s24 + $0xa0] sm:$0x3] %v6757_v56 }
 0x455   : > { %v6079_v8 = vsel %vm5990_vm9, %v6039_v43, 0.0 }
 0x456   : > { %v5993_v29 = vrot.slane %v5992_v9, 4  ;;  %v6080_v14 = vadd.f32 %v6079_v8, %v6078_v57 }
 0x458   : > { %v5994_v55 = vadd.f32 %v5993_v29, %v5992_v9  ;;  %v6081_v12 = vrot.slane %v6080_v14, 4 }
 0x45a   : > { %v5995_v48 = vrot.slane %v5994_v55, 2  ;;  %v6082_v3 = vadd.f32 %v6081_v12, %v6080_v14 }
 0x45c   : > { %v5996_v45 = vadd.f32 %v5995_v48, %v5994_v55  ;;  %v6083_v4 = vrot.slane %v6082_v3, 2 }
 0x45e   : > { %v5997_v2 = vrot.slane %v5996_v45, 1  ;;  %v6084_v39 = vadd.f32 %v6083_v4, %v6082_v3 }
 0x460   : > { %v6085_v40 = vrot.slane %v6084_v39, 1  ;;  %v5998_v11 = vadd.f32 %v5997_v2, %v5996_v45 }
 0x462   : > { %v6086_v53 = vadd.f32 %v6085_v40, %v6084_v39 }
 0x464   : > { %v6088_v46 = vsel %vm6087_vm15, %v5998_v11, %v6086_v53 }
 0x465   : > { %6089 = vst [vmem:[%s235_s28] sm:$0x3] %v6088_v46 }
 0x466 PF: > { %s16_s18 = sadd.s32 1, %s8788_s18  }
 0x467   : > { %p13_p4 = scmp.ge.s32.totalorder %s16_s18, 4  }
 0x469   :  { %15 = sbr.rel (!%p13_p4) target bundleno = 1 (0x1), region = 86 }

// kernel: basic_block_forward.5
= control target key start
LH: loop header
LB: loop body
LE: loop exit
PB: predicated region body
PF: predicated region fallthrough
CT: control target
= control target key end

     0   :  { %s4268_s27 = smov 0   ;;  %s5912_s0 = inlined_call_operand.vmem [shape: bf16[2,140,128], index: 0, kind: input, shape index: {}]   ;;  %s5913_s1 = inlined_call_operand.vmem [shape: bf16[9,128,128], index: 1, kind: input, shape index: {}]   ;;  %s5914_s2 = inlined_call_operand.vmem [shape: f32[1,128], index: 2, kind: input, shape index: {}]   ;;  %s5915_s3 = inlined_call_operand.vmem [shape: f32[1,128], index: 3, kind: input, shape index: {}]   ;;  %s5916_s4 = inlined_call_operand.vmem [shape: f32[2,100,128], index: 4, kind: input, shape index: {}]   ;;  %s5917_s5 = inlined_call_operand.vmem [shape: f32[1,128], index: 5, kind: input, shape index: {}]   ;;  %s5918_s6 = inlined_call_operand.vmem [shape: f32[1,128], index: 6, kind: input, shape index: {}]   ;;  %s5919_s7 = inlined_call_operand.vmem [shape: bf16[128,128], index: 7, kind: input, shape index: {}]   ;;  %s5920_s8 = inlined_call_operand.vmem [shape: f32[2,100,128], index: 8, kind: output, shape index: {}]  }
   0x1 LB: > { %s3038_s28 = sadd.s32 4294967295, %s4219_s27   ;;  %p3042_p0 = scmp.ge.s32.totalorder %s4219_s27, 1  ;;  %s4219_s27 = sphi %s4268_s27, %s18_s27  }
   0x2   : > { %p272_p1 = scmp.lt.s32.totalorder %s4219_s27, 3 }
   0x4   : > { %p273_p2 = pnand %p3042_p0, %p272_p1 }
   0x6   : > { %276 = sbr.rel (%p273_p2) target bundleno = 557 (0x22d), region = 52 }
   0xd   : > { %v4131_v0 = vld [vmem:[%s5913_s1 + $0x40] sm:$0xff]   ;;  %v327_v1 = vlaneseq  ;;  %v5952_v2 = vmov 0.0   ;;  %v4133_v4 = vld [vmem:[%s5913_s1 + $0x48] sm:$0xff]   ;;  %vm5924_vm0 = vmmov 0   ;;  %p311_p3 = scmp.lt.s32.totalorder %s3038_s28, 1  ;;  %v4135_v8 = vld [vmem:[%s5913_s1 + $0x50] sm:$0xff]  }
   0xe   : > { %3470 = vmatprep.subr.bf16.mxu1 %v5952_v2  ;;  %3646 = vmatprep.subr.bf16.mxu0 %v5952_v2  ;;  %v4132_v3 = vld [vmem:[%s5913_s1 + $0x100] sm:$0xff]   ;;  %v4134_v5 = vld [vmem:[%s5913_s1 + $0x108] sm:$0xff]   ;;  %v4136_v9 = vld [vmem:[%s5913_s1 + $0x110] sm:$0xff]  }
   0xf   : > { %3471 = vmatpush3.bf16.msra.mxu1 %v4131_v0  ;;  %3486 = vmatprep.mubr.msk.bf16.mxu1 %vm5924_vm0, %v5952_v2  ;;  %v4293_v6 = vshrl.u32 %v327_v1, 7  ;;  %s6143_s28 = smov (!%p311_p3, %s3038_s28), 1  ;;  %v4137_v14 = vld [vmem:[%s5913_s1 + $0x58] sm:$0xff]   ;;  %v4139_v22 = vld [vmem:[%s5913_s1 + $0x60] sm:$0xff]   ;;  %v4141_v32 = vld [vmem:[%s5913_s1 + $0x68] sm:$0xff]  }
  0x10   : > { %3647 = vmatpush3.bf16.msra.mxu0 %v4132_v3  ;;  %3472 = vmatprep.subr.bf16.mxu1 %v5952_v2  ;;  %s4119_s21 = smul.u32 72, %s6143_s28  ;;  %v4138_v16 = vld [vmem:[%s5913_s1 + $0x118] sm:$0xff]   ;;  %v4140_v23 = vld [vmem:[%s5913_s1 + $0x120] sm:$0xff]   ;;  %v4142_v37 = vld [vmem:[%s5913_s1 + $0x128] sm:$0xff]  }
  0x11   : > { %3648 = vmatprep.subr.bf16.mxu0 %v5952_v2  ;;  %3662 = vmatprep.mubr.msk.bf16.mxu0 %vm5924_vm0, %v5952_v2  ;;  %v4299_v7 = vadd.s32 8, %v4293_v6  ;;  %v346_v10 = vcvt.s32.f32 %v4293_v6  ;;  %v330_v11 = vadd.s32 16, %v4293_v6  ;;  %v331_v13 = vadd.s32 24, %v4293_v6  ;;  %v4143_v42 = vld [vmem:[%s5913_s1 + $0x70] sm:$0xff]   ;;  %v4373_v47 = vld [vmem:[%s5914_s2] ss:$0 sm:$0xff] }
  0x12   : > { %s4330_s30 = scalar_lea.vmem %s5912_s0, %s4119_s21  ;;  %v4337_v24 = vadd.s32 32, %v4293_v6  ;;  %v4144_v48 = vld [vmem:[%s5913_s1 + $0x130] sm:$0xff]   ;;  %v4400_v54 = vld [vmem:[%s5915_s3] ss:$0 sm:$0xff]  ;;  %v4145_v58 = vld [vmem:[%s5913_s1 + $0x78] sm:$0xff]   ;;  %v4452_v3 = vadd.s32 40, %v4293_v6 }
  0x13   : > { %3473 = vmatpush3.bf16.msra.mxu1 %v4133_v4  ;;  %v347_v12 = vcvt.s32.f32 %v4299_v7  ;;  %v348_v15 = vcvt.s32.f32 %v330_v11  ;;  %v349_v17 = vcvt.s32.f32 %v331_v13  ;;  %v364_v18 = vadd.f32 0.5, %v346_v10  ;;  %v3282_v29 = vld [vmem:[%s4330_s30] sm:$0xff]   ;;  %v3313_v30 = vld [vmem:[%s4330_s30 + $0x8] sm:$0xff]   ;;  %v3314_v55 = vld [vmem:[%s4330_s30 + $0x10] sm:$0xff]   ;;  %s4120_s15 = smul.u32 104, %s6143_s28 }
  0x14   : > { %3649 = vmatpush3.bf16.msra.mxu0 %v4134_v5  ;;  %3474 = vmatprep.subr.bf16.mxu1 %v5952_v2  ;;  %v350_v31 = vcvt.s32.f32 %v4337_v24  ;;  %v3283_v36 = vunpack.c.l.bf16 %v3282_v29  ;;  %v3284_v39 = vunpack.c.h.bf16 %v3282_v29  ;;  %v3287_v40 = vunpack.c.l.bf16 %v3313_v30  ;;  %v4146_v0 = vld [vmem:[%s5913_s1 + $0x138] sm:$0xff]   ;;  %v4148_v24 = vld [vmem:[%s5913_s1] sm:$0xff]  }
  0x15   : > { %3650 = vmatprep.subr.bf16.mxu0 %v5952_v2  ;;  %v365_v19 = vadd.f32 0.5, %v347_v12  ;;  %v366_v20 = vadd.f32 0.5, %v348_v15  ;;  %v367_v21 = vadd.f32 0.5, %v349_v17  ;;  %v383_v25 = vmul.f32 0.1, %v364_v18  ;;  %s5523_s22 = scalar_lea.vmem %s5916_s4, %s4120_s15  ;;  %s5860_s13 = scalar_lea.vmem %s5920_s8, %s4120_s15 }
  0x16   : > { %v3288_v41 = vunpack.c.h.bf16 %v3313_v30  ;;  %v689_v60 = vmul.f32 %v3283_v36, %v4373_v47  ;;  %v690_v61 = vmul.f32 %v3284_v39, %v4373_v47  ;;  %v691_v62 = vmul.f32 %v3287_v40, %v4373_v47 }
  0x17   : > { %3475 = vmatpush3.bf16.msra.mxu1 %v4135_v8  ;;  %v384_v26 = vmul.f32 0.1, %v365_v19  ;;  %v385_v27 = vmul.f32 0.1, %v366_v20  ;;  %v386_v28 = vmul.f32 0.1, %v367_v21  ;;  %v4346_v33 = vfloor.f32 %v383_v25 }
  0x18   : > { %3651 = vmatpush3.bf16.msra.mxu0 %v4136_v9  ;;  %3476 = vmatprep.subr.bf16.mxu1 %v5952_v2  ;;  %v692_v63 = vmul.f32 %v3288_v41, %v4373_v47  ;;  %v368_v4 = vadd.f32 0.5, %v350_v31  ;;  %v3291_v5 = vunpack.c.l.bf16 %v3314_v55  ;;  %v3292_v7 = vunpack.c.h.bf16 %v3314_v55 }
  0x19   : > { %3652 = vmatprep.subr.bf16.mxu0 %v5952_v2  ;;  %v4348_v34 = vfloor.f32 %v384_v26  ;;  %v4350_v35 = vfloor.f32 %v385_v27  ;;  %v4356_v38 = vfloor.f32 %v386_v28  ;;  %v419_v43 = vmul.f32 10.0, %v4346_v33 }
  0x1a   : > { %vm455_vm1 = vcmp.gt.f32.partialorder %v4346_v33, 2.5  ;;  %vm473_vm5 = vcmp.lt.f32.partialorder %v4346_v33, 10.5  ;;  %v714_v9 = vadd.f32 %v4400_v54, %v689_v60  ;;  %v716_v11 = vadd.f32 %v4400_v54, %v691_v62  ;;  %v3315_v60 = vld [vmem:[%s4330_s30 + $0x18] sm:$0xff]  }
  0x1b   : > { %3477 = vmatpush3.bf16.msra.mxu1 %v4137_v14  ;;  %v420_v44 = vmul.f32 10.0, %v4348_v34  ;;  %v421_v45 = vmul.f32 10.0, %v4350_v35  ;;  %v422_v46 = vmul.f32 10.0, %v4356_v38  ;;  %vm456_vm2 = vcmp.gt.f32.partialorder %v4348_v34, 2.5  ;;  %vm4393_vm9 = vmand %vm455_vm1, %vm473_vm5 }
  0x1c   : > { %3653 = vmatpush3.bf16.msra.mxu0 %v4138_v16  ;;  %3478 = vmatprep.subr.bf16.mxu1 %v5952_v2  ;;  %vm457_vm3 = vcmp.gt.f32.partialorder %v4350_v35, 2.5  ;;  %vm458_vm4 = vcmp.gt.f32.partialorder %v4356_v38, 2.5  ;;  %v4378_v49 = vsub.f32 %v346_v10, %v419_v43  ;;  %vm474_vm6 = vcmp.lt.f32.partialorder %v4348_v34, 10.5 }
  0x1d   : > { %3654 = vmatprep.subr.bf16.mxu0 %v5952_v2  ;;  %v4380_v50 = vsub.f32 %v347_v12, %v420_v44  ;;  %v4382_v51 = vsub.f32 %v348_v15, %v421_v45  ;;  %v4386_v52 = vsub.f32 %v349_v17, %v422_v46  ;;  %vm475_vm7 = vcmp.lt.f32.partialorder %v4350_v35, 10.5  ;;  %vm4406_vm10 = vmand %vm456_vm2, %vm474_vm6 }
  0x1e   : > { %vm476_vm8 = vcmp.lt.f32.partialorder %v4356_v38, 10.5  ;;  %vm5923_vm11 = vcmp.gt.f32.partialorder %v4378_v49, 0.5  ;;  %vm545_vm14 = vcmp.lt.f32.partialorder %v4378_v49, 8.5  ;;  %vm4416_vm15 = vmand %vm457_vm3, %vm475_vm7  ;;  %v715_v10 = vadd.f32 %v4400_v54, %v690_v61 }
  0x1f   : > { %3479 = vmatpush3.bf16.msra.mxu1 %v4139_v22  ;;  %vm5922_vm12 = vcmp.gt.f32.partialorder %v4380_v50, 0.5  ;;  %vm5921_vm13 = vcmp.gt.f32.partialorder %v4382_v51, 0.5  ;;  %vm5932_vm1 = vcmp.gt.f32.partialorder %v4386_v52, 0.5  ;;  %vm5937_vm2 = vcmp.lt.f32.partialorder %v4380_v50, 8.5  ;;  %vm4431_vm3 = vmand %vm458_vm4, %vm476_vm8 }
  0x20   : > { %3655 = vmatpush3.bf16.msra.mxu0 %v4140_v23  ;;  %3480 = vmatprep.subr.bf16.mxu1 %v5952_v2  ;;  %vm5931_vm5 = vcmp.lt.f32.partialorder %v4382_v51, 8.5  ;;  %vm5930_vm6 = vcmp.lt.f32.partialorder %v4386_v52, 8.5  ;;  %vm4447_vm4 = vmand %vm4393_vm9, %vm5923_vm11  ;;  %v717_v12 = vadd.f32 %v4400_v54, %v692_v63  ;;  %vm889_vm9 = vcmask 1042432  }
  0x21   : > { %3656 = vmatprep.subr.bf16.mxu0 %v5952_v2  ;;  %vm4461_vm7 = vmand %vm4406_vm10, %vm5922_vm12  ;;  %v351_v14 = vcvt.s32.f32 %v4452_v3  ;;  %v387_v15 = vmul.f32 0.1, %v368_v4  ;;  %v693_v16 = vmul.f32 %v3291_v5, %v4373_v47  ;;  %v694_v17 = vmul.f32 %v3292_v7, %v4373_v47  ;;  %v4585_v3 = vld [vmem:[%s4330_s30 + $0x20] sm:$0xff]  }
  0x22   : > { %vm4473_vm8 = vmand %vm4416_vm15, %vm5921_vm13  ;;  %vm732_vm15 = vcmp.ge.f32.partialorder %v714_v9, 0.0  ;;  %vm733_vm13 = vcmp.ge.f32.partialorder %v715_v10, 0.0  ;;  %vm734_vm12 = vcmp.ge.f32.partialorder %v716_v11, 0.0  ;;  %vm735_vm11 = vcmp.ge.f32.partialorder %v717_v12, 0.0 }
  0x23   : > { %3481 = vmatpush3.bf16.msra.mxu1 %v4141_v32  ;;  %vm4484_vm10 = vmand %vm4431_vm3, %vm5932_vm1  ;;  %v750_v20 = vmul.f32 0.01, %v714_v9  ;;  %v751_v21 = vmul.f32 0.01, %v715_v10  ;;  %v752_v22 = vmul.f32 0.01, %v716_v11  ;;  %v4496_v23 = vfloor.f32 %v387_v15 }
  0x24   : > { %3657 = vmatpush3.bf16.msra.mxu0 %v4142_v37  ;;  %3482 = vmatprep.subr.bf16.mxu1 %v5952_v2  ;;  %vm4492_vm0 = vmand %vm4447_vm4, %vm545_vm14  ;;  %v753_v26 = vmul.f32 0.01, %v717_v12  ;;  %v369_v27 = vadd.f32 0.5, %v351_v14  ;;  %v718_v28 = vadd.f32 %v4400_v54, %v693_v16  ;;  %v719_v29 = vadd.f32 %v4400_v54, %v694_v17 }
  0x25   : > { %3658 = vmatprep.subr.bf16.mxu0 %v5952_v2  ;;  %vm4503_vm3 = vmand %vm4461_vm7, %vm5937_vm2  ;;  %v768_v30 = vsel %vm732_vm15, %v714_v9, %v750_v20  ;;  %v769_v32 = vsel %vm733_vm13, %v715_v10, %v751_v21  ;;  %v770_v36 = vsel %vm734_vm12, %v716_v11, %v752_v22  ;;  %v423_v37 = vmul.f32 10.0, %v4496_v23  ;;  %v4150_v9 = vld [vmem:[%s5913_s1 + $0x8] sm:$0xff]  }
  0x26   : > { %vm565_vm4 = vmand %vm4473_vm8, %vm5931_vm5  ;;  %v771_v39 = vsel %vm735_vm11, %v717_v12, %v753_v26  ;;  %v822_v40 = vsel %vm4492_vm0, %v768_v30, 0.0  ;;  %v823_v41 = vsel %vm4503_vm3, %v769_v32, 0.0  ;;  %v388_v45 = vmul.f32 0.1, %v369_v27  ;;  %v4152_v26 = vld [vmem:[%s5913_s1 + $0x10] sm:$0xff]  }
  0x27   : > { %3483 = vmatpush3.bf16.msra.mxu1 %v4143_v42  ;;  %vm566_vm7 = vmand %vm4484_vm10, %vm5930_vm6  ;;  %v824_v42 = vsel %vm565_vm4, %v770_v36, 0.0  ;;  %v4529_v44 = vpack.c.bf16 %v823_v41, %v822_v40  ;;  %v4533_v46 = vsub.f32 %v350_v31, %v423_v37  ;;  %vm459_vm12 = vcmp.gt.f32.partialorder %v4496_v23, 2.5  ;;  %v4147_v36 = vld [vmem:[%s5913_s1 + $0x140] sm:$0xff]  }
  0x28   : > { %3659 = vmatpush3.bf16.msra.mxu0 %v4144_v48  ;;  %3484 = vmatprep.subr.bf16.mxu1 %v5952_v2  ;;  %v825_v43 = vsel %vm566_vm7, %v771_v39, 0.0  ;;  %vm477_vm11 = vcmp.lt.f32.partialorder %v4496_v23, 10.5  ;;  %vm736_vm13 = vcmp.ge.f32.partialorder %v718_v28, 0.0  ;;  %v4540_v55 = vfloor.f32 %v388_v45 }
  0x29   : > { %3660 = vmatprep.subr.bf16.mxu0 %v5952_v2  ;;  %v4535_v48 = vpack.c.bf16 %v825_v43, %v824_v42  ;;  %v890_v53 = vrot.slane %v4529_v44, 5  ;;  %vm495_vm0 = vmand %vm459_vm12, %vm477_vm11  ;;  %vm5929_vm8 = vcmp.gt.f32.partialorder %v4533_v46, 0.5  ;;  %vm5927_vm10 = vcmp.lt.f32.partialorder %v4533_v46, 8.5 }
  0x2a   : > { %vm531_vm15 = vmand %vm495_vm0, %vm5929_vm8  ;;  %vm737_vm3 = vcmp.ge.f32.partialorder %v719_v29, 0.0  ;;  %v754_v56 = vmul.f32 0.01, %v718_v28  ;;  %v755_v57 = vmul.f32 0.01, %v719_v29  ;;  %vm460_vm4 = vcmp.gt.f32.partialorder %v4540_v55, 2.5 }
  0x2b   : > { %3485 = vmatpush3.bf16.msra.mxu1 %v4145_v58  ;;  %v891_v31 = vrot.slane %v4535_v48, 5  ;;  %v424_v58 = vmul.f32 10.0, %v4540_v55  ;;  %vm478_vm7 = vcmp.lt.f32.partialorder %v4540_v55, 10.5  ;;  %vm4555_vm12 = vmand %vm531_vm15, %vm5927_vm10  ;;  %vm1677_vm11 = vcmask 1045504  }
  0x2c   : > { %3661 = vmatpush3.bf16.msra.mxu0 %v4146_v0  ;;  %3514 = vmatprep.subr.bf16.mxu1 %v5952_v2  ;;  %v772_v62 = vsel %vm736_vm13, %v718_v28, %v754_v56  ;;  %v773_v63 = vsel %vm737_vm3, %v719_v29, %v755_v57  ;;  %v1678_v0 = vrot.slane %v4535_v48, 2  ;;  %vm4569_vm0 = vmand %vm460_vm4, %vm478_vm7  ;;  %v4576_v7 = vadd.s32 48, %v4293_v6 }
  0x2d   : > { %3690 = vmatprep.subr.bf16.mxu0 %v5952_v2  ;;  %v892_v61 = vsel %vm889_vm9, %v890_v53, %v891_v31  ;;  %v4567_v1 = vsub.f32 %v351_v14, %v424_v58  ;;  %v826_v5 = vsel %vm4555_vm12, %v772_v62, 0.0  ;;  %v4579_v8 = vadd.s32 56, %v4293_v6 }
  0x2e   : > { %3487 = vmatmul.mubr.bf16.vlgmr.msra.gmra.mrb[0].mxu1 %v892_v61  ;;  %vm6008_vm13 = vmmov 0   ;;  %v3295_v10 = vunpack.c.l.bf16 %v3315_v60  ;;  %v3296_v11 = vunpack.c.h.bf16 %v3315_v60  ;;  %v4590_v12 = vadd.s32 64, %v4293_v6  ;;  %v4154_v60 = vld [vmem:[%s5913_s1 + $0x18] sm:$0xff]  }
  0x2f   : > { %3515 = vmatpush3.bf16.msra.mxu1 %v4148_v24  ;;  %3490 = vmatprep.mubr.msk.bf16.mxu1 %vm6008_vm13, %v5952_v2  ;;  %v4593_v13 = vadd.s32 72, %v4293_v6  ;;  %vm5928_vm15 = vcmp.gt.f32.partialorder %v4567_v1, 0.5  ;;  %vm5926_vm3 = vcmp.lt.f32.partialorder %v4567_v1, 8.5  ;;  %v352_v14 = vcvt.s32.f32 %v4576_v7  ;;  %v4149_v7 = vld [vmem:[%s5913_s1 + $0x148] sm:$0xff]  }
  0x30   : > { %v353_v15 = vcvt.s32.f32 %v4579_v8  ;;  %3516 = vmatprep.subr.bf16.mxu1 %v5952_v2  ;;  %vm532_vm4 = vmand %vm4569_vm0, %vm5928_vm15  ;;  %v695_v16 = vmul.f32 %v3295_v10, %v4373_v47  ;;  %v696_v17 = vmul.f32 %v3296_v11, %v4373_v47  ;;  %v354_v18 = vcvt.s32.f32 %v4590_v12 }
  0x31   : > { %v355_v19 = vcvt.s32.f32 %v4593_v13  ;;  %vm568_vm7 = vmand %vm532_vm4, %vm5926_vm3  ;;  %v370_v20 = vadd.f32 0.5, %v352_v14  ;;  %v3299_v22 = vunpack.c.l.bf16 %v4585_v3  ;;  %v3300_v25 = vunpack.c.h.bf16 %v4585_v3  ;;  %v4158_v13 = vld [vmem:[%s5913_s1 + $0x28] sm:$0xff]  }
  0x32   : > { %v371_v21 = vadd.f32 0.5, %v353_v15  ;;  %v827_v27 = vsel %vm568_vm7, %v773_v63, 0.0  ;;  %v720_v28 = vadd.f32 %v4400_v54, %v695_v16  ;;  %v721_v29 = vadd.f32 %v4400_v54, %v696_v17  ;;  %v4151_v16 = vld [vmem:[%s5913_s1 + $0x150] sm:$0xff]   ;;  %v4156_v17 = vld [vmem:[%s5913_s1 + $0x20] sm:$0xff]  }
  0x33   : > { %3517 = vmatpush3.bf16.msra.mxu1 %v4150_v9  ;;  %v372_v30 = vadd.f32 0.5, %v354_v18  ;;  %v4619_v32 = vpack.c.bf16 %v827_v27, %v826_v5  ;;  %v389_v37 = vmul.f32 0.1, %v370_v20  ;;  %v373_v40 = vadd.f32 0.5, %v355_v19 }
  0x34   : > { %v390_v39 = vmul.f32 0.1, %v371_v21  ;;  %3518 = vmatprep.subr.bf16.mxu1 %v5952_v2  ;;  %vm738_vm12 = vcmp.ge.f32.partialorder %v720_v28, 0.0  ;;  %vm739_vm0 = vcmp.ge.f32.partialorder %v721_v29, 0.0  ;;  %v756_v41 = vmul.f32 0.01, %v720_v28 }
  0x35   : > { %v757_v42 = vmul.f32 0.01, %v721_v29  ;;  %v1679_v43 = vrot.slane %v4619_v32, 2  ;;  %v893_v45 = vrot.slane %v4619_v32, 5  ;;  %v4629_v53 = vfloor.f32 %v389_v37 }
  0x36   : > { %v4631_v24 = vfloor.f32 %v390_v39  ;;  %v4633_v56 = vsel %vm738_vm12, %v720_v28, %v756_v41  ;;  %v391_v58 = vmul.f32 0.1, %v372_v30  ;;  %v392_v59 = vmul.f32 0.1, %v373_v40  ;;  %v4153_v41 = vld [vmem:[%s5913_s1 + $0x158] sm:$0xff]  }
  0x37   : > { %v4635_v57 = vsel %vm739_vm0, %v721_v29, %v757_v42  ;;  %3519 = vmatpush3.bf16.msra.mxu1 %v4152_v26  ;;  %v1680_v61 = vsel %vm1677_vm11, %v1678_v0, %v1679_v43  ;;  %v894_v62 = vsel %vm889_vm9, %v891_v31, %v893_v45  ;;  %v425_v63 = vmul.f32 10.0, %v4629_v53 }
  0x38   : > { %v426_v4 = vmul.f32 10.0, %v4631_v24  ;;  %3520 = vmatprep.subr.bf16.mxu1 %v5952_v2  ;;  %3663 = vmatmul.mubr.bf16.vlgmr.msra.gmra.mrb[0].mxu0 %v1680_v61  ;;  %vm461_vm4 = vcmp.gt.f32.partialorder %v4629_v53, 2.5  ;;  %vm462_vm7 = vcmp.gt.f32.partialorder %v4631_v24, 2.5  ;;  %vm479_vm12 = vcmp.lt.f32.partialorder %v4629_v53, 10.5 }
  0x39   : > { %3491 = vmatmul.mubr.bf16.gmra.mrb[4].mxu1 %v894_v62  ;;  %vm480_vm0 = vcmp.lt.f32.partialorder %v4631_v24, 10.5  ;;  %3691 = vmatpush3.bf16.msra.mxu0 %v4147_v36  ;;  %v4657_v31 = vsub.f32 %v352_v14, %v425_v63  ;;  %vm4661_vm3 = vmand %vm461_vm4, %vm479_vm12  ;;  %v4668_v8 = vfloor.f32 %v391_v58  ;;  %v4670_v9 = vfloor.f32 %v392_v59  ;;  %v3317_v36 = vld [vmem:[%s4330_s30 + $0x28] sm:$0xff]   ;;  %v4155_v62 = vld [vmem:[%s5913_s1 + $0x160] sm:$0xff]  }
  0x3a   : > { %3666 = vmatprep.mubr.msk.bf16.mxu0 %vm6008_vm13, %v5952_v2  ;;  %v4659_v0 = vsub.f32 %v353_v15, %v426_v4  ;;  %3692 = vmatprep.subr.bf16.mxu0 %v5952_v2  ;;  %vm4673_vm10 = vmand %vm462_vm7, %vm480_vm0  ;;  %v697_v10 = vmul.f32 %v3299_v22, %v4373_v47  ;;  %v698_v11 = vmul.f32 %v3300_v25, %v4373_v47  ;;  %v4682_v14 = vadd.s32 80, %v4293_v6  ;;  %v4160_v4 = vld [vmem:[%s5913_s1 + $0x30] sm:$0xff]  }
  0x3b   : > { %6011 = vst [vmem:[#allocation2_spill] sm:$0xff] %v4670_v9  ;;  %3494 = vmatprep.mubr.msk.bf16.mxu1 %vm6008_vm13, %v5952_v2  ;;  %v4685_v15 = vadd.s32 88, %v4293_v6  ;;  %vm5933_vm4 = vcmp.gt.f32.partialorder %v4657_v31, 0.5  ;;  %vm5934_vm12 = vcmp.lt.f32.partialorder %v4657_v31, 8.5  ;;  %3521 = vmatpush3.bf16.msra.mxu1 %v4154_v60  ;;  %v427_v20 = vmul.f32 10.0, %v4668_v8 }
  0x3c   : > { %vm5935_vm7 = vcmp.gt.f32.partialorder %v4659_v0, 0.5  ;;  %vm5936_vm0 = vcmp.lt.f32.partialorder %v4659_v0, 8.5  ;;  %vm533_vm15 = vmand %vm4661_vm3, %vm5933_vm4  ;;  %v428_v21 = vmul.f32 10.0, %v4670_v9  ;;  %vm463_vm8 = vcmp.gt.f32.partialorder %v4668_v8, 2.5  ;;  %3522 = vmatprep.subr.bf16.mxu1 %v5952_v2 }
  0x3d   : > { %vm464_vm6 = vcmp.gt.f32.partialorder %v4670_v9, 2.5  ;;  %vm534_vm5 = vmand %vm4673_vm10, %vm5935_vm7  ;;  %3693 = vmatpush3.bf16.msra.mxu0 %v4149_v7  ;;  %vm481_vm1 = vcmp.lt.f32.partialorder %v4668_v8, 10.5  ;;  %vm482_vm3 = vcmp.lt.f32.partialorder %v4670_v9, 10.5  ;;  %v722_v22 = vadd.f32 %v4400_v54, %v697_v10 }
  0x3e   : > { %v723_v25 = vadd.f32 %v4400_v54, %v698_v11  ;;  %vm4716_vm4 = vmand %vm533_vm15, %vm5934_vm12  ;;  %3694 = vmatprep.subr.bf16.mxu0 %v5952_v2  ;;  %v4723_v27 = vsub.f32 %v354_v18, %v427_v20  ;;  %v4727_v28 = vsub.f32 %v355_v19, %v428_v21  ;;  %v356_v29 = vcvt.s32.f32 %v4682_v14 }
  0x3f   : > { %v357_v30 = vcvt.s32.f32 %v4685_v15  ;;  %vm570_vm10 = vmand %vm534_vm5, %vm5936_vm0  ;;  %v828_v37 = vsel %vm4716_vm4, %v4633_v56, 0.0  ;;  %vm740_vm15 = vcmp.ge.f32.partialorder %v722_v22, 0.0  ;;  %v758_v12 = vmul.f32 0.01, %v722_v22  ;;  %3523 = vmatpush3.bf16.msra.mxu1 %v4156_v17 }
  0x40   : > { %6016 = vst [vmem:[#allocation3_spill] sm:$0xff] %v4723_v27  ;;  %6017 = vst [vmem:[#allocation4_spill] sm:$0xff] %v4727_v28  ;;  %vm741_vm12 = vcmp.ge.f32.partialorder %v723_v25, 0.0  ;;  %v829_v18 = vsel %vm570_vm10, %v4635_v57, 0.0  ;;  %vm5947_vm5 = vcmp.gt.f32.partialorder %v4723_v27, 0.5  ;;  %vm5946_vm0 = vcmp.gt.f32.partialorder %v4727_v28, 0.5  ;;  %3524 = vmatprep.subr.bf16.mxu1 %v5952_v2 }
  0x41   : > { %vm499_vm7 = vmand %vm463_vm8, %vm481_vm1  ;;  %vm5939_vm4 = vcmp.lt.f32.partialorder %v4723_v27, 8.5  ;;  %v4749_v19 = vpack.c.bf16 %v829_v18, %v828_v37  ;;  %3695 = vmatpush3.bf16.msra.mxu0 %v4151_v16  ;;  %vm5938_vm2 = vcmp.lt.f32.partialorder %v4727_v28, 8.5  ;;  %v759_v39 = vmul.f32 0.01, %v723_v25 }
  0x42   : > { %vm500_vm10 = vmand %vm464_vm6, %vm482_vm3  ;;  %v776_v40 = vsel %vm740_vm15, %v722_v22, %v758_v12  ;;  %3696 = vmatprep.subr.bf16.mxu0 %v5952_v2  ;;  %v374_v42 = vadd.f32 0.5, %v356_v29  ;;  %v375_v56 = vadd.f32 0.5, %v357_v30  ;;  %v3303_v57 = vunpack.c.l.bf16 %v3317_v36 }
  0x43   : > { %vm535_vm1 = vmand %vm499_vm7, %vm5947_vm5  ;;  %v3304_v58 = vunpack.c.h.bf16 %v3317_v36  ;;  %v1681_v59 = vrot.slane %v4749_v19, 2  ;;  %v895_v60 = vrot.slane %v4749_v19, 5  ;;  %v777_v61 = vsel %vm741_vm12, %v723_v25, %v759_v39  ;;  %3525 = vmatpush3.bf16.msra.mxu1 %v4158_v13  ;;  %v4157_v39 = vld [vmem:[%s5913_s1 + $0x168] sm:$0xff]  }
  0x44   : > { %vm536_vm6 = vmand %vm500_vm10, %vm5946_vm0  ;;  %v4776_v63 = vadd.s32 96, %v4293_v6  ;;  %v393_v7 = vmul.f32 0.1, %v374_v42  ;;  %v394_v3 = vmul.f32 0.1, %v375_v56  ;;  %v699_v10 = vmul.f32 %v3303_v57, %v4373_v47  ;;  %3526 = vmatprep.subr.bf16.mxu1 %v5952_v2  ;;  %v3318_v56 = vld [vmem:[%s4330_s30 + $0x30] sm:$0xff]  }
  0x45   : > { %vm4783_vm8 = vmand %vm535_vm1, %vm5939_vm4  ;;  %v700_v11 = vmul.f32 %v3304_v58, %v4373_v47  ;;  %v1682_v16 = vsel %vm1677_vm11, %v1679_v43, %v1681_v59  ;;  %v896_v17 = vsel %vm889_vm9, %v893_v45, %v895_v60  ;;  %3697 = vmatpush3.bf16.msra.mxu0 %v4153_v41  ;;  %v4801_v21 = vadd.s32 104, %v4293_v6 }
  0x46   : > { %vm572_vm7 = vmand %vm536_vm6, %vm5938_vm2  ;;  %v830_v20 = vsel %vm4783_vm8, %v776_v40, 0.0  ;;  %3667 = vmatmul.mubr.bf16.gmra.mrb[4].mxu0 %v1682_v16  ;;  %3495 = vmatmul.mubr.bf16.gmra.mrb[8].mxu1 %v896_v17  ;;  %v4803_v25 = vfloor.f32 %v393_v7  ;;  %v4805_v43 = vfloor.f32 %v394_v3  ;;  %v724_v26 = vadd.f32 %v4400_v54, %v699_v10  ;;  %v4162_v40 = vld [vmem:[%s5913_s1 + $0x38] sm:$0xff]  }
  0x47   : > { %v831_v22 = vsel %vm572_vm7, %v777_v61, 0.0  ;;  %3670 = vmatprep.mubr.msk.bf16.mxu0 %vm6008_vm13, %v5952_v2  ;;  %3498 = vmatprep.mubr.msk.bf16.mxu1 %vm6008_vm13, %v5952_v2  ;;  %v725_v36 = vadd.f32 %v4400_v54, %v700_v11  ;;  %v358_v37 = vcvt.s32.f32 %v4776_v63  ;;  %v359_v12 = vcvt.s32.f32 %v4801_v21 }
  0x48   : > { %6020 = vst [vmem:[#allocation5_spill] sm:$0xff] %v4803_v25  ;;  %6021 = vst [vmem:[#allocation6_spill] sm:$0xff] %v4805_v43  ;;  %v4810_v45 = vpack.c.bf16 %v831_v22, %v830_v20  ;;  %v429_v13 = vmul.f32 10.0, %v4803_v25  ;;  %v430_v18 = vmul.f32 10.0, %v4805_v43  ;;  %vm465_vm12 = vcmp.gt.f32.partialorder %v4803_v25, 2.5  ;;  %3698 = vmatprep.subr.bf16.mxu0 %v5952_v2  ;;  %3527 = vmatpush3.bf16.msra.mxu1 %v4160_v4 }
  0x49   : > { %vm466_vm3 = vcmp.gt.f32.partialorder %v4805_v43, 2.5  ;;  %vm483_vm15 = vcmp.lt.f32.partialorder %v4803_v25, 10.5  ;;  %vm484_vm10 = vcmp.lt.f32.partialorder %v4805_v43, 10.5  ;;  %3699 = vmatpush3.bf16.msra.mxu0 %v4155_v62  ;;  %3528 = vmatprep.subr.bf16.mxu1 %v5952_v2  ;;  %vm742_vm6 = vcmp.ge.f32.partialorder %v724_v26, 0.0 }
  0x4a   : > { %v1683_v41 = vrot.slane %v4810_v45, 2  ;;  %v897_v42 = vrot.slane %v4810_v45, 5  ;;  %v4836_v57 = vsub.f32 %v356_v29, %v429_v13  ;;  %v4840_v58 = vsub.f32 %v357_v30, %v430_v18  ;;  %vm4844_vm1 = vmand %vm465_vm12, %vm483_vm15  ;;  %3700 = vmatprep.subr.bf16.mxu0 %v5952_v2 }
  0x4b   : > { %vm743_vm8 = vcmp.ge.f32.partialorder %v725_v36, 0.0  ;;  %vm4857_vm7 = vmand %vm466_vm3, %vm484_vm10  ;;  %v760_v30 = vmul.f32 0.01, %v724_v26  ;;  %v761_v62 = vmul.f32 0.01, %v725_v36  ;;  %v376_v3 = vadd.f32 0.5, %v358_v37 }
  0x4c   : > { %6022 = vst [vmem:[#allocation7_spill] sm:$0xff] %v4836_v57  ;;  %6023 = vst [vmem:[#allocation8_spill] sm:$0xff] %v4840_v58  ;;  %v1684_v14 = vsel %vm1677_vm11, %v1681_v59, %v1683_v41  ;;  %v898_v15 = vsel %vm889_vm9, %v895_v60, %v897_v42  ;;  %vm5943_vm12 = vcmp.gt.f32.partialorder %v4836_v57, 0.5  ;;  %vm5942_vm15 = vcmp.gt.f32.partialorder %v4840_v58, 0.5  ;;  %v4866_v59 = vld [vmem:[%s4330_s30 + $0x38] sm:$0xff]   ;;  %v4159_v60 = vld [vmem:[%s5913_s1 + $0x170] sm:$0xff]   ;;  %3529 = vmatpush3.bf16.msra.mxu1 %v4162_v40 }
  0x4d   : > { %vm5941_vm2 = vcmp.lt.f32.partialorder %v4836_v57, 8.5  ;;  %vm5940_vm4 = vcmp.lt.f32.partialorder %v4840_v58, 8.5  ;;  %vm4875_vm3 = vmand %vm4844_vm1, %vm5943_vm12  ;;  %v778_v5 = vsel %vm742_vm6, %v724_v26, %v760_v30  ;;  %v779_v7 = vsel %vm743_vm8, %v725_v36, %v761_v62  ;;  %3701 = vmatpush3.bf16.msra.mxu0 %v4157_v39  ;;  %3558 = vmatprep.subr.bf16.mxu1 %v5952_v2  ;;  %v4161_v62 = vld [vmem:[%s5913_s1 + $0x178] sm:$0xff]   ;;  %v4175_v58 = vld [vmem:[%s5913_s1 + $0x1b0] sm:$0xff]  }
  0x4e   : > { %v377_v10 = vadd.f32 0.5, %v359_v12  ;;  %3671 = vmatmul.mubr.bf16.gmra.mrb[8].mxu0 %v1684_v14  ;;  %3499 = vmatmul.mubr.bf16.gmra.mrb[12].mxu1 %v898_v15  ;;  %vm538_vm10 = vmand %vm4857_vm7, %vm5942_vm15  ;;  %v3307_v11 = vunpack.c.l.bf16 %v3318_v56  ;;  %v3308_v16 = vunpack.c.h.bf16 %v3318_v56  ;;  %v4891_v17 = vadd.s32 112, %v4293_v6 }
  0x4f   : > { %v4894_v20 = vadd.s32 120, %v4293_v6  ;;  %3674 = vmatprep.mubr.msk.bf16.mxu0 %vm6008_vm13, %v5952_v2  ;;  %vm4902_vm1 = vmand %vm4875_vm3, %vm5941_vm2  ;;  %3502 = vmatprep.mubr.msk.bf16.mxu1 %vm6008_vm13, %v5952_v2  ;;  %v395_v26 = vmul.f32 0.1, %v376_v3  ;;  %v3311_v13 = vunpack.c.l.bf16 %v4866_v59  ;;  %v3312_v18 = vunpack.c.h.bf16 %v4866_v59 }
  0x50   : > { %v396_v36 = vmul.f32 0.1, %v377_v10  ;;  %vm574_vm6 = vmand %vm538_vm10, %vm5940_vm4  ;;  %v832_v39 = vsel %vm4902_vm1, %v778_v5, 0.0  ;;  %v701_v40 = vmul.f32 %v3307_v11, %v4373_v47  ;;  %v702_v56 = vmul.f32 %v3308_v16, %v4373_v47  ;;  %3702 = vmatprep.subr.bf16.mxu0 %v5952_v2 }
  0x51   : > { %v360_v61 = vcvt.s32.f32 %v4891_v17  ;;  %v833_v14 = vsel %vm574_vm6, %v779_v7, 0.0  ;;  %v4918_v15 = vfloor.f32 %v395_v26  ;;  %v361_v30 = vcvt.s32.f32 %v4894_v20  ;;  %3703 = vmatpush3.bf16.msra.mxu0 %v4159_v60 }
  0x52   : > { %v414_v29 = vfloor.f32 %v396_v36  ;;  %v4924_v59 = vpack.c.bf16 %v833_v14, %v832_v39  ;;  %v726_v4 = vadd.f32 %v4400_v54, %v701_v40  ;;  %v727_v5 = vadd.f32 %v4400_v54, %v702_v56  ;;  %3704 = vmatprep.subr.bf16.mxu0 %v5952_v2 }
  0x53   : > { %6032 = vst [vmem:[#allocation9_spill] sm:$0xff] %v4918_v15  ;;  %v378_v3 = vadd.f32 0.5, %v360_v61  ;;  %v431_v7 = vmul.f32 10.0, %v4918_v15  ;;  %vm467_vm8 = vcmp.gt.f32.partialorder %v4918_v15, 2.5  ;;  %vm485_vm3 = vcmp.lt.f32.partialorder %v4918_v15, 10.5 }
  0x54   : > { %v432_v10 = vmul.f32 10.0, %v414_v29  ;;  %vm468_vm7 = vcmp.gt.f32.partialorder %v414_v29, 2.5  ;;  %v1685_v60 = vrot.slane %v4924_v59, 2  ;;  %v899_v11 = vrot.slane %v4924_v59, 5  ;;  %vm4942_vm1 = vmand %vm467_vm8, %vm485_vm3 }
  0x55   : > { %vm486_vm10 = vcmp.lt.f32.partialorder %v414_v29, 10.5  ;;  %v4938_v16 = vsub.f32 %v358_v37, %v431_v7  ;;  %vm744_vm6 = vcmp.ge.f32.partialorder %v726_v4, 0.0  ;;  %vm745_vm4 = vcmp.ge.f32.partialorder %v727_v5, 0.0  ;;  %3705 = vmatpush3.bf16.msra.mxu0 %v4161_v62 }
  0x56   : > { %v450_v22 = vsub.f32 %v359_v12, %v432_v10  ;;  %v1686_v36 = vsel %vm1677_vm11, %v1683_v41, %v1685_v60  ;;  %v900_v63 = vsel %vm889_vm9, %v897_v42, %v899_v11  ;;  %vm4952_vm2 = vmand %vm468_vm7, %vm486_vm10  ;;  %v762_v21 = vmul.f32 0.01, %v726_v4  ;;  %3734 = vmatprep.subr.bf16.mxu0 %v5952_v2 }
  0x57   : > { %6033 = vst [vmem:[#allocation10_spill] sm:$0xff] %v4938_v16  ;;  %v763_v12 = vmul.f32 0.01, %v727_v5  ;;  %3675 = vmatmul.mubr.bf16.gmra.mrb[12].mxu0 %v1686_v36  ;;  %3503 = vmatmul.mubr.bf16.gmra.mrb[16].mxu1 %v900_v63  ;;  %vm5944_vm8 = vcmp.gt.f32.partialorder %v4938_v16, 0.5  ;;  %vm5945_vm15 = vcmp.lt.f32.partialorder %v4938_v16, 8.5  ;;  %v379_v42 = vadd.f32 0.5, %v361_v30 }
  0x58   : > { %vm522_vm3 = vcmp.gt.f32.partialorder %v450_v22, 0.5  ;;  %3678 = vmatprep.mubr.msk.bf16.mxu0 %vm6008_vm13, %v5952_v2  ;;  %vm539_vm7 = vmand %vm4942_vm1, %vm5944_vm8  ;;  %vm558_vm10 = vcmp.lt.f32.partialorder %v450_v22, 8.5  ;;  %v780_v41 = vsel %vm744_vm6, %v726_v4, %v762_v21  ;;  %3506 = vmatprep.mubr.msk.bf16.mxu1 %vm6008_vm13, %v5952_v2  ;;  %v397_v39 = vmul.f32 0.1, %v378_v3  ;;  %v4171_v16 = vld [vmem:[%s5913_s1 + $0x1a0] sm:$0xff]  }
  0x59   : > { %vm540_vm12 = vmand %vm4952_vm2, %vm522_vm3  ;;  %v781_v40 = vsel %vm745_vm4, %v727_v5, %v763_v12  ;;  %v703_v56 = vmul.f32 %v3311_v13, %v4373_v47  ;;  %v704_v14 = vmul.f32 %v3312_v18, %v4373_v47  ;;  %v398_v29 = vmul.f32 0.1, %v379_v42 }
  0x5a   : > { %vm575_vm1 = vmand %vm539_vm7, %vm5945_vm15  ;;  %v415_v62 = vfloor.f32 %v397_v39  ;;  %v5007_v42 = vshll.u32 %v4535_v48, 16  ;;  %v6041_v15 = vmov 0.0   ;;  %v5231_v28 = vadd.s32 136, %v4293_v6 }
  0x5b   : > { %vm576_vm6 = vmand %vm540_vm12, %vm558_vm10  ;;  %v834_v4 = vsel %vm575_vm1, %v780_v41, 0.0  ;;  %v728_v7 = vadd.f32 %v4400_v54, %v703_v56  ;;  %v729_v3 = vadd.f32 %v4400_v54, %v704_v14  ;;  %v416_v22 = vfloor.f32 %v398_v29 }
  0x5c   : > { %v835_v10 = vsel %vm576_vm6, %v781_v40, 0.0  ;;  %v433_v26 = vmul.f32 10.0, %v415_v62  ;;  %vm469_vm2 = vcmp.gt.f32.partialorder %v415_v62, 2.5  ;;  %vm487_vm4 = vcmp.lt.f32.partialorder %v415_v62, 10.5 }
  0x5d   : > { %v4979_v5 = vpack.c.bf16 %v835_v10, %v834_v4  ;;  %vm746_vm3 = vcmp.ge.f32.partialorder %v728_v7, 0.0  ;;  %vm747_vm8 = vcmp.ge.f32.partialorder %v729_v3, 0.0  ;;  %v434_v47 = vmul.f32 10.0, %v416_v22  ;;  %vm505_vm10 = vmand %vm469_vm2, %vm487_vm4 }
  0x5e   : > { %v451_v13 = vsub.f32 %v360_v61, %v433_v26  ;;  %vm470_vm7 = vcmp.gt.f32.partialorder %v416_v22, 2.5  ;;  %vm488_vm12 = vcmp.lt.f32.partialorder %v416_v22, 10.5  ;;  %v764_v36 = vmul.f32 0.01, %v728_v7 }
  0x5f   : > { %v1687_v18 = vrot.slane %v4979_v5, 2  ;;  %v901_v54 = vrot.slane %v4979_v5, 5  ;;  %v765_v63 = vmul.f32 0.01, %v729_v3  ;;  %v452_v37 = vsub.f32 %v361_v30, %v434_v47  ;;  %vm4987_vm1 = vmand %vm470_vm7, %vm488_vm12 }
  0x60   : > { %vm523_vm6 = vcmp.gt.f32.partialorder %v451_v13, 0.5  ;;  %vm559_vm15 = vcmp.lt.f32.partialorder %v451_v13, 8.5  ;;  %v782_v12 = vsel %vm746_vm3, %v728_v7, %v764_v36  ;;  %v5949_v41 = vshrl.u32 %v4529_v44, 16 }
  0x61   : > { %v1688_v17 = vsel %vm1677_vm11, %v1685_v60, %v1687_v18  ;;  %v902_v61 = vsel %vm889_vm9, %v899_v11, %v901_v54  ;;  %vm541_vm2 = vmand %vm505_vm10, %vm523_vm6  ;;  %vm524_vm4 = vcmp.gt.f32.partialorder %v452_v37, 0.5  ;;  %vm560_vm0 = vcmp.lt.f32.partialorder %v452_v37, 8.5 }
  0x62   : > { %3679 = vmatmul.mubr.bf16.gmra.mrb[16].mxu0 %v1688_v17  ;;  %3507 = vmatmul.mubr.bf16.gmra.mrb[20].mxu1 %v902_v61  ;;  %vm577_vm5 = vmand %vm541_vm2, %vm559_vm15  ;;  %v783_v20 = vsel %vm747_vm8, %v729_v3, %v765_v63  ;;  %v5948_v30 = vshll.u32 %v4529_v44, 16  ;;  %v5004_v11 = vshrl.u32 %v4535_v48, 16  ;;  %v1050_v56 = vrot.slane %v5949_v41, 4  ;;  %v4166_v61 = vld [vmem:[%s5913_s1 + $0x88] sm:$0xff]  }
  0x63   : > { %3682 = vmatprep.mubr.msk.bf16.mxu0 %vm6008_vm13, %v5952_v2  ;;  %vm542_vm9 = vmand %vm4987_vm1, %vm524_vm4  ;;  %v836_v60 = vsel %vm577_vm5, %v782_v12, 0.0  ;;  %3510 = vmatprep.mubr.msk.bf16.mxu1 %vm6008_vm13, %v5952_v2  ;;  %v1061_v62 = vrot.slane %v5007_v42, 5  ;;  %v5024_v22 = vshrl.u32 %v4619_v32, 16  ;;  %v5027_v26 = vshll.u32 %v4619_v32, 16 }
  0x64   : > { %vm578_vm15 = vmand %vm542_vm9, %vm560_vm0  ;;  %v1053_v14 = vrot.slane %v5948_v30, 5  ;;  %v1058_v29 = vrot.slane %v5004_v11, 4  ;;  %vm1046_vm0 = vsmask.f32 3328  ;;  %v1865_v47 = vrot.slane %v5004_v11, 2 }
  0x65   : > { %v837_v39 = vsel %vm578_vm15, %v783_v20, 0.0  ;;  %v1067_v36 = vrot.slane %v5024_v22, 4  ;;  %v1070_v63 = vrot.slane %v5027_v26, 5  ;;  %v1868_v37 = vrot.slane %v5024_v22, 2 }
  0x66   : > { %v5009_v40 = vpack.c.bf16 %v837_v39, %v836_v60  ;;  %v1054_v3 = vor.u32 %v1053_v14, %v1050_v56  ;;  %v1062_v10 = vor.u32 %v1061_v62, %v1058_v29  ;;  %v1869_v21 = vrot.slane %v5027_v26, 3  ;;  %v4163_v29 = vld [vmem:[%s5913_s1 + $0x180] sm:$0xff]  }
  0x67   : > { %v1071_v17 = vor.u32 %v1070_v63, %v1067_v36  ;;  %v5047_v60 = vshrl.u32 %v4749_v19, 16  ;;  %v5050_v39 = vshll.u32 %v4749_v19, 16  ;;  %v2066_v56 = vrot.slane %v5004_v11, 6 }
  0x68   : > { %v1689_v4 = vrot.slane %v5009_v40, 2  ;;  %v1063_v13 = vsel %vm1046_vm0, %v1054_v3, %v1062_v10  ;;  %v1870_v20 = vor.u32 %v1869_v21, %v1868_v37  ;;  %v2067_v14 = vrot.slane %v5007_v42, 7 }
  0x69   : > { %6040 = vst [vmem:[#allocation11_spill] sm:$0xff] %v5047_v60  ;;  %v1072_v62 = vsel %vm1046_vm0, %v1062_v10, %v1071_v17  ;;  %v4165_v10 = vld [vmem:[%s5913_s1 + $0x188] sm:$0xff]   ;;  %v5078_v37 = vshrl.u32 %v4810_v45, 16  ;;  %v5081_v21 = vshll.u32 %v4810_v45, 16  ;;  %vm1470_vm5 = vsmask.f32 6400 }
  0x6a   : > { %v1690_v7 = vsel %vm1677_vm11, %v1687_v18, %v1689_v4  ;;  %3511 = vmatmul.mubr.bf16.gmra.mrb[24].mxu1 %v901_v54  ;;  %v1866_v18 = vrot.slane %v5007_v42, 3  ;;  %v4164_v54 = vld [vmem:[%s5913_s1 + $0x80] sm:$0xff]   ;;  %vm1864_vm11 = vsmask.f32 5376  ;;  %v5061_v3 = vor.u32 %v2067_v14, %v2066_v56 }
  0x6b   : > { %3683 = vmatmul.mubr.bf16.gmra.mrb[20].mxu0 %v1690_v7  ;;  %3530 = vmatprep.mubr.msk.bf16.mxu1 %vm6008_vm13, %v5952_v2  ;;  %v1079_v7 = vrot.slane %v5050_v39, 5  ;;  %v1085_v56 = vrot.slane %v5078_v37, 4  ;;  %v1088_v14 = vrot.slane %v5081_v21, 5  ;;  %vm2272_vm8 = vcmask 1040384  }
  0x6c   : > { %3686 = vmatprep.mubr.msk.bf16.mxu0 %vm6008_vm13, %v5952_v2  ;;  %v1867_v12 = vor.u32 %v1866_v18, %v1865_v47  ;;  %v1873_v18 = vrot.slane %v5050_v39, 3  ;;  %vm5976_vm3 = vsmask.f32 256  ;;  %v1273_v57 = vrot.slane %v5004_v11, 5 }
  0x6d   : > { %v1274_v43 = vrot.slane %v5007_v42, 6  ;;  %vm1269_vm7 = vsmask.f32 2304  ;;  %vm2065_vm12 = vsmask.f32 1280  ;;  %v6046_v9 = vcvt.s32.f32 %v5231_v28 }
  0x6e   : > { %v1871_v47 = vsel %vm1864_vm11, %v1867_v12, %v1870_v20 }
  0x72   : > { %3531 = vmatmul.mubr.bf16.vlgmr.msra.gmra.mrb[0].mxu1 %v1063_v13  ;;  %v1872_v13 = vrot.slane %v5047_v60, 2 }
  0x73   : > { %3687 = vmatmul.mubr.bf16.gmra.mrb[24].mxu0 %v1689_v4  ;;  %3559 = vmatpush3.bf16.msra.mxu1 %v4164_v54  ;;  %v1076_v4 = vrot.slane %v5047_v60, 4  ;;  %v4168_v54 = vld [vmem:[%s5913_s1 + $0x90] sm:$0xff]  }
  0x74   : > { %3706 = vmatprep.mubr.msk.bf16.mxu0 %vm6008_vm13, %v5952_v2  ;;  %3534 = vmatprep.mubr.msk.bf16.mxu1 %vm6008_vm13, %v5952_v2  ;;  %v1874_v63 = vor.u32 %v1873_v18, %v1872_v13  ;;  %v4169_v18 = vld [vmem:[%s5913_s1 + $0x198] sm:$0xff]  }
  0x75   : > { %3560 = vmatprep.subr.bf16.mxu1 %v5952_v2  ;;  %v1080_v36 = vor.u32 %v1079_v7, %v1076_v4  ;;  %v1876_v4 = vrot.slane %v5078_v37, 2  ;;  %v1877_v7 = vrot.slane %v5081_v21, 3 }
  0x77   : > { %3561 = vmatpush3.bf16.msra.mxu1 %v4166_v61  ;;  %v4170_v61 = vld [vmem:[%s5913_s1 + $0x98] sm:$0xff]   ;;  %v1081_v12 = vsel %vm1046_vm0, %v1071_v17, %v1080_v36  ;;  %v4172_v17 = vld [vmem:[%s5913_s1 + $0xa0] sm:$0xff]   ;;  %v1878_v13 = vor.u32 %v1877_v7, %v1876_v4 }
  0x78   : > { %3562 = vmatprep.subr.bf16.mxu1 %v5952_v2 }
  0x79   : > { %v1879_v30 = vsel %vm1864_vm11, %v1874_v63, %v1878_v13 }
  0x7a   : > { %3535 = vmatmul.mubr.bf16.gmra.mrb[4].mxu1 %v1072_v62  ;;  %v4167_v62 = vld [vmem:[%s5913_s1 + $0x190] sm:$0xff]  }
  0x7b   : > { %3707 = vmatmul.mubr.bf16.vlgmr.msra.gmra.mrb[0].mxu0 %v1871_v47  ;;  %3538 = vmatprep.mubr.msk.bf16.mxu1 %vm6008_vm13, %v5952_v2  ;;  %v5102_v47 = vshrl.u32 %v4924_v59, 16 }
  0x7c   : > { %3735 = vmatpush3.bf16.msra.mxu0 %v4163_v29  ;;  %3710 = vmatprep.mubr.msk.bf16.mxu0 %vm6008_vm13, %v5952_v2  ;;  %v1875_v29 = vsel %vm1864_vm11, %v1870_v20, %v1874_v63  ;;  %v1089_v20 = vor.u32 %v1088_v14, %v1085_v56  ;;  %v1474_v56 = vrot.slane %v5024_v22, 1 }
  0x7d   : > { %3736 = vmatprep.subr.bf16.mxu0 %v5952_v2  ;;  %3563 = vmatpush3.bf16.msra.mxu1 %v4168_v54  ;;  %v5113_v54 = vshll.u32 %v4924_v59, 16  ;;  %v1880_v14 = vrot.slane %v5102_v47, 2  ;;  %v1094_v4 = vrot.slane %v5102_v47, 4 }
  0x7e   : > { %3564 = vmatprep.subr.bf16.mxu1 %v5952_v2 }
  0x7f   : > { %v1097_v7 = vrot.slane %v5113_v54, 5  ;;  %v1881_v41 = vrot.slane %v5113_v54, 3 }
  0x80   : > { %3737 = vmatpush3.bf16.msra.mxu0 %v4165_v10  ;;  %v1471_v10 = vrot.slane %v5004_v11, 1 }
  0x81   : > { %3738 = vmatprep.subr.bf16.mxu0 %v5952_v2  ;;  %3565 = vmatpush3.bf16.msra.mxu1 %v4170_v61  ;;  %v4174_v61 = vld [vmem:[%s5913_s1 + $0xa8] sm:$0xff]   ;;  %v1098_v63 = vor.u32 %v1097_v7, %v1094_v4 }
  0x82   : > { %3539 = vmatmul.mubr.bf16.gmra.mrb[8].mxu1 %v1081_v12  ;;  %3566 = vmatprep.subr.bf16.mxu1 %v5952_v2  ;;  %v1472_v12 = vrot.slane %v5007_v42, 2  ;;  %v5968_v42 = vrot.slane %v5047_v60, 7 }
  0x83   : > { %3711 = vmatmul.mubr.bf16.gmra.mrb[4].mxu0 %v1875_v29  ;;  %3542 = vmatprep.mubr.msk.bf16.mxu1 %vm6008_vm13, %v5952_v2  ;;  %v1475_v29 = vrot.slane %v5027_v26, 2 }
  0x84   : > { %3714 = vmatprep.mubr.msk.bf16.mxu0 %vm6008_vm13, %v5952_v2  ;;  %3739 = vmatpush3.bf16.msra.mxu0 %v4167_v62  ;;  %v1090_v62 = vsel %vm1046_vm0, %v1080_v36, %v1089_v20  ;;  %v4176_v36 = vld [vmem:[%s5913_s1 + $0xb0] sm:$0xff]  }
  0x85   : > { %3740 = vmatprep.subr.bf16.mxu0 %v5952_v2  ;;  %3567 = vmatpush3.bf16.msra.mxu1 %v4172_v17  ;;  %v1473_v17 = vor.u32 %v1472_v12, %v1471_v10  ;;  %v5149_v12 = vshll.u32 %v4979_v5, 16 }
  0x86   : > { %3568 = vmatprep.subr.bf16.mxu1 %v5952_v2  ;;  %v1476_v2 = vor.u32 %v1475_v29, %v1474_v56  ;;  %v1478_v56 = vrot.slane %v5047_v60, 1  ;;  %v1479_v29 = vrot.slane %v5050_v39, 2 }
  0x87   : > { %v1106_v4 = vrot.slane %v5149_v12, 5 }
  0x88   : > { %3741 = vmatpush3.bf16.msra.mxu0 %v4169_v18  ;;  %v5141_v18 = vshrl.u32 %v4979_v5, 16  ;;  %v5144_v10 = vsel %vm1470_vm5, %v1473_v17, %v1476_v2 }
  0x89   : > { %3742 = vmatprep.subr.bf16.mxu0 %v6041_v15  ;;  %3569 = vmatpush3.bf16.msra.mxu1 %v4174_v61  ;;  %v1882_v61 = vor.u32 %v1881_v41, %v1880_v14  ;;  %v1099_v41 = vsel %vm1046_vm0, %v1089_v20, %v1098_v63  ;;  %v5959_v20 = vrot.slane %v4924_v59, 7 }
  0x8a   : > { %3543 = vmatmul.mubr.bf16.gmra.mrb[12].mxu1 %v1090_v62  ;;  %3570 = vmatprep.subr.bf16.mxu1 %v6041_v15  ;;  %v4178_v62 = vld [vmem:[%s5913_s1 + $0xb8] sm:$0xff]   ;;  %v1103_v14 = vrot.slane %v5141_v18, 4  ;;  %v1884_v17 = vrot.slane %v5141_v18, 2 }
  0x8b   : > { %3715 = vmatmul.mubr.bf16.gmra.mrb[8].mxu0 %v1879_v30  ;;  %3546 = vmatprep.mubr.msk.bf16.mxu1 %vm6008_vm13, %v6041_v15  ;;  %v4173_v30 = vld [vmem:[%s5913_s1 + $0x1a8] sm:$0xff]   ;;  %v1883_v7 = vsel %vm1864_vm11, %v1878_v13, %v1882_v61  ;;  %v2282_v13 = vrot.slane %v4979_v5, 7  ;;  %v4177_v5 = vld [vmem:[%s5913_s1 + $0x1b8] sm:$0xff]  }
  0x8c   : > { %3718 = vmatprep.mubr.msk.bf16.mxu0 %vm6008_vm13, %v6041_v15  ;;  %3743 = vmatpush3.bf16.msra.mxu0 %v4171_v16  ;;  %v5161_v16 = vor.u32 %v1479_v29, %v1478_v56  ;;  %v5183_v29 = vshrl.u32 %v5009_v40, 16 }
  0x8d   : > { %3744 = vmatprep.subr.bf16.mxu0 %v6041_v15  ;;  %3571 = vmatpush3.bf16.msra.mxu1 %v4176_v36  ;;  %v1885_v36 = vrot.slane %v5149_v12, 3 }
  0x8e   : > { %3572 = vmatprep.subr.bf16.mxu1 %v6041_v15  ;;  %v5174_v56 = vsel %vm1470_vm5, %v1476_v2, %v5161_v16 }
  0x8f   : > { %v1886_v2 = vor.u32 %v1885_v36, %v1884_v17  ;;  %v1888_v17 = vrot.slane %v5183_v29, 2 }
  0x90   : > { %3745 = vmatpush3.bf16.msra.mxu0 %v4173_v30  ;;  %v1107_v30 = vor.u32 %v1106_v4, %v1103_v14  ;;  %v5958_v14 = vrot.slane %v5009_v40, 7 }
  0x91   : > { %3746 = vmatprep.subr.bf16.mxu0 %v6041_v15  ;;  %3573 = vmatpush3.bf16.msra.mxu1 %v4178_v62  ;;  %v5188_v62 = vshll.u32 %v5009_v40, 16 }
  0x92   : > { %3547 = vmatmul.mubr.bf16.gmra.mrb[16].mxu1 %v1099_v41  ;;  %3602 = vmatprep.subr.bf16.mxu1 %v6041_v15  ;;  %v5196_v41 = vsel %vm2272_vm8, %v5959_v20, %v2282_v13  ;;  %v5203_v4 = vsel %vm2272_vm8, %v2282_v13, %v5958_v14 }
  0x93   : > { %3719 = vmatmul.mubr.bf16.gmra.mrb[12].mxu0 %v1883_v7  ;;  %3550 = vmatprep.mubr.msk.bf16.mxu1 %vm6008_vm13, %v6041_v15  ;;  %v1887_v7 = vsel %vm1864_vm11, %v1882_v61, %v1886_v2  ;;  %v1889_v36 = vrot.slane %v5188_v62, 3  ;;  %v2463_v61 = vrot.slane %v5024_v22, 7 }
  0x94   : > { %3722 = vmatprep.mubr.msk.bf16.mxu0 %vm6008_vm13, %v6041_v15  ;;  %3747 = vmatpush3.bf16.msra.mxu0 %v4175_v58  ;;  %v1108_v58 = vsel %vm1046_vm0, %v1098_v63, %v1107_v30  ;;  %v2462_v63 = vrot.slane %v5004_v11, 7  ;;  %v1275_v11 = vor.u32 %v1274_v43, %v1273_v57  ;;  %v4180_v43 = vld [vmem:[%s5913_s1 + $0xc0] sm:$0xff]   ;;  %v1277_v57 = vrot.slane %v5024_v22, 5 }
  0x95   : > { %3748 = vmatprep.subr.bf16.mxu0 %v6041_v15  ;;  %v1890_v13 = vor.u32 %v1889_v36, %v1888_v17  ;;  %v2464_v14 = vor.u32 %v2463_v61, %v5027_v26  ;;  %v5228_v36 = vadd.s32 128, %v4293_v6  ;;  %v2467_v6 = vor.u32 %v5968_v42, %v5050_v39  ;;  %v4182_v42 = vld [vmem:[%s5913_s1 + $0xc8] sm:$0xff]  }
  0x97   : > { %v1891_v25 = vsel %vm1864_vm11, %v1886_v2, %v1890_v13  ;;  %v5225_v17 = vsel %vm5976_vm3, %v2462_v63, %v2464_v14  ;;  %v5970_v2 = vcvt.s32.f32 %v5228_v36  ;;  %v5969_v14 = vcvt.s32.f32 %v5231_v28 }
  0x98   : > { %3749 = vmatpush3.bf16.msra.mxu0 %v4177_v5  ;;  %v6042_v5 = vshrl.u32 %v4529_v44, 16  ;;  %v2070_v63 = vrot.slane %v5027_v26, 7 }
  0x99   : > { %3778 = vmatprep.subr.bf16.mxu0 %v6041_v15 }
  0x9a   : > { %3551 = vmatmul.mubr.bf16.gmra.mrb[20].mxu1 %v1108_v58  ;;  %v1270_v20 = vrot.slane %v6042_v5, 5  ;;  %v6043_v58 = vshll.u32 %v4529_v44, 16  ;;  %v5252_v5 = vsel %vm5976_vm3, %v2463_v61, %v2467_v6  ;;  %v1281_v6 = vrot.slane %v5047_v60, 5 }
  0x9b   : > { %3723 = vmatmul.mubr.bf16.gmra.mrb[16].mxu0 %v1887_v7  ;;  %3554 = vmatprep.mubr.msk.bf16.mxu1 %vm6008_vm13, %v6041_v15  ;;  %6044 = vst [vmem:[#allocation12_spill] sm:$0xff] %v5252_v5 }
  0x9c   : > { %3726 = vmatprep.mubr.msk.bf16.mxu0 %vm6008_vm13, %v6041_v15  ;;  %v1271_v7 = vrot.slane %v6043_v58, 6  ;;  %v380_v58 = vadd.f32 0.5, %v5970_v2 }
  0x9e   : > { %v1272_v44 = vor.u32 %v1271_v7, %v1270_v20  ;;  %v1278_v20 = vrot.slane %v5027_v26, 6  ;;  %v381_v7 = vadd.f32 0.5, %v5969_v14  ;;  %v399_v26 = vmul.f32 0.1, %v380_v58  ;;  %v663_v58 = vld [vmem:[%s4330_s30 + $0x44] sm:$0x3] }
  0x9f   : > { %v4181_v14 = vld [vmem:[%s5913_s1 + $0x1c8] sm:$0xff]  }
  0xa2   : > { %3555 = vmatmul.mubr.bf16.gmra.mrb[24].mxu1 %v1107_v30  ;;  %v2069_v30 = vrot.slane %v5024_v22, 6 }
  0xa3   : > { %3727 = vmatmul.mubr.bf16.gmra.mrb[20].mxu0 %v1891_v25  ;;  %3574 = vmatprep.mubr.msk.bf16.mxu1 %vm6008_vm13, %v6041_v15  ;;  %v1276_v25 = vsel %vm1269_vm7, %v1272_v44, %v1275_v11  ;;  %v1279_v44 = vor.u32 %v1278_v20, %v1277_v57  ;;  %v4179_v57 = vld [vmem:[%s5913_s1 + $0x1c0] sm:$0xff]   ;;  %v2073_v20 = vrot.slane %v5047_v60, 6 }
  0xa4   : > { %3730 = vmatprep.mubr.msk.bf16.mxu0 %vm6008_vm13, %v6041_v15  ;;  %v2071_v22 = vor.u32 %v2070_v63, %v2069_v30  ;;  %v2074_v30 = vrot.slane %v5050_v39, 7  ;;  %v662_v63 = vld [vmem:[%s4330_s30 + $0x40] sm:$0xf] }
  0xa5   : > { %v1280_v61 = vsel %vm1269_vm7, %v1275_v11, %v1279_v44  ;;  %v4184_v11 = vld [vmem:[%s5913_s1 + $0xd0] sm:$0xff]   ;;  %v680_v2 = vunpack.c.l.bf16 %v662_v63  ;;  %v2078_v63 = vrot.slane %v5081_v21, 7 }
  0xaa   : > { %3575 = vmatmul.mubr.bf16.vlgmr.msra.gmra.mrb[0].mxu1 %v1276_v25  ;;  %v1282_v25 = vrot.slane %v5050_v39, 6  ;;  %v2075_v39 = vor.u32 %v2074_v30, %v2073_v20  ;;  %v1286_v20 = vrot.slane %v5081_v21, 6 }
  0xab   : > { %3731 = vmatmul.mubr.bf16.gmra.mrb[24].mxu0 %v1890_v13  ;;  %3603 = vmatpush3.bf16.msra.mxu1 %v4180_v43  ;;  %v400_v13 = vmul.f32 0.1, %v381_v7  ;;  %v2072_v43 = vsel %vm2065_vm12, %v5061_v3, %v2071_v22 }
  0xac   : > { %3750 = vmatprep.mubr.msk.bf16.mxu0 %vm6008_vm13, %v6041_v15  ;;  %3578 = vmatprep.mubr.msk.bf16.mxu1 %vm6008_vm13, %v6041_v15  ;;  %v1283_v3 = vor.u32 %v1282_v25, %v1281_v6  ;;  %v2076_v30 = vsel %vm2065_vm12, %v2071_v22, %v2075_v39  ;;  %v4188_v22 = vld [vmem:[%s5913_s1 + $0xe0] sm:$0xff]  }
  0xad   : > { %3604 = vmatprep.subr.bf16.mxu1 %v6041_v15  ;;  %v418_v7 = vfloor.f32 %v400_v13  ;;  %v4186_v13 = vld [vmem:[%s5913_s1 + $0xd8] sm:$0xff]  }
  0xae   : > { %v1284_v25 = vsel %vm1269_vm7, %v1279_v44, %v1283_v3 }
  0xaf   : > { %3605 = vmatpush3.bf16.msra.mxu1 %v4182_v42  ;;  %v417_v42 = vfloor.f32 %v399_v26  ;;  %v681_v26 = vunpack.c.l.bf16 %v663_v58  ;;  %v436_v6 = vmul.f32 10.0, %v418_v7  ;;  %v4211_v58 = vld [vmem:[%s5914_s2] ss:$0 sm:$0xff]  ;;  %vm472_vm6 = vcmp.gt.f32.partialorder %v418_v7, 2.5 }
  0xb0   : > { %3606 = vmatprep.subr.bf16.mxu1 %v6041_v15  ;;  %v705_v44 = vmul.f32 %v4211_v58, %v680_v2  ;;  %vm490_vm2 = vcmp.lt.f32.partialorder %v418_v7, 10.5  ;;  %v4187_v7 = vld [vmem:[%s5913_s1 + $0x1e0] sm:$0xff]  }
  0xb1   : > { %v706_v27 = vmul.f32 %v4211_v58, %v681_v26  ;;  %v454_v5 = vsub.f32 %v6046_v9, %v436_v6  ;;  %vm471_vm10 = vcmp.gt.f32.partialorder %v417_v42, 2.5  ;;  %vm489_vm1 = vcmp.lt.f32.partialorder %v417_v42, 10.5  ;;  %v4185_v26 = vld [vmem:[%s5913_s1 + $0x1d8] sm:$0xff]   ;;  %v4212_v9 = vld [vmem:[%s5915_s3] ss:$0 sm:$0xff]  ;;  %vm5335_vm15 = vmand %vm472_vm6, %vm490_vm2 }
  0xb2   : > { %3579 = vmatmul.mubr.bf16.gmra.mrb[4].mxu1 %v1280_v61  ;;  %v435_v61 = vmul.f32 10.0, %v417_v42  ;;  %v730_v28 = vadd.f32 %v4212_v9, %v705_v44  ;;  %vm507_vm4 = vmand %vm471_vm10, %vm489_vm1  ;;  %v2081_v6 = vrot.slane %v5102_v47, 6  ;;  %v1290_v42 = vrot.slane %v5113_v54, 6  ;;  %v4189_v44 = vld [vmem:[%s5913_s1 + $0x1e8] sm:$0xff]  }
  0xb3   : > { %3751 = vmatmul.mubr.bf16.vlgmr.msra.gmra.mrb[0].mxu0 %v2072_v43  ;;  %3582 = vmatprep.mubr.msk.bf16.mxu1 %vm6008_vm13, %v6041_v15  ;;  %v2077_v43 = vrot.slane %v5078_v37, 6  ;;  %vm526_vm0 = vcmp.gt.f32.partialorder %v454_v5, 0.5  ;;  %vm562_vm6 = vcmp.lt.f32.partialorder %v454_v5, 8.5  ;;  %v2089_v58 = vrot.slane %v5183_v29, 6 }
  0xb4   : > { %3779 = vmatpush3.bf16.msra.mxu0 %v4179_v57  ;;  %3754 = vmatprep.mubr.msk.bf16.mxu0 %vm6008_vm13, %v6041_v15  ;;  %v1285_v57 = vrot.slane %v5078_v37, 5  ;;  %vm544_vm1 = vmand %vm5335_vm15, %vm526_vm0  ;;  %vm748_vm2 = vcmp.ge.f32.partialorder %v730_v28, 0.0  ;;  %vm595_vm0 = vcmp.lt.f32.partialorder %v4348_v34, 8.5 }
  0xb5   : > { %3780 = vmatprep.subr.bf16.mxu0 %v6041_v15  ;;  %3607 = vmatpush3.bf16.msra.mxu1 %v4184_v11  ;;  %v4183_v11 = vld [vmem:[%s5913_s1 + $0x1d0] sm:$0xff]   ;;  %vm5373_vm15 = vmand %vm544_vm1, %vm562_vm6  ;;  %vm6056_vm6 = vcmp.gt.f32.partialorder %v4378_v49, 0.5 }
  0xb6   : > { %3608 = vmatprep.subr.bf16.mxu1 %v6041_v15  ;;  %v1287_v2 = vor.u32 %v1286_v20, %v1285_v57  ;;  %v1289_v57 = vrot.slane %v5102_v47, 5 }
  0xb8   : > { %3781 = vmatpush3.bf16.msra.mxu0 %v4181_v14  ;;  %v6045_v14 = vcvt.s32.f32 %v5228_v36  ;;  %v2079_v36 = vor.u32 %v2078_v63, %v2077_v43  ;;  %v2082_v43 = vrot.slane %v5113_v54, 7  ;;  %v4192_v63 = vld [vmem:[%s5913_s1 + $0xf0] sm:$0xff]  }
  0xb9   : > { %3782 = vmatprep.subr.bf16.mxu0 %v6041_v15  ;;  %3609 = vmatpush3.bf16.msra.mxu1 %v4186_v13  ;;  %v731_v13 = vadd.f32 %v4212_v9, %v706_v27  ;;  %v1288_v27 = vsel %vm1269_vm7, %v1283_v3, %v1287_v2  ;;  %v1293_v9 = vrot.slane %v5141_v18, 5 }
  0xba   : > { %v453_v60 = vsub.f32 %v6045_v14, %v435_v61  ;;  %3583 = vmatmul.mubr.bf16.gmra.mrb[8].mxu1 %v1284_v25  ;;  %3610 = vmatprep.subr.bf16.mxu1 %v6041_v15  ;;  %v4190_v61 = vld [vmem:[%s5913_s1 + $0xe8] sm:$0xff]   ;;  %v2080_v20 = vsel %vm2065_vm12, %v2075_v39, %v2079_v36  ;;  %v1291_v39 = vor.u32 %v1290_v42, %v1289_v57  ;;  %v4191_v57 = vld [vmem:[%s5913_s1 + $0x1f0] sm:$0xff]  }
  0xbb   : > { %3755 = vmatmul.mubr.bf16.gmra.mrb[4].mxu0 %v2076_v30  ;;  %3586 = vmatprep.mubr.msk.bf16.mxu1 %vm6008_vm13, %v6041_v15  ;;  %v767_v3 = vmul.f32 0.01, %v731_v13  ;;  %v2083_v5 = vor.u32 %v2082_v43, %v2081_v6  ;;  %v1294_v6 = vrot.slane %v5149_v12, 6  ;;  %v2086_v43 = vrot.slane %v5149_v12, 7 }
  0xbc   : > { %3758 = vmatprep.mubr.msk.bf16.mxu0 %vm6008_vm13, %v6041_v15  ;;  %3783 = vmatpush3.bf16.msra.mxu0 %v4183_v11  ;;  %vm525_vm9 = vcmp.gt.f32.partialorder %v453_v60, 0.5  ;;  %vm561_vm10 = vcmp.lt.f32.partialorder %v453_v60, 8.5  ;;  %v766_v11 = vmul.f32 0.01, %v730_v28 }
  0xbd   : > { %3784 = vmatprep.subr.bf16.mxu0 %v6041_v15  ;;  %3611 = vmatpush3.bf16.msra.mxu1 %v4188_v22  ;;  %vm5347_vm11 = vmand %vm507_vm4, %vm525_vm9  ;;  %vm749_vm4 = vcmp.ge.f32.partialorder %v731_v13, 0.0 }
  0xbe   : > { %3612 = vmatprep.subr.bf16.mxu1 %v6041_v15  ;;  %vm5364_vm9 = vmand %vm5347_vm11, %vm561_vm10  ;;  %v784_v60 = vsel %vm748_vm2, %v730_v28, %v766_v11  ;;  %v785_v14 = vsel %vm749_vm4, %v731_v13, %v767_v3  ;;  %v2084_v13 = vsel %vm2065_vm12, %v2079_v36, %v2083_v5  ;;  %v1295_v36 = vor.u32 %v1294_v6, %v1293_v9  ;;  %v4198_v9 = vld [vmem:[%s5919_s7 + $0x8] sm:$0xff]  }
  0xbf   : > { %v838_v25 = vsel %vm5364_vm9, %v784_v60, 0.0  ;;  %v839_v28 = vsel %vm5373_vm15, %v785_v14, 0.0  ;;  %v4196_v14 = vld [vmem:[%s5919_s7] sm:$0xff]   ;;  %v2274_v6 = vrot.slane %v4619_v32, 7  ;;  %vm6057_vm9 = vcmp.gt.f32.partialorder %v4380_v50, 0.5 }
  0xc0   : > { %3785 = vmatpush3.bf16.msra.mxu0 %v4185_v26  ;;  %v4194_v26 = vld [vmem:[%s5913_s1 + $0xf8] sm:$0xff]   ;;  %v1296_v3 = vsel %vm1269_vm7, %v1291_v39, %v1295_v36 }
  0xc1   : > { %3786 = vmatprep.subr.bf16.mxu0 %v6041_v15  ;;  %3613 = vmatpush3.bf16.msra.mxu1 %v4190_v61  ;;  %v1292_v61 = vsel %vm1269_vm7, %v1287_v2, %v1291_v39  ;;  %v5396_v2 = vpack.c.bf16 %v839_v28, %v838_v25  ;;  %v1483_v25 = vrot.slane %v5081_v21, 2  ;;  %vm581_vm7 = vcmp.gt.f32.partialorder %v4346_v33, 0.5 }
  0xc2   : > { %3587 = vmatmul.mubr.bf16.gmra.mrb[12].mxu1 %v1288_v27  ;;  %3614 = vmatprep.subr.bf16.mxu1 %v6041_v15  ;;  %v2085_v27 = vrot.slane %v5141_v18, 6 }
  0xc3   : > { %3759 = vmatmul.mubr.bf16.gmra.mrb[8].mxu0 %v2080_v20  ;;  %3590 = vmatprep.mubr.msk.bf16.mxu1 %vm6008_vm13, %v6041_v15  ;;  %v4193_v20 = vld [vmem:[%s5913_s1 + $0x1f8] sm:$0xff]   ;;  %v2094_v30 = vshll.u32 %v5396_v2, 16 }
  0xc4   : > { %3762 = vmatprep.mubr.msk.bf16.mxu0 %vm6008_vm13, %v6041_v15  ;;  %3787 = vmatpush3.bf16.msra.mxu0 %v4187_v7  ;;  %v2087_v42 = vor.u32 %v2086_v43, %v2085_v27  ;;  %v2481_v7 = vshrl.u32 %v5396_v2, 16  ;;  %v2276_v27 = vrot.slane %v4749_v19, 7  ;;  %v4197_v43 = vld [vmem:[%s5913_s1 + $0x208] sm:$0xff]   ;;  %v1487_v19 = vrot.slane %v5113_v54, 2 }
  0xc5   : > { %3788 = vmatprep.subr.bf16.mxu0 %v6041_v15  ;;  %3615 = vmatpush3.bf16.msra.mxu1 %v4192_v63  ;;  %v2096_v60 = vrot.slane %v2094_v30, 7 }
  0xc6   : > { %3616 = vmatprep.subr.bf16.mxu1 %v6041_v15  ;;  %v2483_v11 = vrot.slane %v2481_v7, 7  ;;  %v2088_v63 = vsel %vm2065_vm12, %v2083_v5, %v2087_v42  ;;  %v4204_v7 = vld [vmem:[%s5919_s7 + $0x20] sm:$0xff]  }
  0xc8   : > { %3789 = vmatpush3.bf16.msra.mxu0 %v4189_v44  ;;  %v2090_v44 = vrot.slane %v5188_v62, 7  ;;  %v5413_v22 = vor.u32 %v2483_v11, %v2094_v30  ;;  %v2278_v30 = vrot.slane %v4810_v45, 7  ;;  %v4201_v11 = vld [vmem:[%s5913_s1 + $0x218] sm:$0xff]   ;;  %v1491_v45 = vrot.slane %v5149_v12, 2 }
  0xc9   : > { %3790 = vmatprep.subr.bf16.mxu0 %v6041_v15  ;;  %3617 = vmatpush3.bf16.msra.mxu1 %v4194_v26 }
  0xca   : > { %3591 = vmatmul.mubr.bf16.gmra.mrb[16].mxu1 %v1292_v61  ;;  %3866 = vmatprep.subr.bf16.mxu1 %v6041_v15  ;;  %v2091_v39 = vor.u32 %v2090_v44, %v2089_v58  ;;  %v2273_v61 = vrot.slane %v4535_v48, 7  ;;  %v4200_v48 = vld [vmem:[%s5919_s7 + $0x10] sm:$0xff]   ;;  %v1490_v58 = vrot.slane %v5141_v18, 1  ;;  %v2279_v44 = vsel %vm2272_vm8, %v2276_v27, %v2278_v30 }
  0xcb   : > { %3763 = vmatmul.mubr.bf16.gmra.mrb[12].mxu0 %v2084_v13  ;;  %3594 = vmatprep.mubr.msk.bf16.mxu1 %vm6008_vm13, %v6041_v15  ;;  %v4195_v13 = vld [vmem:[%s5913_s1 + $0x200] sm:$0xff]  }
  0xcc   : > { %3766 = vmatprep.mubr.msk.bf16.mxu0 %vm6008_vm13, %v6041_v15  ;;  %3791 = vmatpush3.bf16.msra.mxu0 %v4191_v57  ;;  %v2092_v5 = vsel %vm2065_vm12, %v2087_v42, %v2091_v39  ;;  %v2097_v26 = vsel %vm2065_vm12, %v2091_v39, %v2096_v60  ;;  %v2275_v28 = vsel %vm2272_vm8, %v2273_v61, %v2274_v6  ;;  %v4203_v39 = vld [vmem:[%s5913_s1 + $0x220] sm:$0xff]   ;;  %v1497_v61 = vrot.slane %v5183_v29, 1 }
  0xcd   : > { %3792 = vmatprep.subr.bf16.mxu0 %v6041_v15  ;;  %v2277_v42 = vsel %vm2272_vm8, %v2274_v6, %v2276_v27  ;;  %v1492_v60 = vor.u32 %v1491_v45, %v1490_v58  ;;  %v1500_v6 = vrot.slane %v5188_v62, 2  ;;  %v2682_v27 = vld [vmem:[%s5523_s22 + $0x8] sm:$0xff]  ;;  %vm594_vm12 = vcmp.lt.f32.partialorder %v4346_v33, 8.5 }
  0xce   : > { %vm607_vm11 = vmand %vm581_vm7, %vm594_vm12  ;;  %vm583_vm7 = vcmp.gt.f32.partialorder %v4350_v35, 0.5  ;;  %vm596_vm12 = vcmp.lt.f32.partialorder %v4350_v35, 8.5 }
  0xcf   : > { %vm620_vm2 = vmand %vm607_vm11, %vm6056_vm6  ;;  %vm597_vm11 = vcmp.lt.f32.partialorder %v4356_v38, 8.5 }
  0xd0   : > { %3793 = vmatpush3.bf16.msra.mxu0 %v4193_v20  ;;  %v4199_v20 = vld [vmem:[%s5913_s1 + $0x210] sm:$0xff]  }
  0xd1   : > { %3822 = vmatprep.subr.bf16.mxu0 %v6041_v15 }
  0xd2   : > { %3595 = vmatmul.mubr.bf16.gmra.mrb[20].mxu1 %v1296_v3  ;;  %v4206_v3 = vld [vmem:[%s5919_s7 + $0x28] sm:$0xff]  }
  0xd3   : > { %3767 = vmatmul.mubr.bf16.gmra.mrb[16].mxu0 %v2088_v63  ;;  %3598 = vmatprep.mubr.msk.bf16.mxu1 %vm6008_vm13, %v6041_v15 }
  0xd4   : > { %3770 = vmatprep.mubr.msk.bf16.mxu0 %vm6008_vm13, %v6041_v15 }
  0xda   : > { %3599 = vmatmul.mubr.bf16.gmra.mrb[24].mxu1 %v1295_v36  ;;  %v1486_v36 = vrot.slane %v5102_v47, 1 }
  0xdb   : > { %3771 = vmatmul.mubr.bf16.gmra.mrb[20].mxu0 %v2092_v5  ;;  %3618 = vmatprep.mubr.msk.bf16.mxu1 %vm6008_vm13, %v6041_v15  ;;  %v4208_v5 = vld [vmem:[%s5919_s7 + $0x30] sm:$0xff]  }
  0xdc   : > { %3774 = vmatprep.mubr.msk.bf16.mxu0 %vm6008_vm13, %v6041_v15 }
  0xe2   : > { %3619 = vmatmul.mubr.bf16.vlgmr.msra.gmra.mrb[0].mxu1 %v5144_v10  ;;  %v1482_v10 = vrot.slane %v5078_v37, 1 }
  0xe3   : > { %3775 = vmatmul.mubr.bf16.gmra.mrb[24].mxu0 %v2097_v26  ;;  %3867 = vmatpush3.bf16.msra.mxu1 %v4196_v14  ;;  %v4205_v14 = vld [vmem:[%s5913_s1 + $0x228] sm:$0xff]   ;;  %v4210_v26 = vld [vmem:[%s5919_s7 + $0x38] sm:$0xff]  }
  0xe4   : > { %3794 = vmatprep.mubr.msk.bf16.mxu0 %vm6008_vm13, %v6041_v15  ;;  %3622 = vmatprep.mubr.msk.bf16.mxu1 %vm6008_vm13, %v6041_v15  ;;  %v1484_v32 = vor.u32 %v1483_v25, %v1482_v10  ;;  %v6055_v10 = vrot.slane %v4924_v59, 7  ;;  %v5538_v59 = vld [vmem:[%s5917_s5] ss:$0 sm:$0xff] }
  0xe5   : > { %3868 = vmatprep.subr.bf16.mxu1 %v6041_v15 }
  0xe6   : > { %v1485_v57 = vsel %vm1470_vm5, %v5161_v16, %v1484_v32  ;;  %v1488_v16 = vor.u32 %v1487_v19, %v1486_v36  ;;  %v2281_v25 = vsel %vm2272_vm8, %v2278_v30, %v6055_v10  ;;  %v5553_v36 = vld [vmem:[%s5918_s6] ss:$0 sm:$0xff] }
  0xe7   : > { %3869 = vmatpush3.bf16.msra.mxu1 %v4198_v9 }
  0xe8   : > { %3870 = vmatprep.subr.bf16.mxu1 %v6041_v15  ;;  %v1489_v63 = vsel %vm1470_vm5, %v1484_v32, %v1488_v16  ;;  %v1493_v9 = vsel %vm1470_vm5, %v1488_v16, %v1492_v60  ;;  %v4209_v32 = vld [vmem:[%s5913_s1 + $0x238] sm:$0xff]  }
  0xea   : > { %3623 = vmatmul.mubr.bf16.gmra.mrb[4].mxu1 %v5174_v56  ;;  %v4202_v56 = vld [vmem:[%s5919_s7 + $0x18] sm:$0xff]  }
  0xeb   : > { %3795 = vmatmul.mubr.bf16.vlgmr.msra.gmra.mrb[0].mxu0 %v2275_v28  ;;  %3626 = vmatprep.mubr.msk.bf16.mxu1 %vm6008_vm13, %v6041_v15  ;;  %v4207_v28 = vld [vmem:[%s5913_s1 + $0x230] sm:$0xff]  }
  0xec   : > { %3823 = vmatpush3.bf16.msra.mxu0 %v4195_v13  ;;  %3798 = vmatprep.mubr.msk.bf16.mxu0 %vm6008_vm13, %v6041_v15  ;;  %v1501_v13 = vor.u32 %v1500_v6, %v1497_v61  ;;  %v6071_v61 = vmov 0 }
  0xed   : > { %3824 = vmatprep.subr.bf16.mxu0 %v6041_v15  ;;  %3871 = vmatpush3.bf16.msra.mxu1 %v4200_v48  ;;  %v2681_v48 = vld [vmem:[%s5523_s22] sm:$0xff] }
  0xee   : > { %3872 = vmatprep.subr.bf16.mxu1 %v6041_v15 }
  0xf0   : > { %3825 = vmatpush3.bf16.msra.mxu0 %v4197_v43  ;;  %v2701_v43 = vmul.f32 %v5538_v59, %v2681_v48 }
  0xf1   : > { %3826 = vmatprep.subr.bf16.mxu0 %v6041_v15  ;;  %3873 = vmatpush3.bf16.msra.mxu1 %v4202_v56  ;;  %v1502_v56 = vsel %vm1470_vm5, %v1492_v60, %v1501_v13  ;;  %vm582_vm5 = vcmp.gt.f32.partialorder %v4348_v34, 0.5  ;;  %v6092_v34 = vmov 0 }
  0xf2   : > { %3627 = vmatmul.mubr.bf16.gmra.mrb[8].mxu1 %v1485_v57  ;;  %3874 = vmatprep.subr.bf16.mxu1 %v6041_v15  ;;  %v2702_v57 = vmul.f32 %v5538_v59, %v2682_v27  ;;  %v2721_v19 = vadd.f32 %v5553_v36, %v2701_v43  ;;  %vm608_vm10 = vmand %vm582_vm5, %vm595_vm0  ;;  %vm584_vm0 = vcmp.gt.f32.partialorder %v4356_v38, 0.5 }
  0xf3   : > { %3799 = vmatmul.mubr.bf16.gmra.mrb[4].mxu0 %v2277_v42  ;;  %3630 = vmatprep.mubr.msk.bf16.mxu1 %vm6008_vm13, %v6041_v15  ;;  %vm5574_vm15 = vmand %vm608_vm10, %vm6057_vm9  ;;  %vm6062_vm10 = vcmp.lt.f32.partialorder %v4380_v50, 8.5  ;;  %vm6066_vm9 = vcmp.gt.f32.partialorder %v4382_v51, 0.5 }
  0xf4   : > { %3802 = vmatprep.mubr.msk.bf16.mxu0 %vm6008_vm13, %v6041_v15  ;;  %3827 = vmatpush3.bf16.msra.mxu0 %v4199_v20  ;;  %v2722_v42 = vadd.f32 %v5553_v36, %v2702_v57  ;;  %v2683_v20 = vld [vmem:[%s5523_s22 + $0x10] sm:$0xff]  ;;  %v2747_v33 = vmul.f32 0.01, %v2721_v19  ;;  %vm2734_vm1 = vcmp.ge.f32.partialorder %v2721_v19, 0.0  ;;  %vm5586_vm5 = vmand %vm620_vm2, %vm545_vm14 }
  0xf5   : > { %3828 = vmatprep.subr.bf16.mxu0 %v6041_v15  ;;  %3875 = vmatpush3.bf16.msra.mxu1 %v4204_v7  ;;  %v2684_v7 = vld [vmem:[%s5523_s22 + $0x18] sm:$0xff]  ;;  %v2703_v16 = vmul.f32 %v5538_v59, %v2683_v20  ;;  %vm5601_vm14 = vmand %vm5574_vm15, %vm6062_vm10  ;;  %vm598_vm10 = vcmp.lt.f32.partialorder %v4496_v23, 8.5 }
  0xf6   : > { %3876 = vmatprep.subr.bf16.mxu1 %v6041_v15  ;;  %v2704_v30 = vmul.f32 %v5538_v59, %v2684_v7  ;;  %vm2735_vm4 = vcmp.ge.f32.partialorder %v2722_v42, 0.0  ;;  %vm610_vm6 = vmand %vm584_vm0, %vm597_vm11  ;;  %vm585_vm11 = vcmp.gt.f32.partialorder %v4496_v23, 0.5  ;;  %v2687_v23 = vld [vmem:[%s5523_s22 + $0x30] sm:$0xff] }
  0xf7   : > { %vm3258_vm2 = vmpackc.low %vm5601_vm14, %vm5586_vm5 }
  0xf8   : > { %3829 = vmatpush3.bf16.msra.mxu0 %v4201_v11  ;;  %v2760_v11 = vsel %vm2734_vm1, %v2721_v19, %v2747_v33  ;;  %v2724_v45 = vadd.f32 %v5553_v36, %v2704_v30  ;;  %vm609_vm1 = vmand %vm583_vm7, %vm596_vm12  ;;  %vm6067_vm12 = vcmp.gt.f32.partialorder %v4386_v52, 0.5  ;;  %v2689_v19 = vld [vmem:[%s5523_s22 + $0x40] sm:$0xff]  ;;  %v2469_v33 = vrot.slane %v5078_v37, 7  ;;  %v6090_v30 = vld [vmem:[#allocation12_spill] sm:$0xff] }
  0xf9   : > { %3830 = vmatprep.subr.bf16.mxu0 %v6041_v15  ;;  %3877 = vmatpush3.bf16.msra.mxu1 %v4206_v3  ;;  %v2723_v3 = vadd.f32 %v5553_v36, %v2703_v16  ;;  %vm622_vm15 = vmand %vm609_vm1, %vm6066_vm9 }
  0xfa   : > { %3631 = vmatmul.mubr.bf16.gmra.mrb[12].mxu1 %v1489_v63  ;;  %3878 = vmatprep.subr.bf16.mxu1 %v6041_v15  ;;  %v2750_v50 = vmul.f32 0.01, %v2724_v45  ;;  %vm2737_vm7 = vcmp.ge.f32.partialorder %v2724_v45, 0.0  ;;  %vm5621_vm0 = vmand %vm610_vm6, %vm6067_vm12  ;;  %vm586_vm6 = vcmp.gt.f32.partialorder %v4540_v55, 0.5 }
  0xfb   : > { %3803 = vmatmul.mubr.bf16.gmra.mrb[8].mxu0 %v2279_v44  ;;  %3634 = vmatprep.mubr.msk.bf16.mxu1 %vm6008_vm13, %v6041_v15  ;;  %v2685_v44 = vld [vmem:[%s5523_s22 + $0x20] sm:$0xff] }
  0xfc   : > { %3806 = vmatprep.mubr.msk.bf16.mxu0 %vm6008_vm13, %v6041_v15  ;;  %3831 = vmatpush3.bf16.msra.mxu0 %v4203_v39  ;;  %v2686_v39 = vld [vmem:[%s5523_s22 + $0x28] sm:$0xff]  ;;  %v2705_v60 = vmul.f32 %v5538_v59, %v2685_v44  ;;  %v2763_v6 = vsel %vm2737_vm7, %v2724_v45, %v2750_v50  ;;  %v2691_v45 = vld [vmem:[%s5523_s22 + $0x50] sm:$0xff]  ;;  %v2470_v44 = vor.u32 %v2469_v33, %v5081_v21 }
  0xfd   : > { %3832 = vmatprep.subr.bf16.mxu0 %v6041_v15  ;;  %3879 = vmatpush3.bf16.msra.mxu1 %v4208_v5  ;;  %v2749_v5 = vmul.f32 0.01, %v2723_v3 }
  0xfe   : > { %3880 = vmatprep.subr.bf16.mxu1 %v6041_v15 }
 0x100   : > { %3833 = vmatpush3.bf16.msra.mxu0 %v4205_v14  ;;  %v6065_v14 = vrot.slane %v5009_v40, 7  ;;  %v2725_v40 = vadd.f32 %v5553_v36, %v2705_v60  ;;  %v6098_v60 = vld [vmem:[#allocation11_spill] sm:$0xff] }
 0x101   : > { %3834 = vmatprep.subr.bf16.mxu0 %v6041_v15  ;;  %3881 = vmatpush3.bf16.msra.mxu1 %v4210_v26  ;;  %v6099_v50 = vrot.slane %v6098_v60, 7 }
 0x102   : > { %3635 = vmatmul.mubr.bf16.gmra.mrb[16].mxu1 %v1493_v9 }
 0x103   : > { %3807 = vmatmul.mubr.bf16.gmra.mrb[12].mxu0 %v2281_v25  ;;  %3638 = vmatprep.mubr.msk.bf16.mxu1 %vm6008_vm13, %v6041_v15  ;;  %v2688_v25 = vld [vmem:[%s5523_s22 + $0x38] sm:$0xff] }
 0x104   : > { %3810 = vmatprep.mubr.msk.bf16.mxu0 %vm6008_vm13, %v6041_v15  ;;  %3835 = vmatpush3.bf16.msra.mxu0 %v4207_v28  ;;  %v2708_v48 = vmul.f32 %v5538_v59, %v2688_v25 }
 0x105   : > { %3836 = vmatprep.subr.bf16.mxu0 %v6041_v15 }
 0x108   : > { %3837 = vmatpush3.bf16.msra.mxu0 %v4209_v32 }
 0x10a   : > { %3639 = vmatmul.mubr.bf16.gmra.mrb[20].mxu1 %v1502_v56  ;;  %v6081_v56 = vmov 0 }
 0x10b   : > { %3811 = vmatmul.mubr.bf16.gmra.mrb[16].mxu0 %v5196_v41  ;;  %3642 = vmatprep.mubr.msk.bf16.mxu1 %vm6008_vm13, %v6041_v15  ;;  %v2748_v41 = vmul.f32 0.01, %v2722_v42 }
 0x10c   : > { %3814 = vmatprep.mubr.msk.bf16.mxu0 %vm6008_vm13, %v6041_v15 }
 0x10d   : > { %v2761_v58 = vsel %vm2735_vm4, %v2722_v42, %v2748_v41  ;;  %vm2736_vm4 = vcmp.ge.f32.partialorder %v2723_v3, 0.0 }
 0x10e   : > { %v3259_v38 = vpack.c.bf16 %v2761_v58, %v2760_v11  ;;  %v2762_v9 = vsel %vm2736_vm4, %v2723_v3, %v2749_v5  ;;  %vm6073_vm4 = vcmp.lt.f32.partialorder %v4386_v52, 8.5  ;;  %v6094_v3 = vld [vmem:[#allocation2_spill] sm:$0xff]  ;;  %v2711_v5 = vmul.f32 %v5538_v59, %v2691_v45 }
 0x10f   : > { %vm5646_vm9 = vmand %vm5621_vm0, %vm6073_vm4  ;;  %v3262_v28 = vpack.c.bf16 %v2763_v6, %v2762_v9  ;;  %vm6076_vm0 = vcmp.gt.f32.partialorder %v4533_v46, 0.5 }
 0x110   : > { %v2731_v6 = vadd.f32 %v5553_v36, %v2711_v5 }
 0x112   : > { %3643 = vmatmul.mubr.bf16.gmra.mrb[24].mxu1 %v1501_v13  ;;  %v2751_v13 = vmul.f32 0.01, %v2725_v40 }
 0x113   : > { %3815 = vmatmul.mubr.bf16.gmra.mrb[20].mxu0 %v5203_v4  ;;  %3882 = vmatprep.mubr.msk.bf16.mxu1 %vm6008_vm13, %v6041_v15  ;;  %v2286_v4 = vrot.slane %v5396_v2, 7  ;;  %v2706_v2 = vmul.f32 %v5538_v59, %v2686_v39 }
 0x114   : > { %3818 = vmatprep.mubr.msk.bf16.mxu0 %vm6008_vm13, %v6041_v15 }
 0x115   : > { %v2287_v26 = vsel %vm2272_vm8, %v6065_v14, %v2286_v4  ;;  %vm6070_vm8 = vcmp.lt.f32.partialorder %v4382_v51, 8.5  ;;  %v2726_v10 = vadd.f32 %v5553_v36, %v2706_v2  ;;  %v6074_v51 = vmov 0  ;;  %v2692_v4 = vld [vmem:[%s5523_s22 + $0x58] sm:$0xff]  ;;  %v6101_v14 = vld [vmem:[#allocation3_spill] sm:$0xff] }
 0x116   : > { %vm5632_vm1 = vmand %vm622_vm15, %vm6070_vm8  ;;  %v6075_v51 = vsel %vm5646_vm9, 4294967295, %v6074_v51  ;;  %vm2738_vm8 = vcmp.ge.f32.partialorder %v2725_v40, 0.0  ;;  %v2712_v21 = vmul.f32 %v5538_v59, %v2692_v4 }
 0x117   : > { %v6072_v61 = vsel %vm5632_vm1, 4294967295, %v6071_v61  ;;  %vm611_vm15 = vmand %vm585_vm11, %vm598_vm10  ;;  %v2752_v52 = vmul.f32 0.01, %v2726_v10  ;;  %vm2739_vm3 = vcmp.ge.f32.partialorder %v2726_v10, 0.0  ;;  %vm6077_vm11 = vcmp.gt.f32.partialorder %v4567_v1, 0.5 }
 0x118   : > { %vm3261_vm12 = vmpackc.low %vm5646_vm9, %vm5632_vm1  ;;  %v2764_v27 = vsel %vm2738_vm8, %v2725_v40, %v2751_v13  ;;  %vm601_vm8 = vcmp.lt.f32.partialorder %v4631_v24, 8.5  ;;  %v6107_v40 = vld [vmem:[#allocation5_spill] sm:$0xff]  ;;  %v2732_v25 = vadd.f32 %v5553_v36, %v2712_v21  ;;  %v6113_v13 = vmov 0 }
 0x119   : > { %vm624_vm4 = vmand %vm611_vm15, %vm6076_vm0  ;;  %vm6080_vm15 = vcmp.lt.f32.partialorder %v4533_v46, 8.5  ;;  %v2765_v57 = vsel %vm2739_vm3, %v2726_v10, %v2752_v52  ;;  %vm6083_vm0 = vcmp.lt.f32.partialorder %v4567_v1, 8.5  ;;  %v6084_v46 = vmov 0 }
 0x11a   : > { %3883 = vmatmul.mubr.msk.bf16.vlgmr.msra.gmra.mrb[28].mxu1 %vm3258_vm2, %v3259_v38  ;;  %vm599_vm2 = vcmp.lt.f32.partialorder %v4540_v55, 8.5  ;;  %v2707_v55 = vmul.f32 %v5538_v59, %v2687_v23  ;;  %v3265_v42 = vpack.c.bf16 %v2765_v57, %v2764_v27  ;;  %v6111_v23 = vld [vmem:[#allocation6_spill] sm:$0xff]  ;;  %vm6115_vm1 = vsmask.f32 256  ;;  %v6116_v57 = vld [vmem:[#allocation7_spill] sm:$0xff] }
 0x11b   : > { %3819 = vmatmul.mubr.bf16.gmra.mrb[24].mxu0 %v2287_v26  ;;  %3886 = vmatprep.mubr.msk.bf16.mxu1 %vm6008_vm13, %v6041_v15  ;;  %vm612_vm7 = vmand %vm586_vm6, %vm599_vm2  ;;  %vm587_vm6 = vcmp.gt.f32.partialorder %v4629_v53, 0.5  ;;  %vm600_vm2 = vcmp.lt.f32.partialorder %v4629_v53, 8.5  ;;  %v2728_v53 = vadd.f32 %v5553_v36, %v2708_v48  ;;  %v6103_v26 = vld [vmem:[#allocation4_spill] sm:$0xff]  ;;  %v2757_v48 = vmul.f32 0.01, %v2731_v6 }
 0x11c   : > { %3838 = vmatprep.mubr.msk.bf16.mxu0 %vm6008_vm13, %v6041_v15  ;;  %vm5661_vm10 = vmand %vm612_vm7, %vm6077_vm11  ;;  %v2727_v43 = vadd.f32 %v5553_v36, %v2707_v55  ;;  %v2693_v55 = vld [vmem:[%s5523_s22 + $0x60] sm:$0xf] }
 0x11d   : > { %vm5673_vm7 = vmand %vm624_vm4, %vm6080_vm15  ;;  %v2754_v1 = vmul.f32 0.01, %v2728_v53  ;;  %v2713_v32 = vmul.f32 %v5538_v59, %v2693_v55 }
 0x11e   : > { %v6082_v56 = vsel %vm5673_vm7, 4294967295, %v6081_v56  ;;  %vm5687_vm11 = vmand %vm5661_vm10, %vm6083_vm0  ;;  %v2753_v20 = vmul.f32 0.01, %v2727_v43  ;;  %vm2740_vm9 = vcmp.ge.f32.partialorder %v2727_v43, 0.0  ;;  %vm6086_vm10 = vcmp.gt.f32.partialorder %v4657_v31, 0.5 }
 0x11f   : > { %v6085_v46 = vsel %vm5687_vm11, 4294967295, %v6084_v46  ;;  %vm613_vm3 = vmand %vm587_vm6, %vm600_vm2  ;;  %vm2741_vm2 = vcmp.ge.f32.partialorder %v2728_v53, 0.0  ;;  %vm589_vm0 = vcmp.gt.f32.partialorder %v4668_v8, 0.5 }
 0x120   : > { %vm3264_vm15 = vmpackc.low %vm5687_vm11, %vm5673_vm7  ;;  %v2766_v41 = vsel %vm2740_vm9, %v2727_v43, %v2753_v20  ;;  %vm602_vm11 = vcmp.lt.f32.partialorder %v4668_v8, 8.5  ;;  %v2767_v11 = vsel %vm2741_vm2, %v2728_v53, %v2754_v1  ;;  %vm590_vm9 = vcmp.gt.f32.partialorder %v6094_v3, 0.5  ;;  %v6118_v53 = vld [vmem:[#allocation8_spill] sm:$0xff] }
 0x121   : > { %vm626_vm6 = vmand %vm613_vm3, %vm6086_vm10  ;;  %vm6091_vm3 = vcmp.lt.f32.partialorder %v4657_v31, 8.5  ;;  %vm6095_vm10 = vcmp.lt.f32.partialorder %v4659_v0, 8.5  ;;  %v6096_v31 = vmov 0  ;;  %v3268_v39 = vpack.c.bf16 %v2767_v11, %v2766_v41 }
 0x122   : > { %3887 = vmatmul.mubr.msk.bf16.gmra.mrb[32].mxu1 %vm3261_vm12, %v3262_v28  ;;  %vm588_vm12 = vcmp.gt.f32.partialorder %v4631_v24, 0.5  ;;  %v2709_v24 = vmul.f32 %v5538_v59, %v2689_v19  ;;  %vm615_vm2 = vmand %vm589_vm0, %vm602_vm11  ;;  %v2472_v8 = vrot.slane %v5102_v47, 7  ;;  %vm6102_vm11 = vcmp.gt.f32.partialorder %v6101_v14, 0.5 }
 0x123   : > { %3839 = vmatmul.mubr.bf16.vlgmr.msra.gmra.mrb[0].mxu0 %v5225_v17  ;;  %3890 = vmatprep.mubr.msk.bf16.mxu1 %vm6008_vm13, %v6041_v15  ;;  %v2690_v17 = vld [vmem:[%s5523_s22 + $0x48] sm:$0xff]  ;;  %vm614_vm4 = vmand %vm588_vm12, %vm601_vm8  ;;  %vm6087_vm12 = vcmp.gt.f32.partialorder %v4659_v0, 0.5  ;;  %v2475_v43 = vrot.slane %v5141_v18, 7 }
 0x124   : > { %3842 = vmatprep.mubr.msk.bf16.mxu0 %vm6008_vm13, %v6041_v15  ;;  %v2710_v7 = vmul.f32 %v5538_v59, %v2690_v17  ;;  %vm5703_vm8 = vmand %vm614_vm4, %vm6087_vm12  ;;  %v2729_v37 = vadd.f32 %v5553_v36, %v2709_v24  ;;  %v2473_v28 = vor.u32 %v2472_v8, %v5113_v54  ;;  %v2758_v54 = vmul.f32 0.01, %v2732_v25  ;;  %v6123_v17 = vld [vmem:[#allocation9_spill] sm:$0xff] }
 0x125   : > { %vm5715_vm4 = vmand %vm626_vm6, %vm6091_vm3  ;;  %v2476_v20 = vor.u32 %v2475_v43, %v5149_v12  ;;  %v6128_v12 = vld [vmem:[#allocation10_spill] sm:$0xff] }
 0x126   : > { %v6093_v34 = vsel %vm5715_vm4, 4294967295, %v6092_v34  ;;  %v2730_v58 = vadd.f32 %v5553_v36, %v2710_v7  ;;  %vm5730_vm6 = vmand %vm5703_vm8, %vm6095_vm10  ;;  %v2755_v38 = vmul.f32 0.01, %v2729_v37  ;;  %vm2742_vm7 = vcmp.ge.f32.partialorder %v2729_v37, 0.0 }
 0x127   : > { %v6097_v31 = vsel %vm5730_vm6, 4294967295, %v6096_v31  ;;  %vm3267_vm3 = vmpackc.low %vm5730_vm6, %vm5715_vm4  ;;  %vm6100_vm8 = vsmask.f32 256  ;;  %vm591_vm6 = vcmp.gt.f32.partialorder %v6107_v40, 0.5  ;;  %vm604_vm4 = vcmp.lt.f32.partialorder %v6107_v40, 8.5 }
 0x128   : > { %v2756_v0 = vmul.f32 0.01, %v2730_v58  ;;  %v2471_v2 = vsel %vm6100_vm8, %v6099_v50, %v2470_v44  ;;  %vm628_vm0 = vmand %vm615_vm2, %vm6102_vm11  ;;  %v2768_v9 = vsel %vm2742_vm7, %v2729_v37, %v2755_v38  ;;  %vm6108_vm2 = vcmp.lt.f32.partialorder %v6101_v14, 8.5 }
 0x129   : > { %vm5762_vm8 = vmand %vm628_vm0, %vm6108_vm2  ;;  %vm605_vm7 = vcmp.lt.f32.partialorder %v6111_v23, 8.5  ;;  %vm2744_vm2 = vcmp.ge.f32.partialorder %v2731_v6, 0.0  ;;  %v2474_v27 = vsel %vm6115_vm1, %v2469_v33, %v2473_v28  ;;  %vm593_vm1 = vcmp.gt.f32.partialorder %v6123_v17, 0.5 }
 0x12a   : > { %3891 = vmatmul.mubr.msk.bf16.gmra.mrb[36].mxu1 %vm3264_vm15, %v3265_v42  ;;  %vm603_vm15 = vcmp.lt.f32.partialorder %v6094_v3, 8.5  ;;  %vm617_vm0 = vmand %vm591_vm6, %vm604_vm4  ;;  %vm2745_vm4 = vcmp.ge.f32.partialorder %v2732_v25, 0.0  ;;  %vm6119_vm6 = vcmp.gt.f32.partialorder %v6118_v53, 0.5  ;;  %v2770_v19 = vsel %vm2744_vm2, %v2731_v6, %v2757_v48 }
 0x12b   : > { %3843 = vmatmul.mubr.bf16.gmra.mrb[4].mxu0 %v6090_v30  ;;  %3894 = vmatprep.mubr.msk.bf16.mxu1 %vm6008_vm13, %v6041_v15  ;;  %vm616_vm12 = vmand %vm590_vm9, %vm603_vm15  ;;  %vm2743_vm9 = vcmp.ge.f32.partialorder %v2730_v58, 0.0  ;;  %vm6104_vm15 = vcmp.gt.f32.partialorder %v6103_v26, 0.5  ;;  %v2771_v18 = vsel %vm2745_vm4, %v2732_v25, %v2758_v54  ;;  %v2733_v42 = vadd.f32 %v5553_v36, %v2713_v32 }
 0x12c   : > { %3846 = vmatprep.mubr.msk.bf16.mxu0 %vm6008_vm13, %v6041_v15  ;;  %vm5751_vm10 = vmand %vm616_vm12, %vm6104_vm15  ;;  %v2769_v10 = vsel %vm2743_vm9, %v2730_v58, %v2756_v0  ;;  %vm592_vm12 = vcmp.gt.f32.partialorder %v6111_v23, 0.5  ;;  %v3274_v1 = vpack.c.bf16 %v2771_v18, %v2770_v19  ;;  %v2478_v33 = vrot.slane %v5183_v29, 7 }
 0x12d   : > { %v3271_v52 = vpack.c.bf16 %v2769_v10, %v2768_v9  ;;  %vm618_vm9 = vmand %vm592_vm12, %vm605_vm7  ;;  %vm6120_vm7 = vcmp.lt.f32.partialorder %v6116_v57, 8.5  ;;  %v2759_v7 = vmul.f32 0.01, %v2733_v42  ;;  %vm2746_vm4 = vcmp.ge.f32.partialorder %v2733_v42, 0.0 }
 0x12e   : > { %vm631_vm12 = vmand %vm618_vm9, %vm6119_vm6  ;;  %vm6124_vm9 = vcmp.lt.f32.partialorder %v6118_v53, 8.5  ;;  %vm6129_vm6 = vcmp.gt.f32.partialorder %v6128_v12, 0.5  ;;  %v2479_v41 = vor.u32 %v2478_v33, %v5188_v62 }
 0x12f   : > { %v2772_v16 = vsel %vm2746_vm4, %v2733_v42, %v2759_v7  ;;  %vm6140_vm4 = vnez %v6097_v31 }
 0x130   : > { %v3277_v29 = vpack.c.bf16 %v2772_v16, %v2772_v16 }
 0x132   : > { %3895 = vmatmul.mubr.msk.bf16.gmra.mrb[40].mxu1 %vm3267_vm3, %v3268_v39  ;;  %vm6112_vm3 = vcmp.lt.f32.partialorder %v6103_v26, 8.5 }
 0x133   : > { %3847 = vmatmul.mubr.bf16.gmra.mrb[8].mxu0 %v2471_v2  ;;  %3898 = vmatprep.mubr.msk.bf16.mxu1 %vm6008_vm13, %v6041_v15  ;;  %vm5776_vm11 = vmand %vm5751_vm10, %vm6112_vm3  ;;  %vm6117_vm10 = vcmp.gt.f32.partialorder %v6116_v57, 0.5 }
 0x134   : > { %3850 = vmatprep.mubr.msk.bf16.mxu0 %vm6008_vm13, %v6041_v15  ;;  %v6114_v13 = vsel %vm5776_vm11, 4294967295, %v6113_v13  ;;  %vm3270_vm15 = vmpackc.low %vm5776_vm11, %vm5762_vm8 }
 0x135   : > { %vm630_vm3 = vmand %vm617_vm0, %vm6117_vm10  ;;  %vm606_vm0 = vcmp.lt.f32.partialorder %v6123_v17, 8.5 }
 0x136   : > { %vm5796_vm11 = vmand %vm630_vm3, %vm6120_vm7  ;;  %vm6127_vm3 = vsmask.f32 256 }
 0x137   : > { %vm619_vm2 = vmand %vm593_vm1, %vm606_vm0  ;;  %v2477_v36 = vsel %vm6127_vm3, %v2472_v8, %v2476_v20 }
 0x138   : > { %vm632_vm7 = vmand %vm619_vm2, %vm6129_vm6  ;;  %vm6141_vm6 = vnez %v6114_v13 }
 0x139   : > { %vm6134_vm2 = vmmov %vm6127_vm3 }
 0x13a   : > { %3899 = vmatmul.mubr.msk.bf16.gmra.mrb[44].mxu1 %vm3270_vm15, %v3271_v52  ;;  %vm5808_vm15 = vmand %vm631_vm12, %vm6124_vm9  ;;  %vm6130_vm12 = vcmp.lt.f32.partialorder %v6128_v12, 8.5  ;;  %v2485_v62 = vsel %vm6134_vm2, %v2478_v33, %v5413_v22 }
 0x13b   : > { %3851 = vmatmul.mubr.bf16.gmra.mrb[12].mxu0 %v2474_v27  ;;  %3902 = vmatprep.mubr.msk.bf16.mxu1 %vm6008_vm13, %v6041_v15  ;;  %vm3273_vm10 = vmpackc.low %vm5808_vm15, %vm5796_vm11 }
 0x13c   : > { %3854 = vmatprep.mubr.msk.bf16.mxu0 %vm6008_vm13, %v6041_v15  ;;  %vm5827_vm1 = vmand %vm632_vm7, %vm6130_vm12 }
 0x13d   : > { %vm3276_vm0 = vmpackc.low %vm5827_vm1, %vm5827_vm1 }
 0x13e   : > { %vm6133_vm9 = vmmov %vm6127_vm3  ;;  %vm6139_vm3 = vnez %v6093_v34 }
 0x13f   : > { %v2480_v30 = vsel %vm6133_vm9, %v2475_v43, %v2479_v41 }
 0x142   : > { %3903 = vmatmul.mubr.msk.bf16.gmra.mrb[48].mxu1 %vm3273_vm10, %v3274_v1  ;;  %vm6138_vm10 = vnez %v6085_v46 }
 0x143   : > { %3855 = vmatmul.mubr.bf16.gmra.mrb[16].mxu0 %v2477_v36  ;;  %3906 = vmatprep.mubr.msk.bf16.mxu1 %vm6008_vm13, %v6041_v15 }
 0x144   : > { %3858 = vmatprep.mubr.msk.bf16.mxu0 %vm6008_vm13, %v6041_v15 }
 0x14a   : > { %3907 = vmatmul.mubr.msk.bf16.gmra.mrb[52].mxu1 %vm3276_vm0, %v3277_v29 }
 0x14b   : > { %3859 = vmatmul.mubr.bf16.gmra.mrb[20].mxu0 %v2480_v30 }
 0x14c   : > { %3862 = vmatprep.mubr.msk.bf16.mxu0 %vm6008_vm13, %v6041_v15  ;;  %vm6135_vm13 = vnez %v6072_v61 }
 0x153   : > { %3863 = vmatmul.mubr.bf16.gmra.mrb[24].mxu0 %v2485_v62 }
 0x1b5   : > { %v1592_v11 = vpop.f32.mrb[0].mxu1 }
 0x1b6   : > { %v3620_v3 = vpop.f32.mrb[1].mxu1 }
 0x1b7   : > { %v1595_v58 = vpop.f32.mrb[2].mxu1 }
 0x1b8   : > { %v3621_v45 = vpop.f32.mrb[3].mxu1 }
 0x1bd   : > { %v1600_v44 = vpop.f32.mrb[4].mxu1 }
 0x1be   : > { %v3624_v4 = vpop.f32.mrb[5].mxu1 }
 0x1bf   : > { %v1603_v39 = vpop.f32.mrb[6].mxu1 }
 0x1c0   : > { %v3625_v38 = vpop.f32.mrb[7].mxu1 }
 0x1c5   : > { %v1608_v5 = vpop.f32.mrb[8].mxu1 }
 0x1c6   : > { %v3628_v0 = vpop.f32.mrb[9].mxu1 }
 0x1c7   : > { %v5839_v21 = vpop.f32.mrb[10].mxu1 }
 0x1c8   : > { %v3629_v60 = vpop.f32.mrb[11].mxu1 }
 0x1cd   : > { %v5841_v50 = vpop.f32.mrb[12].mxu1 }
 0x1ce   : > { %v3632_v15 = vpop.f32.mrb[13].mxu1 }
 0x1cf   : > { %v5843_v2 = vpop.f32.mrb[14].mxu1 }
 0x1d0   : > { %v3633_v22 = vpop.f32.mrb[15].mxu1 }
 0x1d5   : > { %v5845_v8 = vpop.f32.mrb[16].mxu1 }
 0x1d6   : > { %v3636_v14 = vpop.f32.mrb[17].mxu1 }
 0x1d7   : > { %v5847_v26 = vpop.f32.mrb[18].mxu1 }
 0x1d8   : > { %v3637_v35 = vpop.f32.mrb[19].mxu1 }
 0x1dd   : > { %v5849_v9 = vpop.f32.mrb[20].mxu1 }
 0x1de   : > { %v3640_v40 = vpop.f32.mrb[21].mxu1 }
 0x1df   : > { %v5851_v6 = vpop.f32.mrb[22].mxu1 }
 0x1e0   : > { %v3641_v10 = vpop.f32.mrb[23].mxu1 }
 0x1e5   : > { %v5853_v23 = vpop.f32.mrb[24].mxu1 }
 0x1e6   : > { %v3644_v25 = vpop.f32.mrb[25].mxu1 }
 0x1e7   : > { %v1643_v28 = vpop.f32.mrb[26].mxu1 }
 0x1e8   : > { %v3645_v55 = vpop.f32.mrb[27].mxu1 }
 0x1ed   : > { %v2891_v52 = vpop.f32.mrb[28].mxu1 }
 0x1ee   : > { %v3884_v48 = vpop.f32.mrb[29].mxu1 }
 0x1ef   : > { %v2894_v54 = vpop.f32.mrb[30].mxu1 }
 0x1f0   : > { %v3885_v32 = vpop.f32.mrb[31].mxu1 }
 0x1f5   : > { %v2899_v27 = vpop.f32.mrb[32].mxu1 }
 0x1f6   : > { %v2575_v43 = vpop.f32.mrb[0].mxu0  ;;  %v3888_v57 = vpop.f32.mrb[33].mxu1 }
 0x1f7   : > { %v3910_v53 = vadd.f32 %v2575_v43, %v1592_v11  ;;  %v3840_v19 = vpop.f32.mrb[1].mxu0  ;;  %v2902_v18 = vpop.f32.mrb[34].mxu1 }
 0x1f8   : > { %v2578_v17 = vpop.f32.mrb[2].mxu0  ;;  %v3889_v42 = vpop.f32.mrb[35].mxu1 }
 0x1f9   : > { %v2668_v20 = vsel %vm5586_vm5, %v3910_v53, 0.0  ;;  %v3911_v1 = vadd.f32 %v2578_v17, %v1595_v58  ;;  %v3841_v7 = vpop.f32.mrb[3].mxu0  ;;  %vm6136_vm5 = vnez %v6075_v51 }
 0x1fa   : > { %v2945_v36 = vadd.f32 %v2891_v52, %v2668_v20 }
 0x1fb   : > { %v2669_v33 = vsel %vm5601_vm14, %v3911_v1, 0.0  ;;  %vm6137_vm14 = vnez %v6082_v56 }
 0x1fc   : > { %2958 = vst [vmem:[%s5860_s13] sm:$0xff] %v2945_v36  ;;  %v2946_v12 = vadd.f32 %v2894_v54, %v2669_v33 }
 0x1fd   : > { %v2907_v16 = vpop.f32.mrb[36].mxu1 }
 0x1fe   : > { %2959 = vst [vmem:[%s5860_s13 + $0x8] sm:$0xff] %v2946_v12  ;;  %v2583_v41 = vpop.f32.mrb[4].mxu0  ;;  %v3892_v29 = vpop.f32.mrb[37].mxu1 }
 0x1ff   : > { %v3912_v30 = vadd.f32 %v2583_v41, %v1600_v44  ;;  %v3844_v62 = vpop.f32.mrb[5].mxu0  ;;  %v2910_v63 = vpop.f32.mrb[38].mxu1 }
 0x200   : > { %v2586_v11 = vpop.f32.mrb[6].mxu0  ;;  %v3893_v3 = vpop.f32.mrb[39].mxu1 }
 0x201   : > { %v2670_v58 = vsel %vm6135_vm13, %v3912_v30, 0.0  ;;  %v3913_v45 = vadd.f32 %v2586_v11, %v1603_v39  ;;  %v3845_v4 = vpop.f32.mrb[7].mxu0 }
 0x202   : > { %v2947_v49 = vadd.f32 %v2899_v27, %v2670_v58 }
 0x203   : > { %v2671_v38 = vsel %vm6136_vm5, %v3913_v45, 0.0 }
 0x204   : > { %2960 = vst [vmem:[%s5860_s13 + $0x10] sm:$0xff] %v2947_v49  ;;  %v2948_v0 = vadd.f32 %v2902_v18, %v2671_v38 }
 0x205   : > { %v2915_v60 = vpop.f32.mrb[40].mxu1 }
 0x206   : > { %2961 = vst [vmem:[%s5860_s13 + $0x18] sm:$0xff] %v2948_v0  ;;  %v2591_v44 = vpop.f32.mrb[8].mxu0  ;;  %v3896_v15 = vpop.f32.mrb[41].mxu1 }
 0x207   : > { %v3914_v22 = vadd.f32 %v2591_v44, %v1608_v5  ;;  %v3848_v14 = vpop.f32.mrb[9].mxu0  ;;  %v2918_v35 = vpop.f32.mrb[42].mxu1 }
 0x208   : > { %v2594_v40 = vpop.f32.mrb[10].mxu0  ;;  %v3897_v61 = vpop.f32.mrb[43].mxu1 }
 0x209   : > { %v2672_v39 = vsel %vm6137_vm14, %v3914_v22, 0.0  ;;  %v3915_v10 = vadd.f32 %v2594_v40, %v5839_v21  ;;  %v3849_v51 = vpop.f32.mrb[11].mxu0 }
 0x20a   : > { %v2949_v25 = vadd.f32 %v2907_v16, %v2672_v39 }
 0x20b   : > { %v2673_v28 = vsel %vm6138_vm10, %v3915_v10, 0.0 }
 0x20c   : > { %2962 = vst [vmem:[%s5860_s13 + $0x20] sm:$0xff] %v2949_v25  ;;  %v2950_v55 = vadd.f32 %v2910_v63, %v2673_v28 }
 0x20d   : > { %v2923_v52 = vpop.f32.mrb[44].mxu1 }
 0x20e   : > { %2963 = vst [vmem:[%s5860_s13 + $0x28] sm:$0xff] %v2950_v55  ;;  %v2599_v5 = vpop.f32.mrb[12].mxu0  ;;  %v3900_v48 = vpop.f32.mrb[45].mxu1 }
 0x20f   : > { %v3916_v54 = vadd.f32 %v2599_v5, %v5841_v50  ;;  %v3852_v32 = vpop.f32.mrb[13].mxu0  ;;  %v2926_v56 = vpop.f32.mrb[46].mxu1 }
 0x210   : > { %v2602_v27 = vpop.f32.mrb[14].mxu0  ;;  %v3901_v43 = vpop.f32.mrb[47].mxu1 }
 0x211   : > { %v2674_v21 = vsel %vm6139_vm3, %v3916_v54, 0.0  ;;  %v3917_v46 = vadd.f32 %v2602_v27, %v5843_v2  ;;  %v3853_v57 = vpop.f32.mrb[15].mxu0 }
 0x212   : > { %v2951_v53 = vadd.f32 %v2915_v60, %v2674_v21 }
 0x213   : > { %v2675_v19 = vsel %vm6140_vm4, %v3917_v46, 0.0 }
 0x214   : > { %2964 = vst [vmem:[%s5860_s13 + $0x30] sm:$0xff] %v2951_v53  ;;  %v2952_v18 = vadd.f32 %v2918_v35, %v2675_v19 }
 0x215   : > { %v2931_v17 = vpop.f32.mrb[48].mxu1 }
 0x216   : > { %2965 = vst [vmem:[%s5860_s13 + $0x38] sm:$0xff] %v2952_v18  ;;  %v2607_v50 = vpop.f32.mrb[16].mxu0  ;;  %v3904_v42 = vpop.f32.mrb[49].mxu1 }
 0x217   : > { %v3918_v20 = vadd.f32 %v2607_v50, %v5845_v8  ;;  %v3856_v1 = vpop.f32.mrb[17].mxu0  ;;  %v2934_v34 = vpop.f32.mrb[50].mxu1 }
 0x218   : > { %v2610_v7 = vpop.f32.mrb[18].mxu0  ;;  %v3905_v36 = vpop.f32.mrb[51].mxu1 }
 0x219   : > { %v2676_v2 = vsel %vm5762_vm8, %v3918_v20, 0.0  ;;  %v3919_v31 = vadd.f32 %v2610_v7, %v5847_v26  ;;  %v3857_v33 = vpop.f32.mrb[19].mxu0 }
 0x21a   : > { %v2953_v12 = vadd.f32 %v2923_v52, %v2676_v2 }
 0x21b   : > { %v2677_v16 = vsel %vm6141_vm6, %v3919_v31, 0.0 }
 0x21c   : > { %2966 = vst [vmem:[%s5860_s13 + $0x40] sm:$0xff] %v2953_v12  ;;  %v2954_v41 = vadd.f32 %v2926_v56, %v2677_v16 }
 0x21d   : > { %v2939_v29 = vpop.f32.mrb[52].mxu1 }
 0x21e   : > { %2967 = vst [vmem:[%s5860_s13 + $0x48] sm:$0xff] %v2954_v41  ;;  %v2615_v8 = vpop.f32.mrb[20].mxu0  ;;  %v3908_v30 = vpop.f32.mrb[53].mxu1 }
 0x21f   : > { %v3920_v62 = vadd.f32 %v2615_v8, %v5849_v9  ;;  %v3860_v63 = vpop.f32.mrb[21].mxu0  ;;  %v2942_v47 = vpop.f32.mrb[54].mxu1 }
 0x220   : > { %v2618_v11 = vpop.f32.mrb[22].mxu0  ;;  %v3909_v3 = vpop.f32.mrb[55].mxu1 }
 0x221   : > { %v2678_v26 = vsel %vm5796_vm11, %v3920_v62, 0.0  ;;  %v3921_v13 = vadd.f32 %v2618_v11, %v5851_v6  ;;  %v3861_v58 = vpop.f32.mrb[23].mxu0 }
 0x222   : > { %v2955_v45 = vadd.f32 %v2931_v17, %v2678_v26 }
 0x223   : > { %v2679_v4 = vsel %vm5808_vm15, %v3921_v13, 0.0 }
 0x224   : > { %2968 = vst [vmem:[%s5860_s13 + $0x50] sm:$0xff] %v2955_v45  ;;  %v2956_v49 = vadd.f32 %v2934_v34, %v2679_v4 }
 0x226   : > { %2969 = vst [vmem:[%s5860_s13 + $0x58] sm:$0xff] %v2956_v49  ;;  %v2623_v38 = vpop.f32.mrb[24].mxu0 }
 0x227   : > { %v3922_v9 = vadd.f32 %v2623_v38, %v5853_v23  ;;  %v3864_v0 = vpop.f32.mrb[25].mxu0 }
 0x228   : > { %v2626_v60 = vpop.f32.mrb[26].mxu0 }
 0x229   : > { %v2680_v59 = vsel %vm5827_vm1, %v3922_v9, 0.0  ;;  %v3865_v44 = vpop.f32.mrb[27].mxu0 }
 0x22a   : > { %v2957_v15 = vadd.f32 %v2939_v29, %v2680_v59 }
 0x22c   : > { %2970 = vst [vmem:[%s5860_s13 + $0x60] sm:$0xf] %v2957_v15 }
 0x22d PF: > { %s18_s27 = sadd.s32 1, %s4219_s27  }
 0x22e   : > { %p15_p4 = scmp.ge.s32.totalorder %s18_s27, 4  }
 0x230   :  { %17 = sbr.rel (!%p15_p4) target bundleno = 1 (0x1), region = 93 }

</bundles_post_ra>
